<compile_context>
chip_gen: v7x
topology: tpu7x:2x2x1
jax: 0.10.0
libtpu: 0.0.40
codegen_flags: <defaults>
</compile_context>

<pallas_src>
import functools

import jax
import jax.numpy as jnp
from jax.experimental import pallas as pl
from jax.experimental.pallas import tpu as pltpu

LANE = 128  # TPU lane width: channel dim is padded to a multiple of this.


def _round_up(x, m):
    return (x + m - 1) // m * m


def _pick_row_block(h, wp, max_flat_rows=128):
    """Largest divisor of H whose flat-row chunk (rows*Wp) keeps the f32 accumulator in vregs.

    Falls back to RB=1 (CHUNK=Wp) when Wp > max_flat_rows (e.g. W=224); the accumulator is
    then Wp x Cp f32 — still fine for Wp<=256 but watch vreg pressure beyond that.
    """
    rb = 1
    for cand in range(1, h + 1):
        if h % cand == 0 and cand * wp <= max_flat_rows:
            rb = cand
    return rb


def _basic_block_kernel(x_ref, w1_ref, w2_ref, b1_ref, b2_ref, o_ref, mid_ref,
                        *, H, W, Wp, Cp, RB):
    """Fused BasicBlock: relu(bn2(conv2(relu(bn1(conv1(x))))) + x), one image per grid step.

    Layout: flat (rows*Wp, Cp) with channels padded to Cp (lane-dense) and width padded to
    Wp (zero columns [W, Wp) double as the left halo of the next row).  x_ref carries the
    image at flat rows [2*Wp, (H+2)*Wp) with zero halo rows around it, so each 3x3 tap is a
    static flat-band slice -> a clean (CHUNK, Cp) x (Cp, Cp) bf16 MXU matmul with f32
    accumulation.  conv1's output never leaves VMEM (mid_ref) and feeds conv2 directly.
    """
    CHUNK = RB * Wp
    nchunk = H // RB
    # tap (kh, kw) of output flat index o reads input flat index o + (kh+1)*Wp + (kw-1)
    TAPS = [(kh + 1) * Wp + (kw - 1) for kh in range(3) for kw in range(3)]

    # column-within-row index: used to keep the padded columns [W, Wp) zeroed
    col = jax.lax.broadcasted_iota(jnp.int32, (CHUNK, 1), 0) % Wp
    valid_col = col < W

    # hoisted bias loads (BN scale already folded into the weights)
    b1 = b1_ref[...]                       # (1, Cp) f32
    b2 = b2_ref[...]                       # (1, Cp) f32

    # zero mid halo rows (interior is fully rewritten below).  Done every step: with a
    # "parallel" batch axis split across TensorCores, pl.when(program_id==0) would only
    # run on one core.  Cost is 4*Wp rows of bf16 stores — negligible.
    mid_ref[0:2 * Wp, :] = jnp.zeros((2 * Wp, Cp), dtype=mid_ref.dtype)
    mid_ref[(H + 2) * Wp:(H + 4) * Wp, :] = jnp.zeros((2 * Wp, Cp), dtype=mid_ref.dtype)

    def conv3x3(src, w_ref, epilogue):
        # 9 taps = 9 static flat row offsets; chunk loop kept static (small here).
        for c in range(nchunk):
            base = c * CHUNK
            acc = jnp.dot(src(base + TAPS[0]), w_ref[0],
                          preferred_element_type=jnp.float32)
            for t in range(1, 9):
                acc = acc + jnp.dot(src(base + TAPS[t]), w_ref[t],
                                    preferred_element_type=jnp.float32)
            epilogue(c, acc)               # acc: (CHUNK, Cp) f32

    # ---- conv1 (+ folded bn1) + relu -> mid (kept in VMEM as conv2's padded input) ----
    def src1(s):
        return x_ref[s: s + CHUNK, :]

    def epi1(c, acc):
        out = jnp.maximum(acc + b1, 0.0)
        out = jnp.where(valid_col, out, 0.0)            # keep pad columns zero (halo wrap)
        mid_ref[2 * Wp + c * CHUNK: 2 * Wp + (c + 1) * CHUNK, :] = out.astype(mid_ref.dtype)

    conv3x3(src1, w1_ref, epi1)

    # ---- conv2 (+ folded bn2) + identity residual + relu -> padded bf16 output ----
    def src2(s):
        return mid_ref[s: s + CHUNK, :]

    def epi2(c, acc):
        # residual: aligned flat band of x (output col p == input col p in this convention)
        res = x_ref[2 * Wp + c * CHUNK: 2 * Wp + (c + 1) * CHUNK, :].astype(jnp.float32)
        out = jnp.maximum(acc + b2 + res, 0.0)
        out = jnp.where(valid_col, out, 0.0)            # keep output cleanly padded
        o_ref[c * CHUNK: (c + 1) * CHUNK, :] = out.astype(o_ref.dtype)

    conv3x3(src2, w2_ref, epi2)


def fold_bn(gamma, beta, mean, var, eps=1e-5):
    scale = gamma / jnp.sqrt(var + eps)
    bias = beta - mean * scale
    return scale, bias


def basic_block_forward(x_nchw, params):
    """BasicBlock.forward (stride=1, downsample=None). x_nchw: (N, C, H, W) f32."""
    N, C, H, W = x_nchw.shape
    Cp = _round_up(C, LANE)
    Wp = _round_up(W + 1, 16)        # >=1 zero col on the right (serves as left halo wrap)
    RB = _pick_row_block(H, Wp)

    s1, b1 = fold_bn(params["bn1_gamma"], params["bn1_beta"],
                     params["bn1_mean"], params["bn1_var"])
    s2, b2 = fold_bn(params["bn2_gamma"], params["bn2_beta"],
                     params["bn2_mean"], params["bn2_var"])

    def prep_w(w_hwio, scale):       # (3,3,C,C) HWIO, BN scale folded -> (9, Cp, Cp) bf16
        w = w_hwio * scale           # scale is per output channel (last axis)
        w = jnp.pad(w, ((0, 0), (0, 0), (0, Cp - C), (0, Cp - C)))
        return w.reshape(9, Cp, Cp).astype(jnp.bfloat16)

    def pad_lane(v):                 # (C,) -> (1, Cp) f32, zeros in padded channels
        return jnp.pad(v, (0, Cp - C)).reshape(1, Cp).astype(jnp.float32)

    w1 = prep_w(params["w1"], s1)
    w2 = prep_w(params["w2"], s2)
    b1p, b2p = pad_lane(b1), pad_lane(b2)

    # Single layout-conversion op at the block boundary: NCHW -> NHWC, bf16 cast, halo rows
    # (2 top / 2 bottom), width pad to Wp and channel pad to Cp, then flatten (H+4, Wp) into
    # one flat row axis (free reshape).  In an NHWC/bf16-resident network this disappears.
    x = jnp.transpose(x_nchw, (0, 2, 3, 1)).astype(jnp.bfloat16)
    x = jnp.pad(x, ((0, 0), (2, 2), (0, Wp - W), (0, Cp - C)))
    x = x.reshape(N, (H + 4) * Wp, Cp)

    kernel = functools.partial(_basic_block_kernel, H=H, W=W, Wp=Wp, Cp=Cp, RB=RB)

    # Cost / VMEM accounting (per full call).
    x_block = (H + 4) * Wp * Cp * 2
    o_block = H * Wp * Cp * 2
    w_bytes = 2 * 9 * Cp * Cp * 2
    bias_bytes = 2 * Cp * 4
    mid_bytes = (H + 4) * Wp * Cp * 2
    est_vmem = 2 * (x_block + o_block + w_bytes + bias_bytes) + mid_bytes  # double-buffered
    vmem_limit = int(min(64 << 20, max(2 * est_vmem, 16 << 20)))
    flops = N * 2 * (2 * 9 * H * W * Cp * Cp)          # two 3x3 convs, MACs*2
    bytes_accessed = N * (x_block + o_block) + w_bytes + bias_bytes

    out = pl.pallas_call(
        kernel,
        out_shape=jax.ShapeDtypeStruct((N, H * Wp, Cp), jnp.bfloat16),
        grid=(N,),
        in_specs=[
            pl.BlockSpec((None, (H + 4) * Wp, Cp), lambda n: (n, 0, 0)),  # x (flat, padded)
            pl.BlockSpec((9, Cp, Cp), lambda n: (0, 0, 0)),               # w1 (bn1 folded)
            pl.BlockSpec((9, Cp, Cp), lambda n: (0, 0, 0)),               # w2 (bn2 folded)
            pl.BlockSpec((1, Cp), lambda n: (0, 0)),                      # bn1 bias
            pl.BlockSpec((1, Cp), lambda n: (0, 0)),                      # bn2 bias
        ],
        out_specs=pl.BlockSpec((None, H * Wp, Cp), lambda n: (n, 0, 0)),
        scratch_shapes=[
            pltpu.VMEM(((H + 4) * Wp, Cp), jnp.bfloat16),   # conv1 output / conv2 input
        ],
        compiler_params=pltpu.CompilerParams(
            dimension_semantics=("parallel",),
            vmem_limit_bytes=vmem_limit),
        cost_estimate=pl.CostEstimate(flops=flops, transcendentals=0,
                                      bytes_accessed=bytes_accessed),
    )(x, w1, w2, b1p, b2p)

    # Demo/boundary-only conversion back to the module's NCHW f32 contract.  When chaining
    # blocks, keep `out` in its padded NHWC bf16 form and feed it to the next block directly.
    out = out.reshape(N, H, Wp, Cp)[:, :, :W, :C].astype(jnp.float32)
    return jnp.transpose(out, (0, 3, 1, 2))


def make_params(key, inplanes, planes):
    ks = jax.random.split(key, 8)
    # PyTorch conv weight is (out, in, kh, kw); store as HWIO for the kernel.
    w1 = jax.random.normal(ks[0], (planes, inplanes, 3, 3), jnp.float32) * 0.1
    w2 = jax.random.normal(ks[1], (planes, planes, 3, 3), jnp.float32) * 0.1
    return {
        "w1": jnp.transpose(w1, (2, 3, 1, 0)),
        "w2": jnp.transpose(w2, (2, 3, 1, 0)),
        "bn1_gamma": 1.0 + 0.1 * jax.random.normal(ks[2], (planes,), jnp.float32),
        "bn1_beta": 0.1 * jax.random.normal(ks[3], (planes,), jnp.float32),
        "bn1_mean": 0.05 * jax.random.normal(ks[4], (planes,), jnp.float32),
        "bn1_var": jnp.abs(1.0 + 0.1 * jax.random.normal(ks[5], (planes,), jnp.float32)),
        "bn2_gamma": 1.0 + 0.1 * jax.random.normal(ks[6], (planes,), jnp.float32),
        "bn2_beta": 0.1 * jax.random.normal(ks[7], (planes,), jnp.float32),
        "bn2_mean": jnp.zeros((planes,), jnp.float32),
        "bn2_var": jnp.ones((planes,), jnp.float32),
    }


def reference_forward(x_nchw, params):
    """Pure-JAX f32 reference (eval-mode BN, identity residual)."""
    x = jnp.transpose(x_nchw, (0, 2, 3, 1))

    def conv(inp, w):
        return jax.lax.conv_general_dilated(
            inp, w, window_strides=(1, 1), padding=((1, 1), (1, 1)),
            dimension_numbers=("NHWC", "HWIO", "NHWC"))

    s1, b1 = fold_bn(params["bn1_gamma"], params["bn1_beta"],
                     params["bn1_mean"], params["bn1_var"])
    s2, b2 = fold_bn(params["bn2_gamma"], params["bn2_beta"],
                     params["bn2_mean"], params["bn2_var"])
    out = jnp.maximum(conv(x, params["w1"]) * s1 + b1, 0.0)
    out = conv(out, params["w2"]) * s2 + b2 + x
    out = jnp.maximum(out, 0.0)
    return jnp.transpose(out, (0, 3, 1, 2))


if __name__ == "__main__":
    N, C, H, W = 2, 8, 16, 16           # inplanes == planes (identity residual, stride=1)
    key = jax.random.PRNGKey(0)
    kx, kp = jax.random.split(key)
    x = jax.random.normal(kx, (N, C, H, W), jnp.float32)
    params = make_params(kp, inplanes=C, planes=C)

    fwd = jax.jit(basic_block_forward)
    out = jax.block_until_ready(fwd(x, params))
    ref = jax.block_until_ready(reference_forward(x, params))

    assert out.shape == (N, C, H, W)
    # bf16 matmul operands / bf16 output with f32 accumulation -> loosened tolerance.
    assert jnp.allclose(out, ref, atol=5e-2, rtol=5e-2), "mismatch vs reference"
    print("KERNEL_OK")
</pallas_src>

<mosaic_0001>
module attributes {stable_mosaic.version = 11 : i64} {
  func.func @_basic_block_kernel(%arg0: i32, %arg1: memref<1x640x128xbf16, #tpu.memory_space<vmem>>, %arg2: memref<9x128x128xbf16, #tpu.memory_space<vmem>>, %arg3: memref<9x128x128xbf16, #tpu.memory_space<vmem>>, %arg4: memref<1x128xf32, #tpu.memory_space<vmem>>, %arg5: memref<1x128xf32, #tpu.memory_space<vmem>>, %arg6: memref<1x512x128xbf16, #tpu.memory_space<vmem>>, %arg7: memref<640x128xbf16, #tpu.memory_space<vmem>>) attributes {dimension_semantics = [#tpu.dimension_semantics<parallel>], iteration_bounds = array<i64: 2>, scalar_prefetch = 0 : i64, scratch_operands = 1 : i64, tpu.core_type = #tpu.core_type<tc>, window_params = [{transform_indices = @transform_0, window_bounds = array<i64: 1, 640, 128>}, {pipeline_mode = #tpu.pipeline_mode<synchronous>, transform_indices = @transform_1, window_bounds = array<i64: 9, 128, 128>}, {pipeline_mode = #tpu.pipeline_mode<synchronous>, transform_indices = @transform_2, window_bounds = array<i64: 9, 128, 128>}, {pipeline_mode = #tpu.pipeline_mode<synchronous>, transform_indices = @transform_3, window_bounds = array<i64: 1, 128>}, {pipeline_mode = #tpu.pipeline_mode<synchronous>, transform_indices = @transform_4, window_bounds = array<i64: 1, 128>}, {transform_indices = @transform_5, window_bounds = array<i64: 1, 512, 128>}]} {
    %0 = tpu.iota {dimensions = array<i32: 0>} : vector<128x1xi32>
    %c32_i32 = arith.constant 32 : i32
    %c0_i32 = arith.constant 0 : i32
    %1 = arith.cmpi eq, %c32_i32, %c0_i32 : i32
    %c1_i32 = arith.constant 1 : i32
    %2 = arith.select %1, %c1_i32, %c32_i32 : i32
    %3 = vector.broadcast %2 : i32 to vector<128x1xi32>
    %4 = arith.remsi %0, %3 : vector<128x1xi32>
    %c0_i32_0 = arith.constant 0 : i32
    %5 = vector.broadcast %c0_i32_0 : i32 to vector<128x1xi32>
    %6 = arith.cmpi ne, %4, %5 : vector<128x1xi32>
    %c0_i32_1 = arith.constant 0 : i32
    %7 = vector.broadcast %c0_i32_1 : i32 to vector<128x1xi32>
    %8 = arith.cmpi slt, %4, %7 : vector<128x1xi32>
    %c0_i32_2 = arith.constant 0 : i32
    %9 = arith.cmpi slt, %2, %c0_i32_2 : i32
    %10 = vector.broadcast %9 : i1 to vector<128x1xi1>
    %11 = vector.broadcast %10 : vector<128x1xi1> to vector<128x1xi1>
    %12 = arith.xori %8, %11 : vector<128x1xi1>
    %13 = arith.andi %12, %6 : vector<128x1xi1>
    %14 = vector.broadcast %2 : i32 to vector<128x1xi32>
    %15 = arith.addi %4, %14 : vector<128x1xi32>
    %16 = arith.select %13, %15, %4 : vector<128x1xi1>, vector<128x1xi32>
    %c16_i32 = arith.constant 16 : i32
    %17 = vector.broadcast %c16_i32 : i32 to vector<128x1xi32>
    %18 = arith.cmpi slt, %16, %17 : vector<128x1xi32>
    %c0 = arith.constant 0 : index
    %c0_3 = arith.constant 0 : index
    %19 = vector.load %arg4[%c0, %c0_3] : memref<1x128xf32, #tpu.memory_space<vmem>>, vector<1x128xf32>
    %c0_4 = arith.constant 0 : index
    %c0_5 = arith.constant 0 : index
    %20 = vector.load %arg5[%c0_4, %c0_5] : memref<1x128xf32, #tpu.memory_space<vmem>>, vector<1x128xf32>
    %cst = arith.constant 0.000000e+00 : bf16
    %21 = vector.broadcast %cst : bf16 to vector<64x128xbf16>
    %c0_6 = arith.constant 0 : index
    %c0_7 = arith.constant 0 : index
    %22 = vector.load %arg7[%c0_6, %c0_7] : memref<640x128xbf16, #tpu.memory_space<vmem>>, vector<64x128xbf16>
    tpu.vector_store %arg7[%c0_6, %c0_7], %21 {strides = array<i32>} : memref<640x128xbf16, #tpu.memory_space<vmem>>, vector<64x128xbf16>,
    %cst_8 = arith.constant 0.000000e+00 : bf16
    %23 = vector.broadcast %cst_8 : bf16 to vector<64x128xbf16>
    %c576 = arith.constant 576 : index
    %c0_9 = arith.constant 0 : index
    %24 = vector.load %arg7[%c576, %c0_9] : memref<640x128xbf16, #tpu.memory_space<vmem>>, vector<64x128xbf16>
    tpu.vector_store %arg7[%c576, %c0_9], %23 {strides = array<i32>} : memref<640x128xbf16, #tpu.memory_space<vmem>>, vector<64x128xbf16>,
    %c0_10 = arith.constant 0 : index
    %c31 = arith.constant 31 : index
    %c0_11 = arith.constant 0 : index
    %25 = vector.load %arg1[%c0_10, %c31, %c0_11] : memref<1x640x128xbf16, #tpu.memory_space<vmem>>, vector<1x128x128xbf16>
    %26 = vector.shape_cast %25 : vector<1x128x128xbf16> to vector<128x128xbf16>
    %c0_12 = arith.constant 0 : index
    %c0_13 = arith.constant 0 : index
    %c0_14 = arith.constant 0 : index
    %27 = vector.load %arg2[%c0_12, %c0_13, %c0_14] : memref<9x128x128xbf16, #tpu.memory_space<vmem>>, vector<1x128x128xbf16>
    %28 = vector.shape_cast %27 : vector<1x128x128xbf16> to vector<128x128xbf16>
    %cst_15 = arith.constant dense<0.000000e+00> : vector<128x128xf32>
    %29 = tpu.matmul %26, %28, %cst_15 {dimension_numbers = #tpu.dot_dimension_numbers<[1], [0], [0], [1], [0, 0, 1, 1], [], []>} : vector<128x128xbf16>, vector<128x128xbf16>, vector<128x128xf32> -> vector<128x128xf32>
    %c0_16 = arith.constant 0 : index
    %c32 = arith.constant 32 : index
    %c0_17 = arith.constant 0 : index
    %30 = vector.load %arg1[%c0_16, %c32, %c0_17] : memref<1x640x128xbf16, #tpu.memory_space<vmem>>, vector<1x128x128xbf16>
    %31 = vector.shape_cast %30 : vector<1x128x128xbf16> to vector<128x128xbf16>
    %c1 = arith.constant 1 : index
    %c0_18 = arith.constant 0 : index
    %c0_19 = arith.constant 0 : index
    %32 = vector.load %arg2[%c1, %c0_18, %c0_19] : memref<9x128x128xbf16, #tpu.memory_space<vmem>>, vector<1x128x128xbf16>
    %33 = vector.shape_cast %32 : vector<1x128x128xbf16> to vector<128x128xbf16>
    %cst_20 = arith.constant dense<0.000000e+00> : vector<128x128xf32>
    %34 = tpu.matmul %31, %33, %cst_20 {dimension_numbers = #tpu.dot_dimension_numbers<[1], [0], [0], [1], [0, 0, 1, 1], [], []>} : vector<128x128xbf16>, vector<128x128xbf16>, vector<128x128xf32> -> vector<128x128xf32>
    %35 = arith.addf %29, %34 : vector<128x128xf32>
    %c0_21 = arith.constant 0 : index
    %c33 = arith.constant 33 : index
    %c0_22 = arith.constant 0 : index
    %36 = vector.load %arg1[%c0_21, %c33, %c0_22] : memref<1x640x128xbf16, #tpu.memory_space<vmem>>, vector<1x128x128xbf16>
    %37 = vector.shape_cast %36 : vector<1x128x128xbf16> to vector<128x128xbf16>
    %c2 = arith.constant 2 : index
    %c0_23 = arith.constant 0 : index
    %c0_24 = arith.constant 0 : index
    %38 = vector.load %arg2[%c2, %c0_23, %c0_24] : memref<9x128x128xbf16, #tpu.memory_space<vmem>>, vector<1x128x128xbf16>
    %39 = vector.shape_cast %38 : vector<1x128x128xbf16> to vector<128x128xbf16>
    %cst_25 = arith.constant dense<0.000000e+00> : vector<128x128xf32>
    %40 = tpu.matmul %37, %39, %cst_25 {dimension_numbers = #tpu.dot_dimension_numbers<[1], [0], [0], [1], [0, 0, 1, 1], [], []>} : vector<128x128xbf16>, vector<128x128xbf16>, vector<128x128xf32> -> vector<128x128xf32>
    %41 = arith.addf %35, %40 : vector<128x128xf32>
    %c0_26 = arith.constant 0 : index
    %c63 = arith.constant 63 : index
    %c0_27 = arith.constant 0 : index
    %42 = vector.load %arg1[%c0_26, %c63, %c0_27] : memref<1x640x128xbf16, #tpu.memory_space<vmem>>, vector<1x128x128xbf16>
    %43 = vector.shape_cast %42 : vector<1x128x128xbf16> to vector<128x128xbf16>
    %c3 = arith.constant 3 : index
    %c0_28 = arith.constant 0 : index
    %c0_29 = arith.constant 0 : index
    %44 = vector.load %arg2[%c3, %c0_28, %c0_29] : memref<9x128x128xbf16, #tpu.memory_space<vmem>>, vector<1x128x128xbf16>
    %45 = vector.shape_cast %44 : vector<1x128x128xbf16> to vector<128x128xbf16>
    %cst_30 = arith.constant dense<0.000000e+00> : vector<128x128xf32>
    %46 = tpu.matmul %43, %45, %cst_30 {dimension_numbers = #tpu.dot_dimension_numbers<[1], [0], [0], [1], [0, 0, 1, 1], [], []>} : vector<128x128xbf16>, vector<128x128xbf16>, vector<128x128xf32> -> vector<128x128xf32>
    %47 = arith.addf %41, %46 : vector<128x128xf32>
    %c0_31 = arith.constant 0 : index
    %c64 = arith.constant 64 : index
    %c0_32 = arith.constant 0 : index
    %48 = vector.load %arg1[%c0_31, %c64, %c0_32] : memref<1x640x128xbf16, #tpu.memory_space<vmem>>, vector<1x128x128xbf16>
    %49 = vector.shape_cast %48 : vector<1x128x128xbf16> to vector<128x128xbf16>
    %c4 = arith.constant 4 : index
    %c0_33 = arith.constant 0 : index
    %c0_34 = arith.constant 0 : index
    %50 = vector.load %arg2[%c4, %c0_33, %c0_34] : memref<9x128x128xbf16, #tpu.memory_space<vmem>>, vector<1x128x128xbf16>
    %51 = vector.shape_cast %50 : vector<1x128x128xbf16> to vector<128x128xbf16>
    %cst_35 = arith.constant dense<0.000000e+00> : vector<128x128xf32>
    %52 = tpu.matmul %49, %51, %cst_35 {dimension_numbers = #tpu.dot_dimension_numbers<[1], [0], [0], [1], [0, 0, 1, 1], [], []>} : vector<128x128xbf16>, vector<128x128xbf16>, vector<128x128xf32> -> vector<128x128xf32>
    %53 = arith.addf %47, %52 : vector<128x128xf32>
    %c0_36 = arith.constant 0 : index
    %c65 = arith.constant 65 : index
    %c0_37 = arith.constant 0 : index
    %54 = vector.load %arg1[%c0_36, %c65, %c0_37] : memref<1x640x128xbf16, #tpu.memory_space<vmem>>, vector<1x128x128xbf16>
    %55 = vector.shape_cast %54 : vector<1x128x128xbf16> to vector<128x128xbf16>
    %c5 = arith.constant 5 : index
    %c0_38 = arith.constant 0 : index
    %c0_39 = arith.constant 0 : index
    %56 = vector.load %arg2[%c5, %c0_38, %c0_39] : memref<9x128x128xbf16, #tpu.memory_space<vmem>>, vector<1x128x128xbf16>
    %57 = vector.shape_cast %56 : vector<1x128x128xbf16> to vector<128x128xbf16>
    %cst_40 = arith.constant dense<0.000000e+00> : vector<128x128xf32>
    %58 = tpu.matmul %55, %57, %cst_40 {dimension_numbers = #tpu.dot_dimension_numbers<[1], [0], [0], [1], [0, 0, 1, 1], [], []>} : vector<128x128xbf16>, vector<128x128xbf16>, vector<128x128xf32> -> vector<128x128xf32>
    %59 = arith.addf %53, %58 : vector<128x128xf32>
    %c0_41 = arith.constant 0 : index
    %c95 = arith.constant 95 : index
    %c0_42 = arith.constant 0 : index
    %60 = vector.load %arg1[%c0_41, %c95, %c0_42] : memref<1x640x128xbf16, #tpu.memory_space<vmem>>, vector<1x128x128xbf16>
    %61 = vector.shape_cast %60 : vector<1x128x128xbf16> to vector<128x128xbf16>
    %c6 = arith.constant 6 : index
    %c0_43 = arith.constant 0 : index
    %c0_44 = arith.constant 0 : index
    %62 = vector.load %arg2[%c6, %c0_43, %c0_44] : memref<9x128x128xbf16, #tpu.memory_space<vmem>>, vector<1x128x128xbf16>
    %63 = vector.shape_cast %62 : vector<1x128x128xbf16> to vector<128x128xbf16>
    %cst_45 = arith.constant dense<0.000000e+00> : vector<128x128xf32>
    %64 = tpu.matmul %61, %63, %cst_45 {dimension_numbers = #tpu.dot_dimension_numbers<[1], [0], [0], [1], [0, 0, 1, 1], [], []>} : vector<128x128xbf16>, vector<128x128xbf16>, vector<128x128xf32> -> vector<128x128xf32>
    %65 = arith.addf %59, %64 : vector<128x128xf32>
    %c0_46 = arith.constant 0 : index
    %c96 = arith.constant 96 : index
    %c0_47 = arith.constant 0 : index
    %66 = vector.load %arg1[%c0_46, %c96, %c0_47] : memref<1x640x128xbf16, #tpu.memory_space<vmem>>, vector<1x128x128xbf16>
    %67 = vector.shape_cast %66 : vector<1x128x128xbf16> to vector<128x128xbf16>
    %c7 = arith.constant 7 : index
    %c0_48 = arith.constant 0 : index
    %c0_49 = arith.constant 0 : index
    %68 = vector.load %arg2[%c7, %c0_48, %c0_49] : memref<9x128x128xbf16, #tpu.memory_space<vmem>>, vector<1x128x128xbf16>
    %69 = vector.shape_cast %68 : vector<1x128x128xbf16> to vector<128x128xbf16>
    %cst_50 = arith.constant dense<0.000000e+00> : vector<128x128xf32>
    %70 = tpu.matmul %67, %69, %cst_50 {dimension_numbers = #tpu.dot_dimension_numbers<[1], [0], [0], [1], [0, 0, 1, 1], [], []>} : vector<128x128xbf16>, vector<128x128xbf16>, vector<128x128xf32> -> vector<128x128xf32>
    %71 = arith.addf %65, %70 : vector<128x128xf32>
    %c0_51 = arith.constant 0 : index
    %c97 = arith.constant 97 : index
    %c0_52 = arith.constant 0 : index
    %72 = vector.load %arg1[%c0_51, %c97, %c0_52] : memref<1x640x128xbf16, #tpu.memory_space<vmem>>, vector<1x128x128xbf16>
    %73 = vector.shape_cast %72 : vector<1x128x128xbf16> to vector<128x128xbf16>
    %c8 = arith.constant 8 : index
    %c0_53 = arith.constant 0 : index
    %c0_54 = arith.constant 0 : index
    %74 = vector.load %arg2[%c8, %c0_53, %c0_54] : memref<9x128x128xbf16, #tpu.memory_space<vmem>>, vector<1x128x128xbf16>
    %75 = vector.shape_cast %74 : vector<1x128x128xbf16> to vector<128x128xbf16>
    %cst_55 = arith.constant dense<0.000000e+00> : vector<128x128xf32>
    %76 = tpu.matmul %73, %75, %cst_55 {dimension_numbers = #tpu.dot_dimension_numbers<[1], [0], [0], [1], [0, 0, 1, 1], [], []>} : vector<128x128xbf16>, vector<128x128xbf16>, vector<128x128xf32> -> vector<128x128xf32>
    %77 = arith.addf %71, %76 : vector<128x128xf32>
    %78 = vector.broadcast %19 : vector<1x128xf32> to vector<128x128xf32>
    %79 = arith.addf %77, %78 : vector<128x128xf32>
    %cst_56 = arith.constant 0.000000e+00 : f32
    %80 = vector.broadcast %cst_56 : f32 to vector<128x128xf32>
    %81 = arith.maximumf %79, %80 : vector<128x128xf32>
    %cst_57 = arith.constant 0.000000e+00 : f32
    %82 = vector.shape_cast %18 : vector<128x1xi1> to vector<128x1xi1>
    %83 = vector.broadcast %82 : vector<128x1xi1> to vector<128x128xi1>
    %84 = vector.broadcast %cst_57 : f32 to vector<128x128xf32>
    %85 = arith.select %83, %81, %84 : vector<128x128xi1>, vector<128x128xf32>
    %86 = arith.truncf %85 : vector<128x128xf32> to vector<128x128xbf16>
    %c64_58 = arith.constant 64 : index
    %c0_59 = arith.constant 0 : index
    %87 = vector.load %arg7[%c64_58, %c0_59] : memref<640x128xbf16, #tpu.memory_space<vmem>>, vector<128x128xbf16>
    tpu.vector_store %arg7[%c64_58, %c0_59], %86 {strides = array<i32>} : memref<640x128xbf16, #tpu.memory_space<vmem>>, vector<128x128xbf16>,
    %c0_60 = arith.constant 0 : index
    %c159 = arith.constant 159 : index
    %c0_61 = arith.constant 0 : index
    %88 = vector.load %arg1[%c0_60, %c159, %c0_61] : memref<1x640x128xbf16, #tpu.memory_space<vmem>>, vector<1x128x128xbf16>
    %89 = vector.shape_cast %88 : vector<1x128x128xbf16> to vector<128x128xbf16>
    %c0_62 = arith.constant 0 : index
    %c0_63 = arith.constant 0 : index
    %c0_64 = arith.constant 0 : index
    %90 = vector.load %arg2[%c0_62, %c0_63, %c0_64] : memref<9x128x128xbf16, #tpu.memory_space<vmem>>, vector<1x128x128xbf16>
    %91 = vector.shape_cast %90 : vector<1x128x128xbf16> to vector<128x128xbf16>
    %cst_65 = arith.constant dense<0.000000e+00> : vector<128x128xf32>
    %92 = tpu.matmul %89, %91, %cst_65 {dimension_numbers = #tpu.dot_dimension_numbers<[1], [0], [0], [1], [0, 0, 1, 1], [], []>} : vector<128x128xbf16>, vector<128x128xbf16>, vector<128x128xf32> -> vector<128x128xf32>
    %c0_66 = arith.constant 0 : index
    %c160 = arith.constant 160 : index
    %c0_67 = arith.constant 0 : index
    %93 = vector.load %arg1[%c0_66, %c160, %c0_67] : memref<1x640x128xbf16, #tpu.memory_space<vmem>>, vector<1x128x128xbf16>
    %94 = vector.shape_cast %93 : vector<1x128x128xbf16> to vector<128x128xbf16>
    %c1_68 = arith.constant 1 : index
    %c0_69 = arith.constant 0 : index
    %c0_70 = arith.constant 0 : index
    %95 = vector.load %arg2[%c1_68, %c0_69, %c0_70] : memref<9x128x128xbf16, #tpu.memory_space<vmem>>, vector<1x128x128xbf16>
    %96 = vector.shape_cast %95 : vector<1x128x128xbf16> to vector<128x128xbf16>
    %cst_71 = arith.constant dense<0.000000e+00> : vector<128x128xf32>
    %97 = tpu.matmul %94, %96, %cst_71 {dimension_numbers = #tpu.dot_dimension_numbers<[1], [0], [0], [1], [0, 0, 1, 1], [], []>} : vector<128x128xbf16>, vector<128x128xbf16>, vector<128x128xf32> -> vector<128x128xf32>
    %98 = arith.addf %92, %97 : vector<128x128xf32>
    %c0_72 = arith.constant 0 : index
    %c161 = arith.constant 161 : index
    %c0_73 = arith.constant 0 : index
    %99 = vector.load %arg1[%c0_72, %c161, %c0_73] : memref<1x640x128xbf16, #tpu.memory_space<vmem>>, vector<1x128x128xbf16>
    %100 = vector.shape_cast %99 : vector<1x128x128xbf16> to vector<128x128xbf16>
    %c2_74 = arith.constant 2 : index
    %c0_75 = arith.constant 0 : index
    %c0_76 = arith.constant 0 : index
    %101 = vector.load %arg2[%c2_74, %c0_75, %c0_76] : memref<9x128x128xbf16, #tpu.memory_space<vmem>>, vector<1x128x128xbf16>
    %102 = vector.shape_cast %101 : vector<1x128x128xbf16> to vector<128x128xbf16>
    %cst_77 = arith.constant dense<0.000000e+00> : vector<128x128xf32>
    %103 = tpu.matmul %100, %102, %cst_77 {dimension_numbers = #tpu.dot_dimension_numbers<[1], [0], [0], [1], [0, 0, 1, 1], [], []>} : vector<128x128xbf16>, vector<128x128xbf16>, vector<128x128xf32> -> vector<128x128xf32>
    %104 = arith.addf %98, %103 : vector<128x128xf32>
    %c0_78 = arith.constant 0 : index
    %c191 = arith.constant 191 : index
    %c0_79 = arith.constant 0 : index
    %105 = vector.load %arg1[%c0_78, %c191, %c0_79] : memref<1x640x128xbf16, #tpu.memory_space<vmem>>, vector<1x128x128xbf16>
    %106 = vector.shape_cast %105 : vector<1x128x128xbf16> to vector<128x128xbf16>
    %c3_80 = arith.constant 3 : index
    %c0_81 = arith.constant 0 : index
    %c0_82 = arith.constant 0 : index
    %107 = vector.load %arg2[%c3_80, %c0_81, %c0_82] : memref<9x128x128xbf16, #tpu.memory_space<vmem>>, vector<1x128x128xbf16>
    %108 = vector.shape_cast %107 : vector<1x128x128xbf16> to vector<128x128xbf16>
    %cst_83 = arith.constant dense<0.000000e+00> : vector<128x128xf32>
    %109 = tpu.matmul %106, %108, %cst_83 {dimension_numbers = #tpu.dot_dimension_numbers<[1], [0], [0], [1], [0, 0, 1, 1], [], []>} : vector<128x128xbf16>, vector<128x128xbf16>, vector<128x128xf32> -> vector<128x128xf32>
    %110 = arith.addf %104, %109 : vector<128x128xf32>
    %c0_84 = arith.constant 0 : index
    %c192 = arith.constant 192 : index
    %c0_85 = arith.constant 0 : index
    %111 = vector.load %arg1[%c0_84, %c192, %c0_85] : memref<1x640x128xbf16, #tpu.memory_space<vmem>>, vector<1x128x128xbf16>
    %112 = vector.shape_cast %111 : vector<1x128x128xbf16> to vector<128x128xbf16>
    %c4_86 = arith.constant 4 : index
    %c0_87 = arith.constant 0 : index
    %c0_88 = arith.constant 0 : index
    %113 = vector.load %arg2[%c4_86, %c0_87, %c0_88] : memref<9x128x128xbf16, #tpu.memory_space<vmem>>, vector<1x128x128xbf16>
    %114 = vector.shape_cast %113 : vector<1x128x128xbf16> to vector<128x128xbf16>
    %cst_89 = arith.constant dense<0.000000e+00> : vector<128x128xf32>
    %115 = tpu.matmul %112, %114, %cst_89 {dimension_numbers = #tpu.dot_dimension_numbers<[1], [0], [0], [1], [0, 0, 1, 1], [], []>} : vector<128x128xbf16>, vector<128x128xbf16>, vector<128x128xf32> -> vector<128x128xf32>
    %116 = arith.addf %110, %115 : vector<128x128xf32>
    %c0_90 = arith.constant 0 : index
    %c193 = arith.constant 193 : index
    %c0_91 = arith.constant 0 : index
    %117 = vector.load %arg1[%c0_90, %c193, %c0_91] : memref<1x640x128xbf16, #tpu.memory_space<vmem>>, vector<1x128x128xbf16>
    %118 = vector.shape_cast %117 : vector<1x128x128xbf16> to vector<128x128xbf16>
    %c5_92 = arith.constant 5 : index
    %c0_93 = arith.constant 0 : index
    %c0_94 = arith.constant 0 : index
    %119 = vector.load %arg2[%c5_92, %c0_93, %c0_94] : memref<9x128x128xbf16, #tpu.memory_space<vmem>>, vector<1x128x128xbf16>
    %120 = vector.shape_cast %119 : vector<1x128x128xbf16> to vector<128x128xbf16>
    %cst_95 = arith.constant dense<0.000000e+00> : vector<128x128xf32>
    %121 = tpu.matmul %118, %120, %cst_95 {dimension_numbers = #tpu.dot_dimension_numbers<[1], [0], [0], [1], [0, 0, 1, 1], [], []>} : vector<128x128xbf16>, vector<128x128xbf16>, vector<128x128xf32> -> vector<128x128xf32>
    %122 = arith.addf %116, %121 : vector<128x128xf32>
    %c0_96 = arith.constant 0 : index
    %c223 = arith.constant 223 : index
    %c0_97 = arith.constant 0 : index
    %123 = vector.load %arg1[%c0_96, %c223, %c0_97] : memref<1x640x128xbf16, #tpu.memory_space<vmem>>, vector<1x128x128xbf16>
    %124 = vector.shape_cast %123 : vector<1x128x128xbf16> to vector<128x128xbf16>
    %c6_98 = arith.constant 6 : index
    %c0_99 = arith.constant 0 : index
    %c0_100 = arith.constant 0 : index
    %125 = vector.load %arg2[%c6_98, %c0_99, %c0_100] : memref<9x128x128xbf16, #tpu.memory_space<vmem>>, vector<1x128x128xbf16>
    %126 = vector.shape_cast %125 : vector<1x128x128xbf16> to vector<128x128xbf16>
    %cst_101 = arith.constant dense<0.000000e+00> : vector<128x128xf32>
    %127 = tpu.matmul %124, %126, %cst_101 {dimension_numbers = #tpu.dot_dimension_numbers<[1], [0], [0], [1], [0, 0, 1, 1], [], []>} : vector<128x128xbf16>, vector<128x128xbf16>, vector<128x128xf32> -> vector<128x128xf32>
    %128 = arith.addf %122, %127 : vector<128x128xf32>
    %c0_102 = arith.constant 0 : index
    %c224 = arith.constant 224 : index
    %c0_103 = arith.constant 0 : index
    %129 = vector.load %arg1[%c0_102, %c224, %c0_103] : memref<1x640x128xbf16, #tpu.memory_space<vmem>>, vector<1x128x128xbf16>
    %130 = vector.shape_cast %129 : vector<1x128x128xbf16> to vector<128x128xbf16>
    %c7_104 = arith.constant 7 : index
    %c0_105 = arith.constant 0 : index
    %c0_106 = arith.constant 0 : index
    %131 = vector.load %arg2[%c7_104, %c0_105, %c0_106] : memref<9x128x128xbf16, #tpu.memory_space<vmem>>, vector<1x128x128xbf16>
    %132 = vector.shape_cast %131 : vector<1x128x128xbf16> to vector<128x128xbf16>
    %cst_107 = arith.constant dense<0.000000e+00> : vector<128x128xf32>
    %133 = tpu.matmul %130, %132, %cst_107 {dimension_numbers = #tpu.dot_dimension_numbers<[1], [0], [0], [1], [0, 0, 1, 1], [], []>} : vector<128x128xbf16>, vector<128x128xbf16>, vector<128x128xf32> -> vector<128x128xf32>
    %134 = arith.addf %128, %133 : vector<128x128xf32>
    %c0_108 = arith.constant 0 : index
    %c225 = arith.constant 225 : index
    %c0_109 = arith.constant 0 : index
    %135 = vector.load %arg1[%c0_108, %c225, %c0_109] : memref<1x640x128xbf16, #tpu.memory_space<vmem>>, vector<1x128x128xbf16>
    %136 = vector.shape_cast %135 : vector<1x128x128xbf16> to vector<128x128xbf16>
    %c8_110 = arith.constant 8 : index
    %c0_111 = arith.constant 0 : index
    %c0_112 = arith.constant 0 : index
    %137 = vector.load %arg2[%c8_110, %c0_111, %c0_112] : memref<9x128x128xbf16, #tpu.memory_space<vmem>>, vector<1x128x128xbf16>
    %138 = vector.shape_cast %137 : vector<1x128x128xbf16> to vector<128x128xbf16>
    %cst_113 = arith.constant dense<0.000000e+00> : vector<128x128xf32>
    %139 = tpu.matmul %136, %138, %cst_113 {dimension_numbers = #tpu.dot_dimension_numbers<[1], [0], [0], [1], [0, 0, 1, 1], [], []>} : vector<128x128xbf16>, vector<128x128xbf16>, vector<128x128xf32> -> vector<128x128xf32>
    %140 = arith.addf %134, %139 : vector<128x128xf32>
    %141 = vector.broadcast %19 : vector<1x128xf32> to vector<128x128xf32>
    %142 = arith.addf %140, %141 : vector<128x128xf32>
    %cst_114 = arith.constant 0.000000e+00 : f32
    %143 = vector.broadcast %cst_114 : f32 to vector<128x128xf32>
    %144 = arith.maximumf %142, %143 : vector<128x128xf32>
    %cst_115 = arith.constant 0.000000e+00 : f32
    %145 = vector.shape_cast %18 : vector<128x1xi1> to vector<128x1xi1>
    %146 = vector.broadcast %145 : vector<128x1xi1> to vector<128x128xi1>
    %147 = vector.broadcast %cst_115 : f32 to vector<128x128xf32>
    %148 = arith.select %146, %144, %147 : vector<128x128xi1>, vector<128x128xf32>
    %149 = arith.truncf %148 : vector<128x128xf32> to vector<128x128xbf16>
    %c192_116 = arith.constant 192 : index
    %c0_117 = arith.constant 0 : index
    %150 = vector.load %arg7[%c192_116, %c0_117] : memref<640x128xbf16, #tpu.memory_space<vmem>>, vector<128x128xbf16>
    tpu.vector_store %arg7[%c192_116, %c0_117], %149 {strides = array<i32>} : memref<640x128xbf16, #tpu.memory_space<vmem>>, vector<128x128xbf16>,
    %c0_118 = arith.constant 0 : index
    %c287 = arith.constant 287 : index
    %c0_119 = arith.constant 0 : index
    %151 = vector.load %arg1[%c0_118, %c287, %c0_119] : memref<1x640x128xbf16, #tpu.memory_space<vmem>>, vector<1x128x128xbf16>
    %152 = vector.shape_cast %151 : vector<1x128x128xbf16> to vector<128x128xbf16>
    %c0_120 = arith.constant 0 : index
    %c0_121 = arith.constant 0 : index
    %c0_122 = arith.constant 0 : index
    %153 = vector.load %arg2[%c0_120, %c0_121, %c0_122] : memref<9x128x128xbf16, #tpu.memory_space<vmem>>, vector<1x128x128xbf16>
    %154 = vector.shape_cast %153 : vector<1x128x128xbf16> to vector<128x128xbf16>
    %cst_123 = arith.constant dense<0.000000e+00> : vector<128x128xf32>
    %155 = tpu.matmul %152, %154, %cst_123 {dimension_numbers = #tpu.dot_dimension_numbers<[1], [0], [0], [1], [0, 0, 1, 1], [], []>} : vector<128x128xbf16>, vector<128x128xbf16>, vector<128x128xf32> -> vector<128x128xf32>
    %c0_124 = arith.constant 0 : index
    %c288 = arith.constant 288 : index
    %c0_125 = arith.constant 0 : index
    %156 = vector.load %arg1[%c0_124, %c288, %c0_125] : memref<1x640x128xbf16, #tpu.memory_space<vmem>>, vector<1x128x128xbf16>
    %157 = vector.shape_cast %156 : vector<1x128x128xbf16> to vector<128x128xbf16>
    %c1_126 = arith.constant 1 : index
    %c0_127 = arith.constant 0 : index
    %c0_128 = arith.constant 0 : index
    %158 = vector.load %arg2[%c1_126, %c0_127, %c0_128] : memref<9x128x128xbf16, #tpu.memory_space<vmem>>, vector<1x128x128xbf16>
    %159 = vector.shape_cast %158 : vector<1x128x128xbf16> to vector<128x128xbf16>
    %cst_129 = arith.constant dense<0.000000e+00> : vector<128x128xf32>
    %160 = tpu.matmul %157, %159, %cst_129 {dimension_numbers = #tpu.dot_dimension_numbers<[1], [0], [0], [1], [0, 0, 1, 1], [], []>} : vector<128x128xbf16>, vector<128x128xbf16>, vector<128x128xf32> -> vector<128x128xf32>
    %161 = arith.addf %155, %160 : vector<128x128xf32>
    %c0_130 = arith.constant 0 : index
    %c289 = arith.constant 289 : index
    %c0_131 = arith.constant 0 : index
    %162 = vector.load %arg1[%c0_130, %c289, %c0_131] : memref<1x640x128xbf16, #tpu.memory_space<vmem>>, vector<1x128x128xbf16>
    %163 = vector.shape_cast %162 : vector<1x128x128xbf16> to vector<128x128xbf16>
    %c2_132 = arith.constant 2 : index
    %c0_133 = arith.constant 0 : index
    %c0_134 = arith.constant 0 : index
    %164 = vector.load %arg2[%c2_132, %c0_133, %c0_134] : memref<9x128x128xbf16, #tpu.memory_space<vmem>>, vector<1x128x128xbf16>
    %165 = vector.shape_cast %164 : vector<1x128x128xbf16> to vector<128x128xbf16>
    %cst_135 = arith.constant dense<0.000000e+00> : vector<128x128xf32>
    %166 = tpu.matmul %163, %165, %cst_135 {dimension_numbers = #tpu.dot_dimension_numbers<[1], [0], [0], [1], [0, 0, 1, 1], [], []>} : vector<128x128xbf16>, vector<128x128xbf16>, vector<128x128xf32> -> vector<128x128xf32>
    %167 = arith.addf %161, %166 : vector<128x128xf32>
    %c0_136 = arith.constant 0 : index
    %c319 = arith.constant 319 : index
    %c0_137 = arith.constant 0 : index
    %168 = vector.load %arg1[%c0_136, %c319, %c0_137] : memref<1x640x128xbf16, #tpu.memory_space<vmem>>, vector<1x128x128xbf16>
    %169 = vector.shape_cast %168 : vector<1x128x128xbf16> to vector<128x128xbf16>
    %c3_138 = arith.constant 3 : index
    %c0_139 = arith.constant 0 : index
    %c0_140 = arith.constant 0 : index
    %170 = vector.load %arg2[%c3_138, %c0_139, %c0_140] : memref<9x128x128xbf16, #tpu.memory_space<vmem>>, vector<1x128x128xbf16>
    %171 = vector.shape_cast %170 : vector<1x128x128xbf16> to vector<128x128xbf16>
    %cst_141 = arith.constant dense<0.000000e+00> : vector<128x128xf32>
    %172 = tpu.matmul %169, %171, %cst_141 {dimension_numbers = #tpu.dot_dimension_numbers<[1], [0], [0], [1], [0, 0, 1, 1], [], []>} : vector<128x128xbf16>, vector<128x128xbf16>, vector<128x128xf32> -> vector<128x128xf32>
    %173 = arith.addf %167, %172 : vector<128x128xf32>
    %c0_142 = arith.constant 0 : index
    %c320 = arith.constant 320 : index
    %c0_143 = arith.constant 0 : index
    %174 = vector.load %arg1[%c0_142, %c320, %c0_143] : memref<1x640x128xbf16, #tpu.memory_space<vmem>>, vector<1x128x128xbf16>
    %175 = vector.shape_cast %174 : vector<1x128x128xbf16> to vector<128x128xbf16>
    %c4_144 = arith.constant 4 : index
    %c0_145 = arith.constant 0 : index
    %c0_146 = arith.constant 0 : index
    %176 = vector.load %arg2[%c4_144, %c0_145, %c0_146] : memref<9x128x128xbf16, #tpu.memory_space<vmem>>, vector<1x128x128xbf16>
    %177 = vector.shape_cast %176 : vector<1x128x128xbf16> to vector<128x128xbf16>
    %cst_147 = arith.constant dense<0.000000e+00> : vector<128x128xf32>
    %178 = tpu.matmul %175, %177, %cst_147 {dimension_numbers = #tpu.dot_dimension_numbers<[1], [0], [0], [1], [0, 0, 1, 1], [], []>} : vector<128x128xbf16>, vector<128x128xbf16>, vector<128x128xf32> -> vector<128x128xf32>
    %179 = arith.addf %173, %178 : vector<128x128xf32>
    %c0_148 = arith.constant 0 : index
    %c321 = arith.constant 321 : index
    %c0_149 = arith.constant 0 : index
    %180 = vector.load %arg1[%c0_148, %c321, %c0_149] : memref<1x640x128xbf16, #tpu.memory_space<vmem>>, vector<1x128x128xbf16>
    %181 = vector.shape_cast %180 : vector<1x128x128xbf16> to vector<128x128xbf16>
    %c5_150 = arith.constant 5 : index
    %c0_151 = arith.constant 0 : index
    %c0_152 = arith.constant 0 : index
    %182 = vector.load %arg2[%c5_150, %c0_151, %c0_152] : memref<9x128x128xbf16, #tpu.memory_space<vmem>>, vector<1x128x128xbf16>
    %183 = vector.shape_cast %182 : vector<1x128x128xbf16> to vector<128x128xbf16>
    %cst_153 = arith.constant dense<0.000000e+00> : vector<128x128xf32>
    %184 = tpu.matmul %181, %183, %cst_153 {dimension_numbers = #tpu.dot_dimension_numbers<[1], [0], [0], [1], [0, 0, 1, 1], [], []>} : vector<128x128xbf16>, vector<128x128xbf16>, vector<128x128xf32> -> vector<128x128xf32>
    %185 = arith.addf %179, %184 : vector<128x128xf32>
    %c0_154 = arith.constant 0 : index
    %c351 = arith.constant 351 : index
    %c0_155 = arith.constant 0 : index
    %186 = vector.load %arg1[%c0_154, %c351, %c0_155] : memref<1x640x128xbf16, #tpu.memory_space<vmem>>, vector<1x128x128xbf16>
    %187 = vector.shape_cast %186 : vector<1x128x128xbf16> to vector<128x128xbf16>
    %c6_156 = arith.constant 6 : index
    %c0_157 = arith.constant 0 : index
    %c0_158 = arith.constant 0 : index
    %188 = vector.load %arg2[%c6_156, %c0_157, %c0_158] : memref<9x128x128xbf16, #tpu.memory_space<vmem>>, vector<1x128x128xbf16>
    %189 = vector.shape_cast %188 : vector<1x128x128xbf16> to vector<128x128xbf16>
    %cst_159 = arith.constant dense<0.000000e+00> : vector<128x128xf32>
    %190 = tpu.matmul %187, %189, %cst_159 {dimension_numbers = #tpu.dot_dimension_numbers<[1], [0], [0], [1], [0, 0, 1, 1], [], []>} : vector<128x128xbf16>, vector<128x128xbf16>, vector<128x128xf32> -> vector<128x128xf32>
    %191 = arith.addf %185, %190 : vector<128x128xf32>
    %c0_160 = arith.constant 0 : index
    %c352 = arith.constant 352 : index
    %c0_161 = arith.constant 0 : index
    %192 = vector.load %arg1[%c0_160, %c352, %c0_161] : memref<1x640x128xbf16, #tpu.memory_space<vmem>>, vector<1x128x128xbf16>
    %193 = vector.shape_cast %192 : vector<1x128x128xbf16> to vector<128x128xbf16>
    %c7_162 = arith.constant 7 : index
    %c0_163 = arith.constant 0 : index
    %c0_164 = arith.constant 0 : index
    %194 = vector.load %arg2[%c7_162, %c0_163, %c0_164] : memref<9x128x128xbf16, #tpu.memory_space<vmem>>, vector<1x128x128xbf16>
    %195 = vector.shape_cast %194 : vector<1x128x128xbf16> to vector<128x128xbf16>
    %cst_165 = arith.constant dense<0.000000e+00> : vector<128x128xf32>
    %196 = tpu.matmul %193, %195, %cst_165 {dimension_numbers = #tpu.dot_dimension_numbers<[1], [0], [0], [1], [0, 0, 1, 1], [], []>} : vector<128x128xbf16>, vector<128x128xbf16>, vector<128x128xf32> -> vector<128x128xf32>
    %197 = arith.addf %191, %196 : vector<128x128xf32>
    %c0_166 = arith.constant 0 : index
    %c353 = arith.constant 353 : index
    %c0_167 = arith.constant 0 : index
    %198 = vector.load %arg1[%c0_166, %c353, %c0_167] : memref<1x640x128xbf16, #tpu.memory_space<vmem>>, vector<1x128x128xbf16>
    %199 = vector.shape_cast %198 : vector<1x128x128xbf16> to vector<128x128xbf16>
    %c8_168 = arith.constant 8 : index
    %c0_169 = arith.constant 0 : index
    %c0_170 = arith.constant 0 : index
    %200 = vector.load %arg2[%c8_168, %c0_169, %c0_170] : memref<9x128x128xbf16, #tpu.memory_space<vmem>>, vector<1x128x128xbf16>
    %201 = vector.shape_cast %200 : vector<1x128x128xbf16> to vector<128x128xbf16>
    %cst_171 = arith.constant dense<0.000000e+00> : vector<128x128xf32>
    %202 = tpu.matmul %199, %201, %cst_171 {dimension_numbers = #tpu.dot_dimension_numbers<[1], [0], [0], [1], [0, 0, 1, 1], [], []>} : vector<128x128xbf16>, vector<128x128xbf16>, vector<128x128xf32> -> vector<128x128xf32>
    %203 = arith.addf %197, %202 : vector<128x128xf32>
    %204 = vector.broadcast %19 : vector<1x128xf32> to vector<128x128xf32>
    %205 = arith.addf %203, %204 : vector<128x128xf32>
    %cst_172 = arith.constant 0.000000e+00 : f32
    %206 = vector.broadcast %cst_172 : f32 to vector<128x128xf32>
    %207 = arith.maximumf %205, %206 : vector<128x128xf32>
    %cst_173 = arith.constant 0.000000e+00 : f32
    %208 = vector.shape_cast %18 : vector<128x1xi1> to vector<128x1xi1>
    %209 = vector.broadcast %208 : vector<128x1xi1> to vector<128x128xi1>
    %210 = vector.broadcast %cst_173 : f32 to vector<128x128xf32>
    %211 = arith.select %209, %207, %210 : vector<128x128xi1>, vector<128x128xf32>
    %212 = arith.truncf %211 : vector<128x128xf32> to vector<128x128xbf16>
    %c320_174 = arith.constant 320 : index
    %c0_175 = arith.constant 0 : index
    %213 = vector.load %arg7[%c320_174, %c0_175] : memref<640x128xbf16, #tpu.memory_space<vmem>>, vector<128x128xbf16>
    tpu.vector_store %arg7[%c320_174, %c0_175], %212 {strides = array<i32>} : memref<640x128xbf16, #tpu.memory_space<vmem>>, vector<128x128xbf16>,
    %c0_176 = arith.constant 0 : index
    %c415 = arith.constant 415 : index
    %c0_177 = arith.constant 0 : index
    %214 = vector.load %arg1[%c0_176, %c415, %c0_177] : memref<1x640x128xbf16, #tpu.memory_space<vmem>>, vector<1x128x128xbf16>
    %215 = vector.shape_cast %214 : vector<1x128x128xbf16> to vector<128x128xbf16>
    %c0_178 = arith.constant 0 : index
    %c0_179 = arith.constant 0 : index
    %c0_180 = arith.constant 0 : index
    %216 = vector.load %arg2[%c0_178, %c0_179, %c0_180] : memref<9x128x128xbf16, #tpu.memory_space<vmem>>, vector<1x128x128xbf16>
    %217 = vector.shape_cast %216 : vector<1x128x128xbf16> to vector<128x128xbf16>
    %cst_181 = arith.constant dense<0.000000e+00> : vector<128x128xf32>
    %218 = tpu.matmul %215, %217, %cst_181 {dimension_numbers = #tpu.dot_dimension_numbers<[1], [0], [0], [1], [0, 0, 1, 1], [], []>} : vector<128x128xbf16>, vector<128x128xbf16>, vector<128x128xf32> -> vector<128x128xf32>
    %c0_182 = arith.constant 0 : index
    %c416 = arith.constant 416 : index
    %c0_183 = arith.constant 0 : index
    %219 = vector.load %arg1[%c0_182, %c416, %c0_183] : memref<1x640x128xbf16, #tpu.memory_space<vmem>>, vector<1x128x128xbf16>
    %220 = vector.shape_cast %219 : vector<1x128x128xbf16> to vector<128x128xbf16>
    %c1_184 = arith.constant 1 : index
    %c0_185 = arith.constant 0 : index
    %c0_186 = arith.constant 0 : index
    %221 = vector.load %arg2[%c1_184, %c0_185, %c0_186] : memref<9x128x128xbf16, #tpu.memory_space<vmem>>, vector<1x128x128xbf16>
    %222 = vector.shape_cast %221 : vector<1x128x128xbf16> to vector<128x128xbf16>
    %cst_187 = arith.constant dense<0.000000e+00> : vector<128x128xf32>
    %223 = tpu.matmul %220, %222, %cst_187 {dimension_numbers = #tpu.dot_dimension_numbers<[1], [0], [0], [1], [0, 0, 1, 1], [], []>} : vector<128x128xbf16>, vector<128x128xbf16>, vector<128x128xf32> -> vector<128x128xf32>
    %224 = arith.addf %218, %223 : vector<128x128xf32>
    %c0_188 = arith.constant 0 : index
    %c417 = arith.constant 417 : index
    %c0_189 = arith.constant 0 : index
    %225 = vector.load %arg1[%c0_188, %c417, %c0_189] : memref<1x640x128xbf16, #tpu.memory_space<vmem>>, vector<1x128x128xbf16>
    %226 = vector.shape_cast %225 : vector<1x128x128xbf16> to vector<128x128xbf16>
    %c2_190 = arith.constant 2 : index
    %c0_191 = arith.constant 0 : index
    %c0_192 = arith.constant 0 : index
    %227 = vector.load %arg2[%c2_190, %c0_191, %c0_192] : memref<9x128x128xbf16, #tpu.memory_space<vmem>>, vector<1x128x128xbf16>
    %228 = vector.shape_cast %227 : vector<1x128x128xbf16> to vector<128x128xbf16>
    %cst_193 = arith.constant dense<0.000000e+00> : vector<128x128xf32>
    %229 = tpu.matmul %226, %228, %cst_193 {dimension_numbers = #tpu.dot_dimension_numbers<[1], [0], [0], [1], [0, 0, 1, 1], [], []>} : vector<128x128xbf16>, vector<128x128xbf16>, vector<128x128xf32> -> vector<128x128xf32>
    %230 = arith.addf %224, %229 : vector<128x128xf32>
    %c0_194 = arith.constant 0 : index
    %c447 = arith.constant 447 : index
    %c0_195 = arith.constant 0 : index
    %231 = vector.load %arg1[%c0_194, %c447, %c0_195] : memref<1x640x128xbf16, #tpu.memory_space<vmem>>, vector<1x128x128xbf16>
    %232 = vector.shape_cast %231 : vector<1x128x128xbf16> to vector<128x128xbf16>
    %c3_196 = arith.constant 3 : index
    %c0_197 = arith.constant 0 : index
    %c0_198 = arith.constant 0 : index
    %233 = vector.load %arg2[%c3_196, %c0_197, %c0_198] : memref<9x128x128xbf16, #tpu.memory_space<vmem>>, vector<1x128x128xbf16>
    %234 = vector.shape_cast %233 : vector<1x128x128xbf16> to vector<128x128xbf16>
    %cst_199 = arith.constant dense<0.000000e+00> : vector<128x128xf32>
    %235 = tpu.matmul %232, %234, %cst_199 {dimension_numbers = #tpu.dot_dimension_numbers<[1], [0], [0], [1], [0, 0, 1, 1], [], []>} : vector<128x128xbf16>, vector<128x128xbf16>, vector<128x128xf32> -> vector<128x128xf32>
    %236 = arith.addf %230, %235 : vector<128x128xf32>
    %c0_200 = arith.constant 0 : index
    %c448 = arith.constant 448 : index
    %c0_201 = arith.constant 0 : index
    %237 = vector.load %arg1[%c0_200, %c448, %c0_201] : memref<1x640x128xbf16, #tpu.memory_space<vmem>>, vector<1x128x128xbf16>
    %238 = vector.shape_cast %237 : vector<1x128x128xbf16> to vector<128x128xbf16>
    %c4_202 = arith.constant 4 : index
    %c0_203 = arith.constant 0 : index
    %c0_204 = arith.constant 0 : index
    %239 = vector.load %arg2[%c4_202, %c0_203, %c0_204] : memref<9x128x128xbf16, #tpu.memory_space<vmem>>, vector<1x128x128xbf16>
    %240 = vector.shape_cast %239 : vector<1x128x128xbf16> to vector<128x128xbf16>
    %cst_205 = arith.constant dense<0.000000e+00> : vector<128x128xf32>
    %241 = tpu.matmul %238, %240, %cst_205 {dimension_numbers = #tpu.dot_dimension_numbers<[1], [0], [0], [1], [0, 0, 1, 1], [], []>} : vector<128x128xbf16>, vector<128x128xbf16>, vector<128x128xf32> -> vector<128x128xf32>
    %242 = arith.addf %236, %241 : vector<128x128xf32>
    %c0_206 = arith.constant 0 : index
    %c449 = arith.constant 449 : index
    %c0_207 = arith.constant 0 : index
    %243 = vector.load %arg1[%c0_206, %c449, %c0_207] : memref<1x640x128xbf16, #tpu.memory_space<vmem>>, vector<1x128x128xbf16>
    %244 = vector.shape_cast %243 : vector<1x128x128xbf16> to vector<128x128xbf16>
    %c5_208 = arith.constant 5 : index
    %c0_209 = arith.constant 0 : index
    %c0_210 = arith.constant 0 : index
    %245 = vector.load %arg2[%c5_208, %c0_209, %c0_210] : memref<9x128x128xbf16, #tpu.memory_space<vmem>>, vector<1x128x128xbf16>
    %246 = vector.shape_cast %245 : vector<1x128x128xbf16> to vector<128x128xbf16>
    %cst_211 = arith.constant dense<0.000000e+00> : vector<128x128xf32>
    %247 = tpu.matmul %244, %246, %cst_211 {dimension_numbers = #tpu.dot_dimension_numbers<[1], [0], [0], [1], [0, 0, 1, 1], [], []>} : vector<128x128xbf16>, vector<128x128xbf16>, vector<128x128xf32> -> vector<128x128xf32>
    %248 = arith.addf %242, %247 : vector<128x128xf32>
    %c0_212 = arith.constant 0 : index
    %c479 = arith.constant 479 : index
    %c0_213 = arith.constant 0 : index
    %249 = vector.load %arg1[%c0_212, %c479, %c0_213] : memref<1x640x128xbf16, #tpu.memory_space<vmem>>, vector<1x128x128xbf16>
    %250 = vector.shape_cast %249 : vector<1x128x128xbf16> to vector<128x128xbf16>
    %c6_214 = arith.constant 6 : index
    %c0_215 = arith.constant 0 : index
    %c0_216 = arith.constant 0 : index
    %251 = vector.load %arg2[%c6_214, %c0_215, %c0_216] : memref<9x128x128xbf16, #tpu.memory_space<vmem>>, vector<1x128x128xbf16>
    %252 = vector.shape_cast %251 : vector<1x128x128xbf16> to vector<128x128xbf16>
    %cst_217 = arith.constant dense<0.000000e+00> : vector<128x128xf32>
    %253 = tpu.matmul %250, %252, %cst_217 {dimension_numbers = #tpu.dot_dimension_numbers<[1], [0], [0], [1], [0, 0, 1, 1], [], []>} : vector<128x128xbf16>, vector<128x128xbf16>, vector<128x128xf32> -> vector<128x128xf32>
    %254 = arith.addf %248, %253 : vector<128x128xf32>
    %c0_218 = arith.constant 0 : index
    %c480 = arith.constant 480 : index
    %c0_219 = arith.constant 0 : index
    %255 = vector.load %arg1[%c0_218, %c480, %c0_219] : memref<1x640x128xbf16, #tpu.memory_space<vmem>>, vector<1x128x128xbf16>
    %256 = vector.shape_cast %255 : vector<1x128x128xbf16> to vector<128x128xbf16>
    %c7_220 = arith.constant 7 : index
    %c0_221 = arith.constant 0 : index
    %c0_222 = arith.constant 0 : index
    %257 = vector.load %arg2[%c7_220, %c0_221, %c0_222] : memref<9x128x128xbf16, #tpu.memory_space<vmem>>, vector<1x128x128xbf16>
    %258 = vector.shape_cast %257 : vector<1x128x128xbf16> to vector<128x128xbf16>
    %cst_223 = arith.constant dense<0.000000e+00> : vector<128x128xf32>
    %259 = tpu.matmul %256, %258, %cst_223 {dimension_numbers = #tpu.dot_dimension_numbers<[1], [0], [0], [1], [0, 0, 1, 1], [], []>} : vector<128x128xbf16>, vector<128x128xbf16>, vector<128x128xf32> -> vector<128x128xf32>
    %260 = arith.addf %254, %259 : vector<128x128xf32>
    %c0_224 = arith.constant 0 : index
    %c481 = arith.constant 481 : index
    %c0_225 = arith.constant 0 : index
    %261 = vector.load %arg1[%c0_224, %c481, %c0_225] : memref<1x640x128xbf16, #tpu.memory_space<vmem>>, vector<1x128x128xbf16>
    %262 = vector.shape_cast %261 : vector<1x128x128xbf16> to vector<128x128xbf16>
    %c8_226 = arith.constant 8 : index
    %c0_227 = arith.constant 0 : index
    %c0_228 = arith.constant 0 : index
    %263 = vector.load %arg2[%c8_226, %c0_227, %c0_228] : memref<9x128x128xbf16, #tpu.memory_space<vmem>>, vector<1x128x128xbf16>
    %264 = vector.shape_cast %263 : vector<1x128x128xbf16> to vector<128x128xbf16>
    %cst_229 = arith.constant dense<0.000000e+00> : vector<128x128xf32>
    %265 = tpu.matmul %262, %264, %cst_229 {dimension_numbers = #tpu.dot_dimension_numbers<[1], [0], [0], [1], [0, 0, 1, 1], [], []>} : vector<128x128xbf16>, vector<128x128xbf16>, vector<128x128xf32> -> vector<128x128xf32>
    %266 = arith.addf %260, %265 : vector<128x128xf32>
    %267 = vector.broadcast %19 : vector<1x128xf32> to vector<128x128xf32>
    %268 = arith.addf %266, %267 : vector<128x128xf32>
    %cst_230 = arith.constant 0.000000e+00 : f32
    %269 = vector.broadcast %cst_230 : f32 to vector<128x128xf32>
    %270 = arith.maximumf %268, %269 : vector<128x128xf32>
    %cst_231 = arith.constant 0.000000e+00 : f32
    %271 = vector.shape_cast %18 : vector<128x1xi1> to vector<128x1xi1>
    %272 = vector.broadcast %271 : vector<128x1xi1> to vector<128x128xi1>
    %273 = vector.broadcast %cst_231 : f32 to vector<128x128xf32>
    %274 = arith.select %272, %270, %273 : vector<128x128xi1>, vector<128x128xf32>
    %275 = arith.truncf %274 : vector<128x128xf32> to vector<128x128xbf16>
    %c448_232 = arith.constant 448 : index
    %c0_233 = arith.constant 0 : index
    %276 = vector.load %arg7[%c448_232, %c0_233] : memref<640x128xbf16, #tpu.memory_space<vmem>>, vector<128x128xbf16>
    tpu.vector_store %arg7[%c448_232, %c0_233], %275 {strides = array<i32>} : memref<640x128xbf16, #tpu.memory_space<vmem>>, vector<128x128xbf16>,
    %c31_234 = arith.constant 31 : index
    %c0_235 = arith.constant 0 : index
    %277 = vector.load %arg7[%c31_234, %c0_235] : memref<640x128xbf16, #tpu.memory_space<vmem>>, vector<128x128xbf16>
    %c0_236 = arith.constant 0 : index
    %c0_237 = arith.constant 0 : index
    %c0_238 = arith.constant 0 : index
    %278 = vector.load %arg3[%c0_236, %c0_237, %c0_238] : memref<9x128x128xbf16, #tpu.memory_space<vmem>>, vector<1x128x128xbf16>
    %279 = vector.shape_cast %278 : vector<1x128x128xbf16> to vector<128x128xbf16>
    %cst_239 = arith.constant dense<0.000000e+00> : vector<128x128xf32>
    %280 = tpu.matmul %277, %279, %cst_239 {dimension_numbers = #tpu.dot_dimension_numbers<[1], [0], [0], [1], [0, 0, 1, 1], [], []>} : vector<128x128xbf16>, vector<128x128xbf16>, vector<128x128xf32> -> vector<128x128xf32>
    %c32_240 = arith.constant 32 : index
    %c0_241 = arith.constant 0 : index
    %281 = vector.load %arg7[%c32_240, %c0_241] : memref<640x128xbf16, #tpu.memory_space<vmem>>, vector<128x128xbf16>
    %c1_242 = arith.constant 1 : index
    %c0_243 = arith.constant 0 : index
    %c0_244 = arith.constant 0 : index
    %282 = vector.load %arg3[%c1_242, %c0_243, %c0_244] : memref<9x128x128xbf16, #tpu.memory_space<vmem>>, vector<1x128x128xbf16>
    %283 = vector.shape_cast %282 : vector<1x128x128xbf16> to vector<128x128xbf16>
    %cst_245 = arith.constant dense<0.000000e+00> : vector<128x128xf32>
    %284 = tpu.matmul %281, %283, %cst_245 {dimension_numbers = #tpu.dot_dimension_numbers<[1], [0], [0], [1], [0, 0, 1, 1], [], []>} : vector<128x128xbf16>, vector<128x128xbf16>, vector<128x128xf32> -> vector<128x128xf32>
    %285 = arith.addf %280, %284 : vector<128x128xf32>
    %c33_246 = arith.constant 33 : index
    %c0_247 = arith.constant 0 : index
    %286 = vector.load %arg7[%c33_246, %c0_247] : memref<640x128xbf16, #tpu.memory_space<vmem>>, vector<128x128xbf16>
    %c2_248 = arith.constant 2 : index
    %c0_249 = arith.constant 0 : index
    %c0_250 = arith.constant 0 : index
    %287 = vector.load %arg3[%c2_248, %c0_249, %c0_250] : memref<9x128x128xbf16, #tpu.memory_space<vmem>>, vector<1x128x128xbf16>
    %288 = vector.shape_cast %287 : vector<1x128x128xbf16> to vector<128x128xbf16>
    %cst_251 = arith.constant dense<0.000000e+00> : vector<128x128xf32>
    %289 = tpu.matmul %286, %288, %cst_251 {dimension_numbers = #tpu.dot_dimension_numbers<[1], [0], [0], [1], [0, 0, 1, 1], [], []>} : vector<128x128xbf16>, vector<128x128xbf16>, vector<128x128xf32> -> vector<128x128xf32>
    %290 = arith.addf %285, %289 : vector<128x128xf32>
    %c63_252 = arith.constant 63 : index
    %c0_253 = arith.constant 0 : index
    %291 = vector.load %arg7[%c63_252, %c0_253] : memref<640x128xbf16, #tpu.memory_space<vmem>>, vector<128x128xbf16>
    %c3_254 = arith.constant 3 : index
    %c0_255 = arith.constant 0 : index
    %c0_256 = arith.constant 0 : index
    %292 = vector.load %arg3[%c3_254, %c0_255, %c0_256] : memref<9x128x128xbf16, #tpu.memory_space<vmem>>, vector<1x128x128xbf16>
    %293 = vector.shape_cast %292 : vector<1x128x128xbf16> to vector<128x128xbf16>
    %cst_257 = arith.constant dense<0.000000e+00> : vector<128x128xf32>
    %294 = tpu.matmul %291, %293, %cst_257 {dimension_numbers = #tpu.dot_dimension_numbers<[1], [0], [0], [1], [0, 0, 1, 1], [], []>} : vector<128x128xbf16>, vector<128x128xbf16>, vector<128x128xf32> -> vector<128x128xf32>
    %295 = arith.addf %290, %294 : vector<128x128xf32>
    %c64_258 = arith.constant 64 : index
    %c0_259 = arith.constant 0 : index
    %296 = vector.load %arg7[%c64_258, %c0_259] : memref<640x128xbf16, #tpu.memory_space<vmem>>, vector<128x128xbf16>
    %c4_260 = arith.constant 4 : index
    %c0_261 = arith.constant 0 : index
    %c0_262 = arith.constant 0 : index
    %297 = vector.load %arg3[%c4_260, %c0_261, %c0_262] : memref<9x128x128xbf16, #tpu.memory_space<vmem>>, vector<1x128x128xbf16>
    %298 = vector.shape_cast %297 : vector<1x128x128xbf16> to vector<128x128xbf16>
    %cst_263 = arith.constant dense<0.000000e+00> : vector<128x128xf32>
    %299 = tpu.matmul %296, %298, %cst_263 {dimension_numbers = #tpu.dot_dimension_numbers<[1], [0], [0], [1], [0, 0, 1, 1], [], []>} : vector<128x128xbf16>, vector<128x128xbf16>, vector<128x128xf32> -> vector<128x128xf32>
    %300 = arith.addf %295, %299 : vector<128x128xf32>
    %c65_264 = arith.constant 65 : index
    %c0_265 = arith.constant 0 : index
    %301 = vector.load %arg7[%c65_264, %c0_265] : memref<640x128xbf16, #tpu.memory_space<vmem>>, vector<128x128xbf16>
    %c5_266 = arith.constant 5 : index
    %c0_267 = arith.constant 0 : index
    %c0_268 = arith.constant 0 : index
    %302 = vector.load %arg3[%c5_266, %c0_267, %c0_268] : memref<9x128x128xbf16, #tpu.memory_space<vmem>>, vector<1x128x128xbf16>
    %303 = vector.shape_cast %302 : vector<1x128x128xbf16> to vector<128x128xbf16>
    %cst_269 = arith.constant dense<0.000000e+00> : vector<128x128xf32>
    %304 = tpu.matmul %301, %303, %cst_269 {dimension_numbers = #tpu.dot_dimension_numbers<[1], [0], [0], [1], [0, 0, 1, 1], [], []>} : vector<128x128xbf16>, vector<128x128xbf16>, vector<128x128xf32> -> vector<128x128xf32>
    %305 = arith.addf %300, %304 : vector<128x128xf32>
    %c95_270 = arith.constant 95 : index
    %c0_271 = arith.constant 0 : index
    %306 = vector.load %arg7[%c95_270, %c0_271] : memref<640x128xbf16, #tpu.memory_space<vmem>>, vector<128x128xbf16>
    %c6_272 = arith.constant 6 : index
    %c0_273 = arith.constant 0 : index
    %c0_274 = arith.constant 0 : index
    %307 = vector.load %arg3[%c6_272, %c0_273, %c0_274] : memref<9x128x128xbf16, #tpu.memory_space<vmem>>, vector<1x128x128xbf16>
    %308 = vector.shape_cast %307 : vector<1x128x128xbf16> to vector<128x128xbf16>
    %cst_275 = arith.constant dense<0.000000e+00> : vector<128x128xf32>
    %309 = tpu.matmul %306, %308, %cst_275 {dimension_numbers = #tpu.dot_dimension_numbers<[1], [0], [0], [1], [0, 0, 1, 1], [], []>} : vector<128x128xbf16>, vector<128x128xbf16>, vector<128x128xf32> -> vector<128x128xf32>
    %310 = arith.addf %305, %309 : vector<128x128xf32>
    %c96_276 = arith.constant 96 : index
    %c0_277 = arith.constant 0 : index
    %311 = vector.load %arg7[%c96_276, %c0_277] : memref<640x128xbf16, #tpu.memory_space<vmem>>, vector<128x128xbf16>
    %c7_278 = arith.constant 7 : index
    %c0_279 = arith.constant 0 : index
    %c0_280 = arith.constant 0 : index
    %312 = vector.load %arg3[%c7_278, %c0_279, %c0_280] : memref<9x128x128xbf16, #tpu.memory_space<vmem>>, vector<1x128x128xbf16>
    %313 = vector.shape_cast %312 : vector<1x128x128xbf16> to vector<128x128xbf16>
    %cst_281 = arith.constant dense<0.000000e+00> : vector<128x128xf32>
    %314 = tpu.matmul %311, %313, %cst_281 {dimension_numbers = #tpu.dot_dimension_numbers<[1], [0], [0], [1], [0, 0, 1, 1], [], []>} : vector<128x128xbf16>, vector<128x128xbf16>, vector<128x128xf32> -> vector<128x128xf32>
    %315 = arith.addf %310, %314 : vector<128x128xf32>
    %c97_282 = arith.constant 97 : index
    %c0_283 = arith.constant 0 : index
    %316 = vector.load %arg7[%c97_282, %c0_283] : memref<640x128xbf16, #tpu.memory_space<vmem>>, vector<128x128xbf16>
    %c8_284 = arith.constant 8 : index
    %c0_285 = arith.constant 0 : index
    %c0_286 = arith.constant 0 : index
    %317 = vector.load %arg3[%c8_284, %c0_285, %c0_286] : memref<9x128x128xbf16, #tpu.memory_space<vmem>>, vector<1x128x128xbf16>
    %318 = vector.shape_cast %317 : vector<1x128x128xbf16> to vector<128x128xbf16>
    %cst_287 = arith.constant dense<0.000000e+00> : vector<128x128xf32>
    %319 = tpu.matmul %316, %318, %cst_287 {dimension_numbers = #tpu.dot_dimension_numbers<[1], [0], [0], [1], [0, 0, 1, 1], [], []>} : vector<128x128xbf16>, vector<128x128xbf16>, vector<128x128xf32> -> vector<128x128xf32>
    %320 = arith.addf %315, %319 : vector<128x128xf32>
    %c0_288 = arith.constant 0 : index
    %c64_289 = arith.constant 64 : index
    %c0_290 = arith.constant 0 : index
    %321 = vector.load %arg1[%c0_288, %c64_289, %c0_290] : memref<1x640x128xbf16, #tpu.memory_space<vmem>>, vector<1x128x128xbf16>
    %322 = vector.shape_cast %321 : vector<1x128x128xbf16> to vector<128x128xbf16>
    %323 = arith.extf %322 : vector<128x128xbf16> to vector<128x128xf32>
    %324 = vector.broadcast %20 : vector<1x128xf32> to vector<128x128xf32>
    %325 = arith.addf %320, %324 : vector<128x128xf32>
    %326 = arith.addf %325, %323 : vector<128x128xf32>
    %cst_291 = arith.constant 0.000000e+00 : f32
    %327 = vector.broadcast %cst_291 : f32 to vector<128x128xf32>
    %328 = arith.maximumf %326, %327 : vector<128x128xf32>
    %cst_292 = arith.constant 0.000000e+00 : f32
    %329 = vector.shape_cast %18 : vector<128x1xi1> to vector<128x1xi1>
    %330 = vector.broadcast %329 : vector<128x1xi1> to vector<128x128xi1>
    %331 = vector.broadcast %cst_292 : f32 to vector<128x128xf32>
    %332 = arith.select %330, %328, %331 : vector<128x128xi1>, vector<128x128xf32>
    %333 = arith.truncf %332 : vector<128x128xf32> to vector<128x128xbf16>
    %c0_293 = arith.constant 0 : index
    %c0_294 = arith.constant 0 : index
    %c0_295 = arith.constant 0 : index
    %334 = vector.load %arg6[%c0_293, %c0_294, %c0_295] : memref<1x512x128xbf16, #tpu.memory_space<vmem>>, vector<1x128x128xbf16>
    %335 = vector.shape_cast %334 : vector<1x128x128xbf16> to vector<128x128xbf16>
    %336 = vector.shape_cast %333 : vector<128x128xbf16> to vector<1x128x128xbf16>
    tpu.vector_store %arg6[%c0_293, %c0_294, %c0_295], %336 {strides = array<i32>} : memref<1x512x128xbf16, #tpu.memory_space<vmem>>, vector<1x128x128xbf16>,
    %c159_296 = arith.constant 159 : index
    %c0_297 = arith.constant 0 : index
    %337 = vector.load %arg7[%c159_296, %c0_297] : memref<640x128xbf16, #tpu.memory_space<vmem>>, vector<128x128xbf16>
    %c0_298 = arith.constant 0 : index
    %c0_299 = arith.constant 0 : index
    %c0_300 = arith.constant 0 : index
    %338 = vector.load %arg3[%c0_298, %c0_299, %c0_300] : memref<9x128x128xbf16, #tpu.memory_space<vmem>>, vector<1x128x128xbf16>
    %339 = vector.shape_cast %338 : vector<1x128x128xbf16> to vector<128x128xbf16>
    %cst_301 = arith.constant dense<0.000000e+00> : vector<128x128xf32>
    %340 = tpu.matmul %337, %339, %cst_301 {dimension_numbers = #tpu.dot_dimension_numbers<[1], [0], [0], [1], [0, 0, 1, 1], [], []>} : vector<128x128xbf16>, vector<128x128xbf16>, vector<128x128xf32> -> vector<128x128xf32>
    %c160_302 = arith.constant 160 : index
    %c0_303 = arith.constant 0 : index
    %341 = vector.load %arg7[%c160_302, %c0_303] : memref<640x128xbf16, #tpu.memory_space<vmem>>, vector<128x128xbf16>
    %c1_304 = arith.constant 1 : index
    %c0_305 = arith.constant 0 : index
    %c0_306 = arith.constant 0 : index
    %342 = vector.load %arg3[%c1_304, %c0_305, %c0_306] : memref<9x128x128xbf16, #tpu.memory_space<vmem>>, vector<1x128x128xbf16>
    %343 = vector.shape_cast %342 : vector<1x128x128xbf16> to vector<128x128xbf16>
    %cst_307 = arith.constant dense<0.000000e+00> : vector<128x128xf32>
    %344 = tpu.matmul %341, %343, %cst_307 {dimension_numbers = #tpu.dot_dimension_numbers<[1], [0], [0], [1], [0, 0, 1, 1], [], []>} : vector<128x128xbf16>, vector<128x128xbf16>, vector<128x128xf32> -> vector<128x128xf32>
    %345 = arith.addf %340, %344 : vector<128x128xf32>
    %c161_308 = arith.constant 161 : index
    %c0_309 = arith.constant 0 : index
    %346 = vector.load %arg7[%c161_308, %c0_309] : memref<640x128xbf16, #tpu.memory_space<vmem>>, vector<128x128xbf16>
    %c2_310 = arith.constant 2 : index
    %c0_311 = arith.constant 0 : index
    %c0_312 = arith.constant 0 : index
    %347 = vector.load %arg3[%c2_310, %c0_311, %c0_312] : memref<9x128x128xbf16, #tpu.memory_space<vmem>>, vector<1x128x128xbf16>
    %348 = vector.shape_cast %347 : vector<1x128x128xbf16> to vector<128x128xbf16>
    %cst_313 = arith.constant dense<0.000000e+00> : vector<128x128xf32>
    %349 = tpu.matmul %346, %348, %cst_313 {dimension_numbers = #tpu.dot_dimension_numbers<[1], [0], [0], [1], [0, 0, 1, 1], [], []>} : vector<128x128xbf16>, vector<128x128xbf16>, vector<128x128xf32> -> vector<128x128xf32>
    %350 = arith.addf %345, %349 : vector<128x128xf32>
    %c191_314 = arith.constant 191 : index
    %c0_315 = arith.constant 0 : index
    %351 = vector.load %arg7[%c191_314, %c0_315] : memref<640x128xbf16, #tpu.memory_space<vmem>>, vector<128x128xbf16>
    %c3_316 = arith.constant 3 : index
    %c0_317 = arith.constant 0 : index
    %c0_318 = arith.constant 0 : index
    %352 = vector.load %arg3[%c3_316, %c0_317, %c0_318] : memref<9x128x128xbf16, #tpu.memory_space<vmem>>, vector<1x128x128xbf16>
    %353 = vector.shape_cast %352 : vector<1x128x128xbf16> to vector<128x128xbf16>
    %cst_319 = arith.constant dense<0.000000e+00> : vector<128x128xf32>
    %354 = tpu.matmul %351, %353, %cst_319 {dimension_numbers = #tpu.dot_dimension_numbers<[1], [0], [0], [1], [0, 0, 1, 1], [], []>} : vector<128x128xbf16>, vector<128x128xbf16>, vector<128x128xf32> -> vector<128x128xf32>
    %355 = arith.addf %350, %354 : vector<128x128xf32>
    %c192_320 = arith.constant 192 : index
    %c0_321 = arith.constant 0 : index
    %356 = vector.load %arg7[%c192_320, %c0_321] : memref<640x128xbf16, #tpu.memory_space<vmem>>, vector<128x128xbf16>
    %c4_322 = arith.constant 4 : index
    %c0_323 = arith.constant 0 : index
    %c0_324 = arith.constant 0 : index
    %357 = vector.load %arg3[%c4_322, %c0_323, %c0_324] : memref<9x128x128xbf16, #tpu.memory_space<vmem>>, vector<1x128x128xbf16>
    %358 = vector.shape_cast %357 : vector<1x128x128xbf16> to vector<128x128xbf16>
    %cst_325 = arith.constant dense<0.000000e+00> : vector<128x128xf32>
    %359 = tpu.matmul %356, %358, %cst_325 {dimension_numbers = #tpu.dot_dimension_numbers<[1], [0], [0], [1], [0, 0, 1, 1], [], []>} : vector<128x128xbf16>, vector<128x128xbf16>, vector<128x128xf32> -> vector<128x128xf32>
    %360 = arith.addf %355, %359 : vector<128x128xf32>
    %c193_326 = arith.constant 193 : index
    %c0_327 = arith.constant 0 : index
    %361 = vector.load %arg7[%c193_326, %c0_327] : memref<640x128xbf16, #tpu.memory_space<vmem>>, vector<128x128xbf16>
    %c5_328 = arith.constant 5 : index
    %c0_329 = arith.constant 0 : index
    %c0_330 = arith.constant 0 : index
    %362 = vector.load %arg3[%c5_328, %c0_329, %c0_330] : memref<9x128x128xbf16, #tpu.memory_space<vmem>>, vector<1x128x128xbf16>
    %363 = vector.shape_cast %362 : vector<1x128x128xbf16> to vector<128x128xbf16>
    %cst_331 = arith.constant dense<0.000000e+00> : vector<128x128xf32>
    %364 = tpu.matmul %361, %363, %cst_331 {dimension_numbers = #tpu.dot_dimension_numbers<[1], [0], [0], [1], [0, 0, 1, 1], [], []>} : vector<128x128xbf16>, vector<128x128xbf16>, vector<128x128xf32> -> vector<128x128xf32>
    %365 = arith.addf %360, %364 : vector<128x128xf32>
    %c223_332 = arith.constant 223 : index
    %c0_333 = arith.constant 0 : index
    %366 = vector.load %arg7[%c223_332, %c0_333] : memref<640x128xbf16, #tpu.memory_space<vmem>>, vector<128x128xbf16>
    %c6_334 = arith.constant 6 : index
    %c0_335 = arith.constant 0 : index
    %c0_336 = arith.constant 0 : index
    %367 = vector.load %arg3[%c6_334, %c0_335, %c0_336] : memref<9x128x128xbf16, #tpu.memory_space<vmem>>, vector<1x128x128xbf16>
    %368 = vector.shape_cast %367 : vector<1x128x128xbf16> to vector<128x128xbf16>
    %cst_337 = arith.constant dense<0.000000e+00> : vector<128x128xf32>
    %369 = tpu.matmul %366, %368, %cst_337 {dimension_numbers = #tpu.dot_dimension_numbers<[1], [0], [0], [1], [0, 0, 1, 1], [], []>} : vector<128x128xbf16>, vector<128x128xbf16>, vector<128x128xf32> -> vector<128x128xf32>
    %370 = arith.addf %365, %369 : vector<128x128xf32>
    %c224_338 = arith.constant 224 : index
    %c0_339 = arith.constant 0 : index
    %371 = vector.load %arg7[%c224_338, %c0_339] : memref<640x128xbf16, #tpu.memory_space<vmem>>, vector<128x128xbf16>
    %c7_340 = arith.constant 7 : index
    %c0_341 = arith.constant 0 : index
    %c0_342 = arith.constant 0 : index
    %372 = vector.load %arg3[%c7_340, %c0_341, %c0_342] : memref<9x128x128xbf16, #tpu.memory_space<vmem>>, vector<1x128x128xbf16>
    %373 = vector.shape_cast %372 : vector<1x128x128xbf16> to vector<128x128xbf16>
    %cst_343 = arith.constant dense<0.000000e+00> : vector<128x128xf32>
    %374 = tpu.matmul %371, %373, %cst_343 {dimension_numbers = #tpu.dot_dimension_numbers<[1], [0], [0], [1], [0, 0, 1, 1], [], []>} : vector<128x128xbf16>, vector<128x128xbf16>, vector<128x128xf32> -> vector<128x128xf32>
    %375 = arith.addf %370, %374 : vector<128x128xf32>
    %c225_344 = arith.constant 225 : index
    %c0_345 = arith.constant 0 : index
    %376 = vector.load %arg7[%c225_344, %c0_345] : memref<640x128xbf16, #tpu.memory_space<vmem>>, vector<128x128xbf16>
    %c8_346 = arith.constant 8 : index
    %c0_347 = arith.constant 0 : index
    %c0_348 = arith.constant 0 : index
    %377 = vector.load %arg3[%c8_346, %c0_347, %c0_348] : memref<9x128x128xbf16, #tpu.memory_space<vmem>>, vector<1x128x128xbf16>
    %378 = vector.shape_cast %377 : vector<1x128x128xbf16> to vector<128x128xbf16>
    %cst_349 = arith.constant dense<0.000000e+00> : vector<128x128xf32>
    %379 = tpu.matmul %376, %378, %cst_349 {dimension_numbers = #tpu.dot_dimension_numbers<[1], [0], [0], [1], [0, 0, 1, 1], [], []>} : vector<128x128xbf16>, vector<128x128xbf16>, vector<128x128xf32> -> vector<128x128xf32>
    %380 = arith.addf %375, %379 : vector<128x128xf32>
    %c0_350 = arith.constant 0 : index
    %c192_351 = arith.constant 192 : index
    %c0_352 = arith.constant 0 : index
    %381 = vector.load %arg1[%c0_350, %c192_351, %c0_352] : memref<1x640x128xbf16, #tpu.memory_space<vmem>>, vector<1x128x128xbf16>
    %382 = vector.shape_cast %381 : vector<1x128x128xbf16> to vector<128x128xbf16>
    %383 = arith.extf %382 : vector<128x128xbf16> to vector<128x128xf32>
    %384 = vector.broadcast %20 : vector<1x128xf32> to vector<128x128xf32>
    %385 = arith.addf %380, %384 : vector<128x128xf32>
    %386 = arith.addf %385, %383 : vector<128x128xf32>
    %cst_353 = arith.constant 0.000000e+00 : f32
    %387 = vector.broadcast %cst_353 : f32 to vector<128x128xf32>
    %388 = arith.maximumf %386, %387 : vector<128x128xf32>
    %cst_354 = arith.constant 0.000000e+00 : f32
    %389 = vector.shape_cast %18 : vector<128x1xi1> to vector<128x1xi1>
    %390 = vector.broadcast %389 : vector<128x1xi1> to vector<128x128xi1>
    %391 = vector.broadcast %cst_354 : f32 to vector<128x128xf32>
    %392 = arith.select %390, %388, %391 : vector<128x128xi1>, vector<128x128xf32>
    %393 = arith.truncf %392 : vector<128x128xf32> to vector<128x128xbf16>
    %c0_355 = arith.constant 0 : index
    %c128 = arith.constant 128 : index
    %c0_356 = arith.constant 0 : index
    %394 = vector.load %arg6[%c0_355, %c128, %c0_356] : memref<1x512x128xbf16, #tpu.memory_space<vmem>>, vector<1x128x128xbf16>
    %395 = vector.shape_cast %394 : vector<1x128x128xbf16> to vector<128x128xbf16>
    %396 = vector.shape_cast %393 : vector<128x128xbf16> to vector<1x128x128xbf16>
    tpu.vector_store %arg6[%c0_355, %c128, %c0_356], %396 {strides = array<i32>} : memref<1x512x128xbf16, #tpu.memory_space<vmem>>, vector<1x128x128xbf16>,
    %c287_357 = arith.constant 287 : index
    %c0_358 = arith.constant 0 : index
    %397 = vector.load %arg7[%c287_357, %c0_358] : memref<640x128xbf16, #tpu.memory_space<vmem>>, vector<128x128xbf16>
    %c0_359 = arith.constant 0 : index
    %c0_360 = arith.constant 0 : index
    %c0_361 = arith.constant 0 : index
    %398 = vector.load %arg3[%c0_359, %c0_360, %c0_361] : memref<9x128x128xbf16, #tpu.memory_space<vmem>>, vector<1x128x128xbf16>
    %399 = vector.shape_cast %398 : vector<1x128x128xbf16> to vector<128x128xbf16>
    %cst_362 = arith.constant dense<0.000000e+00> : vector<128x128xf32>
    %400 = tpu.matmul %397, %399, %cst_362 {dimension_numbers = #tpu.dot_dimension_numbers<[1], [0], [0], [1], [0, 0, 1, 1], [], []>} : vector<128x128xbf16>, vector<128x128xbf16>, vector<128x128xf32> -> vector<128x128xf32>
    %c288_363 = arith.constant 288 : index
    %c0_364 = arith.constant 0 : index
    %401 = vector.load %arg7[%c288_363, %c0_364] : memref<640x128xbf16, #tpu.memory_space<vmem>>, vector<128x128xbf16>
    %c1_365 = arith.constant 1 : index
    %c0_366 = arith.constant 0 : index
    %c0_367 = arith.constant 0 : index
    %402 = vector.load %arg3[%c1_365, %c0_366, %c0_367] : memref<9x128x128xbf16, #tpu.memory_space<vmem>>, vector<1x128x128xbf16>
    %403 = vector.shape_cast %402 : vector<1x128x128xbf16> to vector<128x128xbf16>
    %cst_368 = arith.constant dense<0.000000e+00> : vector<128x128xf32>
    %404 = tpu.matmul %401, %403, %cst_368 {dimension_numbers = #tpu.dot_dimension_numbers<[1], [0], [0], [1], [0, 0, 1, 1], [], []>} : vector<128x128xbf16>, vector<128x128xbf16>, vector<128x128xf32> -> vector<128x128xf32>
    %405 = arith.addf %400, %404 : vector<128x128xf32>
    %c289_369 = arith.constant 289 : index
    %c0_370 = arith.constant 0 : index
    %406 = vector.load %arg7[%c289_369, %c0_370] : memref<640x128xbf16, #tpu.memory_space<vmem>>, vector<128x128xbf16>
    %c2_371 = arith.constant 2 : index
    %c0_372 = arith.constant 0 : index
    %c0_373 = arith.constant 0 : index
    %407 = vector.load %arg3[%c2_371, %c0_372, %c0_373] : memref<9x128x128xbf16, #tpu.memory_space<vmem>>, vector<1x128x128xbf16>
    %408 = vector.shape_cast %407 : vector<1x128x128xbf16> to vector<128x128xbf16>
    %cst_374 = arith.constant dense<0.000000e+00> : vector<128x128xf32>
    %409 = tpu.matmul %406, %408, %cst_374 {dimension_numbers = #tpu.dot_dimension_numbers<[1], [0], [0], [1], [0, 0, 1, 1], [], []>} : vector<128x128xbf16>, vector<128x128xbf16>, vector<128x128xf32> -> vector<128x128xf32>
    %410 = arith.addf %405, %409 : vector<128x128xf32>
    %c319_375 = arith.constant 319 : index
    %c0_376 = arith.constant 0 : index
    %411 = vector.load %arg7[%c319_375, %c0_376] : memref<640x128xbf16, #tpu.memory_space<vmem>>, vector<128x128xbf16>
    %c3_377 = arith.constant 3 : index
    %c0_378 = arith.constant 0 : index
    %c0_379 = arith.constant 0 : index
    %412 = vector.load %arg3[%c3_377, %c0_378, %c0_379] : memref<9x128x128xbf16, #tpu.memory_space<vmem>>, vector<1x128x128xbf16>
    %413 = vector.shape_cast %412 : vector<1x128x128xbf16> to vector<128x128xbf16>
    %cst_380 = arith.constant dense<0.000000e+00> : vector<128x128xf32>
    %414 = tpu.matmul %411, %413, %cst_380 {dimension_numbers = #tpu.dot_dimension_numbers<[1], [0], [0], [1], [0, 0, 1, 1], [], []>} : vector<128x128xbf16>, vector<128x128xbf16>, vector<128x128xf32> -> vector<128x128xf32>
    %415 = arith.addf %410, %414 : vector<128x128xf32>
    %c320_381 = arith.constant 320 : index
    %c0_382 = arith.constant 0 : index
    %416 = vector.load %arg7[%c320_381, %c0_382] : memref<640x128xbf16, #tpu.memory_space<vmem>>, vector<128x128xbf16>
    %c4_383 = arith.constant 4 : index
    %c0_384 = arith.constant 0 : index
    %c0_385 = arith.constant 0 : index
    %417 = vector.load %arg3[%c4_383, %c0_384, %c0_385] : memref<9x128x128xbf16, #tpu.memory_space<vmem>>, vector<1x128x128xbf16>
    %418 = vector.shape_cast %417 : vector<1x128x128xbf16> to vector<128x128xbf16>
    %cst_386 = arith.constant dense<0.000000e+00> : vector<128x128xf32>
    %419 = tpu.matmul %416, %418, %cst_386 {dimension_numbers = #tpu.dot_dimension_numbers<[1], [0], [0], [1], [0, 0, 1, 1], [], []>} : vector<128x128xbf16>, vector<128x128xbf16>, vector<128x128xf32> -> vector<128x128xf32>
    %420 = arith.addf %415, %419 : vector<128x128xf32>
    %c321_387 = arith.constant 321 : index
    %c0_388 = arith.constant 0 : index
    %421 = vector.load %arg7[%c321_387, %c0_388] : memref<640x128xbf16, #tpu.memory_space<vmem>>, vector<128x128xbf16>
    %c5_389 = arith.constant 5 : index
    %c0_390 = arith.constant 0 : index
    %c0_391 = arith.constant 0 : index
    %422 = vector.load %arg3[%c5_389, %c0_390, %c0_391] : memref<9x128x128xbf16, #tpu.memory_space<vmem>>, vector<1x128x128xbf16>
    %423 = vector.shape_cast %422 : vector<1x128x128xbf16> to vector<128x128xbf16>
    %cst_392 = arith.constant dense<0.000000e+00> : vector<128x128xf32>
    %424 = tpu.matmul %421, %423, %cst_392 {dimension_numbers = #tpu.dot_dimension_numbers<[1], [0], [0], [1], [0, 0, 1, 1], [], []>} : vector<128x128xbf16>, vector<128x128xbf16>, vector<128x128xf32> -> vector<128x128xf32>
    %425 = arith.addf %420, %424 : vector<128x128xf32>
    %c351_393 = arith.constant 351 : index
    %c0_394 = arith.constant 0 : index
    %426 = vector.load %arg7[%c351_393, %c0_394] : memref<640x128xbf16, #tpu.memory_space<vmem>>, vector<128x128xbf16>
    %c6_395 = arith.constant 6 : index
    %c0_396 = arith.constant 0 : index
    %c0_397 = arith.constant 0 : index
    %427 = vector.load %arg3[%c6_395, %c0_396, %c0_397] : memref<9x128x128xbf16, #tpu.memory_space<vmem>>, vector<1x128x128xbf16>
    %428 = vector.shape_cast %427 : vector<1x128x128xbf16> to vector<128x128xbf16>
    %cst_398 = arith.constant dense<0.000000e+00> : vector<128x128xf32>
    %429 = tpu.matmul %426, %428, %cst_398 {dimension_numbers = #tpu.dot_dimension_numbers<[1], [0], [0], [1], [0, 0, 1, 1], [], []>} : vector<128x128xbf16>, vector<128x128xbf16>, vector<128x128xf32> -> vector<128x128xf32>
    %430 = arith.addf %425, %429 : vector<128x128xf32>
    %c352_399 = arith.constant 352 : index
    %c0_400 = arith.constant 0 : index
    %431 = vector.load %arg7[%c352_399, %c0_400] : memref<640x128xbf16, #tpu.memory_space<vmem>>, vector<128x128xbf16>
    %c7_401 = arith.constant 7 : index
    %c0_402 = arith.constant 0 : index
    %c0_403 = arith.constant 0 : index
    %432 = vector.load %arg3[%c7_401, %c0_402, %c0_403] : memref<9x128x128xbf16, #tpu.memory_space<vmem>>, vector<1x128x128xbf16>
    %433 = vector.shape_cast %432 : vector<1x128x128xbf16> to vector<128x128xbf16>
    %cst_404 = arith.constant dense<0.000000e+00> : vector<128x128xf32>
    %434 = tpu.matmul %431, %433, %cst_404 {dimension_numbers = #tpu.dot_dimension_numbers<[1], [0], [0], [1], [0, 0, 1, 1], [], []>} : vector<128x128xbf16>, vector<128x128xbf16>, vector<128x128xf32> -> vector<128x128xf32>
    %435 = arith.addf %430, %434 : vector<128x128xf32>
    %c353_405 = arith.constant 353 : index
    %c0_406 = arith.constant 0 : index
    %436 = vector.load %arg7[%c353_405, %c0_406] : memref<640x128xbf16, #tpu.memory_space<vmem>>, vector<128x128xbf16>
    %c8_407 = arith.constant 8 : index
    %c0_408 = arith.constant 0 : index
    %c0_409 = arith.constant 0 : index
    %437 = vector.load %arg3[%c8_407, %c0_408, %c0_409] : memref<9x128x128xbf16, #tpu.memory_space<vmem>>, vector<1x128x128xbf16>
    %438 = vector.shape_cast %437 : vector<1x128x128xbf16> to vector<128x128xbf16>
    %cst_410 = arith.constant dense<0.000000e+00> : vector<128x128xf32>
    %439 = tpu.matmul %436, %438, %cst_410 {dimension_numbers = #tpu.dot_dimension_numbers<[1], [0], [0], [1], [0, 0, 1, 1], [], []>} : vector<128x128xbf16>, vector<128x128xbf16>, vector<128x128xf32> -> vector<128x128xf32>
    %440 = arith.addf %435, %439 : vector<128x128xf32>
    %c0_411 = arith.constant 0 : index
    %c320_412 = arith.constant 320 : index
    %c0_413 = arith.constant 0 : index
    %441 = vector.load %arg1[%c0_411, %c320_412, %c0_413] : memref<1x640x128xbf16, #tpu.memory_space<vmem>>, vector<1x128x128xbf16>
    %442 = vector.shape_cast %441 : vector<1x128x128xbf16> to vector<128x128xbf16>
    %443 = arith.extf %442 : vector<128x128xbf16> to vector<128x128xf32>
    %444 = vector.broadcast %20 : vector<1x128xf32> to vector<128x128xf32>
    %445 = arith.addf %440, %444 : vector<128x128xf32>
    %446 = arith.addf %445, %443 : vector<128x128xf32>
    %cst_414 = arith.constant 0.000000e+00 : f32
    %447 = vector.broadcast %cst_414 : f32 to vector<128x128xf32>
    %448 = arith.maximumf %446, %447 : vector<128x128xf32>
    %cst_415 = arith.constant 0.000000e+00 : f32
    %449 = vector.shape_cast %18 : vector<128x1xi1> to vector<128x1xi1>
    %450 = vector.broadcast %449 : vector<128x1xi1> to vector<128x128xi1>
    %451 = vector.broadcast %cst_415 : f32 to vector<128x128xf32>
    %452 = arith.select %450, %448, %451 : vector<128x128xi1>, vector<128x128xf32>
    %453 = arith.truncf %452 : vector<128x128xf32> to vector<128x128xbf16>
    %c0_416 = arith.constant 0 : index
    %c256 = arith.constant 256 : index
    %c0_417 = arith.constant 0 : index
    %454 = vector.load %arg6[%c0_416, %c256, %c0_417] : memref<1x512x128xbf16, #tpu.memory_space<vmem>>, vector<1x128x128xbf16>
    %455 = vector.shape_cast %454 : vector<1x128x128xbf16> to vector<128x128xbf16>
    %456 = vector.shape_cast %453 : vector<128x128xbf16> to vector<1x128x128xbf16>
    tpu.vector_store %arg6[%c0_416, %c256, %c0_417], %456 {strides = array<i32>} : memref<1x512x128xbf16, #tpu.memory_space<vmem>>, vector<1x128x128xbf16>,
    %c415_418 = arith.constant 415 : index
    %c0_419 = arith.constant 0 : index
    %457 = vector.load %arg7[%c415_418, %c0_419] : memref<640x128xbf16, #tpu.memory_space<vmem>>, vector<128x128xbf16>
    %c0_420 = arith.constant 0 : index
    %c0_421 = arith.constant 0 : index
    %c0_422 = arith.constant 0 : index
    %458 = vector.load %arg3[%c0_420, %c0_421, %c0_422] : memref<9x128x128xbf16, #tpu.memory_space<vmem>>, vector<1x128x128xbf16>
    %459 = vector.shape_cast %458 : vector<1x128x128xbf16> to vector<128x128xbf16>
    %cst_423 = arith.constant dense<0.000000e+00> : vector<128x128xf32>
    %460 = tpu.matmul %457, %459, %cst_423 {dimension_numbers = #tpu.dot_dimension_numbers<[1], [0], [0], [1], [0, 0, 1, 1], [], []>} : vector<128x128xbf16>, vector<128x128xbf16>, vector<128x128xf32> -> vector<128x128xf32>
    %c416_424 = arith.constant 416 : index
    %c0_425 = arith.constant 0 : index
    %461 = vector.load %arg7[%c416_424, %c0_425] : memref<640x128xbf16, #tpu.memory_space<vmem>>, vector<128x128xbf16>
    %c1_426 = arith.constant 1 : index
    %c0_427 = arith.constant 0 : index
    %c0_428 = arith.constant 0 : index
    %462 = vector.load %arg3[%c1_426, %c0_427, %c0_428] : memref<9x128x128xbf16, #tpu.memory_space<vmem>>, vector<1x128x128xbf16>
    %463 = vector.shape_cast %462 : vector<1x128x128xbf16> to vector<128x128xbf16>
    %cst_429 = arith.constant dense<0.000000e+00> : vector<128x128xf32>
    %464 = tpu.matmul %461, %463, %cst_429 {dimension_numbers = #tpu.dot_dimension_numbers<[1], [0], [0], [1], [0, 0, 1, 1], [], []>} : vector<128x128xbf16>, vector<128x128xbf16>, vector<128x128xf32> -> vector<128x128xf32>
    %465 = arith.addf %460, %464 : vector<128x128xf32>
    %c417_430 = arith.constant 417 : index
    %c0_431 = arith.constant 0 : index
    %466 = vector.load %arg7[%c417_430, %c0_431] : memref<640x128xbf16, #tpu.memory_space<vmem>>, vector<128x128xbf16>
    %c2_432 = arith.constant 2 : index
    %c0_433 = arith.constant 0 : index
    %c0_434 = arith.constant 0 : index
    %467 = vector.load %arg3[%c2_432, %c0_433, %c0_434] : memref<9x128x128xbf16, #tpu.memory_space<vmem>>, vector<1x128x128xbf16>
    %468 = vector.shape_cast %467 : vector<1x128x128xbf16> to vector<128x128xbf16>
    %cst_435 = arith.constant dense<0.000000e+00> : vector<128x128xf32>
    %469 = tpu.matmul %466, %468, %cst_435 {dimension_numbers = #tpu.dot_dimension_numbers<[1], [0], [0], [1], [0, 0, 1, 1], [], []>} : vector<128x128xbf16>, vector<128x128xbf16>, vector<128x128xf32> -> vector<128x128xf32>
    %470 = arith.addf %465, %469 : vector<128x128xf32>
    %c447_436 = arith.constant 447 : index
    %c0_437 = arith.constant 0 : index
    %471 = vector.load %arg7[%c447_436, %c0_437] : memref<640x128xbf16, #tpu.memory_space<vmem>>, vector<128x128xbf16>
    %c3_438 = arith.constant 3 : index
    %c0_439 = arith.constant 0 : index
    %c0_440 = arith.constant 0 : index
    %472 = vector.load %arg3[%c3_438, %c0_439, %c0_440] : memref<9x128x128xbf16, #tpu.memory_space<vmem>>, vector<1x128x128xbf16>
    %473 = vector.shape_cast %472 : vector<1x128x128xbf16> to vector<128x128xbf16>
    %cst_441 = arith.constant dense<0.000000e+00> : vector<128x128xf32>
    %474 = tpu.matmul %471, %473, %cst_441 {dimension_numbers = #tpu.dot_dimension_numbers<[1], [0], [0], [1], [0, 0, 1, 1], [], []>} : vector<128x128xbf16>, vector<128x128xbf16>, vector<128x128xf32> -> vector<128x128xf32>
    %475 = arith.addf %470, %474 : vector<128x128xf32>
    %c448_442 = arith.constant 448 : index
    %c0_443 = arith.constant 0 : index
    %476 = vector.load %arg7[%c448_442, %c0_443] : memref<640x128xbf16, #tpu.memory_space<vmem>>, vector<128x128xbf16>
    %c4_444 = arith.constant 4 : index
    %c0_445 = arith.constant 0 : index
    %c0_446 = arith.constant 0 : index
    %477 = vector.load %arg3[%c4_444, %c0_445, %c0_446] : memref<9x128x128xbf16, #tpu.memory_space<vmem>>, vector<1x128x128xbf16>
    %478 = vector.shape_cast %477 : vector<1x128x128xbf16> to vector<128x128xbf16>
    %cst_447 = arith.constant dense<0.000000e+00> : vector<128x128xf32>
    %479 = tpu.matmul %476, %478, %cst_447 {dimension_numbers = #tpu.dot_dimension_numbers<[1], [0], [0], [1], [0, 0, 1, 1], [], []>} : vector<128x128xbf16>, vector<128x128xbf16>, vector<128x128xf32> -> vector<128x128xf32>
    %480 = arith.addf %475, %479 : vector<128x128xf32>
    %c449_448 = arith.constant 449 : index
    %c0_449 = arith.constant 0 : index
    %481 = vector.load %arg7[%c449_448, %c0_449] : memref<640x128xbf16, #tpu.memory_space<vmem>>, vector<128x128xbf16>
    %c5_450 = arith.constant 5 : index
    %c0_451 = arith.constant 0 : index
    %c0_452 = arith.constant 0 : index
    %482 = vector.load %arg3[%c5_450, %c0_451, %c0_452] : memref<9x128x128xbf16, #tpu.memory_space<vmem>>, vector<1x128x128xbf16>
    %483 = vector.shape_cast %482 : vector<1x128x128xbf16> to vector<128x128xbf16>
    %cst_453 = arith.constant dense<0.000000e+00> : vector<128x128xf32>
    %484 = tpu.matmul %481, %483, %cst_453 {dimension_numbers = #tpu.dot_dimension_numbers<[1], [0], [0], [1], [0, 0, 1, 1], [], []>} : vector<128x128xbf16>, vector<128x128xbf16>, vector<128x128xf32> -> vector<128x128xf32>
    %485 = arith.addf %480, %484 : vector<128x128xf32>
    %c479_454 = arith.constant 479 : index
    %c0_455 = arith.constant 0 : index
    %486 = vector.load %arg7[%c479_454, %c0_455] : memref<640x128xbf16, #tpu.memory_space<vmem>>, vector<128x128xbf16>
    %c6_456 = arith.constant 6 : index
    %c0_457 = arith.constant 0 : index
    %c0_458 = arith.constant 0 : index
    %487 = vector.load %arg3[%c6_456, %c0_457, %c0_458] : memref<9x128x128xbf16, #tpu.memory_space<vmem>>, vector<1x128x128xbf16>
    %488 = vector.shape_cast %487 : vector<1x128x128xbf16> to vector<128x128xbf16>
    %cst_459 = arith.constant dense<0.000000e+00> : vector<128x128xf32>
    %489 = tpu.matmul %486, %488, %cst_459 {dimension_numbers = #tpu.dot_dimension_numbers<[1], [0], [0], [1], [0, 0, 1, 1], [], []>} : vector<128x128xbf16>, vector<128x128xbf16>, vector<128x128xf32> -> vector<128x128xf32>
    %490 = arith.addf %485, %489 : vector<128x128xf32>
    %c480_460 = arith.constant 480 : index
    %c0_461 = arith.constant 0 : index
    %491 = vector.load %arg7[%c480_460, %c0_461] : memref<640x128xbf16, #tpu.memory_space<vmem>>, vector<128x128xbf16>
    %c7_462 = arith.constant 7 : index
    %c0_463 = arith.constant 0 : index
    %c0_464 = arith.constant 0 : index
    %492 = vector.load %arg3[%c7_462, %c0_463, %c0_464] : memref<9x128x128xbf16, #tpu.memory_space<vmem>>, vector<1x128x128xbf16>
    %493 = vector.shape_cast %492 : vector<1x128x128xbf16> to vector<128x128xbf16>
    %cst_465 = arith.constant dense<0.000000e+00> : vector<128x128xf32>
    %494 = tpu.matmul %491, %493, %cst_465 {dimension_numbers = #tpu.dot_dimension_numbers<[1], [0], [0], [1], [0, 0, 1, 1], [], []>} : vector<128x128xbf16>, vector<128x128xbf16>, vector<128x128xf32> -> vector<128x128xf32>
    %495 = arith.addf %490, %494 : vector<128x128xf32>
    %c481_466 = arith.constant 481 : index
    %c0_467 = arith.constant 0 : index
    %496 = vector.load %arg7[%c481_466, %c0_467] : memref<640x128xbf16, #tpu.memory_space<vmem>>, vector<128x128xbf16>
    %c8_468 = arith.constant 8 : index
    %c0_469 = arith.constant 0 : index
    %c0_470 = arith.constant 0 : index
    %497 = vector.load %arg3[%c8_468, %c0_469, %c0_470] : memref<9x128x128xbf16, #tpu.memory_space<vmem>>, vector<1x128x128xbf16>
    %498 = vector.shape_cast %497 : vector<1x128x128xbf16> to vector<128x128xbf16>
    %cst_471 = arith.constant dense<0.000000e+00> : vector<128x128xf32>
    %499 = tpu.matmul %496, %498, %cst_471 {dimension_numbers = #tpu.dot_dimension_numbers<[1], [0], [0], [1], [0, 0, 1, 1], [], []>} : vector<128x128xbf16>, vector<128x128xbf16>, vector<128x128xf32> -> vector<128x128xf32>
    %500 = arith.addf %495, %499 : vector<128x128xf32>
    %c0_472 = arith.constant 0 : index
    %c448_473 = arith.constant 448 : index
    %c0_474 = arith.constant 0 : index
    %501 = vector.load %arg1[%c0_472, %c448_473, %c0_474] : memref<1x640x128xbf16, #tpu.memory_space<vmem>>, vector<1x128x128xbf16>
    %502 = vector.shape_cast %501 : vector<1x128x128xbf16> to vector<128x128xbf16>
    %503 = arith.extf %502 : vector<128x128xbf16> to vector<128x128xf32>
    %504 = vector.broadcast %20 : vector<1x128xf32> to vector<128x128xf32>
    %505 = arith.addf %500, %504 : vector<128x128xf32>
    %506 = arith.addf %505, %503 : vector<128x128xf32>
    %cst_475 = arith.constant 0.000000e+00 : f32
    %507 = vector.broadcast %cst_475 : f32 to vector<128x128xf32>
    %508 = arith.maximumf %506, %507 : vector<128x128xf32>
    %cst_476 = arith.constant 0.000000e+00 : f32
    %509 = vector.shape_cast %18 : vector<128x1xi1> to vector<128x1xi1>
    %510 = vector.broadcast %509 : vector<128x1xi1> to vector<128x128xi1>
    %511 = vector.broadcast %cst_476 : f32 to vector<128x128xf32>
    %512 = arith.select %510, %508, %511 : vector<128x128xi1>, vector<128x128xf32>
    %513 = arith.truncf %512 : vector<128x128xf32> to vector<128x128xbf16>
    %c0_477 = arith.constant 0 : index
    %c384 = arith.constant 384 : index
    %c0_478 = arith.constant 0 : index
    %514 = vector.load %arg6[%c0_477, %c384, %c0_478] : memref<1x512x128xbf16, #tpu.memory_space<vmem>>, vector<1x128x128xbf16>
    %515 = vector.shape_cast %514 : vector<1x128x128xbf16> to vector<128x128xbf16>
    %516 = vector.shape_cast %513 : vector<128x128xbf16> to vector<1x128x128xbf16>
    tpu.vector_store %arg6[%c0_477, %c384, %c0_478], %516 {strides = array<i32>} : memref<1x512x128xbf16, #tpu.memory_space<vmem>>, vector<1x128x128xbf16>,
    return
  }
  func.func @transform_0(%arg0: i32) -> (i32, i32, i32) {
    %c0_i32 = arith.constant 0 : i32
    %c0_i32_0 = arith.constant 0 : i32
    %c0_i32_1 = arith.constant 0 : i32
    return %arg0, %c0_i32, %c0_i32_0 : i32, i32, i32
  }
  func.func @transform_1(%arg0: i32) -> (i32, i32, i32) {
    %c0_i32 = arith.constant 0 : i32
    %c0_i32_0 = arith.constant 0 : i32
    %c0_i32_1 = arith.constant 0 : i32
    %c0_i32_2 = arith.constant 0 : i32
    return %c0_i32, %c0_i32_0, %c0_i32_1 : i32, i32, i32
  }
  func.func @transform_2(%arg0: i32) -> (i32, i32, i32) {
    %c0_i32 = arith.constant 0 : i32
    %c0_i32_0 = arith.constant 0 : i32
    %c0_i32_1 = arith.constant 0 : i32
    %c0_i32_2 = arith.constant 0 : i32
    return %c0_i32, %c0_i32_0, %c0_i32_1 : i32, i32, i32
  }
  func.func @transform_3(%arg0: i32) -> (i32, i32) {
    %c0_i32 = arith.constant 0 : i32
    %c0_i32_0 = arith.constant 0 : i32
    %c0_i32_1 = arith.constant 0 : i32
    return %c0_i32, %c0_i32_0 : i32, i32
  }
  func.func @transform_4(%arg0: i32) -> (i32, i32) {
    %c0_i32 = arith.constant 0 : i32
    %c0_i32_0 = arith.constant 0 : i32
    %c0_i32_1 = arith.constant 0 : i32
    return %c0_i32, %c0_i32_0 : i32, i32
  }
  func.func @transform_5(%arg0: i32) -> (i32, i32, i32) {
    %c0_i32 = arith.constant 0 : i32
    %c0_i32_0 = arith.constant 0 : i32
    %c0_i32_1 = arith.constant 0 : i32
    return %arg0, %c0_i32, %c0_i32_0 : i32, i32, i32
  }
}

</mosaic_0001>

<bundles_post_ra>
// kernel: basic_block_forward.1
= control target key start
LH: loop header
LB: loop body
LE: loop exit
PB: predicated region body
PF: predicated region fallthrough
CT: control target
= control target key end

     0   :  { %s26277_s18 = smov 0   ;;  %s31744_s0 = inlined_call_operand.vmem [shape: bf16[2,640,128], index: 0, kind: input, shape index: {}]   ;;  %s31745_s1 = inlined_call_operand.vmem [shape: bf16[9,128,128], index: 1, kind: input, shape index: {}]   ;;  %s31746_s2 = inlined_call_operand.vmem [shape: bf16[9,128,128], index: 2, kind: input, shape index: {}]   ;;  %s31747_s3 = inlined_call_operand.vmem [shape: f32[1,128], index: 3, kind: input, shape index: {}]   ;;  %s31748_s4 = inlined_call_operand.vmem [shape: f32[1,128], index: 4, kind: input, shape index: {}]   ;;  %s31749_s5 = inlined_call_operand.vmem [shape: bf16[2,512,128], index: 5, kind: output, shape index: {}]  }
   0x1 LB: > { %s19667_s19 = sadd.s32 4294967295, %s26243_s18   ;;  %p19671_p0 = scmp.ge.s32.totalorder %s26243_s18, 1  ;;  %s26243_s18 = sphi %s26277_s18, %s15_s18  }
   0x2   : > { %p187_p1 = scmp.lt.s32.totalorder %s26243_s18, 3 }
   0x4   : > { %p188_p2 = pnand %p19671_p0, %p187_p1 }
   0x5   : > { %v25330_v0 = vld [vmem:[%s31745_s1 + $0x40] sm:$0xff] (!%p188_p2)   ;;  %p215_p3 = scmp.lt.s32.totalorder (!%p188_p2), %s19667_s19, 1  ;;  %v25332_v2 = vld [vmem:[%s31745_s1 + $0x48] sm:$0xff] (!%p188_p2)   ;;  %v25334_v4 = vld [vmem:[%s31745_s1 + $0x50] sm:$0xff] (!%p188_p2)   ;;  %vm715_vm0 = vsmask.f32 (!%p188_p2), 4352 }
   0x6   : > { %191 = sbr.rel (%p188_p2) target bundleno = 1416 (0x588), region = 40  ;;  %v25331_v1 = vld [vmem:[%s31745_s1] sm:$0xff] (!%p188_p2)   ;;  %23015 = vmatprep.subr.bf16.mxu0 (!%p188_p2), %v25330_v0  ;;  %v25333_v3 = vld [vmem:[%s31745_s1 + $0x8] sm:$0xff] (!%p188_p2)   ;;  %v25335_v5 = vld [vmem:[%s31745_s1 + $0x10] sm:$0xff] (!%p188_p2)   ;;  %vm1026_vm1 = vsmask.f32 (!%p188_p2), 7424 }
   0x7   : > { %23047 = vmatprep.subr.bf16.mxu1 (!%p188_p2), %v25331_v1  ;;  %23016 = vmatpush3.bf16.msra.mxu0 (!%p188_p2), %v25330_v0  ;;  %v25336_v6 = vld [vmem:[%s31745_s1 + $0x58] sm:$0xff] (!%p188_p2)   ;;  %v25338_v8 = vld [vmem:[%s31745_s1 + $0x60] sm:$0xff] (!%p188_p2)   ;;  %v25340_v10 = vld [vmem:[%s31745_s1 + $0x68] sm:$0xff] (!%p188_p2)   ;;  %vm10796_vm2 = vsmask.f32 (!%p188_p2), 256 }
   0x8   : > { %23048 = vmatpush3.bf16.msra.mxu1 (!%p188_p2), %v25331_v1  ;;  %23017 = vmatprep.subr.bf16.mxu0 (!%p188_p2), %v25332_v2  ;;  %v25337_v7 = vld [vmem:[%s31745_s1 + $0x18] sm:$0xff] (!%p188_p2)   ;;  %v25339_v9 = vld [vmem:[%s31745_s1 + $0x20] sm:$0xff] (!%p188_p2)   ;;  %v25341_v14 = vld [vmem:[%s31745_s1 + $0x28] sm:$0xff] (!%p188_p2)  }
   0x9   : > { %23049 = vmatprep.subr.bf16.mxu1 (!%p188_p2), %v25333_v3  ;;  %v25342_v21 = vld [vmem:[%s31745_s1 + $0x70] sm:$0xff] (!%p188_p2)   ;;  %v25344_v32 = vld [vmem:[%s31745_s1 + $0x78] sm:$0xff] (!%p188_p2)   ;;  %v25351_v51 = vld [vmem:[%s31745_s1 + $0x80] sm:$0xff] (!%p188_p2)  }
   0xa   : > { %v25343_v22 = vld [vmem:[%s31745_s1 + $0x30] sm:$0xff] (!%p188_p2)   ;;  %v25345_v43 = vld [vmem:[%s31745_s1 + $0x38] sm:$0xff] (!%p188_p2)   ;;  %v25352_v53 = vld [vmem:[%s31745_s1 + $0xc0] sm:$0xff] (!%p188_p2)  }
   0xb   : > { %23018 = vmatpush3.bf16.msra.mxu0 (!%p188_p2), %v25332_v2  ;;  %v25353_v57 = vld [vmem:[%s31745_s1 + $0x88] sm:$0xff] (!%p188_p2)  }
   0xc   : > { %23050 = vmatpush3.bf16.msra.mxu1 (!%p188_p2), %v25333_v3  ;;  %23019 = vmatprep.subr.bf16.mxu0 (!%p188_p2), %v25334_v4  ;;  %v25354_v62 = vld [vmem:[%s31745_s1 + $0xc8] sm:$0xff] (!%p188_p2)  }
   0xd   : > { %s31751_s19 = smov (!%p215_p3, %s19667_s19), 1  ;;  %23051 = vmatprep.subr.bf16.mxu1 %v25335_v5 }
   0xe   : > { %s25319_s11 = smul.u32 320, %s31751_s19  ;;  %s21655_s16 = sshll.u32 %s31751_s19, 8 }
   0xf   : > { %23020 = vmatpush3.bf16.msra.mxu0 %v25334_v4  ;;  %s28851_s22 = scalar_lea.vmem %s31749_s5, %s21655_s16 }
  0x10   : > { %23052 = vmatpush3.bf16.msra.mxu1 %v25335_v5  ;;  %23021 = vmatprep.subr.bf16.mxu0 %v25336_v6  ;;  %s26321_s20 = scalar_lea.vmem %s31744_s0, %s25319_s11 }
  0x11   : > { %23053 = vmatprep.subr.bf16.mxu1 %v25337_v7  ;;  %v461_v11 = vld [vmem:[%s26321_s20 + $0xc] sm:$0x8]  ;;  %v462_v12 = vld [vmem:[%s26321_s20 + $0x10] sm:$0xf]  ;;  %v463_v13 = vld [vmem:[%s26321_s20 + $0x14] sm:$0xf] }
  0x12   : > { %v26333_v15 = vld [vmem:[%s26321_s20 + $0x18] sm:$0xf]  ;;  %v19691_v16 = vcombine.low %v462_v12, %v463_v13  ;;  %v19707_v17 = vcombine.low %v461_v11, %v462_v12  ;;  %v26336_v18 = vld [vmem:[%s26321_s20 + $0x1c] sm:$0xf]  ;;  %v26340_v20 = vld [vmem:[%s26321_s20 + $0x20] sm:$0xf] }
  0x13   : > { %23022 = vmatpush3.bf16.msra.mxu0 %v25336_v6  ;;  %v19708_v19 = vcombine.low %v463_v13, %v26333_v15  ;;  %v19709_v25 = vcombine.low %v26336_v18, %v26340_v20  ;;  %v467_v38 = vld [vmem:[%s26321_s20 + $0x24] sm:$0xf]  ;;  %v26355_v40 = vld [vmem:[%s26321_s20 + $0x28] sm:$0xf]  ;;  %v26358_v41 = vld [vmem:[%s26321_s20 + $0x2c] sm:$0xf]  ;;  %v19692_v56 = vcombine.low %v26333_v15, %v26336_v18 }
  0x14   : > { %23054 = vmatpush3.bf16.msra.mxu1 %v25337_v7  ;;  %23023 = vmatprep.subr.bf16.mxu0 %v25338_v8  ;;  %v717_v23 = vshrl.u32 %v19707_v17, 16  ;;  %v720_v24 = vshll.u32 %v19707_v17, 16  ;;  %v26361_v42 = vld [vmem:[%s26321_s20 + $0x30] sm:$0xf]  ;;  %v19710_v44 = vcombine.low %v467_v38, %v26355_v40  ;;  %v26382_v60 = vld [vmem:[%s26321_s20 + $0x34] sm:$0xf]  ;;  %v19693_v5 = vcombine.low %v26340_v20, %v467_v38 }
  0x15   : > { %23055 = vmatprep.subr.bf16.mxu1 %v25339_v9  ;;  %23031 = vmatprep.mubr.bf16.mxu0 %v19691_v16  ;;  %v725_v26 = vshrl.u32 %v19708_v19, 16  ;;  %v728_v27 = vshll.u32 %v19708_v19, 16  ;;  %v734_v30 = vshrl.u32 %v19709_v25, 16  ;;  %v737_v31 = vshll.u32 %v19709_v25, 16  ;;  %v26385_v61 = vld [vmem:[%s26321_s20 + $0x38] sm:$0xf] }
  0x16   : > { %v719_v28 = vrot.slane %v717_v23, 3  ;;  %v722_v29 = vrot.slane %v720_v24, 4  ;;  %v19711_v45 = vcombine.low %v26358_v41, %v26361_v42  ;;  %v743_v47 = vshrl.u32 %v19710_v44, 16  ;;  %v26393_v1 = vld [vmem:[%s26321_s20 + $0x3c] sm:$0xf]  ;;  %v25359_v15 = vld [vmem:[%s31745_s1 + $0x90] sm:$0xff]  }
  0x17   : > { %23024 = vmatpush3.bf16.msra.mxu0 %v25338_v8  ;;  %v727_v33 = vrot.slane %v725_v26, 3  ;;  %v730_v34 = vrot.slane %v728_v27, 4  ;;  %v736_v36 = vrot.slane %v734_v30, 3  ;;  %v739_v37 = vrot.slane %v737_v31, 4  ;;  %v26396_v2 = vld [vmem:[%s26321_s20 + $0x40] sm:$0xf] }
  0x18   : > { %23056 = vmatpush3.bf16.msra.mxu1 %v25339_v9  ;;  %23025 = vmatprep.subr.bf16.mxu0 %v25340_v10  ;;  %v723_v35 = vor.u32 %v722_v29, %v719_v28  ;;  %v746_v48 = vshll.u32 %v19710_v44, 16  ;;  %v752_v49 = vshrl.u32 %v19711_v45, 16  ;;  %v755_v52 = vshll.u32 %v19711_v45, 16  ;;  %v26404_v13 = vld [vmem:[%s26321_s20 + $0x44] sm:$0xf]  ;;  %v25360_v18 = vld [vmem:[%s31745_s1 + $0xd0] sm:$0xff]  }
  0x19   : > { %23057 = vmatprep.subr.bf16.mxu1 %v25341_v14  ;;  %v731_v39 = vor.u32 %v730_v34, %v727_v33  ;;  %v740_v50 = vor.u32 %v739_v37, %v736_v36  ;;  %v745_v54 = vrot.slane %v743_v47, 3  ;;  %v19712_v0 = vcombine.low %v26382_v60, %v26385_v61  ;;  %v26410_v16 = vld [vmem:[%s26321_s20 + $0x48] sm:$0xf]  ;;  %v26413_v17 = vld [vmem:[%s26321_s20 + $0x4c] sm:$0xf]  ;;  %v25361_v28 = vld [vmem:[%s31745_s1 + $0x98] sm:$0xff]  }
  0x1a   : > { %v748_v55 = vrot.slane %v746_v48, 4  ;;  %v754_v58 = vrot.slane %v752_v49, 3  ;;  %v757_v59 = vrot.slane %v755_v52, 4  ;;  %v19713_v4 = vcombine.low %v26393_v1, %v26396_v2  ;;  %v25362_v29 = vld [vmem:[%s31745_s1 + $0xd8] sm:$0xff]   ;;  %v25379_v38 = vld [vmem:[%s26321_s20 + $0x10] sm:$0xff]   ;;  %v25368_v44 = vld [vmem:[%s31745_s1 + $0xe0] sm:$0xff]  }
  0x1b   : > { %23026 = vmatpush3.bf16.msra.mxu0 %v25340_v10  ;;  %v732_v46 = vsel %vm715_vm0, %v723_v35, %v731_v39  ;;  %v741_v3 = vsel %vm715_vm0, %v731_v39, %v740_v50  ;;  %v761_v6 = vshrl.u32 %v19712_v0, 16  ;;  %v764_v7 = vshll.u32 %v19712_v0, 16  ;;  %v26439_v39 = vld [vmem:[%s26321_s20 + $0x18] sm:$0xff]   ;;  %v26457_v47 = vld [vmem:[%s26321_s20 + $0x20] sm:$0xff]   ;;  %v25369_v49 = vld [vmem:[%s31745_s1 + $0xa8] sm:$0xff]  }
  0x1c   : > { %23058 = vmatpush3.bf16.msra.mxu1 %v25341_v14  ;;  %23027 = vmatprep.subr.bf16.mxu0 %v25342_v21  ;;  %v749_v63 = vor.u32 %v748_v55, %v745_v54  ;;  %v770_v8 = vshrl.u32 %v19713_v4, 16  ;;  %v773_v9 = vshll.u32 %v19713_v4, 16  ;;  %v758_v14 = vor.u32 %v757_v59, %v754_v58  ;;  %v26471_v58 = vld [vmem:[%s26321_s20 + $0x2c] sm:$0xf] }
  0x1d   : > { %23059 = vmatprep.subr.bf16.mxu1 %v25343_v22  ;;  %23063 = vmatprep.mubr.bf16.mxu1 %v732_v46  ;;  %v763_v11 = vrot.slane %v761_v6, 3  ;;  %v766_v12 = vrot.slane %v764_v7, 4  ;;  %v19714_v19 = vcombine.low %v26404_v13, %v26410_v16  ;;  %v19694_v20 = vcombine.low %v26355_v40, %v26358_v41  ;;  %v1264_v40 = vld [vmem:[%s26321_s20 + $0x1c] sm:$0x8]  ;;  %v26443_v41 = vld [vmem:[%s26321_s20 + $0x20] sm:$0xf] }
  0x1e   : > { %v750_v10 = vsel %vm715_vm0, %v740_v50, %v749_v63  ;;  %v19715_v23 = vcombine.low %v26413_v17, %v26413_v17  ;;  %v759_v27 = vsel %vm715_vm0, %v749_v63, %v758_v14  ;;  %v19695_v30 = vcombine.low %v26361_v42, %v26382_v60  ;;  %v26446_v42 = vld [vmem:[%s26321_s20 + $0x24] sm:$0xf]  ;;  %v26454_v46 = vld [vmem:[%s26321_s20 + $0x28] sm:$0xf]  ;;  %v26474_v63 = vld [vmem:[%s26321_s20 + $0x30] sm:$0xf] }
  0x1f   : > { %23028 = vmatpush3.bf16.msra.mxu0 %v25342_v21  ;;  %v772_v21 = vrot.slane %v770_v8, 3  ;;  %v767_v24 = vor.u32 %v766_v12, %v763_v11  ;;  %v779_v25 = vshrl.u32 %v19714_v19, 16  ;;  %v782_v26 = vshll.u32 %v19714_v19, 16 }
  0x20   : > { %23060 = vmatpush3.bf16.msra.mxu1 %v25343_v22  ;;  %23029 = vmatprep.subr.bf16.mxu0 %v25344_v32  ;;  %v775_v22 = vrot.slane %v773_v9, 4  ;;  %v788_v33 = vshrl.u32 %v19715_v23, 16  ;;  %v791_v34 = vshll.u32 %v19715_v23, 16  ;;  %v1030_v45 = vshll.u32 %v25379_v38, 16 }
  0x21   : > { %23061 = vmatprep.subr.bf16.mxu1 %v25345_v43  ;;  %v768_v35 = vsel %vm715_vm0, %v758_v14, %v767_v24  ;;  %v781_v36 = vrot.slane %v779_v25, 3  ;;  %v784_v37 = vrot.slane %v782_v26, 4  ;;  %v19774_v52 = vcombine.low %v26446_v42, %v26454_v46  ;;  %v26489_v14 = vld [vmem:[%s26321_s20 + $0x28] sm:$0xff]  }
  0x22   : > { %v776_v31 = vor.u32 %v775_v22, %v772_v21  ;;  %v790_v50 = vrot.slane %v788_v33, 3  ;;  %v793_v55 = vrot.slane %v791_v34, 4  ;;  %v19697_v0 = vcombine.low %v26396_v2, %v26404_v13  ;;  %v25376_v13 = vld [vmem:[%s31745_s1 + $0xf0] sm:$0xff]   ;;  %v26515_v33 = vld [vmem:[%s26321_s20 + $0x40] sm:$0xf] }
  0x23   : > { %23030 = vmatpush3.bf16.msra.mxu0 %v25344_v32  ;;  %v25367_v32 = vld [vmem:[%s31745_s1 + $0xa0] sm:$0xff]   ;;  %v785_v54 = vor.u32 %v784_v37, %v781_v36  ;;  %v19775_v4 = vcombine.low %v26471_v58, %v26474_v63  ;;  %v1039_v21 = vshrl.u32 %v26439_v39, 16  ;;  %v26498_v22 = vld [vmem:[%s26321_s20 + $0x34] sm:$0xf] }
  0x24   : > { %23062 = vmatpush3.bf16.msra.mxu1 %v25345_v43  ;;  %23079 = vmatprep.subr.bf16.mxu0 %v25351_v51  ;;  %v19696_v43 = vcombine.low %v26385_v61, %v26393_v1  ;;  %v777_v48 = vsel %vm715_vm0, %v767_v24, %v776_v31  ;;  %v1350_v61 = vshrl.u32 %v19774_v52, 16  ;;  %v1032_v1 = vrot.slane %v1030_v45, 1 }
  0x25   : > { %23111 = vmatprep.subr.bf16.mxu1 %v25352_v53  ;;  %v786_v2 = vsel %vm715_vm0, %v776_v31, %v785_v54  ;;  %v1362_v11 = vshll.u32 %v19775_v4, 16  ;;  %v794_v12 = vor.u32 %v793_v55, %v790_v50  ;;  %v1047_v31 = vshrl.u32 %v26457_v47, 16  ;;  %v25386_v50 = vld [vmem:[%s31745_s1 + $0x140] sm:$0xff]  }
  0x26   : > { %23032 = vmatmul.mubr.bf16.vlgmr.msra.gmra.mrb[0].mxu0 %v19692_v56  ;;  %v1028_v56 = vshrl.u32 %v25379_v38, 16  ;;  %v1352_v8 = vrot.slane %v1350_v61, 3  ;;  %v26522_v38 = vld [vmem:[%s26321_s20 + $0x30] sm:$0xff]   ;;  %v26540_v61 = vld [vmem:[%s26321_s20 + $0x44] sm:$0xf] }
  0x27   : > { %23064 = vmatmul.mubr.bf16.vlgmr.msra.gmra.mrb[0].mxu1 %v741_v3  ;;  %23080 = vmatpush3.bf16.msra.mxu0 %v25351_v51  ;;  %v19773_v51 = vcombine.low %v1264_v40, %v26443_v41  ;;  %v1043_v3 = vshll.u32 %v26457_v47, 16  ;;  %v1364_v26 = vrot.slane %v1362_v11, 4  ;;  %v1059_v55 = vshll.u32 %v26522_v38, 16 }
  0x28   : > { %23112 = vmatpush3.bf16.msra.mxu1 %v25352_v53  ;;  %23081 = vmatprep.subr.bf16.mxu0 %v25353_v57  ;;  %v25370_v53 = vld [vmem:[%s31745_s1 + $0xe8] sm:$0xff]   ;;  %v1033_v19 = vor.u32 %v1032_v1, %v1028_v56 }
  0x29   : > { %23113 = vmatprep.subr.bf16.mxu1 %v25354_v62  ;;  %23035 = vmatprep.mubr.bf16.mxu0 %v19693_v5  ;;  %v1342_v59 = vshrl.u32 %v19773_v51, 16  ;;  %v1345_v60 = vshll.u32 %v19773_v51, 16  ;;  %v25375_v5 = vld [vmem:[%s31745_s1 + $0xb0] sm:$0xff]  }
  0x2a   : > { %23067 = vmatprep.mubr.bf16.mxu1 %v750_v10  ;;  %v1359_v10 = vshrl.u32 %v19775_v4, 16  ;;  %v26549_v4 = vld [vmem:[%s26321_s20 + $0x40] sm:$0xff]  }
  0x2b   : > { %23082 = vmatpush3.bf16.msra.mxu0 %v25353_v57  ;;  %v1035_v57 = vshll.u32 %v26439_v39, 16  ;;  %v1344_v6 = vrot.slane %v1342_v59, 3  ;;  %v1347_v7 = vrot.slane %v1345_v60, 4  ;;  %v26537_v60 = vld [vmem:[%s26321_s20 + $0x38] sm:$0xff]  }
  0x2c   : > { %23114 = vmatpush3.bf16.msra.mxu1 %v25354_v62  ;;  %23083 = vmatprep.subr.bf16.mxu0 %v25359_v15  ;;  %v1353_v62 = vshll.u32 %v19774_v52, 16  ;;  %v1361_v25 = vrot.slane %v1359_v10, 3 }
  0x2d   : > { %23115 = vmatprep.subr.bf16.mxu1 %v25360_v18  ;;  %v1348_v23 = vor.u32 %v1347_v7, %v1344_v6  ;;  %v26556_v7 = vld [vmem:[%s26321_s20 + $0x4c] sm:$0xf] }
  0x2e   : > { %23036 = vmatmul.mubr.bf16.gmra.mrb[4].mxu0 %v19694_v20  ;;  %v1355_v9 = vrot.slane %v1353_v62, 4  ;;  %v1037_v20 = vrot.slane %v1035_v57, 1  ;;  %v26543_v62 = vld [vmem:[%s26321_s20 + $0x48] sm:$0xf] }
  0x2f   : > { %23068 = vmatmul.mubr.bf16.gmra.mrb[4].mxu1 %v759_v27  ;;  %23084 = vmatpush3.bf16.msra.mxu0 %v25359_v15  ;;  %v19698_v15 = vcombine.low %v26410_v16, %v26413_v17  ;;  %v26501_v27 = vld [vmem:[%s26321_s20 + $0x38] sm:$0xf]  ;;  %v795_v16 = vsel %vm715_vm0, %v785_v54, %v794_v12  ;;  %v1055_v54 = vshrl.u32 %v26489_v14, 16 }
  0x30   : > { %23116 = vmatpush3.bf16.msra.mxu1 %v25360_v18  ;;  %23085 = vmatprep.subr.bf16.mxu0 %v25361_v28  ;;  %v25377_v18 = vld [vmem:[%s31745_s1 + $0xb8] sm:$0xff]   ;;  %v1356_v24 = vor.u32 %v1355_v9, %v1352_v8  ;;  %v1038_v34 = vsel %vm1026_vm1, %v1033_v19, %v1037_v20  ;;  %v1041_v40 = vor.u32 %v1039_v21, %v1037_v20  ;;  %v26559_v8 = vld [vmem:[%s26321_s20 + $0x50] sm:$0xf]  ;;  %v1063_v9 = vshrl.u32 %v26522_v38, 16  ;;  %v25405_v38 = vld [vmem:[%s26321_s20 + $0x48] sm:$0xff]  }
  0x31   : > { %23117 = vmatprep.subr.bf16.mxu1 %v25362_v29  ;;  %23039 = vmatprep.mubr.bf16.mxu0 %v19695_v30  ;;  %v25378_v17 = vld [vmem:[%s31745_s1 + $0xf8] sm:$0xff]   ;;  %v25394_v20 = vld [vmem:[%s31745_s1 + $0x150] sm:$0xff]  }
  0x32   : > { %23071 = vmatprep.mubr.bf16.mxu1 %v768_v35  ;;  %v26510_v30 = vld [vmem:[%s26321_s20 + $0x3c] sm:$0xf]  ;;  %v25385_v35 = vld [vmem:[%s31745_s1 + $0x100] sm:$0xff]  }
  0x33   : > { %23086 = vmatpush3.bf16.msra.mxu0 %v25361_v28  ;;  %v1045_v28 = vrot.slane %v1043_v3, 1  ;;  %v19777_v39 = vcombine.low %v26510_v30, %v26515_v33  ;;  %v19778_v3 = vcombine.low %v26540_v61, %v26543_v62 }
  0x34   : > { %23118 = vmatpush3.bf16.msra.mxu1 %v25362_v29  ;;  %23087 = vmatprep.subr.bf16.mxu0 %v25367_v32  ;;  %v19776_v29 = vcombine.low %v26498_v22, %v26501_v27 }
  0x35   : > { %23119 = vmatprep.subr.bf16.mxu1 %v25368_v44  ;;  %v1049_v51 = vor.u32 %v1047_v31, %v1045_v28  ;;  %v1046_v56 = vsel %vm1026_vm1, %v1041_v40, %v1045_v28  ;;  %v1386_v10 = vshrl.u32 %v19778_v3, 16  ;;  %v1389_v11 = vshll.u32 %v19778_v3, 16  ;;  %v25396_v31 = vld [vmem:[%s31745_s1 + $0x158] sm:$0xff]  }
  0x36   : > { %23040 = vmatmul.mubr.bf16.gmra.mrb[8].mxu0 %v19696_v43  ;;  %v1368_v36 = vshrl.u32 %v19776_v29, 16  ;;  %v1371_v37 = vshll.u32 %v19776_v29, 16  ;;  %v1357_v43 = vsel %vm715_vm0, %v1348_v23, %v1356_v24  ;;  %v26587_v40 = vld [vmem:[%s26321_s20 + $0x58] sm:$0xf] }
  0x37   : > { %23072 = vmatmul.mubr.bf16.gmra.mrb[8].mxu1 %v777_v48  ;;  %23088 = vmatpush3.bf16.msra.mxu0 %v25367_v32  ;;  %v1051_v32 = vshll.u32 %v26489_v14, 16  ;;  %v1377_v48 = vshrl.u32 %v19777_v39, 16  ;;  %v1061_v14 = vrot.slane %v1059_v55, 1  ;;  %v1388_v21 = vrot.slane %v1386_v10, 3 }
  0x38   : > { %23120 = vmatpush3.bf16.msra.mxu1 %v25368_v44  ;;  %23089 = vmatprep.subr.bf16.mxu0 %v25369_v49  ;;  %v1365_v44 = vor.u32 %v1364_v26, %v1361_v25  ;;  %v1370_v45 = vrot.slane %v1368_v36, 3  ;;  %v1373_v47 = vrot.slane %v1371_v37, 4  ;;  %v1391_v23 = vrot.slane %v1389_v11, 4  ;;  %v25404_v11 = vld [vmem:[%s31745_s1 + $0x168] sm:$0xff]  }
  0x39   : > { %23121 = vmatprep.subr.bf16.mxu1 %v25370_v53  ;;  %23043 = vmatprep.mubr.bf16.mxu0 %v19697_v0  ;;  %v1053_v52 = vrot.slane %v1051_v32, 1  ;;  %v1379_v59 = vrot.slane %v1377_v48, 3  ;;  %v1079_v48 = vshrl.u32 %v26549_v4, 16 }
  0x3a   : > { %23075 = vmatprep.mubr.bf16.mxu1 %v786_v2  ;;  %v1374_v57 = vor.u32 %v1373_v47, %v1370_v45  ;;  %v1366_v0 = vsel %vm715_vm0, %v1356_v24, %v1365_v44  ;;  %v1067_v2 = vshll.u32 %v26537_v60, 16  ;;  %v1075_v24 = vshll.u32 %v26549_v4, 16  ;;  %v25407_v45 = vld [vmem:[%s26321_s20 + $0x50] ss:$0 sps:$4 sm:$0x11]  }
  0x3b   : > { %23090 = vmatpush3.bf16.msra.mxu0 %v25369_v49  ;;  %v1380_v49 = vshll.u32 %v19777_v39, 16  ;;  %v1054_v6 = vsel %vm1026_vm1, %v1049_v51, %v1053_v52  ;;  %v1392_v32 = vor.u32 %v1391_v23, %v1388_v21  ;;  %v26584_v39 = vld [vmem:[%s26321_s20 + $0x54] sm:$0xf]  ;;  %v1091_v4 = vshll.u32 %v25407_v45, 16  ;;  %v25423_v45 = vld [vmem:[%s26321_s20 + $0x38] sm:$0xff]  }
  0x3c   : > { %23122 = vmatpush3.bf16.msra.mxu1 %v25370_v53  ;;  %23091 = vmatprep.subr.bf16.mxu0 %v25375_v5  ;;  %v25387_v53 = vld [vmem:[%s31745_s1 + $0x108] sm:$0xff]   ;;  %v1375_v12 = vsel %vm715_vm0, %v1365_v44, %v1374_v57  ;;  %v1069_v28 = vrot.slane %v1067_v2, 1  ;;  %v19780_v44 = vcombine.low %v26584_v39, %v26587_v40 }
  0x3d   : > { %23123 = vmatprep.subr.bf16.mxu1 %v25376_v13  ;;  %v1382_v1 = vrot.slane %v1380_v49, 4  ;;  %v1083_v49 = vshll.u32 %v25405_v38, 16  ;;  %v1093_v23 = vrot.slane %v1091_v4, 1  ;;  %v1889_v4 = vshrl.u32 %v25423_v45, 16 }
  0x3e   : > { %23044 = vmatmul.mubr.bf16.gmra.mrb[12].mxu0 %v19698_v15  ;;  %v25393_v15 = vld [vmem:[%s31745_s1 + $0x110] sm:$0xff]   ;;  %v1407_v55 = vshll.u32 %v19780_v44, 16 }
  0x3f   : > { %23076 = vmatmul.mubr.bf16.gmra.mrb[12].mxu1 %v795_v16  ;;  %23092 = vmatpush3.bf16.msra.mxu0 %v25375_v5  ;;  %v25388_v5 = vld [vmem:[%s31745_s1 + $0x148] sm:$0xff]   ;;  %v1383_v19 = vor.u32 %v1382_v1, %v1379_v59  ;;  %v25395_v16 = vld [vmem:[%s31745_s1 + $0x118] sm:$0xff]   ;;  %v1087_v59 = vshrl.u32 %v25405_v38, 16 }
  0x40   : > { %23124 = vmatpush3.bf16.msra.mxu1 %v25376_v13  ;;  %23093 = vmatprep.subr.bf16.mxu0 %v25377_v18  ;;  %v1057_v13 = vor.u32 %v1055_v54, %v1053_v52  ;;  %v1404_v54 = vshrl.u32 %v19780_v44, 16  ;;  %v1409_v3 = vrot.slane %v1407_v55, 4 }
  0x41   : > { %23125 = vmatprep.subr.bf16.mxu1 %v25378_v17  ;;  %23095 = vmatprep.mubr.bf16.mxu0 %v1038_v34  ;;  %v1071_v34 = vshrl.u32 %v26537_v60, 16  ;;  %v1384_v36 = vsel %vm715_vm0, %v1374_v57, %v1383_v19  ;;  %v1393_v51 = vsel %vm715_vm0, %v1383_v19, %v1392_v32  ;;  %v25402_v57 = vld [vmem:[%s31745_s1 + $0x160] sm:$0xff]   ;;  %v25415_v19 = vld [vmem:[%s26321_s20 + $0x28] sm:$0xff]  }
  0x42   : > { %23127 = vmatprep.mubr.bf16.mxu1 %v1357_v43  ;;  %v1062_v29 = vsel %vm1026_vm1, %v1057_v13, %v1061_v14  ;;  %v1077_v43 = vrot.slane %v1075_v24, 1  ;;  %v1406_v1 = vrot.slane %v1404_v54, 3 }
  0x43   : > { %23094 = vmatpush3.bf16.msra.mxu0 %v25377_v18  ;;  %v19779_v18 = vcombine.low %v26556_v7, %v26559_v8  ;;  %v1073_v52 = vor.u32 %v1071_v34, %v1069_v28  ;;  %v25411_v34 = vld [vmem:[%s31745_s1 + $0x138] sm:$0xff]  }
  0x44   : > { %23126 = vmatpush3.bf16.msra.mxu1 %v25378_v17  ;;  %23143 = vmatprep.subr.bf16.mxu0 %v25385_v35  ;;  %v1065_v17 = vor.u32 %v1063_v9, %v1061_v14 }
  0x45   : > { %23175 = vmatprep.subr.bf16.mxu1 %v25386_v50  ;;  %v1395_v25 = vshrl.u32 %v19779_v18, 16  ;;  %v1398_v26 = vshll.u32 %v19779_v18, 16  ;;  %v1078_v10 = vsel %vm1026_vm1, %v1073_v52, %v1077_v43  ;;  %v25414_v18 = vld [vmem:[%s26321_s20 + $0x20] sm:$0xff]  }
  0x46   : > { %23096 = vmatmul.mubr.bf16.vlgmr.msra.gmra.mrb[16].mxu0 %v1046_v56  ;;  %v1070_v47 = vsel %vm1026_vm1, %v1065_v17, %v1069_v28  ;;  %v1869_v17 = vshll.u32 %v25415_v19, 16 }
  0x47   : > { %23128 = vmatmul.mubr.bf16.vlgmr.msra.gmra.mrb[16].mxu1 %v1366_v0  ;;  %23144 = vmatpush3.bf16.msra.mxu0 %v25385_v35  ;;  %v1397_v35 = vrot.slane %v1395_v25, 3  ;;  %v1400_v37 = vrot.slane %v1398_v26, 4  ;;  %v1085_v0 = vrot.slane %v1083_v49, 1  ;;  %v25409_v25 = vld [vmem:[%s31745_s1 + $0x130] sm:$0xff]   ;;  %v1862_v26 = vshrl.u32 %v25414_v18, 16  ;;  %v25418_v49 = vld [vmem:[%s31745_s1 + $0x180] sm:$0xff]  }
  0x48   : > { %23176 = vmatpush3.bf16.msra.mxu1 %v25386_v50  ;;  %23145 = vmatprep.subr.bf16.mxu0 %v25387_v53  ;;  %v26595_v50 = vld [vmem:[%s26321_s20 + $0x5c] sm:$0xf] }
  0x49   : > { %23177 = vmatprep.subr.bf16.mxu1 %v25388_v5  ;;  %23099 = vmatprep.mubr.bf16.mxu0 %v1054_v6  ;;  %v1401_v56 = vor.u32 %v1400_v37, %v1397_v35  ;;  %v19781_v60 = vcombine.low %v26595_v50, %v26595_v50  ;;  %v1081_v6 = vor.u32 %v1079_v48, %v1077_v43  ;;  %v1871_v35 = vrot.slane %v1869_v17, 1  ;;  %v26684_v17 = vld [vmem:[%s26321_s20 + $0x30] sm:$0xf] }
  0x4a   : > { %23131 = vmatprep.mubr.bf16.mxu1 %v1375_v12  ;;  %v1410_v12 = vor.u32 %v1409_v3, %v1406_v1  ;;  %v1089_v21 = vor.u32 %v1087_v59, %v1085_v0  ;;  %v19806_v48 = vcombine.low %v26443_v41, %v26446_v42  ;;  %v25419_v41 = vld [vmem:[%s31745_s1 + $0x1c0] sm:$0xff]   ;;  %v19807_v42 = vcombine.low %v26454_v46, %v26471_v58  ;;  %v25421_v59 = vld [vmem:[%s31745_s1 + $0x1c8] sm:$0xff]   ;;  %v25433_v58 = vld [vmem:[%s26321_s20 + $0x50] sm:$0xff]  }
  0x4b   : > { %23146 = vmatpush3.bf16.msra.mxu0 %v25387_v53  ;;  %v25401_v53 = vld [vmem:[%s31745_s1 + $0x120] sm:$0xff]   ;;  %v1413_v9 = vshrl.u32 %v19781_v60, 16  ;;  %v1416_v2 = vshll.u32 %v19781_v60, 16  ;;  %v1402_v13 = vsel %vm715_vm0, %v1392_v32, %v1401_v56  ;;  %v25431_v1 = vld [vmem:[%s26321_s20 + $0x48] sm:$0xff]   ;;  %v19808_v46 = vcombine.low %v26474_v63, %v26498_v22  ;;  %v25427_v63 = vld [vmem:[%s31745_s1 + $0x1d0] sm:$0xff]  }
  0x4c   : > { %23178 = vmatpush3.bf16.msra.mxu1 %v25388_v5  ;;  %23147 = vmatprep.subr.bf16.mxu0 %v25393_v15  ;;  %v25403_v5 = vld [vmem:[%s31745_s1 + $0x128] sm:$0xff]   ;;  %v1411_v24 = vsel %vm715_vm0, %v1401_v56, %v1410_v12  ;;  %v1094_v37 = vsel %vm1026_vm1, %v1089_v21, %v1093_v23  ;;  %v25425_v56 = vld [vmem:[%s26321_s20 + $0x40] sm:$0xff]   ;;  %v1909_v22 = vshll.u32 %v25433_v58, 16  ;;  %v19810_v21 = vcombine.low %v26515_v33, %v26540_v61 }
  0x4d   : > { %23179 = vmatprep.subr.bf16.mxu1 %v25394_v20  ;;  %v1415_v14 = vrot.slane %v1413_v9, 3  ;;  %v1897_v9 = vshrl.u32 %v25425_v56, 16  ;;  %v25435_v61 = vld [vmem:[%s31745_s1 + $0x1e0] sm:$0xff]  }
  0x4e   : > { %23100 = vmatmul.mubr.bf16.gmra.mrb[20].mxu0 %v1062_v29  ;;  %v25417_v29 = vld [vmem:[%s26321_s20 + $0x30] sm:$0xff]   ;;  %v1911_v23 = vrot.slane %v1909_v22, 1 }
  0x4f   : > { %23132 = vmatmul.mubr.bf16.gmra.mrb[20].mxu1 %v1384_v36  ;;  %23148 = vmatpush3.bf16.msra.mxu0 %v25393_v15  ;;  %v1418_v15 = vrot.slane %v1416_v2, 4  ;;  %v1873_v36 = vshrl.u32 %v25415_v19, 16  ;;  %v1877_v44 = vshll.u32 %v25417_v29, 16  ;;  %v1881_v52 = vshrl.u32 %v25417_v29, 16  ;;  %v26670_v19 = vld [vmem:[%s26321_s20 + $0x58] sm:$0xff]  }
  0x50   : > { %23180 = vmatpush3.bf16.msra.mxu1 %v25394_v20  ;;  %23149 = vmatprep.subr.bf16.mxu0 %v25395_v16  ;;  %v1086_v20 = vsel %vm1026_vm1, %v1081_v6, %v1085_v0  ;;  %v1901_v2 = vshll.u32 %v25431_v1, 16  ;;  %v26690_v29 = vld [vmem:[%s26321_s20 + $0x38] sm:$0xf] }
  0x51   : > { %23181 = vmatprep.subr.bf16.mxu1 %v25396_v31  ;;  %23103 = vmatprep.mubr.bf16.mxu0 %v1070_v47  ;;  %v1419_v28 = vor.u32 %v1418_v15, %v1415_v14  ;;  %v25412_v47 = vld [vmem:[%s31745_s1 + $0x178] sm:$0xff]   ;;  %v1875_v54 = vor.u32 %v1873_v36, %v1871_v35  ;;  %v1879_v55 = vrot.slane %v1877_v44, 1 }
  0x52   : > { %23135 = vmatprep.mubr.bf16.mxu1 %v1393_v51  ;;  %v25428_v14 = vld [vmem:[%s31745_s1 + $0x198] sm:$0xff]  }
  0x53   : > { %23150 = vmatpush3.bf16.msra.mxu0 %v25395_v16  ;;  %v1864_v16 = vshll.u32 %v25414_v18, 16  ;;  %v1420_v43 = vsel %vm715_vm0, %v1410_v12, %v1419_v28  ;;  %v1883_v60 = vor.u32 %v1881_v52, %v1879_v55  ;;  %v1880_v3 = vsel %vm1026_vm1, %v1875_v54, %v1879_v55  ;;  %v25426_v12 = vld [vmem:[%s31745_s1 + $0x190] sm:$0xff]  }
  0x54   : > { %23182 = vmatpush3.bf16.msra.mxu1 %v25396_v31  ;;  %23151 = vmatprep.subr.bf16.mxu0 %v25401_v53  ;;  %v25410_v31 = vld [vmem:[%s31745_s1 + $0x170] sm:$0xff]   ;;  %v1903_v18 = vrot.slane %v1901_v2, 1 }
  0x55   : > { %23183 = vmatprep.subr.bf16.mxu1 %v25402_v57  ;;  %v1866_v32 = vrot.slane %v1864_v16, 1  ;;  %v25434_v16 = vld [vmem:[%s31745_s1 + $0x1a0] sm:$0xff]   ;;  %v26687_v28 = vld [vmem:[%s26321_s20 + $0x34] sm:$0xf] }
  0x56   : > { %23104 = vmatmul.mubr.bf16.gmra.mrb[24].mxu0 %v1078_v10  ;;  %v25443_v2 = vld [vmem:[%s31745_s1 + $0x1f0] sm:$0xff]  }
  0x57   : > { %23136 = vmatmul.mubr.bf16.gmra.mrb[24].mxu1 %v1402_v13  ;;  %23152 = vmatpush3.bf16.msra.mxu0 %v25401_v53  ;;  %v1867_v38 = vor.u32 %v1866_v32, %v1862_v26  ;;  %v1885_v53 = vshll.u32 %v25423_v45, 16  ;;  %v19809_v13 = vcombine.low %v26501_v27, %v26510_v30  ;;  %v25429_v27 = vld [vmem:[%s31745_s1 + $0x1d8] sm:$0xff]   ;;  %v1905_v30 = vshrl.u32 %v25431_v1, 16  ;;  %v2098_v26 = vld [vmem:[%s26321_s20 + $0x2c] sm:$0x8] }
  0x58   : > { %23184 = vmatpush3.bf16.msra.mxu1 %v25402_v57  ;;  %23153 = vmatprep.subr.bf16.mxu0 %v25403_v5  ;;  %v25420_v57 = vld [vmem:[%s31745_s1 + $0x188] sm:$0xff]   ;;  %v19871_v32 = vcombine.low %v2098_v26, %v26684_v17  ;;  %v25451_v26 = vld [vmem:[%s31745_s1 + $0x200] sm:$0xff]  }
  0x59   : > { %23185 = vmatprep.subr.bf16.mxu1 %v25404_v11  ;;  %23107 = vmatprep.mubr.bf16.mxu0 %v1086_v20  ;;  %v1872_v51 = vsel %vm1026_vm1, %v1867_v38, %v1871_v35  ;;  %v1887_v0 = vrot.slane %v1885_v53, 1  ;;  %v26701_v35 = vld [vmem:[%s26321_s20 + $0x3c] sm:$0xf]  ;;  %v1907_v36 = vor.u32 %v1905_v30, %v1903_v18  ;;  %v1921_v53 = vshrl.u32 %v26670_v19, 16  ;;  %v26729_v1 = vld [vmem:[%s26321_s20 + $0x4c] sm:$0xf] }
  0x5a   : > { %23139 = vmatprep.mubr.bf16.mxu1 %v1411_v24  ;;  %v1913_v24 = vshrl.u32 %v25433_v58, 16  ;;  %v2176_v38 = vshrl.u32 %v19871_v32, 16  ;;  %v25442_v58 = vld [vmem:[%s31745_s1 + $0x1b0] sm:$0xff]  }
  0x5b   : > { %23154 = vmatpush3.bf16.msra.mxu0 %v25403_v5  ;;  %v1893_v5 = vshll.u32 %v25425_v56, 16  ;;  %v1888_v6 = vsel %vm1026_vm1, %v1883_v60, %v1887_v0  ;;  %v1891_v10 = vor.u32 %v1889_v4, %v1887_v0  ;;  %v26724_v60 = vld [vmem:[%s26321_s20 + $0x48] sm:$0xf] }
  0x5c   : > { %23186 = vmatpush3.bf16.msra.mxu1 %v25404_v11  ;;  %23155 = vmatprep.subr.bf16.mxu0 %v25409_v25  ;;  %v2178_v55 = vrot.slane %v2176_v38, 3  ;;  %v26779_v38 = vld [vmem:[%s26321_s20 + $0x64] sm:$0xf] }
  0x5d   : > { %23187 = vmatprep.subr.bf16.mxu1 %v25410_v31  ;;  %v1895_v11 = vrot.slane %v1893_v5, 1 }
  0x5e   : > { %23108 = vmatmul.mubr.bf16.gmra.mrb[28].mxu0 %v1094_v37  ;;  %v26704_v37 = vld [vmem:[%s26321_s20 + $0x40] sm:$0xf] }
  0x5f   : > { %23140 = vmatmul.mubr.bf16.gmra.mrb[28].mxu1 %v1420_v43  ;;  %23156 = vmatpush3.bf16.msra.mxu0 %v25409_v25  ;;  %v1899_v15 = vor.u32 %v1897_v9, %v1895_v11  ;;  %v1896_v20 = vsel %vm1026_vm1, %v1891_v10, %v1895_v11  ;;  %v25441_v25 = vld [vmem:[%s26321_s20 + $0x60] ss:$0 sps:$4 sm:$0x11]   ;;  %v2179_v43 = vshll.u32 %v19871_v32, 16  ;;  %v19813_v9 = vcombine.low %v26587_v40, %v26595_v50  ;;  %v25444_v40 = vld [vmem:[%s31745_s1 + $0x1b8] sm:$0xff]  }
  0x60   : > { %23188 = vmatpush3.bf16.msra.mxu1 %v25410_v31  ;;  %23157 = vmatprep.subr.bf16.mxu0 %v25411_v34  ;;  %v1917_v31 = vshll.u32 %v26670_v19, 16  ;;  %v1925_v54 = vshll.u32 %v25441_v25, 16  ;;  %v25445_v50 = vld [vmem:[%s31745_s1 + $0x1f8] sm:$0xff]  }
  0x61   : > { %23189 = vmatprep.subr.bf16.mxu1 %v25412_v47  ;;  %23159 = vmatprep.mubr.bf16.mxu0 %v19806_v48  ;;  %v1904_v33 = vsel %vm1026_vm1, %v1899_v15, %v1903_v18  ;;  %v25436_v48 = vld [vmem:[%s31745_s1 + $0x1a8] sm:$0xff]   ;;  %v2181_v56 = vrot.slane %v2179_v43, 4 }
  0x62   : > { %23191 = vmatprep.mubr.bf16.mxu1 %v1872_v51  ;;  %v25437_v51 = vld [vmem:[%s31745_s1 + $0x1e8] sm:$0xff]   ;;  %v1919_v52 = vrot.slane %v1917_v31, 1 }
  0x63   : > { %23158 = vmatpush3.bf16.msra.mxu0 %v25411_v34  ;;  %v19872_v34 = vcombine.low %v26687_v28, %v26690_v29  ;;  %v2182_v10 = vor.u32 %v2181_v56, %v2178_v55  ;;  %v25453_v31 = vld [vmem:[%s31745_s1 + $0x208] sm:$0xff]  }
  0x64   : > { %23190 = vmatpush3.bf16.msra.mxu1 %v25412_v47  ;;  %23207 = vmatprep.subr.bf16.mxu0 %v25418_v49  ;;  %v19811_v47 = vcombine.low %v26543_v62, %v26556_v7  ;;  %v19873_v62 = vcombine.low %v26701_v35, %v26704_v37  ;;  %v1912_v7 = vsel %vm1026_vm1, %v1907_v36, %v1911_v23  ;;  %v26782_v43 = vld [vmem:[%s26321_s20 + $0x68] sm:$0xf]  ;;  %v26801_v55 = vld [vmem:[%s26321_s20 + $0x6c] sm:$0xf] }
  0x65   : > { %23239 = vmatprep.subr.bf16.mxu1 %v25419_v41  ;;  %v2184_v44 = vshrl.u32 %v19872_v34, 16  ;;  %v2187_v45 = vshll.u32 %v19872_v34, 16 }
  0x66   : > { %23160 = vmatmul.mubr.bf16.vlgmr.msra.gmra.mrb[32].mxu0 %v19807_v42  ;;  %v2193_v5 = vshrl.u32 %v19873_v62, 16 }
  0x67   : > { %23192 = vmatmul.mubr.bf16.vlgmr.msra.gmra.mrb[32].mxu1 %v1880_v3  ;;  %23208 = vmatpush3.bf16.msra.mxu0 %v25418_v49  ;;  %v1915_v49 = vor.u32 %v1913_v24, %v1911_v23  ;;  %v2186_v42 = vrot.slane %v2184_v44, 3  ;;  %v26732_v3 = vld [vmem:[%s26321_s20 + $0x50] sm:$0xf] }
  0x68   : > { %23240 = vmatpush3.bf16.msra.mxu1 %v25419_v41  ;;  %23209 = vmatprep.subr.bf16.mxu0 %v25420_v57  ;;  %v19812_v41 = vcombine.low %v26559_v8, %v26584_v39  ;;  %v2196_v8 = vshll.u32 %v19873_v62, 16  ;;  %v1923_v39 = vor.u32 %v1921_v53, %v1919_v52  ;;  %v2195_v22 = vrot.slane %v2193_v5, 3 }
  0x69   : > { %23241 = vmatprep.subr.bf16.mxu1 %v25421_v59  ;;  %23163 = vmatprep.mubr.bf16.mxu0 %v19808_v46  ;;  %v1920_v4 = vsel %vm1026_vm1, %v1915_v49, %v1919_v52  ;;  %v1927_v46 = vrot.slane %v1925_v54, 1  ;;  %v19878_v49 = vcombine.low %v26779_v38, %v26782_v43  ;;  %v25459_v54 = vld [vmem:[%s31745_s1 + $0x210] sm:$0xff]   ;;  %v19879_v5 = vcombine.low %v26801_v55, %v26801_v55 }
  0x6a   : > { %23195 = vmatprep.mubr.bf16.mxu1 %v1888_v6  ;;  %v19875_v6 = vcombine.low %v26729_v1, %v26732_v3 }
  0x6b   : > { %23210 = vmatpush3.bf16.msra.mxu0 %v25420_v57  ;;  %v2189_v57 = vrot.slane %v2187_v45, 4  ;;  %v1928_v15 = vsel %vm1026_vm1, %v1923_v39, %v1927_v46  ;;  %v19905_v45 = vcombine.low %v26690_v29, %v26701_v35  ;;  %v2238_v56 = vshrl.u32 %v19878_v49, 16 }
  0x6c   : > { %23242 = vmatpush3.bf16.msra.mxu1 %v25421_v59  ;;  %23211 = vmatprep.subr.bf16.mxu0 %v25426_v12  ;;  %v26721_v59 = vld [vmem:[%s26321_s20 + $0x44] sm:$0xf]  ;;  %v2211_v18 = vshrl.u32 %v19875_v6, 16  ;;  %v2214_v19 = vshll.u32 %v19875_v6, 16  ;;  %v25479_v6 = vld [vmem:[%s26321_s20 + $0x30] sm:$0xff]  }
  0x6d   : > { %23243 = vmatprep.subr.bf16.mxu1 %v25427_v63  ;;  %v19874_v0 = vcombine.low %v26721_v59, %v26724_v60  ;;  %v2190_v11 = vor.u32 %v2189_v57, %v2186_v42  ;;  %v19906_v29 = vcombine.low %v26704_v37, %v26721_v59  ;;  %v25460_v37 = vld [vmem:[%s31745_s1 + $0x50] sm:$0xff]   ;;  %v2241_v57 = vshll.u32 %v19878_v49, 16  ;;  %v26866_v49 = vld [vmem:[%s26321_s20 + $0x60] sm:$0xf] }
  0x6e   : > { %23164 = vmatmul.mubr.bf16.gmra.mrb[36].mxu0 %v19809_v13  ;;  %v2198_v13 = vrot.slane %v2196_v8, 4  ;;  %v25461_v8 = vld [vmem:[%s31745_s1 + $0x218] sm:$0xff]  }
  0x6f   : > { %23196 = vmatmul.mubr.bf16.gmra.mrb[36].mxu1 %v1896_v20  ;;  %23212 = vmatpush3.bf16.msra.mxu0 %v25426_v12  ;;  %v2202_v12 = vshrl.u32 %v19874_v0, 16  ;;  %v26756_v20 = vld [vmem:[%s26321_s20 + $0x58] sm:$0xf]  ;;  %v2191_v30 = vsel %vm715_vm0, %v2182_v10, %v2190_v11  ;;  %v2250_v10 = vshll.u32 %v19879_v5, 16 }
  0x70   : > { %23244 = vmatpush3.bf16.msra.mxu1 %v25427_v63  ;;  %23213 = vmatprep.subr.bf16.mxu0 %v25428_v14  ;;  %v2205_v63 = vshll.u32 %v19874_v0, 16  ;;  %v2199_v25 = vor.u32 %v2198_v13, %v2195_v22  ;;  %v2698_v22 = vshll.u32 %v25479_v6, 16 }
  0x71   : > { %23245 = vmatprep.subr.bf16.mxu1 %v25429_v27  ;;  %23167 = vmatprep.mubr.bf16.mxu0 %v19810_v21  ;;  %v2204_v21 = vrot.slane %v2202_v12, 3 }
  0x72   : > { %23199 = vmatprep.mubr.bf16.mxu1 %v1904_v33  ;;  %v2207_v23 = vrot.slane %v2205_v63, 4  ;;  %v2213_v33 = vrot.slane %v2211_v18, 3  ;;  %v2200_v44 = vsel %vm715_vm0, %v2190_v11, %v2199_v25  ;;  %v25467_v11 = vld [vmem:[%s31745_s1 + $0x220] sm:$0xff]   ;;  %v25480_v63 = vld [vmem:[%s26321_s20 + $0x38] sm:$0xff]   ;;  %v25470_v18 = vld [vmem:[%s31745_s1 + $0x68] sm:$0xff]  }
  0x73   : > { %23214 = vmatpush3.bf16.msra.mxu0 %v25428_v14  ;;  %v26746_v14 = vld [vmem:[%s26321_s20 + $0x54] sm:$0xf] }
  0x74   : > { %23246 = vmatpush3.bf16.msra.mxu1 %v25429_v27  ;;  %23215 = vmatprep.subr.bf16.mxu0 %v25434_v16  ;;  %v19904_v27 = vcombine.low %v26684_v17, %v26687_v28  ;;  %v19876_v24 = vcombine.low %v26746_v14, %v26756_v20  ;;  %v26770_v17 = vld [vmem:[%s26321_s20 + $0x60] sm:$0xf]  ;;  %v2208_v32 = vor.u32 %v2207_v23, %v2204_v21  ;;  %v2700_v21 = vrot.slane %v2698_v22, 1  ;;  %v26905_v22 = vld [vmem:[%s26321_s20 + $0x6c] sm:$0xf] }
  0x75   : > { %23247 = vmatprep.subr.bf16.mxu1 %v25435_v61  ;;  %v25452_v28 = vld [vmem:[%s31745_s1 + $0x40] sm:$0xff]   ;;  %v19908_v46 = vcombine.low %v26732_v3, %v26746_v14  ;;  %v2703_v23 = vshll.u32 %v25480_v63, 16 }
  0x76   : > { %23168 = vmatmul.mubr.bf16.gmra.mrb[40].mxu0 %v19811_v47  ;;  %v2220_v34 = vshrl.u32 %v19876_v24, 16  ;;  %v2223_v36 = vshll.u32 %v19876_v24, 16  ;;  %v25468_v3 = vld [vmem:[%s31745_s1 + $0x60] sm:$0xff]  }
  0x77   : > { %23200 = vmatmul.mubr.bf16.gmra.mrb[40].mxu1 %v1912_v7  ;;  %23216 = vmatpush3.bf16.msra.mxu0 %v25434_v16  ;;  %v26767_v16 = vld [vmem:[%s26321_s20 + $0x5c] sm:$0xf] }
  0x78   : > { %23248 = vmatpush3.bf16.msra.mxu1 %v25435_v61  ;;  %23217 = vmatprep.subr.bf16.mxu0 %v25436_v48  ;;  %v2216_v61 = vrot.slane %v2214_v19, 4  ;;  %v19877_v47 = vcombine.low %v26767_v16, %v26770_v17  ;;  %v2222_v35 = vrot.slane %v2220_v34, 3  ;;  %v2225_v52 = vrot.slane %v2223_v36, 4 }
  0x79   : > { %23249 = vmatprep.subr.bf16.mxu1 %v25437_v51  ;;  %23171 = vmatprep.mubr.bf16.mxu0 %v19812_v41  ;;  %v19907_v41 = vcombine.low %v26724_v60, %v26729_v1  ;;  %v25462_v60 = vld [vmem:[%s31745_s1 + $0x58] sm:$0xff]   ;;  %v2240_v1 = vrot.slane %v2238_v56, 3  ;;  %v19909_v14 = vcombine.low %v26756_v20, %v26767_v16  ;;  %v2696_v19 = vshrl.u32 %v25479_v6, 16  ;;  %v3034_v16 = vld [vmem:[%s26321_s20 + $0x4c] sm:$0x8]  ;;  %v25487_v56 = vld [vmem:[%s31745_s1 + $0x80] sm:$0xff]  }
  0x7a   : > { %23203 = vmatprep.mubr.bf16.mxu1 %v1920_v4  ;;  %v2217_v53 = vor.u32 %v2216_v61, %v2213_v33  ;;  %v2229_v62 = vshrl.u32 %v19877_v47, 16  ;;  %v2232_v7 = vshll.u32 %v19877_v47, 16  ;;  %v2226_v42 = vor.u32 %v2225_v52, %v2222_v35  ;;  %v3036_v61 = vld [vmem:[%s26321_s20 + $0x54] sm:$0xf] }
  0x7b   : > { %23218 = vmatpush3.bf16.msra.mxu0 %v25436_v48  ;;  %v25454_v48 = vld [vmem:[%s31745_s1 + $0x48] sm:$0xff]   ;;  %v2705_v33 = vrot.slane %v2703_v23, 1  ;;  %v19911_v34 = vcombine.low %v26782_v43, %v26801_v55  ;;  %v2707_v36 = vshrl.u32 %v25480_v63, 16  ;;  %v25493_v55 = vld [vmem:[%s26321_s20 + $0x50] sm:$0xff]  }
  0x7c   : > { %23250 = vmatpush3.bf16.msra.mxu1 %v25437_v51  ;;  %23219 = vmatprep.subr.bf16.mxu0 %v25442_v58  ;;  %v2209_v51 = vsel %vm715_vm0, %v2199_v25, %v2208_v32  ;;  %v2218_v59 = vsel %vm715_vm0, %v2208_v32, %v2217_v53  ;;  %v2231_v0 = vrot.slane %v2229_v62, 3  ;;  %v2234_v4 = vrot.slane %v2232_v7, 4  ;;  %v25485_v25 = vld [vmem:[%s26321_s20 + $0x40] sm:$0xff]   ;;  %v3044_v23 = vld [vmem:[%s26321_s20 + $0x74] sm:$0xf] }
  0x7d   : > { %23251 = vmatprep.subr.bf16.mxu1 %v25443_v2  ;;  %v2227_v39 = vsel %vm715_vm0, %v2217_v53, %v2226_v42  ;;  %v2715_v35 = vshrl.u32 %v25485_v25, 16  ;;  %v2709_v53 = vor.u32 %v2707_v36, %v2705_v33  ;;  %v25486_v62 = vld [vmem:[%s31745_s1] sm:$0xff]  }
  0x7e   : > { %23172 = vmatmul.mubr.bf16.gmra.mrb[44].mxu0 %v19813_v9  ;;  %v2235_v9 = vor.u32 %v2234_v4, %v2231_v0  ;;  %v26885_v4 = vld [vmem:[%s26321_s20 + $0x58] sm:$0xff]  }
  0x7f   : > { %23204 = vmatmul.mubr.bf16.gmra.mrb[44].mxu1 %v1928_v15  ;;  %23220 = vmatpush3.bf16.msra.mxu0 %v25442_v58  ;;  %v2243_v58 = vrot.slane %v2241_v57, 4 }
  0x80   : > { %23252 = vmatpush3.bf16.msra.mxu1 %v25443_v2  ;;  %23221 = vmatprep.subr.bf16.mxu0 %v25444_v40  ;;  %v2247_v2 = vshrl.u32 %v19879_v5, 16  ;;  %v2236_v13 = vsel %vm715_vm0, %v2226_v42, %v2235_v9  ;;  %v3040_v42 = vld [vmem:[%s26321_s20 + $0x64] sm:$0xf] }
  0x81   : > { %23253 = vmatprep.subr.bf16.mxu1 %v25445_v50  ;;  %23223 = vmatprep.mubr.bf16.mxu0 %v2191_v30  ;;  %v2244_v12 = vor.u32 %v2243_v58, %v2240_v1  ;;  %v25475_v30 = vld [vmem:[%s31745_s1 + $0x230] sm:$0xff]   ;;  %v2727_v1 = vshll.u32 %v25493_v55, 16  ;;  %v25488_v58 = vld [vmem:[%s31745_s1 + $0x8] sm:$0xff]   ;;  %v19972_v63 = vcombine.low %v26866_v49, %v3040_v42 }
  0x82   : > { %23255 = vmatprep.mubr.bf16.mxu1 %v19904_v27  ;;  %v2249_v15 = vrot.slane %v2247_v2, 3  ;;  %v19910_v27 = vcombine.low %v26770_v17, %v26779_v38  ;;  %v3035_v17 = vld [vmem:[%s26321_s20 + $0x50] sm:$0xf]  ;;  %v2711_v38 = vshll.u32 %v25485_v25, 16 }
  0x83   : > { %23222 = vmatpush3.bf16.msra.mxu0 %v25444_v40  ;;  %v2252_v40 = vrot.slane %v2250_v10, 4  ;;  %v2245_v20 = vsel %vm715_vm0, %v2235_v9, %v2244_v12  ;;  %v26862_v47 = vcombine.low %v3034_v16, %v3035_v17  ;;  %v26926_v16 = vld [vmem:[%s26321_s20 + $0x68] sm:$0xff]  }
  0x84   : > { %23254 = vmatpush3.bf16.msra.mxu1 %v25445_v50  ;;  %23271 = vmatprep.subr.bf16.mxu0 %v25451_v26  ;;  %v25469_v50 = vld [vmem:[%s31745_s1 + $0x228] sm:$0xff]  }
  0x85   : > { %23303 = vmatprep.subr.bf16.mxu1 %v25452_v28  ;;  %v2253_v24 = vor.u32 %v2252_v40, %v2249_v15  ;;  %v2735_v15 = vshll.u32 %v26885_v4, 16 }
  0x86   : > { %23224 = vmatmul.mubr.bf16.vlgmr.msra.gmra.mrb[48].mxu0 %v2200_v44  ;;  %v25477_v44 = vld [vmem:[%s31745_s1 + $0x238] sm:$0xff]  }
  0x87   : > { %23256 = vmatmul.mubr.bf16.vlgmr.msra.gmra.mrb[48].mxu1 %v19905_v45  ;;  %23272 = vmatpush3.bf16.msra.mxu0 %v25451_v26  ;;  %v25476_v26 = vld [vmem:[%s31745_s1 + $0x70] sm:$0xff]   ;;  %v2254_v32 = vsel %vm715_vm0, %v2244_v12, %v2253_v24  ;;  %v25478_v45 = vld [vmem:[%s31745_s1 + $0x78] sm:$0xff]  }
  0x88   : > { %23304 = vmatpush3.bf16.msra.mxu1 %v25452_v28  ;;  %23273 = vmatprep.subr.bf16.mxu0 %v25453_v31  ;;  %v2701_v28 = vor.u32 %v2700_v21, %v2696_v19  ;;  %v25497_v19 = vld [vmem:[%s31745_s1 + $0x90] sm:$0xff]   ;;  %v25498_v24 = vld [vmem:[%s31745_s1 + $0x18] sm:$0xff]  }
  0x89   : > { %23305 = vmatprep.subr.bf16.mxu1 %v25454_v48  ;;  %23227 = vmatprep.mubr.bf16.mxu0 %v2209_v51  ;;  %v3037_v51 = vld [vmem:[%s26321_s20 + $0x58] sm:$0xf]  ;;  %v3043_v21 = vld [vmem:[%s26321_s20 + $0x70] sm:$0xf] }
  0x8a   : > { %23259 = vmatprep.mubr.bf16.mxu1 %v19906_v29  ;;  %v2706_v43 = vsel %vm1026_vm1, %v2701_v28, %v2705_v33  ;;  %v19970_v29 = vcombine.low %v3035_v17, %v3036_v61  ;;  %v2739_v33 = vshrl.u32 %v26885_v4, 16  ;;  %v25508_v4 = vld [vmem:[%s31745_s1 + $0x28] sm:$0xff]  }
  0x8b   : > { %23274 = vmatpush3.bf16.msra.mxu0 %v25453_v31  ;;  %v26851_v31 = vld [vmem:[%s26321_s20 + $0x48] sm:$0xff]  }
  0x8c   : > { %23306 = vmatpush3.bf16.msra.mxu1 %v25454_v48  ;;  %23275 = vmatprep.subr.bf16.mxu0 %v25459_v54  ;;  %v3038_v48 = vld [vmem:[%s26321_s20 + $0x5c] sm:$0xf]  ;;  %v2719_v52 = vshll.u32 %v26851_v31, 16  ;;  %v2723_v0 = vshrl.u32 %v26851_v31, 16 }
  0x8d   : > { %23307 = vmatprep.subr.bf16.mxu1 %v25460_v37  ;;  %v19988_v7 = vcombine.low %v3038_v48, %v26866_v49  ;;  %v19971_v5 = vcombine.low %v3037_v51, %v3038_v48  ;;  %v2751_v49 = vshll.u32 %v26926_v16, 16 }
  0x8e   : > { %23228 = vmatmul.mubr.bf16.gmra.mrb[52].mxu0 %v2218_v59  ;;  %v2721_v59 = vrot.slane %v2719_v52, 1  ;;  %v25507_v52 = vld [vmem:[%s31745_s1 + $0xa0] sm:$0xff]  }
  0x8f   : > { %23260 = vmatmul.mubr.bf16.gmra.mrb[52].mxu1 %v19907_v41  ;;  %23276 = vmatpush3.bf16.msra.mxu0 %v25459_v54  ;;  %v2713_v54 = vrot.slane %v2711_v38, 1  ;;  %v26880_v41 = vcombine.low %v3036_v61, %v3037_v51  ;;  %v3308_v6 = vshll.u32 %v19988_v7, 16 }
  0x90   : > { %23308 = vmatpush3.bf16.msra.mxu1 %v25460_v37  ;;  %23277 = vmatprep.subr.bf16.mxu0 %v25461_v8  ;;  %v3288_v37 = vshrl.u32 %v26862_v47, 16 }
  0x91   : > { %23309 = vmatprep.subr.bf16.mxu1 %v25462_v60  ;;  %23231 = vmatprep.mubr.bf16.mxu0 %v2227_v39  ;;  %v2717_v57 = vor.u32 %v2715_v35, %v2713_v54  ;;  %v3041_v39 = vld [vmem:[%s26321_s20 + $0x68] sm:$0xf]  ;;  %v3296_v2 = vshrl.u32 %v26880_v41, 16  ;;  %v3299_v10 = vshll.u32 %v26880_v41, 16  ;;  %v3046_v35 = vld [vmem:[%s26321_s20 + $0x7c] sm:$0xf] }
  0x92   : > { %23263 = vmatprep.mubr.bf16.mxu1 %v19908_v46  ;;  %v3291_v46 = vshll.u32 %v26862_v47, 16  ;;  %v26893_v9 = vcombine.low %v3040_v42, %v3041_v39  ;;  %v19973_v28 = vcombine.low %v3041_v39, %v26905_v22  ;;  %v25506_v47 = vld [vmem:[%s31745_s1 + $0x20] sm:$0xff]  }
  0x93   : > { %23278 = vmatpush3.bf16.msra.mxu0 %v25461_v8  ;;  %v2714_v8 = vsel %vm1026_vm1, %v2709_v53, %v2713_v54  ;;  %v2722_v12 = vsel %vm1026_vm1, %v2717_v57, %v2721_v59  ;;  %v3047_v53 = vld [vmem:[%s26321_s20 + $0x80] sm:$0xf]  ;;  %v26954_v57 = vld [vmem:[%s26321_s20 + $0x58] sm:$0xff]  }
  0x94   : > { %23310 = vmatpush3.bf16.msra.mxu1 %v25462_v60  ;;  %23279 = vmatprep.subr.bf16.mxu0 %v25467_v11  ;;  %v3305_v60 = vshrl.u32 %v19988_v7, 16  ;;  %v3317_v31 = vshll.u32 %v26893_v9, 16  ;;  %v26936_v36 = vrot.slane %v3291_v46, 4  ;;  %v2753_v7 = vrot.slane %v2751_v49, 1 }
  0x95   : > { %23311 = vmatprep.subr.bf16.mxu1 %v25468_v3 }
  0x96   : > { %23232 = vmatmul.mubr.bf16.gmra.mrb[56].mxu0 %v2236_v13  ;;  %v25496_v13 = vld [vmem:[%s31745_s1 + $0x10] sm:$0xff]   ;;  %v26911_v40 = vrot.slane %v3305_v60, 3  ;;  %v25509_v60 = vld [vmem:[%s31745_s1 + $0xa8] sm:$0xff]  }
  0x97   : > { %23264 = vmatmul.mubr.bf16.gmra.mrb[56].mxu1 %v19909_v14  ;;  %23280 = vmatpush3.bf16.msra.mxu0 %v25467_v11  ;;  %v25489_v11 = vld [vmem:[%s31745_s1 + $0x88] sm:$0xff]   ;;  %v2731_v14 = vshrl.u32 %v25493_v55, 16  ;;  %v3048_v55 = vld [vmem:[%s26321_s20 + $0x84] sm:$0xf] }
  0x98   : > { %23312 = vmatpush3.bf16.msra.mxu1 %v25468_v3  ;;  %23281 = vmatprep.subr.bf16.mxu0 %v25469_v50  ;;  %v26900_v3 = vrot.slane %v3288_v37, 3  ;;  %v2755_v37 = vshrl.u32 %v26926_v16, 16  ;;  %v25519_v16 = vld [vmem:[%s31745_s1 + $0x38] sm:$0xff]  }
  0x99   : > { %23313 = vmatprep.subr.bf16.mxu1 %v25470_v18  ;;  %23235 = vmatprep.mubr.bf16.mxu0 %v2245_v20  ;;  %v25503_v20 = vld [vmem:[%s26321_s20 + $0x60] sm:$0xff]  }
  0x9a   : > { %23267 = vmatprep.mubr.bf16.mxu1 %v19910_v27  ;;  %v26917_v27 = vrot.slane %v3308_v6, 4  ;;  %v2743_v61 = vshll.u32 %v25503_v20, 16  ;;  %v2747_v48 = vshrl.u32 %v25503_v20, 16  ;;  %v3049_v6 = vld [vmem:[%s26321_s20 + $0x88] sm:$0xf] }
  0x9b   : > { %23282 = vmatpush3.bf16.msra.mxu0 %v25469_v50  ;;  %v2725_v50 = vor.u32 %v2723_v0, %v2721_v59  ;;  %v26957_v0 = vcombine.low %v26905_v22, %v3043_v21  ;;  %v2757_v22 = vor.u32 %v2755_v37, %v2753_v7 }
  0x9c   : > { %23314 = vmatpush3.bf16.msra.mxu1 %v25470_v18  ;;  %23283 = vmatprep.subr.bf16.mxu0 %v25475_v30  ;;  %v2729_v18 = vrot.slane %v2727_v1, 1  ;;  %v2745_v51 = vrot.slane %v2743_v61, 1  ;;  %v26969_v1 = vcombine.low %v3046_v35, %v3047_v53  ;;  %v3608_v61 = vshrl.u32 %v26954_v57, 16 }
  0x9d   : > { %23315 = vmatprep.subr.bf16.mxu1 %v25476_v26 }
  0x9e   : > { %23236 = vmatmul.mubr.bf16.gmra.mrb[60].mxu0 %v2254_v32  ;;  %v2733_v25 = vor.u32 %v2731_v14, %v2729_v18  ;;  %v2730_v17 = vsel %vm1026_vm1, %v2725_v50, %v2729_v18  ;;  %v25499_v32 = vld [vmem:[%s31745_s1 + $0x98] sm:$0xff]   ;;  %v3604_v14 = vshll.u32 %v26954_v57, 16  ;;  %v25523_v50 = vld [vmem:[%s26321_s20 + $0x60] sm:$0xff]   ;;  %v3326_v18 = vshll.u32 %v26957_v0, 16 }
  0x9f   : > { %23268 = vmatmul.mubr.bf16.gmra.mrb[60].mxu1 %v19911_v34  ;;  %23284 = vmatpush3.bf16.msra.mxu0 %v25475_v30  ;;  %v3314_v30 = vshrl.u32 %v26893_v9, 16  ;;  %v25513_v34 = vld [vmem:[%s26321_s20 + $0x70] ss:$0 sps:$4 sm:$0x11]   ;;  %v3341_v20 = vshrl.u32 %v26969_v1, 16  ;;  %v25524_v9 = vld [vmem:[%s31745_s1 + $0xc0] sm:$0xff]  }
  0xa0   : > { %23316 = vmatpush3.bf16.msra.mxu1 %v25476_v26  ;;  %23285 = vmatprep.subr.bf16.mxu0 %v25477_v44  ;;  %v2737_v26 = vrot.slane %v2735_v15, 1  ;;  %v2759_v54 = vshll.u32 %v25513_v34, 16  ;;  %v3323_v15 = vshrl.u32 %v26957_v0, 16  ;;  %v25520_v34 = vld [vmem:[%s31745_s1 + $0xb8] sm:$0xff]  }
  0xa1   : > { %23317 = vmatprep.subr.bf16.mxu1 %v25478_v45  ;;  %23287 = vmatprep.mubr.bf16.mxu0 %v2706_v43 }
  0xa2   : > { %23319 = vmatprep.mubr.bf16.mxu1 %v19970_v29  ;;  %v2738_v38 = vsel %vm1026_vm1, %v2733_v25, %v2737_v26  ;;  %v2741_v43 = vor.u32 %v2739_v33, %v2737_v26  ;;  %v25521_v29 = vld [vmem:[%s26321_s20 + $0x50] sm:$0xff]   ;;  %v2761_v39 = vrot.slane %v2759_v54, 1  ;;  %v26997_v33 = vld [vmem:[%s26321_s20 + $0x68] sm:$0xff]  }
  0xa3   : > { %23286 = vmatpush3.bf16.msra.mxu0 %v25477_v44  ;;  %v19974_v44 = vcombine.low %v3043_v21, %v3044_v23  ;;  %v3599_v59 = vshll.u32 %v25521_v29, 16  ;;  %v3344_v21 = vshll.u32 %v26969_v1, 16  ;;  %v3620_v49 = vshll.u32 %v26997_v33, 16 }
  0xa4   : > { %23318 = vmatpush3.bf16.msra.mxu1 %v25478_v45  ;;  %23335 = vmatprep.subr.bf16.mxu0 %v25486_v62  ;;  %v3045_v45 = vld [vmem:[%s26321_s20 + $0x78] sm:$0xf]  ;;  %v2762_v25 = vsel %vm1026_vm1, %v2757_v22, %v2761_v39  ;;  %v25531_v22 = vld [vmem:[%s31745_s1 + $0x110] sm:$0xff]  }
  0xa5   : > { %23367 = vmatprep.subr.bf16.mxu1 %v25487_v56  ;;  %v19975_v42 = vcombine.low %v3045_v45, %v3046_v35  ;;  %v3325_v35 = vrot.slane %v3323_v15, 3  ;;  %v3622_v37 = vrot.slane %v3620_v49, 1 }
  0xa6   : > { %23288 = vmatmul.mubr.bf16.vlgmr.msra.gmra.mrb[64].mxu0 %v2714_v8  ;;  %v26964_v8 = vcombine.low %v3044_v23, %v3045_v45  ;;  %v3294_v23 = vor.u32 %v26936_v36, %v26900_v3  ;;  %v27000_v3 = vcombine.low %v3048_v55, %v3049_v6  ;;  %v3316_v36 = vrot.slane %v3314_v30, 3 }
  0xa7   : > { %23320 = vmatmul.mubr.bf16.vlgmr.msra.gmra.mrb[64].mxu1 %v19971_v5  ;;  %23336 = vmatpush3.bf16.msra.mxu0 %v25486_v62  ;;  %v2749_v62 = vor.u32 %v2747_v48, %v2745_v51  ;;  %v3298_v5 = vrot.slane %v3296_v2, 3  ;;  %v25517_v2 = vld [vmem:[%s31745_s1 + $0x30] sm:$0xff]   ;;  %v3319_v45 = vrot.slane %v3317_v31, 4  ;;  %v25525_v31 = vld [vmem:[%s31745_s1 + $0x100] sm:$0xff]  }
  0xa8   : > { %23368 = vmatpush3.bf16.msra.mxu1 %v25487_v56  ;;  %23337 = vmatprep.subr.bf16.mxu0 %v25488_v58  ;;  %v2746_v56 = vsel %vm1026_vm1, %v2741_v43, %v2745_v51  ;;  %v3335_v41 = vshll.u32 %v26964_v8, 16  ;;  %v27015_v43 = vld [vmem:[%s26321_s20 + $0x70] sm:$0xff]  }
  0xa9   : > { %23369 = vmatprep.subr.bf16.mxu1 %v25489_v11  ;;  %23291 = vmatprep.mubr.bf16.mxu0 %v2722_v12  ;;  %v2754_v46 = vsel %vm1026_vm1, %v2749_v62, %v2753_v7  ;;  %v3301_v12 = vrot.slane %v3299_v10, 4  ;;  %v25518_v10 = vld [vmem:[%s31745_s1 + $0xb0] sm:$0xff]   ;;  %v3320_v62 = vor.u32 %v3319_v45, %v3316_v36  ;;  %v25526_v7 = vld [vmem:[%s31745_s1 + $0xc8] sm:$0xff]  }
  0xaa   : > { %23323 = vmatprep.mubr.bf16.mxu1 %v19972_v63  ;;  %v3597_v63 = vshrl.u32 %v25521_v29, 16 }
  0xab   : > { %23338 = vmatpush3.bf16.msra.mxu0 %v25488_v58  ;;  %v19976_v58 = vcombine.low %v3047_v53, %v3048_v55  ;;  %v27028_v53 = vld [vmem:[%s26321_s20 + $0x78] sm:$0xff]  }
  0xac   : > { %23370 = vmatpush3.bf16.msra.mxu1 %v25489_v11  ;;  %23339 = vmatprep.subr.bf16.mxu0 %v25496_v13  ;;  %v3050_v11 = vld [vmem:[%s26321_s20 + $0x8c] sm:$0xf] }
  0xad   : > { %23371 = vmatprep.subr.bf16.mxu1 %v25497_v19  ;;  %v19977_v26 = vcombine.low %v3049_v6, %v3050_v11  ;;  %v27017_v30 = vcombine.low %v3050_v11, %v3050_v11  ;;  %v3632_v6 = vshrl.u32 %v27015_v43, 16  ;;  %v3636_v11 = vshll.u32 %v27028_v53, 16 }
  0xae   : > { %23292 = vmatmul.mubr.bf16.gmra.mrb[68].mxu0 %v2730_v17 }
  0xaf   : > { %23324 = vmatmul.mubr.bf16.gmra.mrb[68].mxu1 %v19973_v28  ;;  %23340 = vmatpush3.bf16.msra.mxu0 %v25496_v13  ;;  %v3601_v13 = vrot.slane %v3599_v59, 1  ;;  %v3606_v28 = vrot.slane %v3604_v14, 1  ;;  %v3359_v59 = vshrl.u32 %v27017_v30, 16  ;;  %v3362_v0 = vshll.u32 %v27017_v30, 16  ;;  %v25539_v30 = vld [vmem:[%s31745_s1 + $0x128] sm:$0xff]  }
  0xb0   : > { %23372 = vmatpush3.bf16.msra.mxu1 %v25497_v19  ;;  %23341 = vmatprep.subr.bf16.mxu0 %v25498_v24  ;;  %v3332_v19 = vshrl.u32 %v26964_v8, 16  ;;  %v25541_v8 = vld [vmem:[%s26321_s20 + $0x90] ss:$0 sps:$4 sm:$0x11]  }
  0xb1   : > { %23373 = vmatprep.subr.bf16.mxu1 %v25499_v32  ;;  %23295 = vmatprep.mubr.bf16.mxu0 %v2738_v38  ;;  %v3602_v17 = vor.u32 %v3601_v13, %v3597_v63  ;;  %v3610_v51 = vor.u32 %v3608_v61, %v3606_v28  ;;  %v27062_v13 = vld [vmem:[%s26321_s20 + $0x60] sm:$0xf] }
  0xb2   : > { %23327 = vmatprep.mubr.bf16.mxu1 %v19974_v44  ;;  %v3311_v44 = vor.u32 %v26917_v27, %v26911_v40  ;;  %v3350_v40 = vshrl.u32 %v27000_v3, 16  ;;  %v3353_v27 = vshll.u32 %v27000_v3, 16 }
  0xb3   : > { %23342 = vmatpush3.bf16.msra.mxu0 %v25498_v24  ;;  %v3302_v24 = vor.u32 %v3301_v12, %v3298_v5  ;;  %v3607_v48 = vsel %vm1026_vm1, %v3602_v17, %v3606_v28  ;;  %v3833_v12 = vld [vmem:[%s26321_s20 + $0x5c] sm:$0x8]  ;;  %v3638_v17 = vrot.slane %v3636_v11, 1  ;;  %v3640_v28 = vshrl.u32 %v27028_v53, 16 }
  0xb4   : > { %23374 = vmatpush3.bf16.msra.mxu1 %v25499_v32  ;;  %23343 = vmatprep.subr.bf16.mxu0 %v25506_v47  ;;  %v3612_v32 = vshll.u32 %v25523_v50, 16  ;;  %v3321_v39 = vsel %vm715_vm0, %v3311_v44, %v3320_v62  ;;  %v3355_v36 = vrot.slane %v3353_v27, 4  ;;  %v25537_v27 = vld [vmem:[%s31745_s1 + $0x120] sm:$0xff]  }
  0xb5   : > { %23375 = vmatprep.subr.bf16.mxu1 %v25507_v52  ;;  %v3303_v38 = vsel %vm715_vm0, %v3294_v23, %v3302_v24  ;;  %v3312_v54 = vsel %vm715_vm0, %v3302_v24, %v3311_v44  ;;  %v3343_v23 = vrot.slane %v3341_v20, 3  ;;  %v3346_v24 = vrot.slane %v3344_v21, 4  ;;  %v27088_v20 = vld [vmem:[%s26321_s20 + $0x6c] sm:$0xf]  ;;  %v27091_v21 = vld [vmem:[%s26321_s20 + $0x70] sm:$0xf] }
  0xb6   : > { %23296 = vmatmul.mubr.bf16.gmra.mrb[72].mxu0 %v2746_v56  ;;  %v3614_v29 = vrot.slane %v3612_v32, 1  ;;  %v3624_v56 = vshrl.u32 %v26997_v33, 16  ;;  %v25533_v32 = vld [vmem:[%s31745_s1 + $0x118] sm:$0xff]   ;;  %v3660_v44 = vshll.u32 %v25541_v8, 16 }
  0xb7   : > { %23328 = vmatmul.mubr.bf16.gmra.mrb[72].mxu1 %v19975_v42  ;;  %23344 = vmatpush3.bf16.msra.mxu0 %v25506_v47  ;;  %v3616_v47 = vshrl.u32 %v25523_v50, 16  ;;  %v3628_v42 = vshll.u32 %v27015_v43, 16  ;;  %v27065_v50 = vld [vmem:[%s26321_s20 + $0x88] sm:$0xff]  }
  0xb8   : > { %23376 = vmatpush3.bf16.msra.mxu1 %v25507_v52  ;;  %23345 = vmatprep.subr.bf16.mxu0 %v25508_v4  ;;  %v3328_v52 = vrot.slane %v3326_v18, 4  ;;  %v3615_v57 = vsel %vm1026_vm1, %v3610_v51, %v3614_v29  ;;  %v3626_v14 = vor.u32 %v3624_v56, %v3622_v37  ;;  %v27068_v18 = vld [vmem:[%s26321_s20 + $0x64] sm:$0xf] }
  0xb9   : > { %23377 = vmatprep.subr.bf16.mxu1 %v25509_v60  ;;  %23299 = vmatprep.mubr.bf16.mxu0 %v2754_v46  ;;  %v3618_v55 = vor.u32 %v3616_v47, %v3614_v29  ;;  %v25530_v46 = vld [vmem:[%s31745_s1 + $0xd0] sm:$0xff]   ;;  %v3630_v15 = vrot.slane %v3628_v42, 1  ;;  %v3347_v47 = vor.u32 %v3346_v24, %v3343_v23 }
  0xba   : > { %23331 = vmatprep.mubr.bf16.mxu1 %v19976_v58  ;;  %v3329_v5 = vor.u32 %v3328_v52, %v3325_v35  ;;  %v3337_v58 = vrot.slane %v3335_v41, 4  ;;  %v27072_v41 = vld [vmem:[%s26321_s20 + $0x68] sm:$0xf]  ;;  %v25543_v23 = vld [vmem:[%s31745_s1 + $0x130] sm:$0xff]  }
  0xbb   : > { %23346 = vmatpush3.bf16.msra.mxu0 %v25508_v4  ;;  %v25527_v4 = vld [vmem:[%s31745_s1 + $0x108] sm:$0xff]   ;;  %v3623_v63 = vsel %vm1026_vm1, %v3618_v55, %v3622_v37  ;;  %v3631_v61 = vsel %vm1026_vm1, %v3626_v14, %v3630_v15  ;;  %v20053_v1 = vcombine.low %v27068_v18, %v27072_v41  ;;  %v3662_v37 = vrot.slane %v3660_v44, 1  ;;  %v27149_v14 = vld [vmem:[%s26321_s20 + $0x84] sm:$0xf] }
  0xbc   : > { %23378 = vmatpush3.bf16.msra.mxu1 %v25509_v60  ;;  %23347 = vmatprep.subr.bf16.mxu0 %v25517_v2  ;;  %v3334_v60 = vrot.slane %v3332_v19, 3  ;;  %v3330_v19 = vsel %vm715_vm0, %v3320_v62, %v3329_v5  ;;  %v3656_v62 = vshrl.u32 %v27065_v50, 16 }
  0xbd   : > { %23379 = vmatprep.subr.bf16.mxu1 %v25518_v10  ;;  %v3918_v35 = vshrl.u32 %v20053_v1, 16  ;;  %v3921_v52 = vshll.u32 %v20053_v1, 16 }
  0xbe   : > { %23300 = vmatmul.mubr.bf16.gmra.mrb[76].mxu0 %v2762_v25  ;;  %v20052_v25 = vcombine.low %v3833_v12, %v27062_v13 }
  0xbf   : > { %23332 = vmatmul.mubr.bf16.gmra.mrb[76].mxu1 %v19977_v26  ;;  %23348 = vmatpush3.bf16.msra.mxu0 %v25517_v2  ;;  %v27053_v2 = vld [vmem:[%s26321_s20 + $0x80] sm:$0xff]   ;;  %v25532_v26 = vld [vmem:[%s31745_s1 + $0xd8] sm:$0xff]  }
  0xc0   : > { %23380 = vmatpush3.bf16.msra.mxu1 %v25518_v10  ;;  %23349 = vmatprep.subr.bf16.mxu0 %v25519_v16  ;;  %v3338_v10 = vor.u32 %v3337_v58, %v3334_v60  ;;  %v3644_v33 = vshll.u32 %v27053_v2, 16  ;;  %v3910_v49 = vshrl.u32 %v20052_v25, 16  ;;  %v3913_v43 = vshll.u32 %v20052_v25, 16  ;;  %v27132_v60 = vld [vmem:[%s26321_s20 + $0x78] sm:$0xf] }
  0xc1   : > { %23381 = vmatprep.subr.bf16.mxu1 %v25520_v34  ;;  %23351 = vmatprep.mubr.bf16.mxu0 %v3303_v38  ;;  %v3652_v38 = vshll.u32 %v27065_v50, 16  ;;  %v3648_v3 = vshrl.u32 %v27053_v2, 16  ;;  %v3923_v58 = vrot.slane %v3921_v52, 4  ;;  %v25542_v2 = vld [vmem:[%s31745_s1 + $0xf0] sm:$0xff]  }
  0xc2   : > { %23383 = vmatprep.mubr.bf16.mxu1 %v3607_v48  ;;  %v3339_v45 = vsel %vm715_vm0, %v3329_v5, %v3338_v10  ;;  %v25536_v48 = vld [vmem:[%s31745_s1 + $0xe0] sm:$0xff]   ;;  %v3646_v29 = vrot.slane %v3644_v33, 1  ;;  %v3912_v56 = vrot.slane %v3910_v49, 3  ;;  %v3915_v42 = vrot.slane %v3913_v43, 4  ;;  %v27129_v5 = vld [vmem:[%s26321_s20 + $0x74] sm:$0xf] }
  0xc3   : > { %23350 = vmatpush3.bf16.msra.mxu0 %v25519_v16  ;;  %v3634_v16 = vor.u32 %v3632_v6, %v3630_v15  ;;  %v3654_v55 = vrot.slane %v3652_v38, 1  ;;  %v27136_v6 = vld [vmem:[%s26321_s20 + $0x7c] sm:$0xf]  ;;  %v20055_v12 = vcombine.low %v27129_v5, %v27132_v60  ;;  %v27152_v15 = vld [vmem:[%s26321_s20 + $0x88] sm:$0xf]  ;;  %v20085_v43 = vcombine.low %v27062_v13, %v27068_v18 }
  0xc4   : > { %23382 = vmatpush3.bf16.msra.mxu1 %v25520_v34  ;;  %23399 = vmatprep.subr.bf16.mxu0 %v25524_v9  ;;  %v3352_v34 = vrot.slane %v3350_v40, 3  ;;  %v3642_v40 = vor.u32 %v3640_v28, %v3638_v17  ;;  %v3916_v24 = vor.u32 %v3915_v42, %v3912_v56  ;;  %v25544_v28 = vld [vmem:[%s31745_s1 + $0xf8] sm:$0xff]   ;;  %v20057_v1 = vcombine.low %v27149_v14, %v27152_v15 }
  0xc5   : > { %23431 = vmatprep.subr.bf16.mxu1 %v25525_v31  ;;  %v3639_v51 = vsel %vm1026_vm1, %v3634_v16, %v3638_v17  ;;  %v3658_v50 = vor.u32 %v3656_v62, %v3654_v55  ;;  %v27166_v16 = vld [vmem:[%s26321_s20 + $0x94] sm:$0xf]  ;;  %v27169_v17 = vld [vmem:[%s26321_s20 + $0x98] sm:$0xf]  ;;  %v3936_v33 = vshrl.u32 %v20055_v12, 16  ;;  %v25552_v62 = vld [vmem:[%s31745_s1 + $0x180] sm:$0xff]  }
  0xc6   : > { %23352 = vmatmul.mubr.bf16.vlgmr.msra.gmra.mrb[80].mxu0 %v3312_v54  ;;  %v3356_v53 = vor.u32 %v3355_v36, %v3352_v34  ;;  %v3364_v54 = vrot.slane %v3362_v0, 4 }
  0xc7   : > { %23384 = vmatmul.mubr.bf16.vlgmr.msra.gmra.mrb[80].mxu1 %v3615_v57  ;;  %23400 = vmatpush3.bf16.msra.mxu0 %v25524_v9  ;;  %v27109_v9 = vcombine.low %v27088_v20, %v27091_v21  ;;  %v3348_v57 = vsel %vm715_vm0, %v3338_v10, %v3347_v47  ;;  %v27158_v10 = vld [vmem:[%s26321_s20 + $0x90] sm:$0xf]  ;;  %v3663_v44 = vsel %vm1026_vm1, %v3658_v50, %v3662_v37 }
  0xc8   : > { %23432 = vmatpush3.bf16.msra.mxu1 %v25525_v31  ;;  %23401 = vmatprep.subr.bf16.mxu0 %v25526_v7  ;;  %v3361_v31 = vrot.slane %v3359_v59, 3  ;;  %v3650_v59 = vor.u32 %v3648_v3, %v3646_v29  ;;  %v3357_v11 = vsel %vm715_vm0, %v3347_v47, %v3356_v53  ;;  %v20059_v47 = vcombine.low %v27166_v16, %v27169_v17  ;;  %v25551_v3 = vld [vmem:[%s31745_s1 + $0x140] sm:$0xff]  }
  0xc9   : > { %23433 = vmatprep.subr.bf16.mxu1 %v25527_v4  ;;  %23355 = vmatprep.mubr.bf16.mxu0 %v3321_v39  ;;  %v3927_v0 = vshrl.u32 %v27109_v9, 16  ;;  %v3647_v39 = vsel %vm1026_vm1, %v3642_v40, %v3646_v29 }
  0xca   : > { %23387 = vmatprep.mubr.bf16.mxu1 %v3623_v63  ;;  %v27145_v63 = vld [vmem:[%s26321_s20 + $0x80] sm:$0xf]  ;;  %v3365_v8 = vor.u32 %v3364_v54, %v3361_v31  ;;  %v3957_v31 = vshll.u32 %v20057_v1, 16  ;;  %v3972_v13 = vshrl.u32 %v20059_v47, 16  ;;  %v3975_v18 = vshll.u32 %v20059_v47, 16 }
  0xcb   : > { %23402 = vmatpush3.bf16.msra.mxu0 %v25526_v7  ;;  %v25538_v7 = vld [vmem:[%s31745_s1 + $0xe8] sm:$0xff]   ;;  %v3929_v34 = vrot.slane %v3927_v0, 3 }
  0xcc   : > { %23434 = vmatpush3.bf16.msra.mxu1 %v25527_v4  ;;  %23403 = vmatprep.subr.bf16.mxu0 %v25530_v46  ;;  %v3930_v4 = vshll.u32 %v27109_v9, 16  ;;  %v3938_v9 = vrot.slane %v3936_v33, 3  ;;  %v3959_v42 = vrot.slane %v3957_v31, 4 }
  0xcd   : > { %23435 = vmatprep.subr.bf16.mxu1 %v25531_v22 }
  0xce   : > { %23356 = vmatmul.mubr.bf16.gmra.mrb[84].mxu0 %v3330_v19  ;;  %v27155_v19 = vld [vmem:[%s26321_s20 + $0x8c] sm:$0xf]  ;;  %v3932_v36 = vrot.slane %v3930_v4, 4 }
  0xcf   : > { %23388 = vmatmul.mubr.bf16.gmra.mrb[84].mxu1 %v3631_v61  ;;  %23404 = vmatpush3.bf16.msra.mxu0 %v25530_v46  ;;  %v3920_v46 = vrot.slane %v3918_v35, 3  ;;  %v3939_v61 = vshll.u32 %v20055_v12, 16  ;;  %v20058_v38 = vcombine.low %v27155_v19, %v27158_v10  ;;  %v25553_v4 = vld [vmem:[%s31745_s1 + $0x148] sm:$0xff]   ;;  %v27219_v12 = vld [vmem:[%s26321_s20 + $0x70] sm:$0xf] }
  0xd0   : > { %23436 = vmatpush3.bf16.msra.mxu1 %v25531_v22  ;;  %23405 = vmatprep.subr.bf16.mxu0 %v25532_v26  ;;  %v3655_v22 = vsel %vm1026_vm1, %v3650_v59, %v3654_v55  ;;  %v3933_v35 = vor.u32 %v3932_v36, %v3929_v34  ;;  %v20088_v36 = vcombine.low %v27132_v60, %v27136_v6 }
  0xd1   : > { %23437 = vmatprep.subr.bf16.mxu1 %v25533_v32  ;;  %23359 = vmatprep.mubr.bf16.mxu0 %v3339_v45  ;;  %v3924_v25 = vor.u32 %v3923_v58, %v3920_v46  ;;  %v25545_v45 = vld [vmem:[%s31745_s1 + $0x138] sm:$0xff]   ;;  %v3941_v40 = vrot.slane %v3939_v61, 4  ;;  %v3963_v52 = vshrl.u32 %v20058_v38, 16  ;;  %v27210_v58 = vrot.slane %v3972_v13, 3  ;;  %v25568_v13 = vld [vmem:[%s31745_s1 + $0x1a0] sm:$0xff]  }
  0xd2   : > { %23391 = vmatprep.mubr.bf16.mxu1 %v3639_v51 }
  0xd3   : > { %23406 = vmatpush3.bf16.msra.mxu0 %v25532_v26  ;;  %v20056_v26 = vcombine.low %v27136_v6, %v27145_v63  ;;  %v3925_v49 = vsel %vm715_vm0, %v3916_v24, %v3924_v25  ;;  %v3942_v55 = vor.u32 %v3941_v40, %v3938_v9  ;;  %v27202_v59 = vrot.slane %v3963_v52, 3  ;;  %v27228_v24 = vld [vmem:[%s26321_s20 + $0x74] sm:$0xf]  ;;  %v25567_v52 = vld [vmem:[%s31745_s1 + $0x160] sm:$0xff]  }
  0xd4   : > { %23438 = vmatpush3.bf16.msra.mxu1 %v25533_v32  ;;  %23407 = vmatprep.subr.bf16.mxu0 %v25536_v48  ;;  %v3366_v32 = vsel %vm715_vm0, %v3356_v53, %v3365_v8  ;;  %v3966_v53 = vshll.u32 %v20058_v38, 16  ;;  %v20087_v8 = vcombine.low %v27091_v21, %v27129_v5  ;;  %v27239_v21 = vld [vmem:[%s26321_s20 + $0x68] sm:$0xff]  }
  0xd5   : > { %23439 = vmatprep.subr.bf16.mxu1 %v25537_v27  ;;  %v3945_v51 = vshrl.u32 %v20056_v26, 16  ;;  %v3948_v29 = vshll.u32 %v20056_v26, 16  ;;  %v25560_v26 = vld [vmem:[%s31745_s1 + $0x190] sm:$0xff]  }
  0xd6   : > { %23360 = vmatmul.mubr.bf16.gmra.mrb[88].mxu0 %v3348_v57  ;;  %v3934_v57 = vsel %vm715_vm0, %v3924_v25, %v3933_v35  ;;  %v3968_v46 = vrot.slane %v3966_v53, 4  ;;  %v27231_v25 = vld [vmem:[%s26321_s20 + $0x78] sm:$0xf]  ;;  %v27278_v53 = vld [vmem:[%s26321_s20 + $0x84] sm:$0xf] }
  0xd7   : > { %23392 = vmatmul.mubr.bf16.gmra.mrb[88].mxu1 %v3647_v39  ;;  %23408 = vmatpush3.bf16.msra.mxu0 %v25536_v48  ;;  %v27186_v48 = vld [vmem:[%s26321_s20 + $0x9c] sm:$0xf]  ;;  %v3950_v37 = vrot.slane %v3948_v29, 4  ;;  %v25554_v39 = vld [vmem:[%s31745_s1 + $0x188] sm:$0xff]   ;;  %v20151_v61 = vcombine.low %v27228_v24, %v27231_v25 }
  0xd8   : > { %23440 = vmatpush3.bf16.msra.mxu1 %v25537_v27  ;;  %23409 = vmatprep.subr.bf16.mxu0 %v25538_v7  ;;  %v3954_v27 = vshrl.u32 %v20057_v1, 16  ;;  %v20060_v54 = vcombine.low %v27186_v48, %v27186_v48  ;;  %v27247_v1 = vld [vmem:[%s26321_s20 + $0x70] sm:$0xff]   ;;  %v25562_v29 = vld [vmem:[%s31745_s1 + $0x198] sm:$0xff]  }
  0xd9   : > { %23441 = vmatprep.subr.bf16.mxu1 %v25539_v30  ;;  %23363 = vmatprep.mubr.bf16.mxu0 %v3357_v11  ;;  %v27212_v11 = vrot.slane %v3975_v18, 4  ;;  %v4752_v9 = vshll.u32 %v20151_v61, 16  ;;  %v4443_v40 = vshll.u32 %v27247_v1, 16  ;;  %v27285_v18 = vld [vmem:[%s26321_s20 + $0x88] sm:$0xf] }
  0xda   : > { %23395 = vmatprep.mubr.bf16.mxu1 %v3655_v22  ;;  %v3956_v56 = vrot.slane %v3954_v27, 3  ;;  %v3981_v0 = vshrl.u32 %v20060_v54, 16  ;;  %v3943_v22 = vsel %vm715_vm0, %v3933_v35, %v3942_v55  ;;  %v20089_v35 = vcombine.low %v27145_v63, %v27149_v14  ;;  %v27288_v63 = vld [vmem:[%s26321_s20 + $0x8c] sm:$0xf]  ;;  %v27291_v14 = vld [vmem:[%s26321_s20 + $0x90] sm:$0xf] }
  0xdb   : > { %23410 = vmatpush3.bf16.msra.mxu0 %v25538_v7  ;;  %v3947_v7 = vrot.slane %v3945_v51, 3  ;;  %v4439_v51 = vshrl.u32 %v27239_v21, 16 }
  0xdc   : > { %23442 = vmatpush3.bf16.msra.mxu1 %v25539_v30  ;;  %23411 = vmatprep.subr.bf16.mxu0 %v25542_v2  ;;  %v20086_v30 = vcombine.low %v27072_v41, %v27088_v20  ;;  %v3984_v41 = vshll.u32 %v20060_v54, 16  ;;  %v27215_v20 = vld [vmem:[%s26321_s20 + $0x60] sm:$0xff]   ;;  %v3960_v38 = vor.u32 %v3959_v42, %v3956_v56  ;;  %v3969_v54 = vor.u32 %v3968_v46, %v27202_v59  ;;  %v25570_v46 = vld [vmem:[%s31745_s1 + $0x1a8] sm:$0xff]  }
  0xdd   : > { %23443 = vmatprep.subr.bf16.mxu1 %v25543_v23  ;;  %v3951_v50 = vor.u32 %v3950_v37, %v3947_v7  ;;  %v4428_v47 = vshrl.u32 %v27215_v20, 16  ;;  %v20090_v37 = vcombine.low %v27152_v15, %v27155_v19  ;;  %v27307_v59 = vld [vmem:[%s26321_s20 + $0x80] sm:$0xff]   ;;  %v27316_v15 = vcombine.low %v27288_v63, %v27291_v14  ;;  %v25569_v19 = vld [vmem:[%s31745_s1 + $0x168] sm:$0xff]  }
  0xde   : > { %23364 = vmatmul.mubr.bf16.gmra.mrb[92].mxu0 %v3366_v32  ;;  %v27242_v33 = vrot.slane %v3984_v41, 4  ;;  %v27250_v32 = vld [vmem:[%s26321_s20 + $0x7c] sm:$0xf]  ;;  %v27324_v41 = vrot.slane %v4443_v40, 1 }
  0xdf   : > { %23396 = vmatmul.mubr.bf16.gmra.mrb[92].mxu1 %v3663_v44  ;;  %23412 = vmatpush3.bf16.msra.mxu0 %v25542_v2  ;;  %v4664_v2 = vld [vmem:[%s26321_s20 + $0x6c] sm:$0x8]  ;;  %v3952_v34 = vsel %vm715_vm0, %v3942_v55, %v3951_v50  ;;  %v27256_v44 = vld [vmem:[%s26321_s20 + $0x80] sm:$0xf]  ;;  %v3961_v31 = vsel %vm715_vm0, %v3951_v50, %v3960_v38 }
  0xe0   : > { %23444 = vmatpush3.bf16.msra.mxu1 %v25543_v23  ;;  %23413 = vmatprep.subr.bf16.mxu0 %v25544_v28  ;;  %v25559_v23 = vld [vmem:[%s31745_s1 + $0x150] sm:$0xff]   ;;  %v20150_v5 = vcombine.low %v4664_v2, %v27219_v12  ;;  %v20152_v27 = vcombine.low %v27250_v32, %v27256_v44  ;;  %v4447_v2 = vshrl.u32 %v27247_v1, 16 }
  0xe1   : > { %23445 = vmatprep.subr.bf16.mxu1 %v25545_v45  ;;  %23415 = vmatprep.mubr.bf16.mxu0 %v3925_v49  ;;  %v4430_v49 = vshll.u32 %v27215_v20, 16  ;;  %v25577_v20 = vld [vmem:[%s31745_s1 + $0x178] sm:$0xff]  }
  0xe2   : > { %23447 = vmatprep.mubr.bf16.mxu1 %v20085_v43  ;;  %v4435_v43 = vshll.u32 %v27239_v21, 16  ;;  %v4741_v60 = vshrl.u32 %v20150_v5, 16  ;;  %v4744_v6 = vshll.u32 %v20150_v5, 16  ;;  %v4758_v55 = vshrl.u32 %v20152_v27, 16 }
  0xe3   : > { %23414 = vmatpush3.bf16.msra.mxu0 %v25544_v28  ;;  %v27236_v28 = vrot.slane %v3981_v0, 3  ;;  %v4432_v7 = vrot.slane %v4430_v49, 1  ;;  %v4761_v42 = vshll.u32 %v20152_v27, 16  ;;  %v3970_v0 = vsel %vm715_vm0, %v3960_v38, %v3969_v54 }
  0xe4   : > { %23446 = vmatpush3.bf16.msra.mxu1 %v25545_v45  ;;  %23463 = vmatprep.subr.bf16.mxu0 %v25551_v3  ;;  %v25561_v45 = vld [vmem:[%s31745_s1 + $0x158] sm:$0xff]   ;;  %v27297_v56 = vrot.slane %v4435_v43, 1  ;;  %v4760_v50 = vrot.slane %v4758_v55, 3  ;;  %v4779_v49 = vshll.u32 %v27316_v15, 16  ;;  %v27348_v43 = vld [vmem:[%s26321_s20 + $0x90] sm:$0xff]  }
  0xe5   : > { %23495 = vmatprep.subr.bf16.mxu1 %v25552_v62  ;;  %v4763_v5 = vrot.slane %v4761_v42, 4 }
  0xe6   : > { %23416 = vmatmul.mubr.bf16.vlgmr.msra.gmra.mrb[96].mxu0 %v3934_v57  ;;  %v27300_v57 = vld [vmem:[%s26321_s20 + $0x78] sm:$0xff]  }
  0xe7   : > { %23448 = vmatmul.mubr.bf16.vlgmr.msra.gmra.mrb[96].mxu1 %v20086_v30  ;;  %23464 = vmatpush3.bf16.msra.mxu0 %v25551_v3  ;;  %v4749_v3 = vshrl.u32 %v20151_v61, 16  ;;  %v27304_v30 = vcombine.low %v27278_v53, %v27285_v18  ;;  %v4451_v61 = vshll.u32 %v27300_v57, 16 }
  0xe8   : > { %23496 = vmatpush3.bf16.msra.mxu1 %v25552_v62  ;;  %23465 = vmatprep.subr.bf16.mxu0 %v25553_v4  ;;  %v3978_v62 = vor.u32 %v27212_v11, %v27210_v58  ;;  %v4754_v11 = vrot.slane %v4752_v9, 4  ;;  %v27361_v9 = vld [vmem:[%s26321_s20 + $0x98] sm:$0xf] }
  0xe9   : > { %23497 = vmatprep.subr.bf16.mxu1 %v25554_v39  ;;  %23419 = vmatprep.mubr.bf16.mxu0 %v3943_v22  ;;  %v4751_v58 = vrot.slane %v4749_v3, 3  ;;  %v4770_v38 = vshll.u32 %v27304_v30, 16  ;;  %v27358_v3 = vld [vmem:[%s26321_s20 + $0x94] sm:$0xf]  ;;  %v4453_v21 = vrot.slane %v4451_v61, 1  ;;  %v4463_v61 = vshrl.u32 %v27307_v59, 16 }
  0xea   : > { %23451 = vmatprep.mubr.bf16.mxu1 %v20087_v8  ;;  %v3979_v22 = vsel %vm715_vm0, %v3969_v54, %v3978_v62  ;;  %v20091_v8 = vcombine.low %v27158_v10, %v27166_v16  ;;  %v3987_v10 = vor.u32 %v27242_v33, %v27236_v28  ;;  %v25576_v16 = vld [vmem:[%s31745_s1 + $0x1b0] sm:$0xff]   ;;  %v4433_v28 = vor.u32 %v4432_v7, %v4428_v47  ;;  %v25578_v54 = vld [vmem:[%s31745_s1 + $0x1b8] sm:$0xff]  }
  0xeb   : > { %23466 = vmatpush3.bf16.msra.mxu0 %v25553_v4  ;;  %v27310_v4 = vrot.slane %v4741_v60, 3 }
  0xec   : > { %23498 = vmatpush3.bf16.msra.mxu1 %v25554_v39  ;;  %23467 = vmatprep.subr.bf16.mxu0 %v25559_v23  ;;  %v27312_v39 = vrot.slane %v4744_v6, 4  ;;  %v27354_v6 = vor.u32 %v4754_v11, %v4751_v58  ;;  %v4438_v42 = vsel %vm1026_vm1, %v4433_v28, %v27297_v56  ;;  %v4772_v58 = vrot.slane %v4770_v38, 4 }
  0xed   : > { %23499 = vmatprep.subr.bf16.mxu1 %v25560_v26 }
  0xee   : > { %23420 = vmatmul.mubr.bf16.gmra.mrb[100].mxu0 %v3952_v34  ;;  %v4767_v34 = vshrl.u32 %v27304_v30, 16  ;;  %v4747_v33 = vor.u32 %v27312_v39, %v27310_v4  ;;  %v4475_v4 = vshll.u32 %v27348_v43, 16  ;;  %v27388_v39 = vld [vmem:[%s26321_s20 + $0xa0] sm:$0xf] }
  0xef   : > { %23452 = vmatmul.mubr.bf16.gmra.mrb[100].mxu1 %v20088_v36  ;;  %23468 = vmatpush3.bf16.msra.mxu0 %v25559_v23  ;;  %v27331_v23 = vld [vmem:[%s26321_s20 + $0x88] sm:$0xff]   ;;  %v4459_v36 = vshll.u32 %v27307_v59, 16 }
  0xf0   : > { %23500 = vmatpush3.bf16.msra.mxu1 %v25560_v26  ;;  %23469 = vmatprep.subr.bf16.mxu0 %v25561_v45  ;;  %v25575_v26 = vld [vmem:[%s31745_s1 + $0x170] sm:$0xff]   ;;  %v4756_v30 = vsel %vm715_vm0, %v4747_v33, %v27354_v6 }
  0xf1   : > { %23501 = vmatprep.subr.bf16.mxu1 %v25562_v29  ;;  %23423 = vmatprep.mubr.bf16.mxu0 %v3961_v31 }
  0xf2   : > { %23455 = vmatprep.mubr.bf16.mxu1 %v20089_v35  ;;  %v3988_v35 = vsel %vm715_vm0, %v3978_v62, %v3987_v10  ;;  %v4441_v62 = vor.u32 %v4439_v51, %v27297_v56  ;;  %v4455_v51 = vshrl.u32 %v27300_v57, 16  ;;  %v25585_v56 = vld [vmem:[%s31745_s1 + $0x1c0] sm:$0xff]   ;;  %v27407_v10 = vrot.slane %v4475_v4, 1 }
  0xf3   : > { %23470 = vmatpush3.bf16.msra.mxu0 %v25561_v45  ;;  %v4776_v45 = vshrl.u32 %v27316_v15, 16 }
  0xf4   : > { %23502 = vmatpush3.bf16.msra.mxu1 %v25562_v29  ;;  %23471 = vmatprep.subr.bf16.mxu0 %v25567_v52  ;;  %v4467_v29 = vshll.u32 %v27331_v23, 16  ;;  %v4446_v33 = vsel %vm1026_vm1, %v4441_v62, %v27324_v41  ;;  %v25593_v62 = vld [vmem:[%s31745_s1 + $0x1d0] sm:$0xff]  }
  0xf5   : > { %23503 = vmatprep.subr.bf16.mxu1 %v25568_v13  ;;  %v4778_v11 = vrot.slane %v4776_v45, 3  ;;  %v25587_v45 = vld [vmem:[%s31745_s1 + $0x1c8] sm:$0xff]  }
  0xf6   : > { %23424 = vmatmul.mubr.bf16.gmra.mrb[104].mxu0 %v3970_v0  ;;  %v4764_v0 = vor.u32 %v4763_v5, %v4760_v50 }
  0xf7   : > { %23456 = vmatmul.mubr.bf16.gmra.mrb[104].mxu1 %v20090_v37  ;;  %23472 = vmatpush3.bf16.msra.mxu0 %v25567_v52  ;;  %v20092_v52 = vcombine.low %v27169_v17, %v27186_v48  ;;  %v20155_v17 = vcombine.low %v27358_v3, %v27361_v9 }
  0xf8   : > { %23504 = vmatpush3.bf16.msra.mxu1 %v25568_v13  ;;  %23473 = vmatprep.subr.bf16.mxu0 %v25569_v19  ;;  %v27373_v13 = vld [vmem:[%s26321_s20 + $0x9c] sm:$0xf] }
  0xf9   : > { %v23033_v60 = vpop.f32.mrb[0].mxu0  ;;  %23505 = vmatprep.subr.bf16.mxu1 %v25570_v46  ;;  %23427 = vmatprep.mubr.bf16.mxu0 %v3979_v22  ;;  %v4781_v22 = vrot.slane %v4779_v49, 4  ;;  %v4788_v50 = vshll.u32 %v20155_v17, 16  ;;  %v20156_v57 = vcombine.low %v27373_v13, %v27388_v39  ;;  %v4449_v49 = vor.u32 %v4447_v2, %v27324_v41  ;;  %v25588_v2 = vld [vmem:[%s31745_s1 + $0x208] sm:$0xff]  }
  0xfa   : > { %v23065_v40 = vpop.f32.mrb[0].mxu1  ;;  %v641_v27 = vpop.f32.mrb[1].mxu0  ;;  %23459 = vmatprep.mubr.bf16.mxu1 %v20091_v8  ;;  %v4785_v8 = vshrl.u32 %v20155_v17, 16  ;;  %v27416_v60 = vld [vmem:[%s26321_s20 + $0xa4] sm:$0xf] }
  0xfb   : > { %v886_v47 = vpop.f32.mrb[1].mxu1  ;;  %v23034_v31 = vpop.f32.mrb[2].mxu0  ;;  %23474 = vmatpush3.bf16.msra.mxu0 %v25569_v19  ;;  %v27393_v19 = vrot.slane %v4459_v36, 1  ;;  %v4471_v36 = vshrl.u32 %v27331_v23, 16  ;;  %v4794_v41 = vshrl.u32 %v20156_v57, 16  ;;  %v4782_v4 = vor.u32 %v4781_v22, %v4778_v11 }
  0xfc   : > { %v27375_v7 = vadd.f32 %v886_v47, %v641_v27  ;;  %v23066_v55 = vpop.f32.mrb[2].mxu1  ;;  %23506 = vmatpush3.bf16.msra.mxu1 %v25570_v46  ;;  %v644_v37 = vpop.f32.mrb[3].mxu0  ;;  %23475 = vmatprep.subr.bf16.mxu0 %v25575_v26  ;;  %v4769_v46 = vrot.slane %v4767_v34, 3  ;;  %v27404_v34 = vrot.slane %v4467_v29, 1  ;;  %v4765_v29 = vsel %vm715_vm0, %v27354_v6, %v4764_v0  ;;  %v27423_v27 = vld [vmem:[%s26321_s20 + $0xa8] sm:$0xf] }
  0xfd   : > { %v889_v48 = vpop.f32.mrb[3].mxu1  ;;  %23507 = vmatprep.subr.bf16.mxu1 %v25576_v16  ;;  %v4797_v6 = vshll.u32 %v20156_v57, 16  ;;  %v27431_v55 = vld [vmem:[%s26321_s20 + $0xac] sm:$0xf]  ;;  %v20157_v17 = vcombine.low %v27416_v60, %v27423_v27 }
  0xfe   : > { %v27390_v15 = vadd.f32 %v889_v48, %v644_v37  ;;  %23428 = vmatmul.mubr.bf16.gmra.mrb[108].mxu0 %v3988_v35  ;;  %v4773_v40 = vor.u32 %v4772_v58, %v4769_v46  ;;  %v4790_v35 = vrot.slane %v4788_v50, 4  ;;  %v27446_v46 = vld [vmem:[%s26321_s20 + $0x98] sm:$0xff]   ;;  %v27449_v58 = vld [vmem:[%s26321_s20 + $0xa0] ss:$0 sps:$4 sm:$0x11]   ;;  %v4465_v50 = vor.u32 %v4463_v61, %v27393_v19 }
  0xff   : > { %23460 = vmatmul.mubr.bf16.gmra.mrb[108].mxu1 %v20092_v52  ;;  %23476 = vmatpush3.bf16.msra.mxu0 %v25575_v26  ;;  %v25586_v26 = vld [vmem:[%s31745_s1 + $0x200] sm:$0xff]   ;;  %v4806_v11 = vshll.u32 %v20157_v17, 16  ;;  %v27457_v22 = vcombine.low %v27431_v55, %v27431_v55 }
 0x100   : > { %23508 = vmatpush3.bf16.msra.mxu1 %v25576_v16  ;;  %23477 = vmatprep.subr.bf16.mxu0 %v25577_v20  ;;  %v4774_v48 = vsel %vm715_vm0, %v4764_v0, %v4773_v40 }
 0x101   : > { %v23037_v5 = vpop.f32.mrb[4].mxu0  ;;  %23509 = vmatprep.subr.bf16.mxu1 %v25578_v54  ;;  %23479 = vmatprep.mubr.bf16.mxu0 %v4438_v42  ;;  %v4457_v42 = vor.u32 %v4455_v51, %v4453_v21  ;;  %v4799_v51 = vrot.slane %v4797_v6, 4  ;;  %v4808_v6 = vrot.slane %v4806_v11, 4 }
 0x102   : > { %v23069_v16 = vpop.f32.mrb[4].mxu1  ;;  %v657_v38 = vpop.f32.mrb[5].mxu0  ;;  %23511 = vmatprep.mubr.bf16.mxu1 %v4756_v30  ;;  %v25594_v30 = vld [vmem:[%s31745_s1 + $0x210] sm:$0xff]   ;;  %v4803_v5 = vshrl.u32 %v20157_v17, 16 }
 0x103   : > { %v902_v59 = vpop.f32.mrb[5].mxu1  ;;  %v23038_v28 = vpop.f32.mrb[6].mxu0  ;;  %23478 = vmatpush3.bf16.msra.mxu0 %v25577_v20  ;;  %v4787_v20 = vrot.slane %v4785_v8, 3  ;;  %v4462_v61 = vsel %vm1026_vm1, %v4457_v42, %v27393_v19  ;;  %v4491_v19 = vshll.u32 %v27449_v58, 16  ;;  %v26245_v58 = vmov 0  }
 0x104   : > { %v27425_v47 = vadd.f32 %v902_v59, %v657_v38  ;;  %v23070_v31 = vpop.f32.mrb[6].mxu1  ;;  %23510 = vmatpush3.bf16.msra.mxu1 %v25578_v54  ;;  %v660_v1 = vpop.f32.mrb[7].mxu0  ;;  %23527 = vmatprep.subr.bf16.mxu0 %v25585_v56  ;;  %v4454_v54 = vsel %vm1026_vm1, %v4449_v49, %v4453_v21  ;;  %v25595_v21 = vld [vmem:[%s31745_s1 + $0x1d8] sm:$0xff]   ;;  %453 = vst [vmem:[#allocation2] sm:$0xff] %v26245_v58  ;;  %456 = vst [vmem:[#allocation2 + $0x18] sm:$0xff] %v26245_v58 }
 0x105   : > { %v905_v52 = vpop.f32.mrb[7].mxu1  ;;  %23559 = vmatprep.subr.bf16.mxu1 %v25586_v26  ;;  %v25596_v38 = vld [vmem:[%s31745_s1 + $0x218] sm:$0xff]   ;;  %v4791_v49 = vor.u32 %v4790_v35, %v4787_v20  ;;  %v4479_v31 = vshrl.u32 %v27348_v43, 16  ;;  %v4470_v20 = vsel %vm1026_vm1, %v4465_v50, %v27404_v34  ;;  %v4812_v43 = vshrl.u32 %v27457_v22, 16  ;;  %454 = vst [vmem:[#allocation2 + $0x8] sm:$0xff] %v26245_v58  ;;  %457 = vst [vmem:[#allocation2 + $0x120] sm:$0xff] %v26245_v58 }
 0x106   : > { %v27433_v37 = vadd.f32 %v905_v52, %v660_v1  ;;  %23480 = vmatmul.mubr.bf16.vlgmr.msra.gmra.mrb[112].mxu0 %v4446_v33  ;;  %v4473_v52 = vor.u32 %v4471_v36, %v27404_v34  ;;  %459 = vst [vmem:[#allocation2 + $0x130] sm:$0xff] %v26245_v58  ;;  %v25603_v36 = vld [vmem:[%s31745_s1 + $0x1e8] sm:$0xff]   ;;  %v4493_v50 = vrot.slane %v4491_v19, 1  ;;  %v25612_v58 = vld [vmem:[%s31745_s1 + $0x238] sm:$0xff]  }
 0x107   : > { %23512 = vmatmul.mubr.bf16.vlgmr.msra.gmra.mrb[112].mxu1 %v4765_v29  ;;  %23528 = vmatpush3.bf16.msra.mxu0 %v25585_v56  ;;  %v4796_v56 = vrot.slane %v4794_v41, 3  ;;  %v4783_v29 = vsel %vm715_vm0, %v4773_v40, %v4782_v4  ;;  %v25601_v40 = vld [vmem:[%s31745_s1 + $0x1e0] sm:$0xff]   ;;  %v4792_v35 = vsel %vm715_vm0, %v4782_v4, %v4791_v49  ;;  %v4481_v4 = vor.u32 %v4479_v31, %v27407_v10 }
 0x108   : > { %23560 = vmatpush3.bf16.msra.mxu1 %v25586_v26  ;;  %23529 = vmatprep.subr.bf16.mxu0 %v25587_v45 }
 0x109   : > { %v23041_v8 = vpop.f32.mrb[8].mxu0  ;;  %23561 = vmatprep.subr.bf16.mxu1 %v25588_v2  ;;  %23483 = vmatprep.mubr.bf16.mxu0 %v4454_v54  ;;  %v27483_v54 = vld [vmem:[%s26321_s20 + $0x70] sm:$0xff]   ;;  %v4800_v17 = vor.u32 %v4799_v51, %v4796_v56  ;;  %v4814_v56 = vrot.slane %v4812_v43, 3  ;;  %v4478_v51 = vsel %vm1026_vm1, %v4473_v52, %v27407_v10 }
 0x10a   : > { %v23073_v57 = vpop.f32.mrb[8].mxu1  ;;  %v673_v0 = vpop.f32.mrb[9].mxu0  ;;  %23515 = vmatprep.mubr.bf16.mxu1 %v4774_v48  ;;  %v4815_v48 = vshll.u32 %v27457_v22, 16  ;;  %v4487_v8 = vshrl.u32 %v27446_v46, 16  ;;  %v27500_v22 = vld [vmem:[%s26321_s20 + $0x78] sm:$0xff]   ;;  %v5259_v10 = vshrl.u32 %v27483_v54, 16 }
 0x10b   : > { %v918_v26 = vpop.f32.mrb[9].mxu1  ;;  %v23042_v16 = vpop.f32.mrb[10].mxu0  ;;  %23530 = vmatpush3.bf16.msra.mxu0 %v25587_v45  ;;  %v4483_v45 = vshll.u32 %v27446_v46, 16  ;;  %v5266_v19 = vshll.u32 %v27500_v22, 16 }
 0x10c   : > { %v27464_v59 = vadd.f32 %v918_v26, %v673_v0  ;;  %v23074_v28 = vpop.f32.mrb[10].mxu1  ;;  %23562 = vmatpush3.bf16.msra.mxu1 %v25588_v2  ;;  %v676_v33 = vpop.f32.mrb[11].mxu0  ;;  %23531 = vmatprep.subr.bf16.mxu0 %v25593_v62  ;;  %v4805_v2 = vrot.slane %v4803_v5, 3  ;;  %v25604_v5 = vld [vmem:[%s31745_s1 + $0x228] sm:$0xff]   ;;  %v5261_v26 = vshll.u32 %v27483_v54, 16 }
 0x10d   : > { %v921_v1 = vpop.f32.mrb[11].mxu1  ;;  %23563 = vmatprep.subr.bf16.mxu1 %v25594_v30  ;;  %v4817_v28 = vrot.slane %v4815_v48, 4  ;;  %v5270_v48 = vshrl.u32 %v27500_v22, 16  ;;  %v20183_v22 = vcombine.low %v27219_v12, %v27228_v24  ;;  %v25619_v12 = vld [vmem:[%s31745_s1] sm:$0xff]  }
 0x10e   : > { %v27470_v41 = vadd.f32 %v921_v1, %v676_v33  ;;  %23484 = vmatmul.mubr.bf16.gmra.mrb[116].mxu0 %v4462_v61  ;;  %v4809_v11 = vor.u32 %v4808_v6, %v4805_v2  ;;  %v25609_v2 = vld [vmem:[%s31745_s1 + $0x1f0] sm:$0xff]  }
 0x10f   : > { %23516 = vmatmul.mubr.bf16.gmra.mrb[116].mxu1 %v4783_v29  ;;  %23532 = vmatpush3.bf16.msra.mxu0 %v25593_v62  ;;  %v25602_v62 = vld [vmem:[%s31745_s1 + $0x220] sm:$0xff]  }
 0x110   : > { %23564 = vmatpush3.bf16.msra.mxu1 %v25594_v30  ;;  %23533 = vmatprep.subr.bf16.mxu0 %v25595_v21  ;;  %v4485_v30 = vrot.slane %v4483_v45, 1  ;;  %v27508_v29 = vld [vmem:[%s26321_s20 + $0x80] sm:$0xff]  }
 0x111   : > { %v23045_v42 = vpop.f32.mrb[12].mxu0  ;;  %23565 = vmatprep.subr.bf16.mxu1 %v25596_v38  ;;  %23487 = vmatprep.mubr.bf16.mxu0 %v4470_v20  ;;  %v4818_v20 = vor.u32 %v4817_v28, %v4814_v56 }
 0x112   : > { %v23077_v23 = vpop.f32.mrb[12].mxu1  ;;  %v689_v34 = vpop.f32.mrb[13].mxu0  ;;  %23519 = vmatprep.mubr.bf16.mxu1 %v4792_v35  ;;  %v4486_v45 = vsel %vm1026_vm1, %v4481_v4, %v4485_v30  ;;  %v4489_v1 = vor.u32 %v4487_v8, %v4485_v30  ;;  %v25610_v35 = vld [vmem:[%s31745_s1 + $0x230] sm:$0xff]   ;;  %v5274_v30 = vshll.u32 %v27508_v29, 16 }
 0x113   : > { %v934_v57 = vpop.f32.mrb[13].mxu1  ;;  %v23046_v0 = vpop.f32.mrb[14].mxu0  ;;  %23534 = vmatpush3.bf16.msra.mxu0 %v25595_v21  ;;  %v4801_v21 = vsel %vm715_vm0, %v4791_v49, %v4800_v17  ;;  %v5263_v49 = vrot.slane %v5261_v26, 1  ;;  %v4819_v56 = vsel %vm715_vm0, %v4809_v11, %v4818_v20 }
 0x114   : > { %v27503_v16 = vadd.f32 %v934_v57, %v689_v34  ;;  %v23078_v46 = vpop.f32.mrb[14].mxu1  ;;  %23566 = vmatpush3.bf16.msra.mxu1 %v25596_v38  ;;  %v692_v61 = vpop.f32.mrb[15].mxu0  ;;  %23535 = vmatprep.subr.bf16.mxu0 %v25601_v40  ;;  %v4810_v38 = vsel %vm715_vm0, %v4800_v17, %v4809_v11  ;;  %v4494_v54 = vsel %vm1026_vm1, %v4489_v1, %v4493_v50  ;;  %v25611_v17 = vld [vmem:[%s31745_s1 + $0x1f8] sm:$0xff]   ;;  %v5268_v34 = vrot.slane %v5266_v19, 1 }
 0x115   : > { %v937_v33 = vpop.f32.mrb[15].mxu1  ;;  %23567 = vmatprep.subr.bf16.mxu1 %v25602_v62  ;;  %v5264_v23 = vor.u32 %v5263_v49, %v5259_v10  ;;  %v5278_v57 = vshrl.u32 %v27508_v29, 16  ;;  %v27558_v1 = vld [vmem:[%s26321_s20 + $0x98] sm:$0xff]  }
 0x116   : > { %v27510_v31 = vadd.f32 %v937_v33, %v692_v61  ;;  %23488 = vmatmul.mubr.bf16.gmra.mrb[120].mxu0 %v4478_v51  ;;  %v5272_v46 = vor.u32 %v5270_v48, %v5268_v34  ;;  %v5276_v61 = vrot.slane %v5274_v30, 1  ;;  %v20184_v33 = vcombine.low %v27231_v25, %v27250_v32  ;;  %v25620_v25 = vld [vmem:[%s31745_s1 + $0x48] sm:$0xff]  }
 0x117   : > { %23520 = vmatmul.mubr.bf16.gmra.mrb[120].mxu1 %v4801_v21  ;;  %23536 = vmatpush3.bf16.msra.mxu0 %v25601_v40  ;;  %v27522_v40 = vld [vmem:[%s26321_s20 + $0x88] sm:$0xff]   ;;  %v5269_v11 = vsel %vm1026_vm1, %v5264_v23, %v5268_v34 }
 0x118   : > { %23568 = vmatpush3.bf16.msra.mxu1 %v25602_v62  ;;  %23537 = vmatprep.subr.bf16.mxu0 %v25603_v36  ;;  %v5282_v26 = vshll.u32 %v27522_v40, 16  ;;  %v5280_v29 = vor.u32 %v5278_v57, %v5276_v61  ;;  %v5286_v32 = vshrl.u32 %v27522_v40, 16  ;;  %v5559_v34 = vld [vmem:[%s26321_s20 + $0x8c] sm:$0x8] }
 0x119   : > { %v23097_v43 = vpop.f32.mrb[16].mxu0  ;;  %23569 = vmatprep.subr.bf16.mxu1 %v25604_v5  ;;  %23491 = vmatprep.mubr.bf16.mxu0 %v4486_v45 }
 0x11a   : > { %v23129_v52 = vpop.f32.mrb[16].mxu1  ;;  %v1185_v6 = vpop.f32.mrb[17].mxu0  ;;  %23523 = vmatprep.mubr.bf16.mxu1 %v4810_v38  ;;  %v5284_v45 = vrot.slane %v5282_v26, 1  ;;  %v5277_v43 = vsel %vm1026_vm1, %v5272_v46, %v5276_v61  ;;  %v27609_v26 = vld [vmem:[%s26321_s20 + $0x98] sm:$0xf] }
 0x11b   : > { %v1248_v42 = vadd.f32 %v1185_v6, %v27375_v7  ;;  %v1511_v62 = vpop.f32.mrb[17].mxu1  ;;  %v23098_v4 = vpop.f32.mrb[18].mxu0  ;;  %23538 = vmatpush3.bf16.msra.mxu0 %v25603_v36  ;;  %v27537_v7 = vld [vmem:[%s26321_s20 + $0x90] sm:$0xff]   ;;  %v25621_v6 = vld [vmem:[%s31745_s1 + $0x8] sm:$0xff]  }
 0x11c   : > { %v23130_v8 = vpop.f32.mrb[18].mxu1  ;;  %23570 = vmatpush3.bf16.msra.mxu1 %v25604_v5  ;;  %v1188_v50 = vpop.f32.mrb[19].mxu0  ;;  %23539 = vmatprep.subr.bf16.mxu0 %v25609_v2  ;;  %v5290_v24 = vshll.u32 %v27537_v7, 16  ;;  %v5285_v40 = vsel %vm1026_vm1, %v5280_v29, %v5284_v45  ;;  %v5302_v4 = vshrl.u32 %v27558_v1, 16  ;;  %v5288_v23 = vor.u32 %v5286_v32, %v5284_v45 }
 0x11d   : > { %v27539_v0 = vadd.f32 %v1511_v62, %v1248_v42  ;;  %v1249_v36 = vadd.f32 %v1188_v50, %v27390_v15  ;;  %v1514_v51 = vpop.f32.mrb[19].mxu1  ;;  %23571 = vmatprep.subr.bf16.mxu1 %v25610_v35  ;;  %v25618_v15 = vld [vmem:[%s31745_s1 + $0x40] sm:$0xff]   ;;  %v5298_v62 = vshll.u32 %v27558_v1, 16  ;;  %v27595_v50 = vld [vmem:[%s26321_s20 + $0x90] sm:$0xf]  ;;  %v25629_v1 = vld [vmem:[%s31745_s1 + $0x18] sm:$0xff]  }
 0x11e   : > { %23492 = vmatmul.mubr.bf16.gmra.mrb[124].mxu0 %v4494_v54  ;;  %v20185_v54 = vcombine.low %v27256_v44, %v27278_v53  ;;  %v5292_v48 = vrot.slane %v5290_v24, 1  ;;  %v25627_v44 = vld [vmem:[%s31745_s1 + $0x10] sm:$0xff]   ;;  %v5294_v53 = vshrl.u32 %v27537_v7, 16  ;;  %v20186_v7 = vcombine.low %v27285_v18, %v27288_v63 }
 0x11f   : > { %v27545_v5 = vadd.f32 %v1514_v51, %v1249_v36  ;;  %23524 = vmatmul.mubr.bf16.gmra.mrb[124].mxu1 %v4819_v56  ;;  %23540 = vmatpush3.bf16.msra.mxu0 %v25609_v2  ;;  %v25628_v36 = vld [vmem:[%s31745_s1 + $0x58] sm:$0xff]   ;;  %v27603_v51 = vld [vmem:[%s26321_s20 + $0xb0] ss:$0 sps:$4 sm:$0x11]  }
 0x120   : > { %23572 = vmatpush3.bf16.msra.mxu1 %v25610_v35  ;;  %23541 = vmatprep.subr.bf16.mxu0 %v25611_v17  ;;  %v5293_v24 = vsel %vm1026_vm1, %v5288_v23, %v5292_v48 }
 0x121   : > { %v23101_v21 = vpop.f32.mrb[20].mxu0  ;;  %23573 = vmatprep.subr.bf16.mxu1 %v25612_v58  ;;  %23543 = vmatprep.mubr.bf16.mxu0 %v20183_v22  ;;  %v27606_v22 = vld [vmem:[%s26321_s20 + $0x94] sm:$0xf] }
 0x122   : > { %v23133_v28 = vpop.f32.mrb[20].mxu1  ;;  %v1201_v10 = vpop.f32.mrb[21].mxu0  ;;  %23575 = vmatprep.mubr.bf16.mxu1 %v5269_v11  ;;  %v5300_v21 = vrot.slane %v5298_v62, 1 }
 0x123   : > { %v1252_v38 = vadd.f32 %v1201_v10, %v27425_v47  ;;  %v1527_v49 = vpop.f32.mrb[21].mxu1  ;;  %v23102_v19 = vpop.f32.mrb[22].mxu0  ;;  %23542 = vmatpush3.bf16.msra.mxu0 %v25611_v17  ;;  %v27575_v17 = vld [vmem:[%s26321_s20 + $0xa0] sm:$0xff]   ;;  %v20187_v28 = vcombine.low %v27291_v14, %v27358_v3  ;;  %v27617_v10 = vld [vmem:[%s26321_s20 + $0x9c] sm:$0xf] }
 0x124   : > { %v23134_v20 = vpop.f32.mrb[22].mxu1  ;;  %23574 = vmatpush3.bf16.msra.mxu1 %v25612_v58  ;;  %v1204_v2 = vpop.f32.mrb[23].mxu0  ;;  %23591 = vmatprep.subr.bf16.mxu0 %v25618_v15  ;;  %v27590_v58 = vld [vmem:[%s26321_s20 + $0xa8] sm:$0xff]   ;;  %v5306_v8 = vshll.u32 %v27575_v17, 16  ;;  %v5310_v3 = vshrl.u32 %v27575_v17, 16 }
 0x125   : > { %v27566_v35 = vadd.f32 %v1527_v49, %v1252_v38  ;;  %v1253_v47 = vadd.f32 %v1204_v2, %v27433_v37  ;;  %v1530_v52 = vpop.f32.mrb[23].mxu1  ;;  %23623 = vmatprep.subr.bf16.mxu1 %v25619_v12  ;;  %v25626_v37 = vld [vmem:[%s31745_s1 + $0x50] sm:$0xff]   ;;  %v5314_v18 = vshll.u32 %v27590_v58, 16  ;;  %v20264_v38 = vcombine.low %v5559_v34, %v27595_v50  ;;  %v27635_v19 = vld [vmem:[%s26321_s20 + $0xa4] sm:$0xf] }
 0x126   : > { %23544 = vmatmul.mubr.bf16.vlgmr.msra.gmra.mrb[128].mxu0 %v20184_v33  ;;  %v27631_v49 = vcombine.low %v27606_v22, %v27609_v26  ;;  %v5308_v14 = vrot.slane %v5306_v8, 1  ;;  %v27638_v20 = vld [vmem:[%s26321_s20 + $0xa8] sm:$0xf]  ;;  %v5318_v32 = vshrl.u32 %v27590_v58, 16 }
 0x127   : > { %v27581_v42 = vadd.f32 %v1530_v52, %v1253_v47  ;;  %23576 = vmatmul.mubr.bf16.vlgmr.msra.gmra.mrb[128].mxu1 %v5277_v43  ;;  %23592 = vmatpush3.bf16.msra.mxu0 %v25618_v15  ;;  %v5296_v15 = vor.u32 %v5294_v53, %v5292_v48  ;;  %v25634_v43 = vld [vmem:[%s31745_s1 + $0x60] sm:$0xff]   ;;  %v5304_v52 = vor.u32 %v5302_v4, %v5300_v21  ;;  %v5816_v48 = vshll.u32 %v20264_v38, 16  ;;  %v25636_v4 = vld [vmem:[%s31745_s1 + $0x68] sm:$0xff]  }
 0x128   : > { %23624 = vmatpush3.bf16.msra.mxu1 %v25619_v12  ;;  %23593 = vmatprep.subr.bf16.mxu0 %v25620_v25  ;;  %v27656_v53 = vcombine.low %v27635_v19, %v27638_v20  ;;  %v5312_v23 = vor.u32 %v5310_v3, %v5308_v14 }
 0x129   : > { %v23105_v30 = vpop.f32.mrb[24].mxu0  ;;  %23625 = vmatprep.subr.bf16.mxu1 %v25621_v6  ;;  %23547 = vmatprep.mubr.bf16.mxu0 %v20185_v54  ;;  %v5301_v2 = vsel %vm1026_vm1, %v5296_v15, %v5300_v21  ;;  %v5322_v54 = vshll.u32 %v27603_v51, 16  ;;  %v20189_v15 = vcombine.low %v27388_v39, %v27416_v60  ;;  %v25643_v60 = vld [vmem:[%s31745_s1 + $0x30] sm:$0xff]  }
 0x12a   : > { %v23137_v56 = vpop.f32.mrb[24].mxu1  ;;  %v1217_v57 = vpop.f32.mrb[25].mxu0  ;;  %23579 = vmatprep.mubr.bf16.mxu1 %v5285_v40  ;;  %v5813_v40 = vshrl.u32 %v20264_v38, 16  ;;  %v5839_v21 = vshrl.u32 %v27656_v53, 16 }
 0x12b   : > { %v1256_v11 = vadd.f32 %v1217_v57, %v27464_v59  ;;  %v1543_v46 = vpop.f32.mrb[25].mxu1  ;;  %v23106_v61 = vpop.f32.mrb[26].mxu0  ;;  %23594 = vmatpush3.bf16.msra.mxu0 %v25620_v25  ;;  %v27620_v59 = vld [vmem:[%s26321_s20 + $0xa0] sm:$0xf]  ;;  %v25637_v56 = vld [vmem:[%s31745_s1 + $0x28] sm:$0xff]   ;;  %v5824_v57 = vshll.u32 %v27631_v49, 16 }
 0x12c   : > { %v23138_v63 = vpop.f32.mrb[26].mxu1  ;;  %23626 = vmatpush3.bf16.msra.mxu1 %v25621_v6  ;;  %v1220_v12 = vpop.f32.mrb[27].mxu0  ;;  %23595 = vmatprep.subr.bf16.mxu0 %v25626_v37  ;;  %v25635_v25 = vld [vmem:[%s31745_s1 + $0x20] sm:$0xff]   ;;  %v20266_v47 = vcombine.low %v27617_v10, %v27620_v59  ;;  %v5316_v6 = vrot.slane %v5314_v18, 1  ;;  %v27679_v18 = vld [vmem:[%s26321_s20 + $0xb0] sm:$0xf] }
 0x12d   : > { %v27622_v33 = vadd.f32 %v1543_v46, %v1256_v11  ;;  %v1257_v29 = vadd.f32 %v1220_v12, %v27470_v41  ;;  %v1546_v45 = vpop.f32.mrb[27].mxu1  ;;  %23627 = vmatprep.subr.bf16.mxu1 %v25627_v44  ;;  %v5309_v11 = vsel %vm1026_vm1, %v5304_v52, %v5308_v14  ;;  %v27670_v46 = vld [vmem:[%s26321_s20 + $0xac] sm:$0xf]  ;;  %v5324_v63 = vrot.slane %v5322_v54, 1  ;;  %v25642_v12 = vld [vmem:[%s31745_s1 + $0x70] sm:$0xff]  }
 0x12e   : > { %23548 = vmatmul.mubr.bf16.gmra.mrb[132].mxu0 %v20186_v7  ;;  %v5830_v7 = vshrl.u32 %v20266_v47, 16  ;;  %v5317_v39 = vsel %vm1026_vm1, %v5312_v23, %v5316_v6  ;;  %v5320_v38 = vor.u32 %v5318_v32, %v5316_v6  ;;  %v5842_v14 = vshll.u32 %v27656_v53, 16  ;;  %v27699_v52 = vld [vmem:[%s26321_s20 + $0xb8] sm:$0xf] }
 0x12f   : > { %v27640_v41 = vadd.f32 %v1546_v45, %v1257_v29  ;;  %23580 = vmatmul.mubr.bf16.gmra.mrb[132].mxu1 %v5293_v24  ;;  %23596 = vmatpush3.bf16.msra.mxu0 %v25626_v37  ;;  %v5821_v37 = vshrl.u32 %v27631_v49, 16  ;;  %v5815_v24 = vrot.slane %v5813_v40, 3  ;;  %v27693_v3 = vcombine.low %v27670_v46, %v27679_v18  ;;  %v27706_v6 = vld [vmem:[%s31745_s1 + $0x78] sm:$0xff]  }
 0x130   : > { %23628 = vmatpush3.bf16.msra.mxu1 %v25627_v44  ;;  %23597 = vmatprep.subr.bf16.mxu0 %v25628_v36  ;;  %v20188_v44 = vcombine.low %v27361_v9, %v27373_v13  ;;  %v5833_v9 = vshll.u32 %v20266_v47, 16  ;;  %v27696_v47 = vld [vmem:[%s26321_s20 + $0xb4] sm:$0xf]  ;;  %v20190_v32 = vcombine.low %v27423_v27, %v27431_v55  ;;  %v27715_v53 = vld [vmem:[%s31745_s1 + $0x38] sm:$0xff]   ;;  %v27720_v55 = vld [vmem:[%s26321_s20 + $0xc0] sm:$0xf] }
 0x131   : > { %v23109_v17 = vpop.f32.mrb[28].mxu0  ;;  %23629 = vmatprep.subr.bf16.mxu1 %v25629_v1  ;;  %23551 = vmatprep.mubr.bf16.mxu0 %v20187_v28  ;;  %v5818_v28 = vrot.slane %v5816_v48, 4  ;;  %v5823_v29 = vrot.slane %v5821_v37, 3  ;;  %v5848_v23 = vshrl.u32 %v27693_v3, 16 }
 0x132   : > { %v23141_v62 = vpop.f32.mrb[28].mxu1  ;;  %v1233_v58 = vpop.f32.mrb[29].mxu0  ;;  %23583 = vmatprep.mubr.bf16.mxu1 %v5301_v2  ;;  %v5835_v49 = vrot.slane %v5833_v9, 4  ;;  %v27709_v17 = vld [vmem:[%s26321_s20 + $0xbc] sm:$0xf] }
 0x133   : > { %v1260_v34 = vadd.f32 %v1233_v58, %v27503_v16  ;;  %v1559_v30 = vpop.f32.mrb[29].mxu1  ;;  %v23110_v8 = vpop.f32.mrb[30].mxu0  ;;  %23598 = vmatpush3.bf16.msra.mxu0 %v25628_v36  ;;  %v5819_v62 = vor.u32 %v5818_v28, %v5815_v24  ;;  %v27734_v9 = vld [vmem:[%s26321_s20 + $0xc8] sm:$0xf]  ;;  %v20249_v24 = vcombine.low %v27609_v26, %v27617_v10 }
 0x134   : > { %v23142_v13 = vpop.f32.mrb[30].mxu1  ;;  %23630 = vmatpush3.bf16.msra.mxu1 %v25629_v1  ;;  %v1236_v51 = vpop.f32.mrb[31].mxu0  ;;  %23599 = vmatprep.subr.bf16.mxu0 %v25634_v43  ;;  %v5832_v1 = vrot.slane %v5830_v7, 3  ;;  %v5851_v7 = vshll.u32 %v27693_v3, 16 }
 0x135   : > { %v27672_v16 = vadd.f32 %v1559_v30, %v1260_v34  ;;  %v1261_v36 = vadd.f32 %v1236_v51, %v27510_v31  ;;  %v1562_v61 = vpop.f32.mrb[31].mxu1  ;;  %23631 = vmatprep.subr.bf16.mxu1 %v25635_v25  ;;  %v5826_v31 = vrot.slane %v5824_v57, 4  ;;  %v20248_v57 = vcombine.low %v27595_v50, %v27606_v22 }
 0x136   : > { %23552 = vmatmul.mubr.bf16.gmra.mrb[136].mxu0 %v20188_v44  ;;  %v27738_v13 = vcombine.low %v27696_v47, %v27699_v52  ;;  %v27742_v51 = vcombine.low %v27709_v17, %v27720_v55  ;;  %v5836_v22 = vor.u32 %v5835_v49, %v5832_v1  ;;  %v25653_v1 = vld [vmem:[%s31745_s1 + $0x88] sm:$0xff]  }
 0x137   : > { %v27684_v45 = vadd.f32 %v1562_v61, %v1261_v36  ;;  %23584 = vmatmul.mubr.bf16.gmra.mrb[136].mxu1 %v5309_v11  ;;  %23600 = vmatpush3.bf16.msra.mxu0 %v25634_v43  ;;  %v5841_v43 = vrot.slane %v5839_v21, 3  ;;  %v27717_v27 = vor.u32 %v5826_v31, %v5823_v29  ;;  %v25651_v36 = vld [vmem:[%s31745_s1 + $0x80] sm:$0xff]   ;;  %v5853_v29 = vrot.slane %v5851_v7, 4 }
 0x138   : > { %23632 = vmatpush3.bf16.msra.mxu1 %v25635_v25  ;;  %23601 = vmatprep.subr.bf16.mxu0 %v25636_v4  ;;  %v25652_v61 = vld [vmem:[%s31745_s1 + $0xc0] sm:$0xff]   ;;  %v5860_v49 = vshll.u32 %v27738_v13, 16  ;;  %v5866_v26 = vshrl.u32 %v27742_v51, 16  ;;  %v5869_v10 = vshll.u32 %v27742_v51, 16 }
 0x139   : > { %v23161_v2 = vpop.f32.mrb[32].mxu0  ;;  %23633 = vmatprep.subr.bf16.mxu1 %v25637_v56  ;;  %23555 = vmatprep.mubr.bf16.mxu0 %v20189_v15  ;;  %v5828_v50 = vsel %vm715_vm0, %v5819_v62, %v27717_v27  ;;  %v5850_v15 = vrot.slane %v5848_v23, 3  ;;  %v20250_v62 = vcombine.low %v27620_v59, %v27635_v19 }
 0x13a   : > { %v23193_v25 = vpop.f32.mrb[32].mxu1  ;;  %v1705_v54 = vpop.f32.mrb[33].mxu0  ;;  %23587 = vmatprep.mubr.bf16.mxu1 %v5317_v39  ;;  %v5862_v19 = vrot.slane %v5860_v49, 4 }
 0x13b   : > { %v1768_v40 = vadd.f32 %v1705_v54, %v27539_v0  ;;  %v2019_v48 = vpop.f32.mrb[33].mxu1  ;;  %v23162_v37 = vpop.f32.mrb[34].mxu0  ;;  %23602 = vmatpush3.bf16.msra.mxu0 %v25636_v4  ;;  %v5325_v0 = vsel %vm1026_vm1, %v5320_v38, %v5324_v63  ;;  %v5844_v4 = vrot.slane %v5842_v14, 4  ;;  %v26246_v63 = vmov 0.0|0.0  }
 0x13c   : > { %v23194_v58 = vpop.f32.mrb[34].mxu1  ;;  %23634 = vmatpush3.bf16.msra.mxu1 %v25637_v56  ;;  %v1708_v44 = vpop.f32.mrb[35].mxu0  ;;  %23603 = vmatprep.subr.bf16.mxu0 %v25642_v12  ;;  %v27731_v56 = vld [vmem:[%s26321_s20 + $0xc4] sm:$0xf]  ;;  %3027 = vst [vmem:[#allocation2 + $0x28] sm:$0xff] %v26246_v63  ;;  %3031 = vst [vmem:[#allocation2 + $0x48] sm:$0xff] %v26246_v63 }
 0x13d   : > { %v27724_v34 = vadd.f32 %v2019_v48, %v1768_v40  ;;  %v1769_v30 = vadd.f32 %v1708_v44, %v27545_v5  ;;  %v2022_v8 = vpop.f32.mrb[35].mxu1  ;;  %23635 = vmatprep.subr.bf16.mxu1 %v25643_v60  ;;  %v27745_v5 = vld [vmem:[%s26321_s20 + $0xcc] sm:$0xf]  ;;  %v27760_v21 = vcombine.low %v27731_v56, %v27734_v9  ;;  %3033 = vst [vmem:[#allocation2 + $0x58] sm:$0xff] %v26246_v63  ;;  %5552 = vst [vmem:[#allocation2 + $0x68] sm:$0xff] %v26246_v63  ;;  %v25660_v44 = vld [vmem:[%s31745_s1 + $0xd0] sm:$0xff]  }
 0x13e   : > { %23556 = vmatmul.mubr.bf16.gmra.mrb[140].mxu0 %v20190_v32  ;;  %5556 = vst [vmem:[#allocation2 + $0x88] sm:$0xff] %v26246_v63  ;;  %5558 = vst [vmem:[#allocation2 + $0x98] sm:$0xff] %v26246_v63  ;;  %v27765_v28 = vor.u32 %v5844_v4, %v5841_v43  ;;  %v27769_v39 = vcombine.low %v27745_v5, %v27745_v5  ;;  %v5857_v38 = vshrl.u32 %v27738_v13, 16  ;;  %v25654_v43 = vld [vmem:[%s31745_s1 + $0xc8] sm:$0xff]  }
 0x13f   : > { %v27747_v11 = vadd.f32 %v2022_v8, %v1769_v30  ;;  %23588 = vmatmul.mubr.bf16.gmra.mrb[140].mxu1 %v5325_v0  ;;  %23604 = vmatpush3.bf16.msra.mxu0 %v25642_v12  ;;  %8077 = vst [vmem:[#allocation2 + $0xa8] sm:$0xff] %v26246_v63  ;;  %8081 = vst [vmem:[#allocation2 + $0xc8] sm:$0xff] %v26246_v63  ;;  %v5837_v32 = vsel %vm715_vm0, %v27717_v27, %v5836_v22  ;;  %v5875_v40 = vshrl.u32 %v27760_v21, 16  ;;  %v27806_v30 = vld [vmem:[%s26321_s20 + $0x90] sm:$0xff]  }
 0x140   : > { %23636 = vmatpush3.bf16.msra.mxu1 %v25643_v60  ;;  %23605 = vmatprep.subr.bf16.mxu0 %v27706_v6  ;;  %8083 = vst [vmem:[#allocation2 + $0xd8] sm:$0xff] %v26246_v63  ;;  %10602 = vst [vmem:[#allocation2 + $0xe8] sm:$0xff] %v26246_v63  ;;  %v5846_v27 = vsel %vm715_vm0, %v5836_v22, %v27765_v28  ;;  %v5859_v59 = vrot.slane %v5857_v38, 3  ;;  %v5868_v0 = vrot.slane %v5866_v26, 3  ;;  %v5887_v23 = vshll.u32 %v27769_v39, 16 }
 0x141   : > { %v23165_v12 = vpop.f32.mrb[36].mxu0  ;;  %23637 = vmatprep.subr.bf16.mxu1 %v27715_v53  ;;  %23607 = vmatprep.mubr.bf16.mxu0 %v20248_v57  ;;  %v5854_v4 = vor.u32 %v5853_v29, %v5850_v15  ;;  %v5871_v57 = vrot.slane %v5869_v10, 4  ;;  %v27808_v7 = vrot.slane %v5875_v40, 3  ;;  %v25661_v15 = vld [vmem:[%s31745_s1 + $0x98] sm:$0xff]   ;;  %v27824_v63 = vld [vmem:[%s26321_s20 + $0xa0] sm:$0xf] }
 0x142   : > { %v23197_v60 = vpop.f32.mrb[36].mxu1  ;;  %v1721_v31 = vpop.f32.mrb[37].mxu0  ;;  %23639 = vmatprep.mubr.bf16.mxu1 %v5828_v50  ;;  %v27815_v50 = vld [vmem:[%s26321_s20 + $0x98] sm:$0xff]   ;;  %v27840_v49 = vrot.slane %v5887_v23, 4  ;;  %v6124_v26 = vshll.u32 %v27806_v30, 16 }
 0x143   : > { %v1772_v14 = vadd.f32 %v1721_v31, %v27566_v35  ;;  %v2035_v3 = vpop.f32.mrb[37].mxu1  ;;  %v23166_v2 = vpop.f32.mrb[38].mxu0  ;;  %23606 = vmatpush3.bf16.msra.mxu0 %v27706_v6  ;;  %v5878_v35 = vshll.u32 %v27760_v21, 16  ;;  %v6358_v21 = vld [vmem:[%s26321_s20 + $0x9c] sm:$0x8]  ;;  %v5863_v60 = vor.u32 %v5862_v19, %v5859_v59 }
 0x144   : > { %v23198_v25 = vpop.f32.mrb[38].mxu1  ;;  %23638 = vmatpush3.bf16.msra.mxu1 %v27715_v53  ;;  %v1724_v54 = vpop.f32.mrb[39].mxu0  ;;  %23655 = vmatprep.subr.bf16.mxu0 %v25651_v36  ;;  %v5884_v53 = vshrl.u32 %v27769_v39, 16  ;;  %v25662_v39 = vld [vmem:[%s31745_s1 + $0xd8] sm:$0xff]   ;;  %v27831_v31 = vld [vmem:[%s26321_s20 + $0xa4] sm:$0xf] }
 0x145   : > { %v27788_v48 = vadd.f32 %v2035_v3, %v1772_v14  ;;  %v1773_v6 = vadd.f32 %v1724_v54, %v27581_v42  ;;  %v2038_v37 = vpop.f32.mrb[39].mxu1  ;;  %23687 = vmatprep.subr.bf16.mxu1 %v25652_v61  ;;  %v25659_v42 = vld [vmem:[%s31745_s1 + $0x90] sm:$0xff]   ;;  %v27810_v13 = vrot.slane %v5878_v35, 4  ;;  %v27844_v10 = vld [vmem:[%s26321_s20 + $0xac] sm:$0xf]  ;;  %v5864_v40 = vsel %vm715_vm0, %v5854_v4, %v5863_v60  ;;  %v25668_v35 = vld [vmem:[%s31745_s1 + $0xe0] sm:$0xff]  }
 0x146   : > { %23608 = vmatmul.mubr.bf16.vlgmr.msra.gmra.mrb[144].mxu0 %v20249_v24  ;;  %v27812_v51 = vrot.slane %v5884_v53, 3  ;;  %v27852_v25 = vld [vmem:[%s26321_s20 + $0xb0] sm:$0xf]  ;;  %v6133_v53 = vshrl.u32 %v27815_v50, 16 }
 0x147   : > { %v27796_v58 = vadd.f32 %v2038_v37, %v1773_v6  ;;  %23640 = vmatmul.mubr.bf16.vlgmr.msra.gmra.mrb[144].mxu1 %v5837_v32  ;;  %23656 = vmatpush3.bf16.msra.mxu0 %v25651_v36  ;;  %v27861_v32 = vld [vmem:[%s26321_s20 + $0xa0] sm:$0xff]   ;;  %v20332_v6 = vcombine.low %v27844_v10, %v27852_v25  ;;  %v5872_v37 = vor.u32 %v5871_v57, %v5868_v0 }
 0x148   : > { %23688 = vmatpush3.bf16.msra.mxu1 %v25652_v61  ;;  %23657 = vmatprep.subr.bf16.mxu0 %v25653_v1  ;;  %v20251_v61 = vcombine.low %v27638_v20, %v27670_v46  ;;  %v27834_v20 = vld [vmem:[%s26321_s20 + $0xa8] sm:$0xf]  ;;  %v6137_v57 = vshll.u32 %v27861_v32, 16 }
 0x149   : > { %v23169_v8 = vpop.f32.mrb[40].mxu0  ;;  %23689 = vmatprep.subr.bf16.mxu1 %v25654_v43  ;;  %23611 = vmatprep.mubr.bf16.mxu0 %v20250_v62  ;;  %v20331_v54 = vcombine.low %v27831_v31, %v27834_v20  ;;  %v27871_v62 = vrot.slane %v6124_v26, 1 }
 0x14a   : > { %v23201_v22 = vpop.f32.mrb[40].mxu1  ;;  %v1737_v36 = vpop.f32.mrb[41].mxu0  ;;  %23643 = vmatprep.mubr.bf16.mxu1 %v5846_v27 }
 0x14b   : > { %v1776_v12 = vadd.f32 %v1737_v36, %v27622_v33  ;;  %v2051_v24 = vpop.f32.mrb[41].mxu1  ;;  %v23170_v29 = vpop.f32.mrb[42].mxu0  ;;  %23658 = vmatpush3.bf16.msra.mxu0 %v25653_v1  ;;  %v5855_v33 = vsel %vm715_vm0, %v27765_v28, %v5854_v4  ;;  %v20252_v1 = vcombine.low %v27679_v18, %v27696_v47  ;;  %v20330_v28 = vcombine.low %v6358_v21, %v27824_v63  ;;  %v25667_v18 = vld [vmem:[%s31745_s1 + $0xa0] sm:$0xff]  }
 0x14c   : > { %v23202_v46 = vpop.f32.mrb[42].mxu1  ;;  %23690 = vmatpush3.bf16.msra.mxu1 %v25654_v43  ;;  %v1740_v38 = vpop.f32.mrb[43].mxu0  ;;  %23659 = vmatprep.subr.bf16.mxu0 %v25659_v42  ;;  %v6122_v43 = vshrl.u32 %v27806_v30, 16  ;;  %v6129_v47 = vshll.u32 %v27815_v50, 16  ;;  %v6443_v23 = vshrl.u32 %v20331_v54, 16  ;;  %v6446_v8 = vshll.u32 %v20331_v54, 16 }
 0x14d   : > { %v27846_v14 = vadd.f32 %v2051_v24, %v1776_v12  ;;  %v1777_v3 = vadd.f32 %v1740_v38, %v27640_v41  ;;  %v2054_v2 = vpop.f32.mrb[43].mxu1  ;;  %23691 = vmatprep.subr.bf16.mxu1 %v25660_v44  ;;  %v6435_v59 = vshrl.u32 %v20330_v28, 16  ;;  %v6438_v0 = vshll.u32 %v20330_v28, 16  ;;  %v27884_v12 = vld [vmem:[%s26321_s20 + $0xb4] sm:$0xf] }
 0x14e   : > { %23612 = vmatmul.mubr.bf16.gmra.mrb[148].mxu0 %v20251_v61  ;;  %v6455_v21 = vshll.u32 %v20332_v6, 16  ;;  %v5873_v46 = vsel %vm715_vm0, %v5863_v60, %v5872_v37  ;;  %v20254_v38 = vcombine.low %v27720_v55, %v27731_v56  ;;  %v25675_v55 = vld [vmem:[%s31745_s1 + $0xb0] sm:$0xff]   ;;  %v6445_v60 = vrot.slane %v6443_v23, 3 }
 0x14f   : > { %v27863_v41 = vadd.f32 %v2054_v2, %v1777_v3  ;;  %23644 = vmatmul.mubr.bf16.gmra.mrb[148].mxu1 %v5855_v33  ;;  %23660 = vmatpush3.bf16.msra.mxu0 %v25659_v42  ;;  %v20253_v42 = vcombine.low %v27699_v52, %v27709_v17  ;;  %v5881_v52 = vor.u32 %v27810_v13, %v27808_v7  ;;  %v6452_v17 = vshrl.u32 %v20332_v6, 16  ;;  %v25670_v13 = vld [vmem:[%s31745_s1 + $0xe8] sm:$0xff]   ;;  %v25676_v28 = vld [vmem:[%s31745_s1 + $0xf0] sm:$0xff]  }
 0x150   : > { %23692 = vmatpush3.bf16.msra.mxu1 %v25660_v44  ;;  %23661 = vmatprep.subr.bf16.mxu0 %v25661_v15  ;;  %v25669_v44 = vld [vmem:[%s31745_s1 + $0xa8] sm:$0xff]   ;;  %v6440_v56 = vrot.slane %v6438_v0, 4  ;;  %v6448_v26 = vrot.slane %v6446_v8, 4  ;;  %v6141_v54 = vshrl.u32 %v27861_v32, 16  ;;  %v5890_v6 = vor.u32 %v27840_v49, %v27812_v51  ;;  %v25677_v51 = vld [vmem:[%s31745_s1 + $0xb8] sm:$0xff]  }
 0x151   : > { %v23173_v27 = vpop.f32.mrb[44].mxu0  ;;  %23693 = vmatprep.subr.bf16.mxu1 %v25662_v39  ;;  %23615 = vmatprep.mubr.bf16.mxu0 %v20252_v1  ;;  %v27898_v1 = vrot.slane %v6435_v59, 3  ;;  %v5882_v2 = vsel %vm715_vm0, %v5872_v37, %v5881_v52  ;;  %v27923_v59 = vld [vmem:[%s26321_s20 + $0xb0] sm:$0xff]   ;;  %v6127_v49 = vor.u32 %v27871_v62, %v6122_v43  ;;  %v25687_v32 = vld [vmem:[%s31745_s1 + $0x108] sm:$0xff]  }
 0x152   : > { %v23205_v19 = vpop.f32.mrb[44].mxu1  ;;  %v1753_v4 = vpop.f32.mrb[45].mxu0  ;;  %23647 = vmatprep.mubr.bf16.mxu1 %v5864_v40  ;;  %v6457_v27 = vrot.slane %v6455_v21, 4  ;;  %v5891_v30 = vsel %vm715_vm0, %v5881_v52, %v5890_v6  ;;  %v6153_v50 = vshll.u32 %v27923_v59, 16 }
 0x153   : > { %v1780_v22 = vadd.f32 %v1753_v4, %v27672_v16  ;;  %v2067_v36 = vpop.f32.mrb[45].mxu1  ;;  %v23174_v61 = vpop.f32.mrb[46].mxu0  ;;  %23662 = vmatpush3.bf16.msra.mxu0 %v25661_v15  ;;  %v27890_v16 = vld [vmem:[%s26321_s20 + $0xb8] sm:$0xf]  ;;  %v27926_v19 = vld [vmem:[%s26321_s20 + $0xc0] sm:$0xf]  ;;  %v6441_v23 = vor.u32 %v6440_v56, %v27898_v1 }
 0x154   : > { %v23206_v24 = vpop.f32.mrb[46].mxu1  ;;  %23694 = vmatpush3.bf16.msra.mxu1 %v25662_v39  ;;  %v1756_v29 = vpop.f32.mrb[47].mxu0  ;;  %23663 = vmatprep.subr.bf16.mxu0 %v25667_v18  ;;  %v6131_v39 = vrot.slane %v6129_v47, 1  ;;  %v27912_v47 = vld [vmem:[%s26321_s20 + $0xa8] sm:$0xff]   ;;  %v20333_v40 = vcombine.low %v27884_v12, %v27890_v16  ;;  %v27974_v56 = vld [vmem:[%s26321_s20 + $0xd0] sm:$0xf] }
 0x155   : > { %v27892_v33 = vadd.f32 %v2067_v36, %v1780_v22  ;;  %v1781_v15 = vadd.f32 %v1756_v29, %v27684_v45  ;;  %v2070_v7 = vpop.f32.mrb[47].mxu1  ;;  %23695 = vmatprep.subr.bf16.mxu1 %v25668_v35  ;;  %v27903_v45 = vrot.slane %v6137_v57, 1  ;;  %v27938_v36 = vor.u32 %v6448_v26, %v6445_v60  ;;  %v25678_v24 = vld [vmem:[%s31745_s1 + $0xf8] sm:$0xff]   ;;  %v27971_v1 = vld [vmem:[%s26321_s20 + $0xcc] sm:$0xf] }
 0x156   : > { %23616 = vmatmul.mubr.bf16.gmra.mrb[152].mxu0 %v20253_v42  ;;  %v27920_v42 = vld [vmem:[%s26321_s20 + $0xbc] sm:$0xf]  ;;  %v6461_v61 = vshrl.u32 %v20333_v40, 16  ;;  %v6135_v43 = vor.u32 %v6133_v53, %v6131_v39  ;;  %v6145_v52 = vshll.u32 %v27912_v47, 16  ;;  %v27954_v53 = vld [vmem:[%s26321_s20 + $0xc4] sm:$0xf]  ;;  %v6132_v29 = vsel %vm1026_vm1, %v6127_v49, %v6131_v39 }
 0x157   : > { %v27905_v3 = vadd.f32 %v2070_v7, %v1781_v15  ;;  %23648 = vmatmul.mubr.bf16.gmra.mrb[152].mxu1 %v5873_v46  ;;  %23664 = vmatpush3.bf16.msra.mxu0 %v25667_v18  ;;  %v6454_v18 = vrot.slane %v6452_v17, 3  ;;  %v27961_v46 = vld [vmem:[%s26321_s20 + $0xc8] sm:$0xf]  ;;  %v6450_v15 = vsel %vm715_vm0, %v6441_v23, %v27938_v36  ;;  %v25686_v7 = vld [vmem:[%s31745_s1 + $0x140] sm:$0xff]   ;;  %v27989_v49 = vcombine.low %v27971_v1, %v27974_v56 }
 0x158   : > { %23696 = vmatpush3.bf16.msra.mxu1 %v25668_v35  ;;  %23665 = vmatprep.subr.bf16.mxu0 %v25669_v44  ;;  %v20255_v35 = vcombine.low %v27734_v9, %v27745_v5  ;;  %v6464_v9 = vshll.u32 %v20333_v40, 16  ;;  %v6140_v6 = vsel %vm1026_vm1, %v6135_v43, %v27903_v45 }
 0x159   : > { %v23225_v37 = vpop.f32.mrb[48].mxu0  ;;  %23697 = vmatprep.subr.bf16.mxu1 %v25670_v13  ;;  %23619 = vmatprep.mubr.bf16.mxu0 %v20254_v38  ;;  %v6458_v60 = vor.u32 %v6457_v27, %v6454_v18  ;;  %v6147_v18 = vrot.slane %v6145_v52, 1  ;;  %v6149_v27 = vshrl.u32 %v27912_v47, 16  ;;  %v6488_v52 = vshrl.u32 %v27989_v49, 16 }
 0x15a   : > { %v23257_v4 = vpop.f32.mrb[48].mxu1  ;;  %v2345_v0 = vpop.f32.mrb[49].mxu0  ;;  %23651 = vmatprep.mubr.bf16.mxu1 %v5882_v2  ;;  %v6466_v39 = vrot.slane %v6464_v9, 4  ;;  %v6143_v37 = vor.u32 %v6141_v54, %v27903_v45  ;;  %v25688_v45 = vld [vmem:[%s31745_s1 + $0x148] sm:$0xff]  }
 0x15b   : > { %v2408_v8 = vadd.f32 %v2345_v0, %v27724_v34  ;;  %v2539_v57 = vpop.f32.mrb[49].mxu1  ;;  %v23226_v22 = vpop.f32.mrb[50].mxu0  ;;  %23666 = vmatpush3.bf16.msra.mxu0 %v25669_v44  ;;  %v20334_v34 = vcombine.low %v27920_v42, %v27926_v19  ;;  %v27984_v4 = vld [vmem:[%s26321_s20 + $0xb8] sm:$0xff]  }
 0x15c   : > { %v23258_v5 = vpop.f32.mrb[50].mxu1  ;;  %23698 = vmatpush3.bf16.msra.mxu1 %v25670_v13  ;;  %v2348_v17 = vpop.f32.mrb[51].mxu0  ;;  %23667 = vmatprep.subr.bf16.mxu0 %v25675_v55  ;;  %v6463_v13 = vrot.slane %v6461_v61, 3 }
 0x15d   : > { %v27945_v62 = vadd.f32 %v2539_v57, %v2408_v8  ;;  %v2409_v44 = vadd.f32 %v2348_v17, %v27747_v11  ;;  %v2542_v21 = vpop.f32.mrb[51].mxu1  ;;  %23699 = vmatprep.subr.bf16.mxu1 %v25676_v28  ;;  %v25685_v11 = vld [vmem:[%s31745_s1 + $0x100] sm:$0xff]   ;;  %v6470_v26 = vshrl.u32 %v20334_v34, 16  ;;  %v6473_v2 = vshll.u32 %v20334_v34, 16 }
 0x15e   : > { %23620 = vmatmul.mubr.bf16.gmra.mrb[156].mxu0 %v20255_v35  ;;  %v6155_v35 = vrot.slane %v6153_v50, 1  ;;  %v27998_v47 = vor.u32 %v6466_v39, %v6463_v13  ;;  %v6157_v17 = vshrl.u32 %v27923_v59, 16  ;;  %v25693_v59 = vld [vmem:[%s31745_s1 + $0x110] sm:$0xff]   ;;  %v6491_v50 = vshll.u32 %v27989_v49, 16  ;;  %v28038_v49 = vld [vmem:[%s26321_s20 + $0xdc] sm:$0xf] }
 0x15f   : > { %v27963_v38 = vadd.f32 %v2542_v21, %v2409_v44  ;;  %23652 = vmatmul.mubr.bf16.gmra.mrb[156].mxu1 %v5891_v30  ;;  %23668 = vmatpush3.bf16.msra.mxu0 %v25675_v55  ;;  %v20335_v55 = vcombine.low %v27954_v53, %v27961_v46  ;;  %v6475_v5 = vrot.slane %v6473_v2, 4  ;;  %v28004_v30 = vld [vmem:[%s26321_s20 + $0xc0] sm:$0xff]   ;;  %v6161_v21 = vshll.u32 %v27984_v4, 16  ;;  %v28021_v2 = vld [vmem:[%s26321_s20 + $0xd4] sm:$0xf] }
 0x160   : > { %23700 = vmatpush3.bf16.msra.mxu1 %v25676_v28  ;;  %23669 = vmatprep.subr.bf16.mxu0 %v25677_v51 }
 0x161   : > { %v23229_v40 = vpop.f32.mrb[52].mxu0  ;;  %23701 = vmatprep.subr.bf16.mxu1 %v25678_v24  ;;  %23671 = vmatprep.mubr.bf16.mxu0 %v6132_v29  ;;  %v6479_v54 = vshrl.u32 %v20335_v55, 16  ;;  %v6482_v22 = vshll.u32 %v20335_v55, 16  ;;  %v28024_v55 = vld [vmem:[%s26321_s20 + $0xd8] sm:$0xf] }
 0x162   : > { %v23261_v28 = vpop.f32.mrb[52].mxu1  ;;  %v2361_v0 = vpop.f32.mrb[53].mxu0  ;;  %23703 = vmatprep.mubr.bf16.mxu1 %v6450_v15 }
 0x163   : > { %v2412_v23 = vadd.f32 %v2361_v0, %v27788_v48  ;;  %v2555_v8 = vpop.f32.mrb[53].mxu1  ;;  %v23230_v57 = vpop.f32.mrb[54].mxu0  ;;  %23670 = vmatpush3.bf16.msra.mxu0 %v25677_v51  ;;  %v6459_v48 = vsel %vm715_vm0, %v27938_v36, %v6458_v60  ;;  %v6472_v51 = vrot.slane %v6470_v26, 3  ;;  %v6151_v36 = vor.u32 %v6149_v27, %v6147_v18 }
 0x164   : > { %v23262_v61 = vpop.f32.mrb[54].mxu1  ;;  %23702 = vmatpush3.bf16.msra.mxu1 %v25678_v24  ;;  %v2364_v9 = vpop.f32.mrb[55].mxu0  ;;  %23719 = vmatprep.subr.bf16.mxu0 %v25685_v11  ;;  %v6148_v24 = vsel %vm1026_vm1, %v6143_v37, %v6147_v18  ;;  %v6481_v15 = vrot.slane %v6479_v54, 3  ;;  %v6484_v13 = vrot.slane %v6482_v22, 4  ;;  %v6159_v26 = vor.u32 %v6157_v17, %v6155_v35  ;;  %v28032_v37 = vld [vmem:[%s26321_s20 + $0xc8] sm:$0xff]   ;;  %v25696_v54 = vld [vmem:[%s31745_s1 + $0x158] sm:$0xff]  }
 0x165   : > { %v28006_v43 = vadd.f32 %v2555_v8, %v2412_v23  ;;  %v2413_v34 = vadd.f32 %v2364_v9, %v27796_v58  ;;  %v2558_v44 = vpop.f32.mrb[55].mxu1  ;;  %23751 = vmatprep.subr.bf16.mxu1 %v25686_v7  ;;  %v6468_v58 = vsel %vm715_vm0, %v6458_v60, %v27998_v47  ;;  %v6476_v39 = vor.u32 %v6475_v5, %v6472_v51 }
 0x166   : > { %23672 = vmatmul.mubr.bf16.vlgmr.msra.gmra.mrb[160].mxu0 %v6140_v6  ;;  %v6163_v60 = vrot.slane %v6161_v21, 1  ;;  %v6165_v6 = vshrl.u32 %v27984_v4, 16  ;;  %v20337_v28 = vcombine.low %v28021_v2, %v28024_v55  ;;  %v6156_v27 = vsel %vm1026_vm1, %v6151_v36, %v6155_v35  ;;  %v25695_v4 = vld [vmem:[%s31745_s1 + $0x118] sm:$0xff]  }
 0x167   : > { %v28016_v29 = vadd.f32 %v2558_v44, %v2413_v34  ;;  %23704 = vmatmul.mubr.bf16.vlgmr.msra.gmra.mrb[160].mxu1 %v6459_v48  ;;  %23720 = vmatpush3.bf16.msra.mxu0 %v25685_v11  ;;  %v25694_v11 = vld [vmem:[%s31745_s1 + $0x150] sm:$0xff]   ;;  %v6485_v22 = vor.u32 %v6484_v13, %v6481_v15  ;;  %v6493_v5 = vrot.slane %v6491_v50, 4  ;;  %v20338_v17 = vcombine.low %v28038_v49, %v28038_v49  ;;  %v25702_v13 = vld [vmem:[%s31745_s1 + $0x160] sm:$0xff]  }
 0x168   : > { %23752 = vmatpush3.bf16.msra.mxu1 %v25686_v7  ;;  %23721 = vmatprep.subr.bf16.mxu0 %v25687_v32  ;;  %v6169_v7 = vshll.u32 %v28004_v30, 16  ;;  %v6497_v61 = vshrl.u32 %v20337_v28, 16  ;;  %v6500_v9 = vshll.u32 %v20337_v28, 16  ;;  %v28048_v48 = vld [vmem:[%s26321_s20 + $0xd0] ss:$0 sps:$4 sm:$0x11]  }
 0x169   : > { %v23233_v40 = vpop.f32.mrb[56].mxu0  ;;  %23753 = vmatprep.subr.bf16.mxu1 %v25688_v45  ;;  %23675 = vmatprep.mubr.bf16.mxu0 %v6148_v24  ;;  %v6164_v24 = vsel %vm1026_vm1, %v6159_v26, %v6163_v60  ;;  %v6177_v50 = vshll.u32 %v28032_v37, 16 }
 0x16a   : > { %v23265_v0 = vpop.f32.mrb[56].mxu1  ;;  %v2377_v18 = vpop.f32.mrb[57].mxu0  ;;  %23707 = vmatprep.mubr.bf16.mxu1 %v6468_v58  ;;  %v6171_v36 = vrot.slane %v6169_v7, 1  ;;  %v6499_v58 = vrot.slane %v6497_v61, 3  ;;  %v6502_v26 = vrot.slane %v6500_v9, 4  ;;  %v6506_v40 = vshrl.u32 %v20338_v17, 16 }
 0x16b   : > { %v2416_v23 = vadd.f32 %v2377_v18, %v27846_v14  ;;  %v2571_v8 = vpop.f32.mrb[57].mxu1  ;;  %v23234_v57 = vpop.f32.mrb[58].mxu0  ;;  %23722 = vmatpush3.bf16.msra.mxu0 %v25687_v32  ;;  %v6477_v14 = vsel %vm715_vm0, %v27998_v47, %v6476_v39  ;;  %v6490_v32 = vrot.slane %v6488_v52, 3  ;;  %v25701_v47 = vld [vmem:[%s31745_s1 + $0x120] sm:$0xff]   ;;  %v6173_v52 = vshrl.u32 %v28004_v30, 16  ;;  %v25704_v9 = vld [vmem:[%s31745_s1 + $0x168] sm:$0xff]  }
 0x16c   : > { %v23266_v35 = vpop.f32.mrb[58].mxu1  ;;  %23754 = vmatpush3.bf16.msra.mxu1 %v25688_v45  ;;  %v2380_v51 = vpop.f32.mrb[59].mxu0  ;;  %23723 = vmatprep.subr.bf16.mxu0 %v25693_v59  ;;  %v6167_v45 = vor.u32 %v6165_v6, %v6163_v60  ;;  %v6509_v30 = vshll.u32 %v20338_v17, 16  ;;  %v28070_v6 = vld [vmem:[%s26321_s20 + $0xa0] sm:$0xff]  }
 0x16d   : > { %v28054_v34 = vadd.f32 %v2571_v8, %v2416_v23  ;;  %v2417_v44 = vadd.f32 %v2380_v51, %v27863_v41  ;;  %v2574_v21 = vpop.f32.mrb[59].mxu1  ;;  %23755 = vmatprep.subr.bf16.mxu1 %v25694_v11  ;;  %v6486_v41 = vsel %vm715_vm0, %v6476_v39, %v6485_v22  ;;  %v6494_v60 = vor.u32 %v6493_v5, %v6490_v32  ;;  %v28078_v23 = vld [vmem:[%s26321_s20 + $0xa8] sm:$0xff]  }
 0x16e   : > { %23676 = vmatmul.mubr.bf16.gmra.mrb[164].mxu0 %v6156_v27  ;;  %v6172_v0 = vsel %vm1026_vm1, %v6167_v45, %v6171_v36  ;;  %v6175_v18 = vor.u32 %v6173_v52, %v6171_v36  ;;  %v6179_v27 = vrot.slane %v6177_v50, 1  ;;  %v6181_v35 = vshrl.u32 %v28032_v37, 16  ;;  %v28094_v52 = vld [vmem:[%s26321_s20 + $0xb0] sm:$0xff]  }
 0x16f   : > { %v28063_v15 = vadd.f32 %v2574_v21, %v2417_v44  ;;  %23708 = vmatmul.mubr.bf16.gmra.mrb[164].mxu1 %v6477_v14  ;;  %23724 = vmatpush3.bf16.msra.mxu0 %v25693_v59  ;;  %v6185_v59 = vshll.u32 %v28048_v48, 16  ;;  %v6503_v48 = vor.u32 %v6502_v26, %v6499_v58  ;;  %v6955_v51 = vshll.u32 %v28070_v6, 16  ;;  %v28102_v58 = vld [vmem:[%s31747_s3] ss:$0 sm:$0xff]  ;;  %v25709_v26 = vld [vmem:[%s31745_s1 + $0x130] sm:$0xff]  }
 0x170   : > { %23756 = vmatpush3.bf16.msra.mxu1 %v25694_v11  ;;  %23725 = vmatprep.subr.bf16.mxu0 %v25695_v4  ;;  %v25703_v11 = vld [vmem:[%s31745_s1 + $0x128] sm:$0xff]   ;;  %v6495_v5 = vsel %vm715_vm0, %v6485_v22, %v6494_v60  ;;  %v6511_v17 = vrot.slane %v6509_v30, 4  ;;  %v6180_v37 = vsel %vm1026_vm1, %v6175_v18, %v6179_v27  ;;  %v6953_v36 = vshrl.u32 %v28070_v6, 16  ;;  %v28116_v18 = vld [vmem:[%s26321_s20 + $0xb8] sm:$0xff]  }
 0x171   : > { %v23237_v7 = vpop.f32.mrb[60].mxu0  ;;  %23757 = vmatprep.subr.bf16.mxu1 %v25696_v54  ;;  %23679 = vmatprep.mubr.bf16.mxu0 %v6164_v24  ;;  %v6187_v24 = vrot.slane %v6185_v59, 1  ;;  %v6960_v45 = vshll.u32 %v28078_v23, 16  ;;  %v6504_v50 = vsel %vm715_vm0, %v6494_v60, %v6503_v48 }
 0x172   : > { %v23269_v28 = vpop.f32.mrb[60].mxu1  ;;  %v2393_v39 = vpop.f32.mrb[61].mxu0  ;;  %23711 = vmatprep.mubr.bf16.mxu1 %v6486_v41 }
 0x173   : > { %v2420_v8 = vadd.f32 %v2393_v39, %v27892_v33  ;;  %v2587_v57 = vpop.f32.mrb[61].mxu1  ;;  %v23238_v61 = vpop.f32.mrb[62].mxu0  ;;  %23726 = vmatpush3.bf16.msra.mxu0 %v25695_v4  ;;  %v6508_v33 = vrot.slane %v6506_v40, 3  ;;  %v6962_v30 = vrot.slane %v6960_v45, 1  ;;  %v20364_v45 = vcombine.low %v27834_v20, %v27844_v10 }
 0x174   : > { %v23270_v14 = vpop.f32.mrb[62].mxu1  ;;  %23758 = vmatpush3.bf16.msra.mxu1 %v25696_v54  ;;  %v2396_v32 = vpop.f32.mrb[63].mxu0  ;;  %23727 = vmatprep.subr.bf16.mxu0 %v25701_v47  ;;  %v6957_v54 = vrot.slane %v6955_v51, 1  ;;  %v6964_v61 = vshrl.u32 %v28078_v23, 16  ;;  %v25718_v23 = vld [vmem:[%s31745_s1 + $0x180] sm:$0xff]   ;;  %v6980_v10 = vshrl.u32 %v28116_v18, 16 }
 0x175   : > { %v28087_v44 = vadd.f32 %v2587_v57, %v2420_v8  ;;  %v2421_v4 = vadd.f32 %v2396_v32, %v27905_v3  ;;  %v2590_v21 = vpop.f32.mrb[63].mxu1  ;;  %23759 = vmatprep.subr.bf16.mxu1 %v25702_v13  ;;  %v6183_v3 = vor.u32 %v6181_v35, %v6179_v27  ;;  %v6512_v41 = vor.u32 %v6511_v17, %v6508_v33  ;;  %v25719_v33 = vld [vmem:[%s31745_s1 + $0x1c0] sm:$0xff]  }
 0x176   : > { %23680 = vmatmul.mubr.bf16.gmra.mrb[168].mxu0 %v6172_v0  ;;  %v6958_v39 = vor.u32 %v6957_v54, %v6953_v36  ;;  %v6968_v0 = vshll.u32 %v28094_v52, 16  ;;  %v6972_v14 = vshrl.u32 %v28094_v52, 16  ;;  %v6966_v17 = vor.u32 %v6964_v61, %v6962_v30  ;;  %v25720_v52 = vld [vmem:[%s31745_s1 + $0x188] sm:$0xff]  }
 0x177   : > { %v28096_v22 = vadd.f32 %v2590_v21, %v2421_v4  ;;  %23712 = vmatmul.mubr.bf16.gmra.mrb[168].mxu1 %v6495_v5  ;;  %23728 = vmatpush3.bf16.msra.mxu0 %v25701_v47  ;;  %v25710_v47 = vld [vmem:[%s31745_s1 + $0x170] sm:$0xff]   ;;  %v6188_v28 = vsel %vm1026_vm1, %v6183_v3, %v6187_v24  ;;  %v6513_v57 = vsel %vm715_vm0, %v6503_v48, %v6512_v41 }
 0x178   : > { %23760 = vmatpush3.bf16.msra.mxu1 %v25702_v13  ;;  %23729 = vmatprep.subr.bf16.mxu0 %v25703_v11  ;;  %v20363_v48 = vcombine.low %v27824_v63, %v27831_v31  ;;  %v6970_v5 = vrot.slane %v6968_v0, 1  ;;  %v6976_v63 = vshll.u32 %v28116_v18, 16  ;;  %v28143_v31 = vld [vmem:[%s26321_s20 + $0xc0] sm:$0xff]   ;;  %v20365_v0 = vcombine.low %v27852_v25, %v27884_v12  ;;  %v25726_v18 = vld [vmem:[%s31745_s1 + $0x190] sm:$0xff]  }
 0x179   : > { %v23289_v40 = vpop.f32.mrb[64].mxu0  ;;  %23761 = vmatprep.subr.bf16.mxu1 %v25704_v9  ;;  %23683 = vmatprep.mubr.bf16.mxu0 %v6180_v37  ;;  %v28146_v37 = vld [vmem:[%s26321_s20 + $0xc8] sm:$0xff]   ;;  %v6988_v25 = vshrl.u32 %v28143_v31, 16 }
 0x17a   : > { %v23321_v13 = vpop.f32.mrb[64].mxu1  ;;  %v2853_v60 = vpop.f32.mrb[65].mxu0  ;;  %23715 = vmatprep.mubr.bf16.mxu1 %v6504_v50  ;;  %v6974_v50 = vor.u32 %v6972_v14, %v6970_v5  ;;  %v6971_v20 = vsel %vm1026_vm1, %v6966_v17, %v6970_v5  ;;  %v6996_v61 = vshrl.u32 %v28146_v37, 16 }
 0x17b   : > { %v2916_v6 = vadd.f32 %v2853_v60, %v27945_v62  ;;  %v28111_v7 = vpop.f32.mrb[65].mxu1  ;;  %v23290_v59 = vpop.f32.mrb[66].mxu0  ;;  %23730 = vmatpush3.bf16.msra.mxu0 %v25703_v11  ;;  %v25711_v62 = vld [vmem:[%s31745_s1 + $0x138] sm:$0xff]   ;;  %v6984_v13 = vshll.u32 %v28143_v31, 16 }
 0x17c   : > { %v23322_v27 = vpop.f32.mrb[66].mxu1  ;;  %23762 = vmatpush3.bf16.msra.mxu1 %v25704_v9  ;;  %v2856_v8 = vpop.f32.mrb[67].mxu0  ;;  %23731 = vmatprep.subr.bf16.mxu0 %v25709_v26  ;;  %v25712_v9 = vld [vmem:[%s31745_s1 + $0x178] sm:$0xff]  }
 0x17d   : > { %v2938_v11 = vadd.f32 %v28102_v58, %v2916_v6  ;;  %v2917_v35 = vadd.f32 %v2856_v8, %v27963_v38  ;;  %v28125_v51 = vpop.f32.mrb[67].mxu1  ;;  %23763 = vmatprep.subr.bf16.mxu1 %v25710_v47  ;;  %v6963_v38 = vsel %vm1026_vm1, %v6958_v39, %v6962_v30  ;;  %v28160_v6 = vld [vmem:[%s26321_s20 + $0xd0] sm:$0xff]   ;;  %v25721_v39 = vld [vmem:[%s31745_s1 + $0x1c8] sm:$0xff]   ;;  %v6992_v27 = vshll.u32 %v28146_v37, 16 }
 0x17e   : > { %23684 = vmatmul.mubr.bf16.gmra.mrb[172].mxu0 %v6188_v28 }
 0x17f   : > { %v2939_v32 = vadd.f32 %v28102_v58, %v2917_v35  ;;  %23716 = vmatmul.mubr.bf16.gmra.mrb[172].mxu1 %v6513_v57  ;;  %23732 = vmatpush3.bf16.msra.mxu0 %v25709_v26  ;;  %v2954_v4 = vmax.f32 %v2938_v11, 0.0  ;;  %v6986_v57 = vrot.slane %v6984_v13, 1  ;;  %v7000_v11 = vshll.u32 %v28160_v6, 16 }
 0x180   : > { %23764 = vmatpush3.bf16.msra.mxu1 %v25710_v47  ;;  %23733 = vmatprep.subr.bf16.mxu0 %v25711_v62  ;;  %v6978_v47 = vrot.slane %v6976_v63, 1  ;;  %v6994_v5 = vrot.slane %v6992_v27, 1 }
 0x181   : > { %v2955_v21 = vmax.f32 %v2939_v32, 0.0  ;;  %v23293_v24 = vpop.f32.mrb[68].mxu0  ;;  %23765 = vmatprep.subr.bf16.mxu1 %v25712_v9  ;;  %23735 = vmatprep.mubr.bf16.mxu0 %v20363_v48 }
 0x182   : > { %v23325_v36 = vpop.f32.mrb[68].mxu1  ;;  %v2869_v54 = vpop.f32.mrb[69].mxu0  ;;  %23767 = vmatprep.mubr.bf16.mxu1 %v6963_v38  ;;  %v6982_v12 = vor.u32 %v6980_v10, %v6978_v47  ;;  %v20366_v38 = vcombine.low %v27890_v16, %v27920_v42  ;;  %v25728_v16 = vld [vmem:[%s31745_s1 + $0x198] sm:$0xff]   ;;  %v28222_v10 = vld [vmem:[%s26321_s20 + $0xb0] sm:$0xf] }
 0x183   : > { %v3018_v3 = vpack.c.bf16 %v2955_v21, %v2954_v4  ;;  %v2920_v41 = vadd.f32 %v2869_v54, %v28006_v43  ;;  %v28154_v26 = vpop.f32.mrb[69].mxu1  ;;  %v23294_v40 = vpop.f32.mrb[70].mxu0  ;;  %23734 = vmatpush3.bf16.msra.mxu0 %v25711_v62  ;;  %v25727_v62 = vld [vmem:[%s31745_s1 + $0x1d0] sm:$0xff]   ;;  %v6990_v21 = vor.u32 %v6988_v25, %v6986_v57  ;;  %v25729_v42 = vld [vmem:[%s31745_s1 + $0x1d8] sm:$0xff]  }
 0x184   : > { %v23326_v60 = vpop.f32.mrb[70].mxu1  ;;  %23766 = vmatpush3.bf16.msra.mxu1 %v25712_v9  ;;  %v2872_v30 = vpop.f32.mrb[71].mxu0  ;;  %23783 = vmatprep.subr.bf16.mxu0 %v25718_v23  ;;  %v6987_v54 = vsel %vm1026_vm1, %v6982_v12, %v6986_v57  ;;  %v28211_v40 = vld [vmem:[%s31745_s1 + $0x1a0] sm:$0xff]  }
 0x185   : > { %3026 = vst [vmem:[#allocation2 + $0x20] sm:$0xff] %v3018_v3  ;;  %v2942_v43 = vadd.f32 %v28102_v58, %v2920_v41  ;;  %v2921_v59 = vadd.f32 %v2872_v30, %v28016_v29  ;;  %v28164_v28 = vpop.f32.mrb[71].mxu1  ;;  %23815 = vmatprep.subr.bf16.mxu1 %v25719_v33  ;;  %v6979_v29 = vsel %vm1026_vm1, %v6974_v50, %v6978_v47  ;;  %v7002_v3 = vrot.slane %v7000_v11, 1 }
 0x186   : > { %23736 = vmatmul.mubr.bf16.vlgmr.msra.gmra.mrb[176].mxu0 %v20364_v45  ;;  %v20367_v50 = vcombine.low %v27926_v19, %v27954_v53  ;;  %v6998_v41 = vor.u32 %v6996_v61, %v6994_v5  ;;  %v7004_v47 = vshrl.u32 %v28160_v6, 16  ;;  %v6995_v19 = vsel %vm1026_vm1, %v6990_v21, %v6994_v5  ;;  %v25735_v53 = vld [vmem:[%s31745_s1 + $0x1e0] sm:$0xff]   ;;  %v28225_v6 = vld [vmem:[%s26321_s20 + $0xb4] sm:$0xf]  ;;  %v25737_v21 = vld [vmem:[%s31745_s1 + $0x1e8] sm:$0xff]  }
 0x187   : > { %v2943_v8 = vadd.f32 %v28102_v58, %v2921_v59  ;;  %23768 = vmatmul.mubr.bf16.vlgmr.msra.gmra.mrb[176].mxu1 %v6971_v20  ;;  %23784 = vmatpush3.bf16.msra.mxu0 %v25718_v23  ;;  %v2958_v35 = vmax.f32 %v2942_v43, 0.0  ;;  %v28184_v23 = vld [vmem:[%s26321_s20 + $0xd8] sm:$0xff]   ;;  %v7189_v20 = vld [vmem:[%s26321_s20 + $0xac] sm:$0x8]  ;;  %v28242_v61 = vld [vmem:[%s26321_s20 + $0xc0] sm:$0xf] }
 0x188   : > { %23816 = vmatpush3.bf16.msra.mxu1 %v25719_v33  ;;  %23785 = vmatprep.subr.bf16.mxu0 %v25720_v52  ;;  %v28189_v33 = vld [vmem:[%s26321_s20 + $0xe0] ss:$0 sps:$4 sm:$0x11]   ;;  %v7008_v24 = vshll.u32 %v28184_v23, 16  ;;  %v20428_v27 = vcombine.low %v7189_v20, %v28222_v10  ;;  %v7003_v57 = vsel %vm1026_vm1, %v6998_v41, %v7002_v3  ;;  %v7006_v25 = vor.u32 %v7004_v47, %v7002_v3  ;;  %v25743_v3 = vld [vmem:[%s31745_s1 + $0x1f0] sm:$0xff]  }
 0x189   : > { %v2959_v9 = vmax.f32 %v2943_v8, 0.0  ;;  %v23297_v48 = vpop.f32.mrb[72].mxu0  ;;  %23817 = vmatprep.subr.bf16.mxu1 %v25721_v39  ;;  %23739 = vmatprep.mubr.bf16.mxu0 %v20365_v0  ;;  %v28230_v0 = vld [vmem:[%s26321_s20 + $0xb8] sm:$0xf] }
 0x18a   : > { %v23329_v14 = vpop.f32.mrb[72].mxu1  ;;  %v2885_v32 = vpop.f32.mrb[73].mxu0  ;;  %23771 = vmatprep.mubr.bf16.mxu1 %v6979_v29  ;;  %v7010_v30 = vrot.slane %v7008_v24, 1  ;;  %v20429_v12 = vcombine.low %v28225_v6, %v28230_v0  ;;  %v7269_v48 = vshll.u32 %v20428_v27, 16 }
 0x18b   : > { %v3020_v63 = vpack.c.bf16 %v2959_v9, %v2958_v35  ;;  %v2924_v31 = vadd.f32 %v2885_v32, %v28054_v34  ;;  %v28192_v17 = vpop.f32.mrb[73].mxu1  ;;  %v23298_v4 = vpop.f32.mrb[74].mxu0  ;;  %23786 = vmatpush3.bf16.msra.mxu0 %v25720_v52  ;;  %v7266_v9 = vshrl.u32 %v20428_v27, 16 }
 0x18c   : > { %v23330_v37 = vpop.f32.mrb[74].mxu1  ;;  %23818 = vmatpush3.bf16.msra.mxu1 %v25721_v39  ;;  %v2888_v36 = vpop.f32.mrb[75].mxu0  ;;  %23787 = vmatprep.subr.bf16.mxu0 %v25726_v18  ;;  %v20368_v39 = vcombine.low %v27961_v46, %v27971_v1  ;;  %v7277_v5 = vshll.u32 %v20429_v12, 16 }
 0x18d   : > { %3028 = vst [vmem:[#allocation2 + $0x30] sm:$0xff] %v3020_v63  ;;  %v2946_v34 = vadd.f32 %v28102_v58, %v2924_v31  ;;  %v2925_v45 = vadd.f32 %v2888_v36, %v28063_v15  ;;  %v28204_v52 = vpop.f32.mrb[75].mxu1  ;;  %23819 = vmatprep.subr.bf16.mxu1 %v25727_v62  ;;  %v7016_v15 = vshll.u32 %v28189_v33, 16  ;;  %v7268_v24 = vrot.slane %v7266_v9, 3 }
 0x18e   : > { %23740 = vmatmul.mubr.bf16.gmra.mrb[180].mxu0 %v20366_v38  ;;  %v7274_v38 = vshrl.u32 %v20429_v12, 16  ;;  %v7271_v37 = vrot.slane %v7269_v48, 4  ;;  %v25744_v12 = vld [vmem:[%s31745_s1 + $0x1b8] sm:$0xff]  }
 0x18f   : > { %v2962_v13 = vmax.f32 %v2946_v34, 0.0  ;;  %v2947_v60 = vadd.f32 %v28102_v58, %v2925_v45  ;;  %23772 = vmatmul.mubr.bf16.gmra.mrb[180].mxu1 %v6987_v54  ;;  %23788 = vmatpush3.bf16.msra.mxu0 %v25726_v18  ;;  %v28234_v18 = vld [vmem:[%s26321_s20 + $0xbc] sm:$0xf]  ;;  %v7279_v54 = vrot.slane %v7277_v5, 4  ;;  %v7011_v45 = vsel %vm1026_vm1, %v7006_v25, %v7010_v30 }
 0x190   : > { %23820 = vmatpush3.bf16.msra.mxu1 %v25727_v62  ;;  %23789 = vmatprep.subr.bf16.mxu0 %v25728_v16  ;;  %v20369_v62 = vcombine.low %v27974_v56, %v28021_v2  ;;  %v25736_v56 = vld [vmem:[%s31745_s1 + $0x1a8] sm:$0xff]   ;;  %v7012_v2 = vshrl.u32 %v28184_v23, 16  ;;  %v25742_v23 = vld [vmem:[%s31745_s1 + $0x1b0] sm:$0xff]   ;;  %v7276_v36 = vrot.slane %v7274_v38, 3  ;;  %v7272_v20 = vor.u32 %v7271_v37, %v7268_v24  ;;  %v25745_v48 = vld [vmem:[%s31745_s1 + $0x1f8] sm:$0xff]  }
 0x191   : > { %v2963_v43 = vmax.f32 %v2947_v60, 0.0  ;;  %v23301_v59 = vpop.f32.mrb[76].mxu0  ;;  %23821 = vmatprep.subr.bf16.mxu1 %v25729_v42  ;;  %23743 = vmatprep.mubr.bf16.mxu0 %v20367_v50  ;;  %v7018_v50 = vrot.slane %v7016_v15, 1  ;;  %v28316_v37 = vld [vmem:[%s26321_s20 + $0xd8] sm:$0xf] }
 0x192   : > { %v23333_v8 = vpop.f32.mrb[76].mxu1  ;;  %v2901_v29 = vpop.f32.mrb[77].mxu0  ;;  %23775 = vmatprep.mubr.bf16.mxu1 %v6995_v19  ;;  %v7014_v41 = vor.u32 %v7012_v2, %v7010_v30  ;;  %v28276_v19 = vld [vmem:[%s26321_s20 + $0xc8] sm:$0xf]  ;;  %v7280_v30 = vor.u32 %v7279_v54, %v7276_v36  ;;  %v28283_v59 = vld [vmem:[%s26321_s20 + $0xcc] sm:$0xf]  ;;  %v20461_v2 = vcombine.low %v28222_v10, %v28225_v6 }
 0x193   : > { %v3022_v46 = vpack.c.bf16 %v2963_v43, %v2962_v13  ;;  %v2928_v1 = vadd.f32 %v2901_v29, %v28087_v44  ;;  %v28245_v11 = vpop.f32.mrb[77].mxu1  ;;  %v23302_v35 = vpop.f32.mrb[78].mxu0  ;;  %23790 = vmatpush3.bf16.msra.mxu0 %v25728_v16  ;;  %v20430_v44 = vcombine.low %v28234_v18, %v28242_v61  ;;  %v25752_v10 = vld [vmem:[%s31745_s1 + $0x40] sm:$0xff]  }
 0x194   : > { %v23334_v14 = vpop.f32.mrb[78].mxu1  ;;  %23822 = vmatpush3.bf16.msra.mxu1 %v25729_v42  ;;  %v2904_v32 = vpop.f32.mrb[79].mxu0  ;;  %23791 = vmatprep.subr.bf16.mxu0 %v28211_v40 }
 0x195   : > { %3030 = vst [vmem:[#allocation2 + $0x40] sm:$0xff] %v3022_v46  ;;  %v2950_v63 = vadd.f32 %v28102_v58, %v2928_v1  ;;  %v2929_v31 = vadd.f32 %v2904_v32, %v28096_v22  ;;  %v28256_v4 = vpop.f32.mrb[79].mxu1  ;;  %23823 = vmatprep.subr.bf16.mxu1 %v25735_v53  ;;  %v7283_v16 = vshrl.u32 %v20430_v44, 16  ;;  %v7286_v42 = vshll.u32 %v20430_v44, 16 }
 0x196   : > { %23744 = vmatmul.mubr.bf16.gmra.mrb[184].mxu0 %v20368_v39  ;;  %v28286_v39 = vld [vmem:[%s26321_s20 + $0xd0] sm:$0xf] }
 0x197   : > { %v2966_v34 = vmax.f32 %v2950_v63, 0.0  ;;  %v2951_v22 = vadd.f32 %v28102_v58, %v2929_v31  ;;  %23776 = vmatmul.mubr.bf16.gmra.mrb[184].mxu1 %v7003_v57  ;;  %23792 = vmatpush3.bf16.msra.mxu0 %v28211_v40  ;;  %v7285_v47 = vrot.slane %v7283_v16, 3  ;;  %v7288_v58 = vrot.slane %v7286_v42, 4  ;;  %v28273_v40 = vld [vmem:[%s26321_s20 + $0xc4] sm:$0xf]  ;;  %v25753_v16 = vld [vmem:[%s31745_s1 + $0x208] sm:$0xff]  }
 0x198   : > { %23824 = vmatpush3.bf16.msra.mxu1 %v25735_v53  ;;  %23793 = vmatprep.subr.bf16.mxu0 %v25736_v56  ;;  %v20370_v53 = vcombine.low %v28024_v55, %v28038_v49  ;;  %v20431_v43 = vcombine.low %v28273_v40, %v28276_v19  ;;  %v7019_v49 = vsel %vm1026_vm1, %v7014_v41, %v7018_v50  ;;  %v25751_v63 = vld [vmem:[%s31745_s1 + $0x200] sm:$0xff]   ;;  %v28313_v31 = vld [vmem:[%s26321_s20 + $0xd4] sm:$0xf] }
 0x199   : > { %v2967_v13 = vmax.f32 %v2951_v22, 0.0  ;;  %v23353_v60 = vpop.f32.mrb[80].mxu0  ;;  %23825 = vmatprep.subr.bf16.mxu1 %v25737_v21  ;;  %23747 = vmatprep.mubr.bf16.mxu0 %v20369_v62  ;;  %v20432_v62 = vcombine.low %v28283_v59, %v28286_v39  ;;  %v7289_v44 = vor.u32 %v7288_v58, %v7285_v47  ;;  %v28327_v22 = vld [vmem:[%s26321_s20 + $0xe0] sm:$0xf]  ;;  %v20462_v47 = vcombine.low %v28230_v0, %v28234_v18 }
 0x19a   : > { %v23385_v33 = vpop.f32.mrb[80].mxu1  ;;  %v3457_v15 = vpop.f32.mrb[81].mxu0  ;;  %23779 = vmatprep.mubr.bf16.mxu1 %v7011_v45  ;;  %v7292_v46 = vshrl.u32 %v20431_v43, 16  ;;  %v7295_v1 = vshll.u32 %v20431_v43, 16  ;;  %v20463_v0 = vcombine.low %v28242_v61, %v28273_v40  ;;  %v25760_v61 = vld [vmem:[%s31745_s1 + $0x50] sm:$0xff]  }
 0x19b   : > { %v3024_v27 = vpack.c.bf16 %v2967_v13, %v2966_v34  ;;  %v3458_v8 = vadd.f32 %v3457_v15, %v28111_v7  ;;  %v3754_v29 = vpop.f32.mrb[81].mxu1  ;;  %v23354_v57 = vpop.f32.mrb[82].mxu0  ;;  %23794 = vmatpush3.bf16.msra.mxu0 %v25736_v56  ;;  %v7301_v14 = vshrl.u32 %v20432_v62, 16  ;;  %v7304_v32 = vshll.u32 %v20432_v62, 16  ;;  %v28353_v62 = vld [vmem:[%s26321_s20 + $0xe4] sm:$0xf] }
 0x19c   : > { %v23386_v25 = vpop.f32.mrb[82].mxu1  ;;  %23826 = vmatpush3.bf16.msra.mxu1 %v25737_v21  ;;  %v3460_v55 = vpop.f32.mrb[83].mxu0  ;;  %23795 = vmatprep.subr.bf16.mxu0 %v25742_v23  ;;  %v7281_v56 = vsel %vm715_vm0, %v7272_v20, %v7280_v30  ;;  %v7294_v38 = vrot.slane %v7292_v46, 3  ;;  %v7297_v5 = vrot.slane %v7295_v1, 4  ;;  %v20433_v34 = vcombine.low %v28313_v31, %v28316_v37 }
 0x19d   : > { %3032 = vst [vmem:[#allocation2 + $0x50] sm:$0xff] %v3024_v27  ;;  %v28295_v7 = vadd.f32 %v3754_v29, %v3458_v8  ;;  %v3461_v35 = vadd.f32 %v3460_v55, %v28125_v51  ;;  %v3757_v9 = vpop.f32.mrb[83].mxu1  ;;  %23827 = vmatprep.subr.bf16.mxu1 %v25743_v3  ;;  %v7303_v6 = vrot.slane %v7301_v14, 3  ;;  %v7306_v24 = vrot.slane %v7304_v32, 4  ;;  %v28356_v25 = vld [vmem:[%s26321_s20 + $0xe8] sm:$0xf] }
 0x19e   : > { %23748 = vmatmul.mubr.bf16.gmra.mrb[188].mxu0 %v20370_v53  ;;  %v7298_v42 = vor.u32 %v7297_v5, %v7294_v38  ;;  %v7290_v41 = vsel %vm715_vm0, %v7280_v30, %v7289_v44  ;;  %v7310_v33 = vshrl.u32 %v20433_v34, 16  ;;  %v7313_v15 = vshll.u32 %v20433_v34, 16  ;;  %v25754_v30 = vld [vmem:[%s31745_s1 + $0x48] sm:$0xff]  }
 0x19f   : > { %v28304_v51 = vadd.f32 %v3757_v9, %v3461_v35  ;;  %23780 = vmatmul.mubr.bf16.gmra.mrb[188].mxu1 %v7019_v49  ;;  %23796 = vmatpush3.bf16.msra.mxu0 %v25742_v23  ;;  %v28319_v23 = vld [vmem:[%s26321_s20 + $0xdc] sm:$0xf]  ;;  %v7307_v27 = vor.u32 %v7306_v24, %v7303_v6  ;;  %v28359_v55 = vld [vmem:[%s26321_s20 + $0xec] sm:$0xf]  ;;  %v20435_v46 = vcombine.low %v28353_v62, %v28356_v25 }
 0x1a0   : > { %23828 = vmatpush3.bf16.msra.mxu1 %v25743_v3  ;;  %23797 = vmatprep.subr.bf16.mxu0 %v25744_v12  ;;  %v20434_v58 = vcombine.low %v28319_v23, %v28327_v22  ;;  %v7299_v43 = vsel %vm715_vm0, %v7289_v44, %v7298_v42  ;;  %v7312_v8 = vrot.slane %v7310_v33, 3  ;;  %v7315_v29 = vrot.slane %v7313_v15, 4 }
 0x1a1   : > { %v23357_v21 = vpop.f32.mrb[84].mxu0  ;;  %23829 = vmatprep.subr.bf16.mxu1 %v25745_v48  ;;  %23799 = vmatprep.mubr.bf16.mxu0 %v7281_v56  ;;  %v7308_v9 = vsel %vm715_vm0, %v7298_v42, %v7307_v27  ;;  %v20436_v32 = vcombine.low %v28359_v55, %v28359_v55  ;;  %v7328_v44 = vshrl.u32 %v20435_v46, 16  ;;  %v20465_v42 = vcombine.low %v28286_v39, %v28313_v31  ;;  %v25768_v39 = vld [vmem:[%s31745_s1 + $0x60] sm:$0xff]   ;;  %v28391_v31 = vld [vmem:[%s26321_s20 + $0xb8] sm:$0xff]  }
 0x1a2   : > { %v23389_v36 = vpop.f32.mrb[84].mxu1  ;;  %v3473_v54 = vpop.f32.mrb[85].mxu0  ;;  %23831 = vmatprep.mubr.bf16.mxu1 %v20461_v2  ;;  %v7319_v18 = vshrl.u32 %v20434_v58, 16  ;;  %v7322_v40 = vshll.u32 %v20434_v58, 16  ;;  %v7316_v14 = vor.u32 %v7315_v29, %v7312_v8 }
 0x1a3   : > { %v3474_v45 = vadd.f32 %v3473_v54, %v28154_v26  ;;  %v3770_v50 = vpop.f32.mrb[85].mxu1  ;;  %v23358_v3 = vpop.f32.mrb[86].mxu0  ;;  %23798 = vmatpush3.bf16.msra.mxu0 %v25744_v12  ;;  %v7337_v36 = vshrl.u32 %v20436_v32, 16  ;;  %v7340_v54 = vshll.u32 %v20436_v32, 16  ;;  %v7330_v34 = vrot.slane %v7328_v44, 3 }
 0x1a4   : > { %v23390_v13 = vpop.f32.mrb[86].mxu1  ;;  %23830 = vmatpush3.bf16.msra.mxu1 %v25745_v48  ;;  %v3476_v60 = vpop.f32.mrb[87].mxu0  ;;  %23847 = vmatprep.subr.bf16.mxu0 %v25751_v63  ;;  %v7321_v12 = vrot.slane %v7319_v18, 3  ;;  %v20464_v48 = vcombine.low %v28276_v19, %v28283_v59  ;;  %v7324_v5 = vrot.slane %v7322_v40, 4  ;;  %v25761_v19 = vld [vmem:[%s31745_s1 + $0x218] sm:$0xff]   ;;  %v25767_v3 = vld [vmem:[%s31745_s1 + $0x220] sm:$0xff]  }
 0x1a5   : > { %v28335_v53 = vadd.f32 %v3770_v50, %v3474_v45  ;;  %v3477_v26 = vadd.f32 %v3476_v60, %v28164_v28  ;;  %v3773_v20 = vpop.f32.mrb[87].mxu1  ;;  %23879 = vmatprep.subr.bf16.mxu1 %v25752_v10  ;;  %v25759_v28 = vld [vmem:[%s31745_s1 + $0x210] sm:$0xff]   ;;  %v20466_v60 = vcombine.low %v28316_v37, %v28319_v23  ;;  %v7339_v18 = vrot.slane %v7337_v36, 3  ;;  %v25769_v37 = vld [vmem:[%s31745_s1 + $0x228] sm:$0xff]  }
 0x1a6   : > { %23800 = vmatmul.mubr.bf16.vlgmr.msra.gmra.mrb[192].mxu0 %v7290_v41  ;;  %v25779_v41 = vld [vmem:[%s26321_s20 + $0xb0] sm:$0xff]   ;;  %v8084_v40 = vld [vmem:[%s26321_s20 + $0xcc] sm:$0x8] }
 0x1a7   : > { %v28347_v57 = vadd.f32 %v3773_v20, %v3477_v26  ;;  %23832 = vmatmul.mubr.bf16.vlgmr.msra.gmra.mrb[192].mxu1 %v20462_v47  ;;  %23848 = vmatpush3.bf16.msra.mxu0 %v25751_v63  ;;  %v7331_v63 = vshll.u32 %v20435_v46, 16  ;;  %v7786_v15 = vshll.u32 %v25779_v41, 16  ;;  %v25775_v46 = vld [vmem:[%s31745_s1 + $0x230] sm:$0xff]  }
 0x1a8   : > { %23880 = vmatpush3.bf16.msra.mxu1 %v25752_v10  ;;  %23849 = vmatprep.subr.bf16.mxu0 %v25753_v16  ;;  %v28421_v32 = vld [vmem:[%s26321_s20 + $0xd0] sm:$0xf] }
 0x1a9   : > { %v23361_v49 = vpop.f32.mrb[88].mxu0  ;;  %23881 = vmatprep.subr.bf16.mxu1 %v25754_v30  ;;  %23803 = vmatprep.mubr.bf16.mxu0 %v7299_v43  ;;  %v7333_v45 = vrot.slane %v7331_v63, 4  ;;  %v7342_v43 = vrot.slane %v7340_v54, 4  ;;  %v20468_v63 = vcombine.low %v28356_v25, %v28359_v55  ;;  %v28439_v54 = vld [vmem:[%s26321_s20 + $0xdc] sm:$0xf] }
 0x1aa   : > { %v23393_v1 = vpop.f32.mrb[88].mxu1  ;;  %v3489_v35 = vpop.f32.mrb[89].mxu0  ;;  %23835 = vmatprep.mubr.bf16.mxu1 %v20463_v0 }
 0x1ab   : > { %v3490_v56 = vadd.f32 %v3489_v35, %v28192_v17  ;;  %v3786_v2 = vpop.f32.mrb[89].mxu1  ;;  %v23362_v38 = vpop.f32.mrb[90].mxu0  ;;  %23850 = vmatpush3.bf16.msra.mxu0 %v25753_v16  ;;  %v25762_v17 = vld [vmem:[%s31745_s1 + $0x58] sm:$0xff]   ;;  %v7317_v16 = vsel %vm715_vm0, %v7307_v27, %v7316_v14  ;;  %v7334_v33 = vor.u32 %v7333_v45, %v7330_v34  ;;  %v7788_v1 = vrot.slane %v7786_v15, 1  ;;  %v28467_v15 = vld [vmem:[%s26321_s20 + $0xd0] sm:$0xff]  }
 0x1ac   : > { %v23394_v10 = vpop.f32.mrb[90].mxu1  ;;  %23882 = vmatpush3.bf16.msra.mxu1 %v25754_v30  ;;  %v3492_v6 = vpop.f32.mrb[91].mxu0  ;;  %23851 = vmatprep.subr.bf16.mxu0 %v25759_v28 }
 0x1ad   : > { %v28372_v59 = vadd.f32 %v3786_v2, %v3490_v56  ;;  %v3493_v21 = vadd.f32 %v3492_v6, %v28204_v52  ;;  %v3789_v24 = vpop.f32.mrb[91].mxu1  ;;  %23883 = vmatprep.subr.bf16.mxu1 %v25760_v61  ;;  %v7325_v52 = vor.u32 %v7324_v5, %v7321_v12  ;;  %v20467_v12 = vcombine.low %v28327_v22, %v28353_v62  ;;  %v25785_v22 = vld [vmem:[%s26321_s20 + $0xc0] sm:$0xff]   ;;  %v8086_v62 = vld [vmem:[%s26321_s20 + $0xd4] sm:$0xf]  ;;  %v28426_v56 = vld [vmem:[%s26321_s20 + $0xd8] sm:$0xf] }
 0x1ae   : > { %23804 = vmatmul.mubr.bf16.gmra.mrb[196].mxu0 %v7308_v9  ;;  %v7343_v9 = vor.u32 %v7342_v43, %v7339_v18  ;;  %v25777_v10 = vld [vmem:[%s31745_s1 + $0x238] sm:$0xff]   ;;  %v28442_v25 = vcombine.low %v8086_v62, %v28426_v56  ;;  %v7799_v55 = vshll.u32 %v25785_v22, 16  ;;  %v7803_v45 = vshrl.u32 %v25785_v22, 16  ;;  %v25787_v18 = vld [vmem:[%s31745_s1 + $0x80] sm:$0xff]  }
 0x1af   : > { %v28381_v50 = vadd.f32 %v3789_v24, %v3493_v21  ;;  %23836 = vmatmul.mubr.bf16.gmra.mrb[196].mxu1 %v20464_v48  ;;  %23852 = vmatpush3.bf16.msra.mxu0 %v25759_v28  ;;  %v7326_v0 = vsel %vm715_vm0, %v7316_v14, %v7325_v52  ;;  %v7335_v49 = vsel %vm715_vm0, %v7325_v52, %v7334_v33  ;;  %v25776_v48 = vld [vmem:[%s31745_s1 + $0x70] sm:$0xff]   ;;  %v7795_v14 = vshrl.u32 %v28391_v31, 16  ;;  %v28451_v52 = vld [vmem:[%s26321_s20 + $0xe0] sm:$0xf] }
 0x1b0   : > { %23884 = vmatpush3.bf16.msra.mxu1 %v25760_v61  ;;  %23853 = vmatprep.subr.bf16.mxu0 %v25761_v19  ;;  %v7791_v61 = vshll.u32 %v28391_v31, 16  ;;  %v7344_v36 = vsel %vm715_vm0, %v7334_v33, %v7343_v9  ;;  %v25786_v33 = vld [vmem:[%s31745_s1] sm:$0xff]   ;;  %v8349_v43 = vshll.u32 %v28442_v25, 16 }
 0x1b1   : > { %v23365_v47 = vpop.f32.mrb[92].mxu0  ;;  %23885 = vmatprep.subr.bf16.mxu1 %v25762_v17  ;;  %23807 = vmatprep.mubr.bf16.mxu0 %v7317_v16  ;;  %v28445_v16 = vld [vmem:[%s26321_s20 + $0xc8] sm:$0xff]  }
 0x1b2   : > { %v23397_v58 = vpop.f32.mrb[92].mxu1  ;;  %v3505_v13 = vpop.f32.mrb[93].mxu0  ;;  %23839 = vmatprep.mubr.bf16.mxu1 %v20465_v42  ;;  %v7793_v38 = vrot.slane %v7791_v61, 1  ;;  %v7807_v31 = vshll.u32 %v28445_v16, 16 }
 0x1b3   : > { %v3506_v26 = vadd.f32 %v3505_v13, %v28245_v11  ;;  %v3802_v20 = vpop.f32.mrb[93].mxu1  ;;  %v23366_v30 = vpop.f32.mrb[94].mxu0  ;;  %23854 = vmatpush3.bf16.msra.mxu0 %v25761_v19  ;;  %v25770_v11 = vld [vmem:[%s31745_s1 + $0x68] sm:$0xff]   ;;  %v28434_v19 = vcombine.low %v8084_v40, %v28421_v32 }
 0x1b4   : > { %v23398_v27 = vpop.f32.mrb[94].mxu1  ;;  %23886 = vmatpush3.bf16.msra.mxu1 %v25762_v17  ;;  %v3508_v28 = vpop.f32.mrb[95].mxu0  ;;  %23855 = vmatprep.subr.bf16.mxu0 %v25767_v3  ;;  %v8346_v30 = vshrl.u32 %v28442_v25, 16 }
 0x1b5   : > { %v28403_v23 = vadd.f32 %v3802_v20, %v3506_v26  ;;  %v3509_v8 = vadd.f32 %v3508_v28, %v28256_v4  ;;  %v3805_v29 = vpop.f32.mrb[95].mxu1  ;;  %23887 = vmatprep.subr.bf16.mxu1 %v25768_v39  ;;  %v7784_v4 = vshrl.u32 %v25779_v41, 16  ;;  %v8338_v13 = vshrl.u32 %v28434_v19, 16  ;;  %v8090_v27 = vld [vmem:[%s26321_s20 + $0xe4] sm:$0xf] }
 0x1b6   : > { %23808 = vmatmul.mubr.bf16.gmra.mrb[200].mxu0 %v7326_v0  ;;  %v7797_v20 = vor.u32 %v7795_v14, %v7793_v38  ;;  %v7801_v0 = vrot.slane %v7799_v55, 1  ;;  %v7811_v28 = vshrl.u32 %v28445_v16, 16 }
 0x1b7   : > { %v28414_v35 = vadd.f32 %v3805_v29, %v3509_v8  ;;  %23840 = vmatmul.mubr.bf16.gmra.mrb[200].mxu1 %v20466_v60  ;;  %23856 = vmatpush3.bf16.msra.mxu0 %v25767_v3  ;;  %v7789_v6 = vor.u32 %v7788_v1, %v7784_v4  ;;  %v8341_v60 = vshll.u32 %v28434_v19, 16  ;;  %v7809_v8 = vrot.slane %v7807_v31, 1  ;;  %v28479_v29 = vld [vmem:[%s26321_s20 + $0xe8] sm:$0xf] }
 0x1b8   : > { %23888 = vmatpush3.bf16.msra.mxu1 %v25768_v39  ;;  %23857 = vmatprep.subr.bf16.mxu0 %v25769_v37  ;;  %v20526_v39 = vcombine.low %v28421_v32, %v8086_v62  ;;  %v7815_v4 = vshll.u32 %v28467_v15, 16  ;;  %v28486_v1 = vcombine.low %v8090_v27, %v28479_v29  ;;  %v20527_v32 = vcombine.low %v28426_v56, %v28439_v54  ;;  %v25789_v62 = vld [vmem:[%s31745_s1 + $0x88] sm:$0xff]   ;;  %v28500_v56 = vld [vmem:[%s26321_s20 + $0xd8] sm:$0xff]  }
 0x1b9   : > { %v23417_v2 = vpop.f32.mrb[96].mxu0  ;;  %23889 = vmatprep.subr.bf16.mxu1 %v25770_v11  ;;  %23811 = vmatprep.mubr.bf16.mxu0 %v7335_v49  ;;  %v7794_v58 = vsel %vm1026_vm1, %v7789_v6, %v7793_v38  ;;  %v25788_v49 = vld [vmem:[%s31745_s1 + $0x8] sm:$0xff]   ;;  %v7802_v22 = vsel %vm1026_vm1, %v7797_v20, %v7801_v0  ;;  %v20528_v6 = vcombine.low %v28451_v52, %v8090_v27  ;;  %v7827_v31 = vshrl.u32 %v28500_v56, 16 }
 0x1ba   : > { %v23449_v5 = vpop.f32.mrb[96].mxu1  ;;  %v4079_v44 = vpop.f32.mrb[97].mxu0  ;;  %23843 = vmatprep.mubr.bf16.mxu1 %v20467_v12  ;;  %v7813_v55 = vor.u32 %v7811_v28, %v7809_v8  ;;  %v7817_v16 = vrot.slane %v7815_v4, 1 }
 0x1bb   : > { %v4142_v21 = vadd.f32 %v4079_v44, %v28295_v7  ;;  %v4272_v24 = vpop.f32.mrb[97].mxu1  ;;  %v23418_v17 = vpop.f32.mrb[98].mxu0  ;;  %23858 = vmatpush3.bf16.msra.mxu0 %v25769_v37  ;;  %v25778_v7 = vld [vmem:[%s31745_s1 + $0x78] sm:$0xff]  }
 0x1bc   : > { %v23450_v42 = vpop.f32.mrb[98].mxu1  ;;  %23890 = vmatpush3.bf16.msra.mxu1 %v25770_v11  ;;  %v4082_v34 = vpop.f32.mrb[99].mxu0  ;;  %23859 = vmatprep.subr.bf16.mxu0 %v25775_v46  ;;  %v7805_v11 = vor.u32 %v7803_v45, %v7801_v0  ;;  %v7819_v17 = vshrl.u32 %v28467_v15, 16  ;;  %v8367_v45 = vshll.u32 %v28486_v1, 16  ;;  %v25798_v15 = vld [vmem:[%s31745_s1 + $0x18] sm:$0xff]  }
 0x1bd   : > { %v28453_v3 = vadd.f32 %v4272_v24, %v4142_v21  ;;  %v4143_v41 = vadd.f32 %v4082_v34, %v28304_v51  ;;  %v4275_v47 = vpop.f32.mrb[99].mxu1  ;;  %23891 = vmatprep.subr.bf16.mxu1 %v25776_v48  ;;  %v20544_v51 = vcombine.low %v28439_v54, %v28451_v52  ;;  %v8364_v21 = vshrl.u32 %v28486_v1, 16  ;;  %v25796_v24 = vld [vmem:[%s31745_s1 + $0x10] sm:$0xff]   ;;  %v25827_v1 = vld [vmem:[%s31745_s1 + $0x108] sm:$0xff]  }
 0x1be   : > { %23812 = vmatmul.mubr.bf16.gmra.mrb[204].mxu0 %v7344_v36  ;;  %v28513_v36 = vld [vmem:[%s26321_s20 + $0xe0] sm:$0xff]   ;;  %v7823_v42 = vshll.u32 %v28500_v56, 16  ;;  %v25797_v52 = vld [vmem:[%s31745_s1 + $0x90] sm:$0xff]   ;;  %v7821_v20 = vor.u32 %v7819_v17, %v7817_v16 }
 0x1bf   : > { %v28469_v26 = vadd.f32 %v4275_v47, %v4143_v41  ;;  %23844 = vmatmul.mubr.bf16.gmra.mrb[204].mxu1 %v20468_v63  ;;  %23860 = vmatpush3.bf16.msra.mxu0 %v25775_v46  ;;  %v8355_v12 = vshrl.u32 %v20544_v51, 16  ;;  %v8358_v46 = vshll.u32 %v20544_v51, 16  ;;  %v8092_v63 = vld [vmem:[%s26321_s20 + $0xec] sm:$0xf]  ;;  %v8094_v41 = vld [vmem:[%s26321_s20 + $0xf4] sm:$0xf] }
 0x1c0   : > { %23892 = vmatpush3.bf16.msra.mxu1 %v25776_v48  ;;  %23861 = vmatprep.subr.bf16.mxu0 %v25777_v10  ;;  %v7825_v0 = vrot.slane %v7823_v42, 1  ;;  %v28569_v56 = vld [vmem:[%s26321_s20 + $0x100] sm:$0xf] }
 0x1c1   : > { %v23421_v37 = vpop.f32.mrb[100].mxu0  ;;  %23893 = vmatprep.subr.bf16.mxu1 %v25778_v7  ;;  %23863 = vmatprep.mubr.bf16.mxu0 %v7794_v58  ;;  %v28518_v34 = vrot.slane %v8355_v12, 3  ;;  %v28532_v58 = vld [vmem:[%s26321_s20 + $0xf8] sm:$0xf] }
 0x1c2   : > { %v23453_v61 = vpop.f32.mrb[100].mxu1  ;;  %v4095_v40 = vpop.f32.mrb[101].mxu0  ;;  %23895 = vmatprep.mubr.bf16.mxu1 %v20526_v39 }
 0x1c3   : > { %v4146_v9 = vadd.f32 %v4095_v40, %v28335_v53  ;;  %v4288_v48 = vpop.f32.mrb[101].mxu1  ;;  %v23422_v14 = vpop.f32.mrb[102].mxu0  ;;  %23862 = vmatpush3.bf16.msra.mxu0 %v25777_v10  ;;  %v7810_v10 = vsel %vm1026_vm1, %v7805_v11, %v7809_v8  ;;  %v7818_v11 = vsel %vm1026_vm1, %v7813_v55, %v7817_v16  ;;  %v20529_v8 = vcombine.low %v28479_v29, %v8092_v63  ;;  %v25813_v55 = vld [vmem:[%s26321_s20 + $0xf0] ss:$0 sps:$4 sm:$0x11]  }
 0x1c4   : > { %v23454_v2 = vpop.f32.mrb[102].mxu1  ;;  %23894 = vmatpush3.bf16.msra.mxu1 %v25778_v7  ;;  %v4098_v38 = vpop.f32.mrb[103].mxu0  ;;  %23911 = vmatprep.subr.bf16.mxu0 %v25786_v33  ;;  %v28520_v7 = vrot.slane %v8358_v46, 4  ;;  %v28542_v61 = vcombine.low %v8094_v41, %v28532_v58  ;;  %v25799_v46 = vld [vmem:[%s31745_s1 + $0x98] sm:$0xff]   ;;  %v7826_v14 = vsel %vm1026_vm1, %v7821_v20, %v7825_v0  ;;  %v28597_v20 = vrot.slane %v8338_v13, 3 }
 0x1c5   : > { %v28495_v53 = vadd.f32 %v4288_v48, %v4146_v9  ;;  %v4147_v5 = vadd.f32 %v4098_v38, %v28347_v57  ;;  %v4291_v44 = vpop.f32.mrb[103].mxu1  ;;  %23943 = vmatprep.subr.bf16.mxu1 %v25787_v18  ;;  %v28510_v57 = vld [vmem:[%s26321_s20 + $0xf0] sm:$0xf]  ;;  %v28553_v48 = vld [vmem:[%s26321_s20 + $0xfc] sm:$0xf]  ;;  %v7829_v38 = vor.u32 %v7827_v31, %v7825_v0 }
 0x1c6   : > { %23864 = vmatmul.mubr.bf16.vlgmr.msra.gmra.mrb[208].mxu0 %v7802_v22  ;;  %v28528_v47 = vcombine.low %v8092_v63, %v28510_v57  ;;  %v25810_v63 = vld [vmem:[%s26321_s20 + $0xe8] sm:$0xff]  }
 0x1c7   : > { %v28515_v54 = vadd.f32 %v4291_v44, %v4147_v5  ;;  %23896 = vmatmul.mubr.bf16.vlgmr.msra.gmra.mrb[208].mxu1 %v20527_v32  ;;  %23912 = vmatpush3.bf16.msra.mxu0 %v25786_v33  ;;  %v20530_v32 = vcombine.low %v28510_v57, %v8094_v41  ;;  %v8382_v5 = vshrl.u32 %v28542_v61, 16  ;;  %v25807_v44 = vld [vmem:[%s31745_s1 + $0xa0] sm:$0xff]   ;;  %v8385_v57 = vshll.u32 %v28542_v61, 16 }
 0x1c8   : > { %23944 = vmatpush3.bf16.msra.mxu1 %v25787_v18  ;;  %23913 = vmatprep.subr.bf16.mxu0 %v25788_v49  ;;  %v7831_v18 = vshll.u32 %v28513_v36, 16  ;;  %v8376_v29 = vshll.u32 %v28528_v47, 16  ;;  %v20531_v41 = vcombine.low %v28532_v58, %v28553_v48  ;;  %v25809_v58 = vld [vmem:[%s31745_s1 + $0xa8] sm:$0xff]  }
 0x1c9   : > { %v23425_v39 = vpop.f32.mrb[104].mxu0  ;;  %23945 = vmatprep.subr.bf16.mxu1 %v25789_v62  ;;  %23867 = vmatprep.mubr.bf16.mxu0 %v7810_v10  ;;  %v28572_v10 = vld [vmem:[%s26321_s20 + $0x104] sm:$0xf] }
 0x1ca   : > { %v23457_v33 = vpop.f32.mrb[104].mxu1  ;;  %v4111_v51 = vpop.f32.mrb[105].mxu0  ;;  %23899 = vmatprep.mubr.bf16.mxu1 %v20528_v6  ;;  %v7833_v22 = vrot.slane %v7831_v18, 1  ;;  %v28576_v6 = vcombine.low %v28553_v48, %v28569_v56  ;;  %v25808_v39 = vld [vmem:[%s31745_s1 + $0x28] sm:$0xff]   ;;  %v20532_v48 = vcombine.low %v28569_v56, %v28572_v10  ;;  %v8343_v56 = vrot.slane %v8341_v60, 4 }
 0x1cb   : > { %v4150_v27 = vadd.f32 %v4111_v51, %v28372_v59  ;;  %v4304_v28 = vpop.f32.mrb[105].mxu1  ;;  %v23426_v37 = vpop.f32.mrb[106].mxu0  ;;  %23914 = vmatpush3.bf16.msra.mxu0 %v25788_v49  ;;  %v8373_v59 = vshrl.u32 %v28528_v47, 16  ;;  %v7843_v33 = vshrl.u32 %v25810_v63, 16  ;;  %v28593_v51 = vld [vmem:[%s26321_s20 + $0x10c] sm:$0xf] }
 0x1cc   : > { %v23458_v40 = vpop.f32.mrb[106].mxu1  ;;  %23946 = vmatpush3.bf16.msra.mxu1 %v25789_v62  ;;  %v4114_v12 = vpop.f32.mrb[107].mxu0  ;;  %23915 = vmatprep.subr.bf16.mxu0 %v25796_v24  ;;  %v7835_v62 = vshrl.u32 %v28513_v36, 16  ;;  %v7839_v36 = vshll.u32 %v25810_v63, 16  ;;  %v8391_v13 = vshrl.u32 %v28576_v6, 16 }
 0x1cd   : > { %v28548_v4 = vadd.f32 %v4304_v28, %v4150_v27  ;;  %v4151_v49 = vadd.f32 %v4114_v12, %v28381_v50  ;;  %v4307_v9 = vpop.f32.mrb[107].mxu1  ;;  %23947 = vmatprep.subr.bf16.mxu1 %v25797_v52  ;;  %v25806_v50 = vld [vmem:[%s31745_s1 + $0x20] sm:$0xff]   ;;  %v7834_v28 = vsel %vm1026_vm1, %v7829_v38, %v7833_v22  ;;  %v8394_v12 = vshll.u32 %v28576_v6, 16 }
 0x1ce   : > { %23868 = vmatmul.mubr.bf16.gmra.mrb[212].mxu0 %v7818_v11  ;;  %v7837_v31 = vor.u32 %v7835_v62, %v7833_v22  ;;  %v7841_v37 = vrot.slane %v7839_v36, 1  ;;  %v7847_v11 = vshll.u32 %v25813_v55, 16  ;;  %v8351_v36 = vrot.slane %v8349_v43, 4  ;;  %v25821_v55 = vld [vmem:[%s26321_s20 + $0xd0] sm:$0xff]  }
 0x1cf   : > { %v28561_v2 = vadd.f32 %v4307_v9, %v4151_v49  ;;  %23900 = vmatmul.mubr.bf16.gmra.mrb[212].mxu1 %v20529_v8  ;;  %23916 = vmatpush3.bf16.msra.mxu0 %v25796_v24  ;;  %v28579_v24 = vld [vmem:[%s26321_s20 + $0x108] sm:$0xf] }
 0x1d0   : > { %23948 = vmatpush3.bf16.msra.mxu1 %v25797_v52  ;;  %23917 = vmatprep.subr.bf16.mxu0 %v25798_v15  ;;  %v28585_v16 = vcombine.low %v28572_v10, %v28579_v24  ;;  %v7849_v22 = vrot.slane %v7847_v11, 1  ;;  %v25818_v10 = vld [vmem:[%s31745_s1 + $0xb0] sm:$0xff]  }
 0x1d1   : > { %v23429_v17 = vpop.f32.mrb[108].mxu0  ;;  %23949 = vmatprep.subr.bf16.mxu1 %v25799_v46  ;;  %23871 = vmatprep.mubr.bf16.mxu0 %v7826_v14  ;;  %v7842_v14 = vsel %vm1026_vm1, %v7837_v31, %v7841_v37 }
 0x1d2   : > { %v23461_v42 = vpop.f32.mrb[108].mxu1  ;;  %v4127_v52 = vpop.f32.mrb[109].mxu0  ;;  %23903 = vmatprep.mubr.bf16.mxu1 %v20530_v32  ;;  %v7845_v32 = vor.u32 %v7843_v33, %v7841_v37  ;;  %v8403_v62 = vshll.u32 %v28585_v16, 16  ;;  %v8348_v17 = vrot.slane %v8346_v30, 3  ;;  %v8647_v33 = vshrl.u32 %v25821_v55, 16 }
 0x1d3   : > { %v4154_v0 = vadd.f32 %v4127_v52, %v28403_v23  ;;  %v4320_v18 = vpop.f32.mrb[109].mxu1  ;;  %v23430_v27 = vpop.f32.mrb[110].mxu0  ;;  %23918 = vmatpush3.bf16.msra.mxu0 %v25798_v15  ;;  %v28608_v23 = vcombine.low %v28593_v51, %v28593_v51  ;;  %v20533_v52 = vcombine.low %v28579_v24, %v28593_v51  ;;  %v25819_v24 = vld [vmem:[%s31745_s1 + $0x38] sm:$0xff]  }
 0x1d4   : > { %v23462_v8 = vpop.f32.mrb[110].mxu1  ;;  %23950 = vmatpush3.bf16.msra.mxu1 %v25799_v46  ;;  %v4130_v40 = vpop.f32.mrb[111].mxu0  ;;  %23919 = vmatprep.subr.bf16.mxu0 %v25806_v50  ;;  %v8400_v46 = vshrl.u32 %v28585_v16, 16  ;;  %v8352_v30 = vor.u32 %v8351_v36, %v8348_v17  ;;  %v25823_v27 = vld [vmem:[%s26321_s20 + $0xe0] sm:$0xff]   ;;  %v8366_v17 = vrot.slane %v8364_v21, 3  ;;  %v25828_v36 = vld [vmem:[%s26321_s20 + $0xe8] sm:$0xff]  }
 0x1d5   : > { %v28610_v15 = vadd.f32 %v4320_v18, %v4154_v0  ;;  %v4155_v49 = vadd.f32 %v4130_v40, %v28414_v35  ;;  %v4323_v9 = vpop.f32.mrb[111].mxu1  ;;  %23951 = vmatprep.subr.bf16.mxu1 %v25807_v44  ;;  %v25817_v35 = vld [vmem:[%s31745_s1 + $0x30] sm:$0xff]   ;;  %v8409_v63 = vshrl.u32 %v28608_v23, 16  ;;  %v8649_v0 = vshll.u32 %v25821_v55, 16 }
 0x1d6   : > { %23872 = vmatmul.mubr.bf16.gmra.mrb[216].mxu0 %v7834_v28 }
 0x1d7   : > { %v28621_v38 = vadd.f32 %v4323_v9, %v4155_v49  ;;  %23904 = vmatmul.mubr.bf16.gmra.mrb[216].mxu1 %v20531_v41  ;;  %23920 = vmatpush3.bf16.msra.mxu0 %v25806_v50  ;;  %v25822_v50 = vld [vmem:[%s26321_s20 + $0xd8] sm:$0xff]   ;;  %v8344_v41 = vor.u32 %v8343_v56, %v28597_v20  ;;  %v8651_v8 = vrot.slane %v8649_v0, 1  ;;  %v8361_v49 = vor.u32 %v28520_v7, %v28518_v34  ;;  %v25825_v56 = vld [vmem:[%s31745_s1 + $0x100] sm:$0xff]  }
 0x1d8   : > { %23952 = vmatpush3.bf16.msra.mxu1 %v25807_v44  ;;  %23921 = vmatprep.subr.bf16.mxu0 %v25808_v39  ;;  %v7850_v44 = vsel %vm1026_vm1, %v7845_v32, %v7849_v22  ;;  %v8654_v18 = vshll.u32 %v25822_v50, 16  ;;  %v8658_v51 = vshrl.u32 %v25822_v50, 16  ;;  %v8662_v9 = vshll.u32 %v25823_v27, 16  ;;  %v25826_v50 = vld [vmem:[%s31745_s1 + $0xc8] sm:$0xff]  }
 0x1d9   : > { %v23481_v42 = vpop.f32.mrb[112].mxu0  ;;  %23953 = vmatprep.subr.bf16.mxu1 %v25809_v58  ;;  %23875 = vmatprep.mubr.bf16.mxu0 %v7842_v14  ;;  %v8652_v14 = vor.u32 %v8651_v8, %v8647_v33  ;;  %v25831_v8 = vld [vmem:[%s31745_s1 + $0x110] sm:$0xff]  }
 0x1da   : > { %v23513_v19 = vpop.f32.mrb[112].mxu1  ;;  %v4585_v60 = vpop.f32.mrb[113].mxu0  ;;  %23907 = vmatprep.mubr.bf16.mxu1 %v20532_v48  ;;  %v8656_v40 = vrot.slane %v8654_v18, 1  ;;  %v25824_v48 = vld [vmem:[%s31745_s1 + $0xc0] sm:$0xff]   ;;  %v8664_v22 = vrot.slane %v8662_v9, 1  ;;  %v8362_v42 = vsel %vm715_vm0, %v8352_v30, %v8361_v49 }
 0x1db   : > { %v4648_v25 = vadd.f32 %v4585_v60, %v28453_v3  ;;  %v4910_v43 = vpop.f32.mrb[113].mxu1  ;;  %v23482_v31 = vpop.f32.mrb[114].mxu0  ;;  %23922 = vmatpush3.bf16.msra.mxu0 %v25808_v39  ;;  %v25820_v39 = vld [vmem:[%s31745_s1 + $0xb8] sm:$0xff]  }
 0x1dc   : > { %v23514_v28 = vpop.f32.mrb[114].mxu1  ;;  %23954 = vmatpush3.bf16.msra.mxu1 %v25809_v58  ;;  %v4588_v37 = vpop.f32.mrb[115].mxu0  ;;  %23923 = vmatprep.subr.bf16.mxu0 %v25817_v35  ;;  %v8353_v58 = vsel %vm715_vm0, %v8344_v41, %v8352_v30  ;;  %v8660_v32 = vor.u32 %v8658_v51, %v8656_v40  ;;  %v8657_v7 = vsel %vm1026_vm1, %v8652_v14, %v8656_v40  ;;  %v8674_v51 = vshrl.u32 %v25828_v36, 16 }
 0x1dd   : > { %v28644_v20 = vadd.f32 %v4910_v43, %v4648_v25  ;;  %v4649_v3 = vadd.f32 %v4588_v37, %v28469_v26  ;;  %v4913_v11 = vpop.f32.mrb[115].mxu1  ;;  %23955 = vmatprep.subr.bf16.mxu1 %v25818_v10  ;;  %v8378_v43 = vrot.slane %v8376_v29, 4  ;;  %v8384_v40 = vrot.slane %v8382_v5, 3 }
 0x1de   : > { %23876 = vmatmul.mubr.bf16.gmra.mrb[220].mxu0 %v7850_v44  ;;  %v8665_v25 = vsel %vm1026_vm1, %v8660_v32, %v8664_v22  ;;  %v25832_v32 = vld [vmem:[%s31745_s1 + $0xd8] sm:$0xff]  }
 0x1df   : > { %v28656_v26 = vadd.f32 %v4913_v11, %v4649_v3  ;;  %23908 = vmatmul.mubr.bf16.gmra.mrb[220].mxu1 %v20533_v52  ;;  %23924 = vmatpush3.bf16.msra.mxu0 %v25817_v35  ;;  %v8369_v35 = vrot.slane %v8367_v45, 4  ;;  %v8666_v45 = vshrl.u32 %v25823_v27, 16  ;;  %v8670_v52 = vshll.u32 %v25828_v36, 16  ;;  %v25829_v27 = vld [vmem:[%s26321_s20 + $0xf0] sm:$0xff]  }
 0x1e0   : > { %23956 = vmatpush3.bf16.msra.mxu1 %v25818_v10  ;;  %23925 = vmatprep.subr.bf16.mxu0 %v25819_v24  ;;  %v8678_v47 = vshll.u32 %v25829_v27, 16  ;;  %v8682_v61 = vshrl.u32 %v25829_v27, 16 }
 0x1e1   : > { %v23485_v34 = vpop.f32.mrb[116].mxu0  ;;  %23957 = vmatprep.subr.bf16.mxu1 %v25820_v39  ;;  %23927 = vmatprep.mubr.bf16.mxu0 %v8353_v58  ;;  %v8370_v21 = vor.u32 %v8369_v35, %v8366_v17  ;;  %v8668_v18 = vor.u32 %v8666_v45, %v8664_v22  ;;  %v8672_v37 = vrot.slane %v8670_v52, 1  ;;  %v8387_v58 = vrot.slane %v8385_v57, 4  ;;  %v28706_v57 = vld [vmem:[%s26321_s20 + $0x100] sm:$0xff]  }
 0x1e2   : > { %v23517_v10 = vpop.f32.mrb[116].mxu1  ;;  %v4601_v55 = vpop.f32.mrb[117].mxu0  ;;  %23959 = vmatprep.mubr.bf16.mxu1 %v8657_v7  ;;  %v8694_v6 = vshll.u32 %v28706_v57, 16 }
 0x1e3   : > { %v4652_v19 = vadd.f32 %v4601_v55, %v28495_v53  ;;  %v4926_v60 = vpop.f32.mrb[117].mxu1  ;;  %v23486_v44 = vpop.f32.mrb[118].mxu0  ;;  %23926 = vmatpush3.bf16.msra.mxu0 %v25819_v24  ;;  %v8375_v53 = vrot.slane %v8373_v59, 3  ;;  %v8371_v28 = vsel %vm715_vm0, %v8361_v49, %v8370_v21  ;;  %v8673_v59 = vsel %vm1026_vm1, %v8668_v18, %v8672_v37  ;;  %v25834_v49 = vld [vmem:[%s26321_s20 + $0xf8] sm:$0xff]  }
 0x1e4   : > { %v23518_v41 = vpop.f32.mrb[118].mxu1  ;;  %23958 = vmatpush3.bf16.msra.mxu1 %v25820_v39  ;;  %v4604_v30 = vpop.f32.mrb[119].mxu0  ;;  %23975 = vmatprep.subr.bf16.mxu0 %v25824_v48  ;;  %v8676_v29 = vor.u32 %v8674_v51, %v8672_v37  ;;  %v8680_v39 = vrot.slane %v8678_v47, 1  ;;  %v8388_v7 = vor.u32 %v8387_v58, %v8384_v40  ;;  %v8686_v36 = vshll.u32 %v25834_v49, 16 }
 0x1e5   : > { %v28680_v31 = vadd.f32 %v4926_v60, %v4652_v19  ;;  %v4653_v33 = vadd.f32 %v4604_v30, %v28515_v54  ;;  %v4929_v0 = vpop.f32.mrb[119].mxu1  ;;  %24007 = vmatprep.subr.bf16.mxu1 %v25825_v56  ;;  %v8379_v24 = vor.u32 %v8378_v43, %v8375_v53  ;;  %v25830_v54 = vld [vmem:[%s31745_s1 + $0xd0] sm:$0xff]   ;;  %v8393_v10 = vrot.slane %v8391_v13, 3  ;;  %v25833_v60 = vld [vmem:[%s31745_s1 + $0x118] sm:$0xff]   ;;  %v25837_v43 = vld [vmem:[%s31745_s1 + $0x120] sm:$0xff]  }
 0x1e6   : > { %23928 = vmatmul.mubr.bf16.vlgmr.msra.gmra.mrb[224].mxu0 %v8362_v42  ;;  %v8681_v5 = vsel %vm1026_vm1, %v8676_v29, %v8680_v39  ;;  %v8690_v55 = vshrl.u32 %v25834_v49, 16  ;;  %v8684_v44 = vor.u32 %v8682_v61, %v8680_v39  ;;  %v8696_v30 = vrot.slane %v8694_v6, 1  ;;  %v25843_v61 = vld [vmem:[%s31745_s1 + $0x130] sm:$0xff]  }
 0x1e7   : > { %v28685_v3 = vadd.f32 %v4929_v0, %v4653_v33  ;;  %23960 = vmatmul.mubr.bf16.vlgmr.msra.gmra.mrb[224].mxu1 %v8665_v25  ;;  %23976 = vmatpush3.bf16.msra.mxu0 %v25824_v48  ;;  %v8380_v14 = vsel %vm715_vm0, %v8370_v21, %v8379_v24  ;;  %v8688_v21 = vrot.slane %v8686_v36, 1  ;;  %v25836_v25 = vld [vmem:[%s31745_s1 + $0xe0] sm:$0xff]   ;;  %v25840_v33 = vld [vmem:[%s26321_s20 + $0x108] sm:$0xff]   ;;  %v28765_v36 = vld [vmem:[%s31745_s1 + $0xf8] sm:$0xff]  }
 0x1e8   : > { %24008 = vmatpush3.bf16.msra.mxu1 %v25825_v56  ;;  %23977 = vmatprep.subr.bf16.mxu0 %v25826_v50  ;;  %v8702_v16 = vshll.u32 %v25840_v33, 16 }
 0x1e9   : > { %v23489_v11 = vpop.f32.mrb[120].mxu0  ;;  %24009 = vmatprep.subr.bf16.mxu1 %v25827_v1  ;;  %23931 = vmatprep.mubr.bf16.mxu0 %v8371_v28  ;;  %v8689_v52 = vsel %vm1026_vm1, %v8684_v44, %v8688_v21  ;;  %v8692_v41 = vor.u32 %v8690_v55, %v8688_v21  ;;  %v25838_v28 = vld [vmem:[%s31745_s1 + $0xe8] sm:$0xff]  }
 0x1ea   : > { %v23521_v9 = vpop.f32.mrb[120].mxu1  ;;  %v4617_v48 = vpop.f32.mrb[121].mxu0  ;;  %23963 = vmatprep.mubr.bf16.mxu1 %v8673_v59  ;;  %v25839_v11 = vld [vmem:[%s31745_s1 + $0x128] sm:$0xff]  }
 0x1eb   : > { %v4656_v22 = vadd.f32 %v4617_v48, %v28548_v4  ;;  %v4942_v56 = vpop.f32.mrb[121].mxu1  ;;  %v23490_v34 = vpop.f32.mrb[122].mxu0  ;;  %23978 = vmatpush3.bf16.msra.mxu0 %v25826_v50  ;;  %v8396_v4 = vrot.slane %v8394_v12, 4  ;;  %v8412_v12 = vshll.u32 %v28608_v23, 16  ;;  %v8697_v29 = vsel %vm1026_vm1, %v8692_v41, %v8696_v30  ;;  %v28772_v44 = vld [vmem:[%s26321_s20 + $0xe8] sm:$0xf] }
 0x1ec   : > { %v23522_v17 = vpop.f32.mrb[122].mxu1  ;;  %24010 = vmatpush3.bf16.msra.mxu1 %v25827_v1  ;;  %v4620_v35 = vpop.f32.mrb[123].mxu0  ;;  %23979 = vmatprep.subr.bf16.mxu0 %v25830_v54  ;;  %v8389_v1 = vsel %vm715_vm0, %v8379_v24, %v8388_v7  ;;  %v25841_v48 = vld [vmem:[%s26321_s20 + $0x110] ss:$0 sps:$4 sm:$0x11]  }
 0x1ed   : > { %v28712_v42 = vadd.f32 %v4942_v56, %v4656_v22  ;;  %v4657_v50 = vadd.f32 %v4620_v35, %v28561_v2  ;;  %v4945_v19 = vpop.f32.mrb[123].mxu1  ;;  %24011 = vmatprep.subr.bf16.mxu1 %v25831_v8  ;;  %v8397_v13 = vor.u32 %v8396_v4, %v8393_v10  ;;  %v8402_v2 = vrot.slane %v8400_v46, 3  ;;  %v8884_v10 = vld [vmem:[%s26321_s20 + $0xe0] sm:$0xf]  ;;  %v8885_v4 = vld [vmem:[%s26321_s20 + $0xe4] sm:$0xf] }
 0x1ee   : > { %23932 = vmatmul.mubr.bf16.gmra.mrb[228].mxu0 %v8380_v14  ;;  %v8405_v46 = vrot.slane %v8403_v62, 4  ;;  %v8414_v39 = vrot.slane %v8412_v12, 4  ;;  %v28775_v21 = vld [vmem:[%s26321_s20 + $0xec] sm:$0xf] }
 0x1ef   : > { %v28721_v45 = vadd.f32 %v4945_v19, %v4657_v50  ;;  %23964 = vmatmul.mubr.bf16.gmra.mrb[228].mxu1 %v8681_v5  ;;  %23980 = vmatpush3.bf16.msra.mxu0 %v25830_v54  ;;  %v8398_v27 = vsel %vm715_vm0, %v8388_v7, %v8397_v13  ;;  %v8698_v54 = vshrl.u32 %v28706_v57, 16  ;;  %v8883_v57 = vld [vmem:[%s26321_s20 + $0xdc] sm:$0x8] }
 0x1f0   : > { %24012 = vmatpush3.bf16.msra.mxu1 %v25831_v8  ;;  %23981 = vmatprep.subr.bf16.mxu0 %v25832_v32  ;;  %v8406_v47 = vor.u32 %v8405_v46, %v8402_v2  ;;  %v8706_v8 = vshrl.u32 %v25840_v33, 16  ;;  %v20609_v2 = vcombine.low %v8885_v4, %v28772_v44 }
 0x1f1   : > { %v23493_v53 = vpop.f32.mrb[124].mxu0  ;;  %24013 = vmatprep.subr.bf16.mxu1 %v25833_v60  ;;  %23935 = vmatprep.mubr.bf16.mxu0 %v8389_v1  ;;  %v8700_v9 = vor.u32 %v8698_v54, %v8696_v30  ;;  %v20608_v1 = vcombine.low %v8883_v57, %v8884_v10  ;;  %v28819_v57 = vld [vmem:[%s26321_s20 + $0xf8] sm:$0xf] }
 0x1f2   : > { %v23525_v0 = vpop.f32.mrb[124].mxu1  ;;  %v4633_v18 = vpop.f32.mrb[125].mxu0  ;;  %23967 = vmatprep.mubr.bf16.mxu1 %v8689_v52  ;;  %v8407_v14 = vsel %vm715_vm0, %v8397_v13, %v8406_v47  ;;  %v20641_v52 = vcombine.low %v8884_v10, %v8885_v4  ;;  %v25845_v53 = vld [vmem:[%s31745_s1 + $0x138] sm:$0xff]   ;;  %v8968_v33 = vshrl.u32 %v20609_v2, 16 }
 0x1f3   : > { %v4660_v37 = vadd.f32 %v4633_v18, %v28610_v15  ;;  %v4958_v24 = vpop.f32.mrb[125].mxu1  ;;  %v23494_v51 = vpop.f32.mrb[126].mxu0  ;;  %23982 = vmatpush3.bf16.msra.mxu0 %v25832_v32  ;;  %v8411_v15 = vrot.slane %v8409_v63, 3  ;;  %v8704_v32 = vrot.slane %v8702_v16, 1  ;;  %v8710_v63 = vshll.u32 %v25841_v48, 16 }
 0x1f4   : > { %v23526_v62 = vpop.f32.mrb[126].mxu1  ;;  %24014 = vmatpush3.bf16.msra.mxu1 %v25833_v60  ;;  %v4636_v59 = vpop.f32.mrb[127].mxu0  ;;  %23983 = vmatprep.subr.bf16.mxu0 %v25836_v25  ;;  %v8963_v46 = vshll.u32 %v20608_v1, 16  ;;  %v8971_v0 = vshll.u32 %v20609_v2, 16  ;;  %v8970_v54 = vrot.slane %v8968_v33, 3  ;;  %v28861_v33 = vld [vmem:[%s31745_s1 + $0x150] sm:$0xff]  }
 0x1f5   : > { %v28747_v40 = vadd.f32 %v4958_v24, %v4660_v37  ;;  %v4661_v58 = vadd.f32 %v4636_v59, %v28621_v38  ;;  %v4961_v49 = vpop.f32.mrb[127].mxu1  ;;  %24015 = vmatprep.subr.bf16.mxu1 %v25837_v43  ;;  %v8415_v23 = vor.u32 %v8414_v39, %v8411_v15  ;;  %v25842_v38 = vld [vmem:[%s31745_s1 + $0xf0] sm:$0xff]   ;;  %v8705_v56 = vsel %vm1026_vm1, %v8700_v9, %v8704_v32 }
 0x1f6   : > { %23936 = vmatmul.mubr.bf16.gmra.mrb[232].mxu0 %v8398_v27  ;;  %v8708_v34 = vor.u32 %v8706_v8, %v8704_v32  ;;  %v8712_v7 = vrot.slane %v8710_v63, 1  ;;  %v26218_v27 = vld [vmem:[#allocation2 + $0x28] sm:$0xff]  ;;  %v8973_v16 = vrot.slane %v8971_v0, 4  ;;  %v25852_v8 = vld [vmem:[%s31745_s1 + $0x180] sm:$0xff]   ;;  %v28809_v63 = vld [vmem:[%s26321_s20 + $0xf4] sm:$0xf] }
 0x1f7   : > { %v28752_v22 = vadd.f32 %v4961_v49, %v4661_v58  ;;  %23968 = vmatmul.mubr.bf16.gmra.mrb[232].mxu1 %v8697_v29  ;;  %23984 = vmatpush3.bf16.msra.mxu0 %v25836_v25  ;;  %v8416_v60 = vsel %vm715_vm0, %v8406_v47, %v8415_v23  ;;  %v8965_v47 = vrot.slane %v8963_v46, 4  ;;  %v25851_v29 = vld [vmem:[%s31745_s1 + $0x140] sm:$0xff]   ;;  %v28804_v58 = vcombine.high %v26218_v27, %v26218_v27  ;;  %v28866_v0 = vld [vmem:[%s31745_s1 + $0x190] sm:$0xff]  }
 0x1f8   : > { %24016 = vmatpush3.bf16.msra.mxu1 %v25837_v43  ;;  %23985 = vmatprep.subr.bf16.mxu0 %v25838_v28  ;;  %v8713_v12 = vsel %vm1026_vm1, %v8708_v34, %v8712_v7  ;;  %v8960_v43 = vshrl.u32 %v20608_v1, 16  ;;  %v8974_v48 = vor.u32 %v8973_v16, %v8970_v54  ;;  %v20642_v23 = vcombine.low %v28772_v44, %v28775_v21 }
 0x1f9   : > { %v23545_v5 = vpop.f32.mrb[128].mxu0  ;;  %24017 = vmatprep.subr.bf16.mxu1 %v25839_v11  ;;  %23939 = vmatprep.mubr.bf16.mxu0 %v8407_v14  ;;  %12858 = vst [vmem:[%s28851_s22 + $0xc] sm:$0xf] %v28804_v58  ;;  %12862 = vst [vmem:[%s28851_s22 + $0x1c] sm:$0xf] %v28804_v58 }
 0x1fa   : > { %v23577_v17 = vpop.f32.mrb[128].mxu1  ;;  %v5103_v35 = vpop.f32.mrb[129].mxu0  ;;  %23971 = vmatprep.mubr.bf16.mxu1 %v8705_v56  ;;  %v8962_v51 = vrot.slane %v8960_v43, 3  ;;  %12866 = vst [vmem:[%s28851_s22 + $0x2c] sm:$0xf] %v28804_v58 }
 0x1fb   : > { %v5166_v55 = vadd.f32 %v5103_v35, %v28644_v20  ;;  %v5416_v50 = vpop.f32.mrb[129].mxu1  ;;  %v23546_v19 = vpop.f32.mrb[130].mxu0  ;;  %23986 = vmatpush3.bf16.msra.mxu0 %v25838_v28  ;;  %v28780_v20 = vld [vmem:[%s26321_s20 + $0xf0] sm:$0xf]  ;;  %v28788_v28 = vcombine.low %v26218_v27, %v26218_v27  ;;  %12870 = vst [vmem:[%s28851_s22 + $0x3c] sm:$0xf] %v28804_v58 }
 0x1fc   : > { %v23578_v13 = vpop.f32.mrb[130].mxu1  ;;  %24018 = vmatpush3.bf16.msra.mxu1 %v25839_v11  ;;  %v5106_v6 = vpop.f32.mrb[131].mxu0  ;;  %23987 = vmatprep.subr.bf16.mxu0 %v25842_v38  ;;  %v20610_v18 = vcombine.low %v28775_v21, %v28780_v20  ;;  %v8966_v39 = vor.u32 %v8965_v47, %v8962_v51  ;;  %v20643_v17 = vcombine.low %v28780_v20, %v28809_v63  ;;  %v28838_v21 = vld [vmem:[%s31745_s1 + $0x188] sm:$0xff]   ;;  %v25861_v20 = vld [vmem:[%s31745_s1 + $0x158] sm:$0xff]  }
 0x1fd   : > { %v5479_v41 = vadd.f32 %v5416_v50, %v5166_v55  ;;  %v5167_v30 = vadd.f32 %v5106_v6, %v28656_v26  ;;  %v5419_v25 = vpop.f32.mrb[131].mxu1  ;;  %24019 = vmatprep.subr.bf16.mxu1 %v25843_v61  ;;  %v28793_v26 = vld [vmem:[%s31747_s3] ss:$0 sm:$0xff]  ;;  %v28829_v55 = vld [vmem:[%s26321_s20 + $0xfc] sm:$0xf] }
 0x1fe   : > { %23940 = vmatmul.mubr.bf16.gmra.mrb[236].mxu0 %v8416_v60  ;;  %v8977_v62 = vshrl.u32 %v20610_v18, 16  ;;  %v8980_v59 = vshll.u32 %v20610_v18, 16  ;;  %v8975_v4 = vsel %vm715_vm0, %v8966_v39, %v8974_v48  ;;  %v28832_v50 = vld [vmem:[%s26321_s20 + $0x100] sm:$0xf]  ;;  %12857 = vst [vmem:[%s28851_s22 + $0x8] sm:$0xf] %v28788_v28  ;;  %v20644_v16 = vcombine.low %v28819_v57, %v28829_v55 }
 0x1ff   : > { %v5495_v37 = vadd.f32 %v28793_v26, %v5479_v41  ;;  %v5480_v24 = vadd.f32 %v5419_v25, %v5167_v30  ;;  %23972 = vmatmul.mubr.bf16.gmra.mrb[236].mxu1 %v8713_v12  ;;  %23988 = vmatpush3.bf16.msra.mxu0 %v25842_v38  ;;  %v20612_v2 = vcombine.low %v28829_v55, %v28832_v50  ;;  %v28868_v18 = vld [vmem:[#allocation2] sm:$0xff]  ;;  %v28948_v39 = vld [vmem:[%s26321_s20 + $0x108] sm:$0xf] }
 0x200   : > { %24020 = vmatpush3.bf16.msra.mxu1 %v25843_v61  ;;  %23989 = vmatprep.subr.bf16.mxu0 %v28765_v36  ;;  %v8979_v14 = vrot.slane %v8977_v62, 3  ;;  %v8982_v32 = vrot.slane %v8980_v59, 4  ;;  %v28816_v61 = vld [vmem:[%s31745_s1 + $0x148] sm:$0xff]   ;;  %v10802_v27 = vshrl.u32 %v28868_v18, 16  ;;  %12861 = vst [vmem:[%s28851_s22 + $0x18] sm:$0xf] %v28788_v28 }
 0x201   : > { %v5496_v11 = vadd.f32 %v28793_v26, %v5480_v24  ;;  %v23549_v15 = vpop.f32.mrb[132].mxu0  ;;  %24021 = vmatprep.subr.bf16.mxu1 %v25845_v53  ;;  %24023 = vmatprep.mubr.bf16.mxu1 %v20641_v52  ;;  %v5511_v38 = vmax.f32 %v5495_v37, 0.0  ;;  %v8995_v25 = vshrl.u32 %v20612_v2, 16  ;;  %12865 = vst [vmem:[%s28851_s22 + $0x28] sm:$0xf] %v28788_v28 }
 0x202   : > { %v23581_v49 = vpop.f32.mrb[132].mxu1  ;;  %v5119_v9 = vpop.f32.mrb[133].mxu0  ;;  %23991 = vmatprep.mubr.bf16.mxu0 %v8975_v4  ;;  %12869 = vst [vmem:[%s28851_s22 + $0x38] sm:$0xf] %v28788_v28  ;;  %15104 = vst [vmem:[%s28851_s22 + $0x48] sm:$0xf] %v28788_v28 }
 0x203   : > { %v5512_v56 = vmax.f32 %v5496_v11, 0.0  ;;  %v5170_v34 = vadd.f32 %v5119_v9, %v28680_v31  ;;  %v5432_v5 = vpop.f32.mrb[133].mxu1  ;;  %v23550_v7 = vpop.f32.mrb[134].mxu0  ;;  %23990 = vmatpush3.bf16.msra.mxu0 %v28765_v36  ;;  %v28824_v31 = vor.u32 %v8982_v32, %v8979_v14  ;;  %v20611_v36 = vcombine.low %v28809_v63, %v28819_v57  ;;  %15105 = vst [vmem:[%s28851_s22 + $0x4c] sm:$0xf] %v28804_v58 }
 0x204   : > { %v23582_v35 = vpop.f32.mrb[134].mxu1  ;;  %24022 = vmatpush3.bf16.msra.mxu1 %v25845_v53  ;;  %v5122_v10 = vpop.f32.mrb[135].mxu0  ;;  %24039 = vmatprep.subr.bf16.mxu0 %v25851_v29  ;;  %v8998_v53 = vshll.u32 %v20612_v2, 16  ;;  %15108 = vst [vmem:[%s28851_s22 + $0x58] sm:$0xf] %v28788_v28  ;;  %v8997_v47 = vrot.slane %v8995_v25, 3 }
 0x205   : > { %v5543_v19 = vpack.c.bf16 %v5512_v56, %v5511_v38  ;;  %v5483_v60 = vadd.f32 %v5432_v5, %v5170_v34  ;;  %v5171_v44 = vadd.f32 %v5122_v10, %v28685_v3  ;;  %v5435_v1 = vpop.f32.mrb[135].mxu1  ;;  %24071 = vmatprep.subr.bf16.mxu1 %v25852_v8  ;;  %v8984_v13 = vsel %vm715_vm0, %v8974_v48, %v28824_v31  ;;  %v8893_v62 = vld [vmem:[%s26321_s20 + $0x104] sm:$0xf]  ;;  %v28957_v14 = vld [vmem:[%s26321_s20 + $0x10c] sm:$0xf]  ;;  %v25862_v34 = vld [vmem:[%s31745_s1 + $0x198] sm:$0xff]  }
 0x206   : > { %v8986_v6 = vshrl.u32 %v20611_v36, 16  ;;  %v8989_v12 = vshll.u32 %v20611_v36, 16  ;;  %23992 = vmatmul.mubr.bf16.vlgmr.msra.gmra.mrb[240].mxu0 %v8984_v13  ;;  %15109 = vst [vmem:[%s28851_s22 + $0x5c] sm:$0xf] %v28804_v58  ;;  %15112 = vst [vmem:[%s28851_s22 + $0x68] sm:$0xf] %v28788_v28  ;;  %v20613_v48 = vcombine.low %v8893_v62, %v28948_v39  ;;  %v20646_v2 = vcombine.low %v28948_v39, %v28957_v14 }
 0x207   : > { %5551 = vst [vmem:[#allocation2 + $0x60] sm:$0xff] %v5543_v19  ;;  %v28845_v52 = vadd.f32 %v28793_v26, %v5483_v60  ;;  %v5484_v3 = vadd.f32 %v5435_v1, %v5171_v44  ;;  %24024 = vmatmul.mubr.bf16.vlgmr.msra.gmra.mrb[240].mxu1 %v20642_v23  ;;  %24040 = vmatpush3.bf16.msra.mxu0 %v25851_v29  ;;  %15113 = vst [vmem:[%s28851_s22 + $0x6c] sm:$0xf] %v28804_v58  ;;  %v9000_v54 = vrot.slane %v8998_v53, 4  ;;  %v28960_v32 = vld [vmem:[%s26321_s20 + $0x110] sm:$0xf] }
 0x208   : > { %24072 = vmatpush3.bf16.msra.mxu1 %v25852_v8  ;;  %v8988_v41 = vrot.slane %v8986_v6, 3  ;;  %v8991_v30 = vrot.slane %v8989_v12, 4  ;;  %24041 = vmatprep.subr.bf16.mxu0 %v28816_v61  ;;  %15116 = vst [vmem:[%s28851_s22 + $0x78] sm:$0xf] %v28788_v28  ;;  %15117 = vst [vmem:[%s28851_s22 + $0x7c] sm:$0xf] %v28804_v58  ;;  %v20645_v8 = vcombine.low %v28832_v50, %v8893_v62 }
 0x209   : > { %v28854_v43 = vadd.f32 %v28793_v26, %v5484_v3  ;;  %v23553_v46 = vpop.f32.mrb[136].mxu0  ;;  %24073 = vmatprep.subr.bf16.mxu1 %v28838_v21  ;;  %17351 = vst [vmem:[%s28851_s22 + $0x88] sm:$0xf] %v28788_v28  ;;  %17352 = vst [vmem:[%s28851_s22 + $0x8c] sm:$0xf] %v28804_v58  ;;  %24027 = vmatprep.mubr.bf16.mxu1 %v20643_v17  ;;  %v5515_v59 = vmax.f32 %v28845_v52, 0.0  ;;  %v20614_v57 = vcombine.low %v28957_v14, %v28960_v32 }
 0x20a   : > { %17355 = vst [vmem:[%s28851_s22 + $0x98] sm:$0xf] %v28788_v28  ;;  %17356 = vst [vmem:[%s28851_s22 + $0x9c] sm:$0xf] %v28804_v58  ;;  %v23585_v37 = vpop.f32.mrb[136].mxu1  ;;  %v5135_v24 = vpop.f32.mrb[137].mxu0  ;;  %v8992_v51 = vor.u32 %v8991_v30, %v8988_v41 }
 0x20b   : > { %17359 = vst [vmem:[%s28851_s22 + $0xa8] sm:$0xf] %v28788_v28  ;;  %17360 = vst [vmem:[%s28851_s22 + $0xac] sm:$0xf] %v28804_v58  ;;  %v5174_v29 = vadd.f32 %v5135_v24, %v28712_v42  ;;  %v5448_v11 = vpop.f32.mrb[137].mxu1  ;;  %v23554_v15 = vpop.f32.mrb[138].mxu0  ;;  %24042 = vmatpush3.bf16.msra.mxu0 %v28816_v61  ;;  %v9001_v42 = vor.u32 %v9000_v54, %v8997_v47 }
 0x20c   : > { %17363 = vst [vmem:[%s28851_s22 + $0xb8] sm:$0xf] %v28788_v28  ;;  %17364 = vst [vmem:[%s28851_s22 + $0xbc] sm:$0xf] %v28804_v58  ;;  %24074 = vmatpush3.bf16.msra.mxu1 %v28838_v21  ;;  %v5138_v49 = vpop.f32.mrb[139].mxu0  ;;  %v8993_v9 = vsel %vm715_vm0, %v28824_v31, %v8992_v51  ;;  %24043 = vmatprep.subr.bf16.mxu0 %v28861_v33  ;;  %v9004_v7 = vshrl.u32 %v20613_v48, 16 }
 0x20d   : > { %19598 = vst [vmem:[%s28851_s22 + $0xc8] sm:$0xf] %v28788_v28  ;;  %19599 = vst [vmem:[%s28851_s22 + $0xcc] sm:$0xf] %v28804_v58  ;;  %v5487_v63 = vadd.f32 %v5448_v11, %v5174_v29  ;;  %v5175_v38 = vadd.f32 %v5138_v49, %v28721_v45  ;;  %23995 = vmatprep.mubr.bf16.mxu0 %v8993_v9  ;;  %v9002_v5 = vsel %vm715_vm0, %v8992_v51, %v9001_v42  ;;  %v25867_v19 = vld [vmem:[%s31745_s1 + $0x160] sm:$0xff]   ;;  %v25869_v53 = vld [vmem:[%s31745_s1 + $0x168] sm:$0xff]  }
 0x20e   : > { %19602 = vst [vmem:[%s28851_s22 + $0xd8] sm:$0xf] %v28788_v28  ;;  %19603 = vst [vmem:[%s28851_s22 + $0xdc] sm:$0xf] %v28804_v58  ;;  %24075 = vmatprep.subr.bf16.mxu1 %v28866_v0  ;;  %v9007_v61 = vshll.u32 %v20613_v48, 16  ;;  %23996 = vmatmul.mubr.bf16.gmra.mrb[244].mxu0 %v9002_v5  ;;  %v9006_v35 = vrot.slane %v9004_v7, 3 }
 0x20f   : > { %19606 = vst [vmem:[%s28851_s22 + $0xe8] sm:$0xf] %v28788_v28  ;;  %19607 = vst [vmem:[%s28851_s22 + $0xec] sm:$0xf] %v28804_v58  ;;  %v5503_v45 = vadd.f32 %v28793_v26, %v5487_v63  ;;  %24028 = vmatmul.mubr.bf16.gmra.mrb[244].mxu1 %v20644_v16  ;;  %24044 = vmatpush3.bf16.msra.mxu0 %v28861_v33  ;;  %v9013_v4 = vshrl.u32 %v20614_v57, 16  ;;  %v9016_v31 = vshll.u32 %v20614_v57, 16 }
 0x210   : > { %19610 = vst [vmem:[%s28851_s22 + $0xf8] sm:$0xf] %v28788_v28  ;;  %19611 = vst [vmem:[%s28851_s22 + $0xfc] sm:$0xf] %v28804_v58  ;;  %v5516_v28 = vmax.f32 %v28854_v43, 0.0  ;;  %v23586_v58 = vpop.f32.mrb[138].mxu1  ;;  %24076 = vmatpush3.bf16.msra.mxu1 %v28866_v0  ;;  %24045 = vmatprep.subr.bf16.mxu0 %v25861_v20 }
 0x211   : > { %v5451_v56 = vpop.f32.mrb[139].mxu1  ;;  %v9009_v10 = vrot.slane %v9007_v61, 4  ;;  %v5519_v36 = vmax.f32 %v5503_v45, 0.0  ;;  %v23557_v50 = vpop.f32.mrb[140].mxu0  ;;  %24077 = vmatprep.subr.bf16.mxu1 %v25862_v34  ;;  %v25868_v60 = vld [vmem:[%s31745_s1 + $0x1a0] sm:$0xff]   ;;  %24031 = vmatprep.mubr.bf16.mxu1 %v20645_v8  ;;  %v9015_v6 = vrot.slane %v9013_v4, 3 }
 0x212   : > { %v5545_v23 = vpack.c.bf16 %v5516_v28, %v5515_v59  ;;  %v5488_v17 = vadd.f32 %v5451_v56, %v5175_v38  ;;  %v8897_v44 = vld [vmem:[%s26321_s20 + $0x114] sm:$0xf]  ;;  %v23589_v1 = vpop.f32.mrb[140].mxu1  ;;  %v5151_v21 = vpop.f32.mrb[141].mxu0  ;;  %v9018_v12 = vrot.slane %v9016_v31, 4  ;;  %v25870_v43 = vld [vmem:[%s31745_s1 + $0x1a8] sm:$0xff]  }
 0x213   : > { %v9010_v13 = vor.u32 %v9009_v10, %v9006_v35  ;;  %v28985_v52 = vld [vmem:[%s26321_s20 + $0x118] sm:$0xf]  ;;  %v5178_v41 = vadd.f32 %v5151_v21, %v28747_v40  ;;  %v5464_v30 = vpop.f32.mrb[141].mxu1  ;;  %v23558_v25 = vpop.f32.mrb[142].mxu0  ;;  %v20647_v33 = vcombine.low %v28960_v32, %v8897_v44  ;;  %v28997_v0 = vld [vmem:[%s26321_s20 + $0x11c] sm:$0xf]  ;;  %24046 = vmatpush3.bf16.msra.mxu0 %v25861_v20 }
 0x214   : > { %5553 = vst [vmem:[#allocation2 + $0x70] sm:$0xff] %v5545_v23  ;;  %v5504_v55 = vadd.f32 %v28793_v26, %v5488_v17  ;;  %v20615_v46 = vcombine.low %v8897_v44, %v28985_v52  ;;  %v23590_v37 = vpop.f32.mrb[142].mxu1  ;;  %24078 = vmatpush3.bf16.msra.mxu1 %v25862_v34  ;;  %v5154_v40 = vpop.f32.mrb[143].mxu0  ;;  %v9019_v51 = vor.u32 %v9018_v12, %v9015_v6  ;;  %v25876_v48 = vld [vmem:[%s31745_s1 + $0x1b0] sm:$0xff]   ;;  %v25879_v14 = vld [vmem:[%s26321_s20 + $0xe0] sm:$0xff]   ;;  %v25877_v17 = vld [vmem:[%s31745_s1 + $0x178] sm:$0xff]  }
 0x215   : > { %v9011_v24 = vsel %vm715_vm0, %v9001_v42, %v9010_v13  ;;  %v20616_v47 = vcombine.low %v28997_v0, %v28997_v0  ;;  %v5491_v16 = vadd.f32 %v5464_v30, %v5178_v41  ;;  %v5179_v62 = vadd.f32 %v5154_v40, %v28752_v22  ;;  %v5467_v59 = vpop.f32.mrb[143].mxu1  ;;  %24047 = vmatprep.subr.bf16.mxu0 %v25867_v19  ;;  %v25875_v22 = vld [vmem:[%s31745_s1 + $0x170] sm:$0xff]   ;;  %v25880_v35 = vld [vmem:[%s26321_s20 + $0xe8] sm:$0xff]   ;;  %v25886_v40 = vld [vmem:[%s31745_s1 + $0x1c0] sm:$0xff]  }
 0x216   : > { %v5520_v3 = vmax.f32 %v5504_v55, 0.0  ;;  %23999 = vmatprep.mubr.bf16.mxu0 %v9011_v24  ;;  %v9022_v28 = vshrl.u32 %v20615_v46, 16  ;;  %v9020_v29 = vsel %vm715_vm0, %v9010_v13, %v9019_v51  ;;  %24079 = vmatprep.subr.bf16.mxu1 %v25868_v60  ;;  %v9025_v11 = vshll.u32 %v20615_v46, 16  ;;  %v29027_v50 = vld [vmem:[%s26321_s20 + $0xf0] sm:$0xff]   ;;  %v9714_v6 = vld [vmem:[%s26321_s20 + $0xec] sm:$0x8] }
 0x217   : > { %v9031_v15 = vshrl.u32 %v20616_v47, 16  ;;  %v9034_v20 = vshll.u32 %v20616_v47, 16  ;;  %v5507_v39 = vadd.f32 %v28793_v26, %v5491_v16  ;;  %v5492_v8 = vadd.f32 %v5467_v59, %v5179_v62  ;;  %24000 = vmatmul.mubr.bf16.gmra.mrb[248].mxu0 %v9020_v29  ;;  %24032 = vmatmul.mubr.bf16.gmra.mrb[248].mxu1 %v20646_v2 }
 0x218   : > { %v5547_v54 = vpack.c.bf16 %v5520_v3, %v5519_v36  ;;  %v9024_v58 = vrot.slane %v9022_v28, 3  ;;  %24048 = vmatpush3.bf16.msra.mxu0 %v25867_v19  ;;  %24080 = vmatpush3.bf16.msra.mxu1 %v25868_v60  ;;  %v9027_v49 = vrot.slane %v9025_v11, 4  ;;  %v20648_v45 = vcombine.low %v28985_v52, %v28997_v0  ;;  %v29034_v52 = vld [vmem:[%s26321_s20 + $0xf0] sm:$0xf]  ;;  %v29037_v3 = vld [vmem:[%s26321_s20 + $0xf4] sm:$0xf] }
 0x219   : > { %v9033_v9 = vrot.slane %v9031_v15, 3  ;;  %v9036_v42 = vrot.slane %v9034_v20, 4  ;;  %v5523_v32 = vmax.f32 %v5507_v39, 0.0  ;;  %v5508_v23 = vadd.f32 %v28793_v26, %v5492_v8  ;;  %v23609_v63 = vpop.f32.mrb[144].mxu0  ;;  %24049 = vmatprep.subr.bf16.mxu0 %v25869_v53  ;;  %24081 = vmatprep.subr.bf16.mxu1 %v25870_v43  ;;  %v25878_v26 = vld [vmem:[%s31745_s1 + $0x1b8] sm:$0xff]   ;;  %v25887_v15 = vld [vmem:[%s31745_s1 + $0x200] sm:$0xff]  }
 0x21a   : > { %5555 = vst [vmem:[#allocation2 + $0x80] sm:$0xff] %v5547_v54  ;;  %v23641_v38 = vpop.f32.mrb[144].mxu1  ;;  %v5738_v56 = vpop.f32.mrb[145].mxu0  ;;  %v9028_v34 = vor.u32 %v9027_v49, %v9024_v58  ;;  %24035 = vmatprep.mubr.bf16.mxu1 %v20647_v33  ;;  %v9478_v19 = vshrl.u32 %v25879_v14, 16  ;;  %v9480_v1 = vshll.u32 %v25879_v14, 16  ;;  %v9485_v21 = vshll.u32 %v25880_v35, 16 }
 0x21b   : > { %v9037_v5 = vor.u32 %v9036_v42, %v9033_v9  ;;  %v5524_v7 = vmax.f32 %v5508_v23, 0.0  ;;  %v5982_v61 = vpop.f32.mrb[145].mxu1  ;;  %v23610_v57 = vpop.f32.mrb[146].mxu0  ;;  %v9489_v13 = vshrl.u32 %v25880_v35, 16  ;;  %v9493_v2 = vshll.u32 %v29027_v50, 16  ;;  %v25888_v63 = vld [vmem:[%s31745_s1 + $0x1c8] sm:$0xff]  }
 0x21c   : > { %v29022_v10 = vadd.f32 %v5982_v61, %v5738_v56  ;;  %v23642_v4 = vpop.f32.mrb[146].mxu1  ;;  %24050 = vmatpush3.bf16.msra.mxu0 %v25869_v53  ;;  %24082 = vmatpush3.bf16.msra.mxu1 %v25870_v43  ;;  %v5741_v31 = vpop.f32.mrb[147].mxu0  ;;  %v9029_v36 = vsel %vm715_vm0, %v9019_v51, %v9028_v34  ;;  %v10805_v41 = vshll.u32 %v28868_v18, 16  ;;  %v9482_v30 = vrot.slane %v9480_v1, 1  ;;  %v29041_v53 = vld [vmem:[%s26321_s20 + $0xf8] sm:$0xf] }
 0x21d   : > { %v9038_v55 = vsel %vm715_vm0, %v9028_v34, %v9037_v5  ;;  %v5549_v60 = vpack.c.bf16 %v5524_v7, %v5523_v32  ;;  %v5985_v44 = vpop.f32.mrb[147].mxu1  ;;  %24003 = vmatprep.mubr.bf16.mxu0 %v9029_v36  ;;  %24051 = vmatprep.subr.bf16.mxu0 %v25875_v22  ;;  %v9487_v25 = vrot.slane %v9485_v21, 1  ;;  %v29044_v43 = vld [vmem:[%s26321_s20 + $0xfc] sm:$0xf]  ;;  %v20706_v46 = vcombine.low %v9714_v6, %v29034_v52  ;;  %v29048_v0 = vld [vmem:[%s26321_s20 + $0x100] sm:$0xf] }
 0x21e   : > { %v29030_v12 = vadd.f32 %v5985_v44, %v5741_v31  ;;  %24083 = vmatprep.subr.bf16.mxu1 %v25876_v48  ;;  %v9495_v33 = vrot.slane %v9493_v2, 1  ;;  %v20707_v37 = vcombine.low %v29037_v3, %v29041_v53  ;;  %v9483_v51 = vor.u32 %v9482_v30, %v9478_v19  ;;  %v25890_v5 = vld [vmem:[%s26321_s20 + $0xf8] sm:$0xff]   ;;  %v25889_v35 = vld [vmem:[%s31745_s1 + $0x208] sm:$0xff]   ;;  %v29076_v36 = vld [vmem:[%s26321_s20 + $0x104] sm:$0xf] }
 0x21f   : > { %5557 = vst [vmem:[#allocation2 + $0x90] sm:$0xff] %v5549_v60  ;;  %24004 = vmatmul.mubr.bf16.gmra.mrb[252].mxu0 %v9038_v55  ;;  %24036 = vmatmul.mubr.bf16.gmra.mrb[252].mxu1 %v20648_v45  ;;  %v9491_v47 = vor.u32 %v9489_v13, %v9487_v25  ;;  %v20708_v54 = vcombine.low %v29044_v43, %v29048_v0  ;;  %v9791_v16 = vshrl.u32 %v20706_v46, 16  ;;  %v9794_v28 = vshll.u32 %v20706_v46, 16  ;;  %v29079_v55 = vld [vmem:[%s26321_s20 + $0x108] sm:$0xf]  ;;  %v29090_v13 = vld [vmem:[%s26321_s20 + $0x100] sm:$0xff]  }
 0x220   : > { %24052 = vmatpush3.bf16.msra.mxu0 %v25875_v22  ;;  %24084 = vmatpush3.bf16.msra.mxu1 %v25876_v48  ;;  %v9799_v29 = vshrl.u32 %v20707_v37, 16  ;;  %v9802_v11 = vshll.u32 %v20707_v37, 16  ;;  %v9488_v8 = vsel %vm1026_vm1, %v9483_v51, %v9487_v25  ;;  %v9501_v4 = vshll.u32 %v25890_v5, 16  ;;  %v29085_v1 = vld [vmem:[%s26321_s20 + $0x110] sm:$0xf]  ;;  %v25960_v18 = vld [vmem:[%s31746_s2 + $0xb8] sm:$0xff]  }
 0x221   : > { %v23613_v24 = vpop.f32.mrb[148].mxu0  ;;  %24053 = vmatprep.subr.bf16.mxu0 %v25877_v17  ;;  %24085 = vmatprep.subr.bf16.mxu1 %v25878_v26  ;;  %v9496_v58 = vsel %vm1026_vm1, %v9491_v47, %v9495_v33  ;;  %v9793_v22 = vrot.slane %v9791_v16, 3  ;;  %v9808_v49 = vshrl.u32 %v20708_v54, 16  ;;  %v9796_v14 = vrot.slane %v9794_v28, 4  ;;  %v25895_v46 = vld [vmem:[%s31745_s1 + $0x1d0] sm:$0xff]  }
 0x222   : > { %v23645_v62 = vpop.f32.mrb[148].mxu1  ;;  %v5754_v59 = vpop.f32.mrb[149].mxu0  ;;  %v9801_v32 = vrot.slane %v9799_v29, 3  ;;  %v9804_v23 = vrot.slane %v9802_v11, 4  ;;  %24055 = vmatprep.mubr.bf16.mxu0 %v9488_v8  ;;  %v9811_v34 = vshll.u32 %v20708_v54, 16  ;;  %v9505_v31 = vshrl.u32 %v25890_v5, 16 }
 0x223   : > { %v5998_v20 = vpop.f32.mrb[149].mxu1  ;;  %v23614_v39 = vpop.f32.mrb[150].mxu0  ;;  %v9810_v56 = vrot.slane %v9808_v49, 3  ;;  %v9797_v61 = vor.u32 %v9796_v14, %v9793_v22  ;;  %v20709_v21 = vcombine.low %v29076_v36, %v29079_v55  ;;  %v9503_v30 = vrot.slane %v9501_v4, 1 }
 0x224   : > { %v29062_v9 = vadd.f32 %v5998_v20, %v5754_v59  ;;  %v23646_v42 = vpop.f32.mrb[150].mxu1  ;;  %24054 = vmatpush3.bf16.msra.mxu0 %v25877_v17  ;;  %24086 = vmatpush3.bf16.msra.mxu1 %v25878_v26  ;;  %v5757_v48 = vpop.f32.mrb[151].mxu0  ;;  %v9805_v57 = vor.u32 %v9804_v23, %v9801_v32  ;;  %v9813_v45 = vrot.slane %v9811_v34, 4  ;;  %v9497_v17 = vshrl.u32 %v29027_v50, 16  ;;  %v29082_v50 = vld [vmem:[%s26321_s20 + $0x10c] sm:$0xf] }
 0x225   : > { %v6001_v38 = vpop.f32.mrb[151].mxu1  ;;  %24103 = vmatprep.subr.bf16.mxu0 %v25886_v40  ;;  %24135 = vmatprep.subr.bf16.mxu1 %v25887_v15  ;;  %v20710_v25 = vcombine.low %v29082_v50, %v29085_v1  ;;  %v9817_v24 = vshrl.u32 %v20709_v21, 16  ;;  %v9820_v51 = vshll.u32 %v20709_v21, 16  ;;  %v9507_v59 = vor.u32 %v9505_v31, %v9503_v30  ;;  %v25898_v32 = vld [vmem:[%s31745_s1 + $0x218] sm:$0xff]   ;;  %v25899_v34 = vld [vmem:[%s26321_s20 + $0x108] sm:$0xff]  }
 0x226   : > { %v29068_v7 = vadd.f32 %v6001_v38, %v5757_v48  ;;  %v9806_v26 = vsel %vm715_vm0, %v9797_v61, %v9805_v57  ;;  %v9814_v19 = vor.u32 %v9813_v45, %v9810_v56  ;;  %v9499_v44 = vor.u32 %v9497_v17, %v9495_v33  ;;  %v29120_v45 = vld [vmem:[%s26321_s20 + $0x114] sm:$0xf] }
 0x227   : > { %24056 = vmatmul.mubr.bf16.vlgmr.msra.gmra.mrb[0].mxu0 %v9496_v58  ;;  %24087 = vmatprep.mubr.bf16.mxu1 %v9806_v26  ;;  %v9826_v28 = vshrl.u32 %v20710_v25, 16  ;;  %v9819_v11 = vrot.slane %v9817_v24, 3  ;;  %v9822_v20 = vrot.slane %v9820_v51, 4  ;;  %v9829_v39 = vshll.u32 %v20710_v25, 16  ;;  %v25897_v58 = vld [vmem:[%s31745_s1 + $0x1d8] sm:$0xff]   ;;  %v29123_v17 = vld [vmem:[%s26321_s20 + $0x110] sm:$0xff]  }
 0x228   : > { %24104 = vmatpush3.bf16.msra.mxu0 %v25886_v40  ;;  %v9815_v33 = vsel %vm715_vm0, %v9805_v57, %v9814_v19  ;;  %v9504_v62 = vsel %vm1026_vm1, %v9499_v44, %v9503_v30  ;;  %v9509_v8 = vshll.u32 %v29090_v13, 16  ;;  %v9513_v57 = vshrl.u32 %v29090_v13, 16  ;;  %v29136_v30 = vld [vmem:[%s26321_s20 + $0x120] sm:$0xf] }
 0x229   : > { %v23617_v60 = vpop.f32.mrb[152].mxu0  ;;  %24105 = vmatprep.subr.bf16.mxu0 %v25888_v63  ;;  %24088 = vmatmul.mubr.bf16.vlgmr.msra.gmra.mrb[0].mxu1 %v9815_v33  ;;  %v9828_v49 = vrot.slane %v9826_v28, 3  ;;  %v9823_v42 = vor.u32 %v9822_v20, %v9819_v11  ;;  %v9831_v48 = vrot.slane %v9829_v39, 4  ;;  %v9517_v31 = vshll.u32 %v25899_v34, 16 }
 0x22a   : > { %v23649_v6 = vpop.f32.mrb[152].mxu1  ;;  %v5770_v2 = vpop.f32.mrb[153].mxu0  ;;  %24136 = vmatpush3.bf16.msra.mxu1 %v25887_v15  ;;  %24059 = vmatprep.mubr.bf16.mxu0 %v9504_v62  ;;  %v25896_v15 = vld [vmem:[%s31745_s1 + $0x210] sm:$0xff]   ;;  %v9511_v14 = vrot.slane %v9509_v8, 1  ;;  %v29128_v60 = vld [vmem:[%s26321_s20 + $0x118] sm:$0xf] }
 0x22b   : > { %v6014_v37 = vpop.f32.mrb[153].mxu1  ;;  %v23618_v40 = vpop.f32.mrb[154].mxu0  ;;  %24137 = vmatprep.subr.bf16.mxu1 %v25889_v35  ;;  %v9824_v23 = vsel %vm715_vm0, %v9814_v19, %v9823_v42  ;;  %v9521_v19 = vshrl.u32 %v25899_v34, 16  ;;  %v20711_v25 = vcombine.low %v29120_v45, %v29128_v60  ;;  %v9519_v33 = vrot.slane %v9517_v31, 1  ;;  %v25905_v8 = vld [vmem:[%s31745_s1 + $0x220] sm:$0xff]  }
 0x22c   : > { %v29098_v47 = vadd.f32 %v6014_v37, %v5770_v2  ;;  %v23650_v54 = vpop.f32.mrb[154].mxu1  ;;  %24106 = vmatpush3.bf16.msra.mxu0 %v25888_v63  ;;  %v5773_v16 = vpop.f32.mrb[155].mxu0  ;;  %v29114_v63 = vor.u32 %v9831_v48, %v9828_v49  ;;  %v9512_v38 = vsel %vm1026_vm1, %v9507_v59, %v9511_v14  ;;  %24091 = vmatprep.mubr.bf16.mxu1 %v9824_v23  ;;  %v29133_v2 = vld [vmem:[%s26321_s20 + $0x11c] sm:$0xf] }
 0x22d   : > { %v6017_v29 = vpop.f32.mrb[155].mxu1  ;;  %24107 = vmatprep.subr.bf16.mxu0 %v25895_v46  ;;  %v9515_v6 = vor.u32 %v9513_v57, %v9511_v14  ;;  %v20712_v37 = vcombine.low %v29133_v2, %v29136_v30  ;;  %v9835_v24 = vshrl.u32 %v20711_v25, 16  ;;  %v9838_v51 = vshll.u32 %v20711_v25, 16  ;;  %v25908_v57 = vld [vmem:[%s26321_s20 + $0x118] sm:$0xff]   ;;  %v29175_v25 = vld [vmem:[%s26321_s20 + $0x128] sm:$0xf] }
 0x22e   : > { %v29105_v22 = vadd.f32 %v6017_v29, %v5773_v16  ;;  %24138 = vmatpush3.bf16.msra.mxu1 %v25889_v35  ;;  %v9833_v26 = vsel %vm715_vm0, %v9823_v42, %v29114_v63  ;;  %v9525_v54 = vshll.u32 %v29123_v17, 16  ;;  %v25904_v16 = vld [vmem:[%s31745_s1 + $0x1e0] sm:$0xff]   ;;  %v9523_v59 = vor.u32 %v9521_v19, %v9519_v33  ;;  %v25906_v42 = vld [vmem:[%s31745_s1 + $0x1e8] sm:$0xff]  }
 0x22f   : > { %24060 = vmatmul.mubr.bf16.gmra.mrb[4].mxu0 %v9512_v38  ;;  %24139 = vmatprep.subr.bf16.mxu1 %v25896_v15  ;;  %v9520_v62 = vsel %vm1026_vm1, %v9515_v6, %v9519_v33  ;;  %v9844_v28 = vshrl.u32 %v20712_v37, 16  ;;  %v9847_v29 = vshll.u32 %v20712_v37, 16  ;;  %v9837_v11 = vrot.slane %v9835_v24, 3  ;;  %v29172_v6 = vld [vmem:[%s26321_s20 + $0x124] sm:$0xf] }
 0x230   : > { %24108 = vmatpush3.bf16.msra.mxu0 %v25895_v46  ;;  %24063 = vmatprep.mubr.bf16.mxu0 %v9520_v62  ;;  %v9840_v20 = vrot.slane %v9838_v51, 4  ;;  %v9527_v39 = vrot.slane %v9525_v54, 1  ;;  %v29178_v33 = vld [vmem:[%s26321_s20 + $0x12c] sm:$0xf]  ;;  %v20713_v37 = vcombine.low %v29172_v6, %v29175_v25  ;;  %v25913_v54 = vld [vmem:[%s31745_s1 + $0x1f0] sm:$0xff]  }
 0x231   : > { %v23621_v56 = vpop.f32.mrb[156].mxu0  ;;  %24109 = vmatprep.subr.bf16.mxu0 %v25897_v58  ;;  %24092 = vmatmul.mubr.bf16.gmra.mrb[4].mxu1 %v9833_v26  ;;  %v9849_v49 = vrot.slane %v9847_v29, 4  ;;  %v25912_v51 = vld [vmem:[%s26321_s20 + $0x120] ss:$0 sps:$4 sm:$0x11]  }
 0x232   : > { %v23653_v5 = vpop.f32.mrb[156].mxu1  ;;  %v5786_v61 = vpop.f32.mrb[157].mxu0  ;;  %24140 = vmatpush3.bf16.msra.mxu1 %v25896_v15  ;;  %v9841_v48 = vor.u32 %v9840_v20, %v9837_v11  ;;  %v9528_v14 = vsel %vm1026_vm1, %v9523_v59, %v9527_v39  ;;  %v9853_v62 = vshrl.u32 %v20713_v37, 16  ;;  %v9856_v59 = vshll.u32 %v20713_v37, 16 }
 0x233   : > { %v6030_v35 = vpop.f32.mrb[157].mxu1  ;;  %v23622_v4 = vpop.f32.mrb[158].mxu0  ;;  %24141 = vmatprep.subr.bf16.mxu1 %v25898_v32  ;;  %v25907_v5 = vld [vmem:[%s31745_s1 + $0x228] sm:$0xff]   ;;  %v9541_v20 = vshll.u32 %v25912_v51, 16 }
 0x234   : > { %v29130_v44 = vadd.f32 %v6030_v35, %v5786_v61  ;;  %v23654_v21 = vpop.f32.mrb[158].mxu1  ;;  %24110 = vmatpush3.bf16.msra.mxu0 %v25897_v58  ;;  %v5789_v13 = vpop.f32.mrb[159].mxu0  ;;  %v9846_v58 = vrot.slane %v9844_v28, 3  ;;  %v9842_v26 = vsel %vm715_vm0, %v29114_v63, %v9841_v48  ;;  %v9533_v63 = vshll.u32 %v25908_v57, 16  ;;  %v25914_v28 = vld [vmem:[%s31745_s1 + $0x230] sm:$0xff]  }
 0x235   : > { %v6033_v46 = vpop.f32.mrb[159].mxu1  ;;  %24111 = vmatprep.subr.bf16.mxu0 %v25904_v16  ;;  %24095 = vmatprep.mubr.bf16.mxu1 %v9842_v26 }
 0x236   : > { %v29142_v40 = vadd.f32 %v6033_v46, %v5789_v13  ;;  %24142 = vmatpush3.bf16.msra.mxu1 %v25898_v32  ;;  %v29156_v56 = vor.u32 %v9849_v49, %v9846_v58  ;;  %v9529_v13 = vshrl.u32 %v29123_v17, 16  ;;  %v9537_v46 = vshrl.u32 %v25908_v57, 16 }
 0x237   : > { %24143 = vmatprep.subr.bf16.mxu1 %v25905_v8  ;;  %24064 = vmatmul.mubr.bf16.gmra.mrb[8].mxu0 %v9528_v14  ;;  %v20714_v17 = vcombine.low %v29178_v33, %v29178_v33  ;;  %v9855_v49 = vrot.slane %v9853_v62, 3  ;;  %v20740_v62 = vcombine.low %v29041_v53, %v29044_v43  ;;  %v25923_v53 = vld [vmem:[%s31746_s2 + $0x48] sm:$0xff]  }
 0x238   : > { %24112 = vmatpush3.bf16.msra.mxu0 %v25904_v16  ;;  %v9851_v31 = vsel %vm715_vm0, %v9841_v48, %v29156_v56  ;;  %v9535_v16 = vrot.slane %v9533_v63, 1 }
 0x239   : > { %v23673_v15 = vpop.f32.mrb[160].mxu0  ;;  %24113 = vmatprep.subr.bf16.mxu0 %v25906_v42  ;;  %24096 = vmatmul.mubr.bf16.gmra.mrb[8].mxu1 %v9851_v31  ;;  %v9862_v29 = vshrl.u32 %v20714_v17, 16  ;;  %v9865_v11 = vshll.u32 %v20714_v17, 16  ;;  %v25916_v31 = vld [vmem:[%s31745_s1 + $0x238] sm:$0xff]  }
 0x23a   : > { %v23705_v23 = vpop.f32.mrb[160].mxu1  ;;  %v6279_v38 = vpop.f32.mrb[161].mxu0  ;;  %24144 = vmatpush3.bf16.msra.mxu1 %v25905_v8  ;;  %v9539_v58 = vor.u32 %v9537_v46, %v9535_v16  ;;  %v9858_v15 = vrot.slane %v9856_v59, 4 }
 0x23b   : > { %v6342_v32 = vadd.f32 %v6279_v38, %v29022_v10  ;;  %v6604_v34 = vpop.f32.mrb[161].mxu1  ;;  %v23674_v61 = vpop.f32.mrb[162].mxu0  ;;  %24145 = vmatprep.subr.bf16.mxu1 %v25907_v5  ;;  %v9864_v14 = vrot.slane %v9862_v29, 3  ;;  %v9867_v23 = vrot.slane %v9865_v11, 4  ;;  %v9543_v38 = vrot.slane %v9541_v20, 1  ;;  %v25922_v11 = vld [vmem:[%s31746_s2] sm:$0xff]  }
 0x23c   : > { %v23706_v35 = vpop.f32.mrb[162].mxu1  ;;  %v6282_v4 = vpop.f32.mrb[163].mxu0  ;;  %24114 = vmatpush3.bf16.msra.mxu0 %v25906_v42  ;;  %v25915_v61 = vld [vmem:[%s31745_s1 + $0x1f8] sm:$0xff]  }
 0x23d   : > { %v29167_v10 = vadd.f32 %v6604_v34, %v6342_v32  ;;  %v6343_v19 = vadd.f32 %v6282_v4, %v29030_v12  ;;  %v6607_v21 = vpop.f32.mrb[163].mxu1  ;;  %v9531_v12 = vor.u32 %v9529_v13, %v9527_v39  ;;  %24115 = vmatprep.subr.bf16.mxu0 %v25913_v54  ;;  %v9868_v26 = vor.u32 %v9867_v23, %v9864_v14  ;;  %v25918_v13 = vld [vmem:[%s26321_s20 + $0xf0] sm:$0xff]  }
 0x23e   : > { %24146 = vmatpush3.bf16.msra.mxu1 %v25907_v5  ;;  %v9859_v5 = vor.u32 %v9858_v15, %v9855_v49  ;;  %v9544_v35 = vsel %vm1026_vm1, %v9539_v58, %v9543_v38  ;;  %v20741_v23 = vcombine.low %v29048_v0, %v29076_v36 }
 0x23f   : > { %v29182_v24 = vadd.f32 %v6607_v21, %v6343_v19  ;;  %v9536_v8 = vsel %vm1026_vm1, %v9531_v12, %v9535_v16  ;;  %24147 = vmatprep.subr.bf16.mxu1 %v25914_v28  ;;  %v20739_v21 = vcombine.low %v29034_v52, %v29037_v3  ;;  %v25919_v12 = vld [vmem:[%s26321_s20 + $0xf8] sm:$0xff]   ;;  %v10309_v52 = vshrl.u32 %v25918_v13, 16 }
 0x240   : > { %24067 = vmatprep.mubr.bf16.mxu0 %v9536_v8  ;;  %24116 = vmatpush3.bf16.msra.mxu0 %v25913_v54  ;;  %v9860_v63 = vsel %vm715_vm0, %v29156_v56, %v9859_v5  ;;  %v9869_v17 = vsel %vm715_vm0, %v9859_v5, %v9868_v26  ;;  %v25920_v54 = vld [vmem:[%s26321_s20 + $0x100] sm:$0xff]   ;;  %v10311_v3 = vshll.u32 %v25918_v13, 16  ;;  %v10316_v16 = vshll.u32 %v25919_v12, 16  ;;  %v25926_v26 = vld [vmem:[%s26321_s20 + $0x108] sm:$0xff]  }
 0x241   : > { %v23677_v39 = vpop.f32.mrb[164].mxu0  ;;  %24068 = vmatmul.mubr.bf16.gmra.mrb[12].mxu0 %v9544_v35  ;;  %24117 = vmatprep.subr.bf16.mxu0 %v25915_v61  ;;  %v10320_v56 = vshrl.u32 %v25919_v12, 16  ;;  %v10324_v29 = vshll.u32 %v25920_v54, 16  ;;  %v10328_v35 = vshrl.u32 %v25920_v54, 16 }
 0x242   : > { %v23709_v42 = vpop.f32.mrb[164].mxu1  ;;  %v6295_v48 = vpop.f32.mrb[165].mxu0  ;;  %24148 = vmatpush3.bf16.msra.mxu1 %v25914_v28  ;;  %24099 = vmatprep.mubr.bf16.mxu1 %v9860_v63  ;;  %v10313_v59 = vrot.slane %v10311_v3, 1  ;;  %v10318_v28 = vrot.slane %v10316_v16, 1  ;;  %v25929_v63 = vld [vmem:[%s31746_s2 + $0x10] sm:$0xff]  }
 0x243   : > { %v6346_v32 = vadd.f32 %v6295_v48, %v29062_v9  ;;  %v6620_v34 = vpop.f32.mrb[165].mxu1  ;;  %v23678_v57 = vpop.f32.mrb[166].mxu0  ;;  %24149 = vmatprep.subr.bf16.mxu1 %v25916_v31  ;;  %24100 = vmatmul.mubr.bf16.gmra.mrb[12].mxu1 %v9869_v17  ;;  %v10326_v49 = vrot.slane %v10324_v29, 1  ;;  %v25924_v48 = vld [vmem:[%s31746_s2 + $0x8] sm:$0xff]  }
 0x244   : > { %v23710_v19 = vpop.f32.mrb[166].mxu1  ;;  %v6298_v9 = vpop.f32.mrb[167].mxu0  ;;  %24118 = vmatpush3.bf16.msra.mxu0 %v25915_v61  ;;  %24119 = vmatprep.mubr.bf16.mxu0 %v20739_v21  ;;  %v10314_v8 = vor.u32 %v10313_v59, %v10309_v52  ;;  %v10322_v58 = vor.u32 %v10320_v56, %v10318_v28  ;;  %v25928_v21 = vld [vmem:[%s31746_s2 + $0x50] sm:$0xff]   ;;  %v25930_v52 = vld [vmem:[%s31746_s2 + $0x58] sm:$0xff]  }
 0x245   : > { %v29199_v4 = vadd.f32 %v6620_v34, %v6346_v32  ;;  %v6347_v46 = vadd.f32 %v6298_v9, %v29068_v7  ;;  %v6623_v37 = vpop.f32.mrb[167].mxu1  ;;  %v25921_v7 = vld [vmem:[%s31746_s2 + $0x40] sm:$0xff]   ;;  %v10330_v36 = vor.u32 %v10328_v35, %v10326_v49  ;;  %v10332_v19 = vshll.u32 %v25926_v26, 16 }
 0x246   : > { %24150 = vmatpush3.bf16.msra.mxu1 %v25916_v31  ;;  %24167 = vmatprep.subr.bf16.mxu0 %v25921_v7  ;;  %v10319_v38 = vsel %vm1026_vm1, %v10314_v8, %v10318_v28  ;;  %v10327_v32 = vsel %vm1026_vm1, %v10322_v58, %v10326_v49  ;;  %v25927_v31 = vld [vmem:[%s26321_s20 + $0x110] sm:$0xff]   ;;  %v10336_v9 = vshrl.u32 %v25926_v26, 16  ;;  %v20743_v28 = vcombine.low %v29085_v1, %v29120_v45  ;;  %v25934_v8 = vld [vmem:[%s26321_s20 + $0x120] sm:$0xff]  }
 0x247   : > { %v29212_v51 = vadd.f32 %v6623_v37, %v6347_v46  ;;  %24199 = vmatprep.subr.bf16.mxu1 %v25922_v11  ;;  %24151 = vmatprep.mubr.bf16.mxu1 %v10319_v38  ;;  %v10340_v13 = vshll.u32 %v25927_v31, 16  ;;  %v10334_v12 = vrot.slane %v10332_v19, 1 }
 0x249   : > { %v23681_v20 = vpop.f32.mrb[168].mxu0  ;;  %24120 = vmatmul.mubr.bf16.vlgmr.msra.gmra.mrb[16].mxu0 %v20740_v62  ;;  %v10342_v3 = vrot.slane %v10340_v13, 1  ;;  %v10335_v56 = vsel %vm1026_vm1, %v10330_v36, %v10334_v12  ;;  %v25940_v36 = vld [vmem:[%s26321_s20 + $0x128] sm:$0xff]  }
 0x24a   : > { %v23713_v39 = vpop.f32.mrb[168].mxu1  ;;  %v6311_v15 = vpop.f32.mrb[169].mxu0  ;;  %24168 = vmatpush3.bf16.msra.mxu0 %v25921_v7  ;;  %24123 = vmatprep.mubr.bf16.mxu0 %v20741_v23  ;;  %v10338_v7 = vor.u32 %v10336_v9, %v10334_v12  ;;  %v25933_v20 = vld [vmem:[%s26321_s20 + $0x118] sm:$0xff]   ;;  %v10368_v13 = vshrl.u32 %v25940_v36, 16 }
 0x24b   : > { %v6636_v42 = vpop.f32.mrb[169].mxu1  ;;  %v6350_v43 = vadd.f32 %v6311_v15, %v29098_v47  ;;  %v23682_v14 = vpop.f32.mrb[170].mxu0  ;;  %24152 = vmatmul.mubr.bf16.vlgmr.msra.gmra.mrb[16].mxu1 %v10327_v32  ;;  %24169 = vmatprep.subr.bf16.mxu0 %v25923_v53  ;;  %v10344_v39 = vshrl.u32 %v25927_v31, 16  ;;  %v10348_v1 = vshll.u32 %v25933_v20, 16  ;;  %v10352_v45 = vshrl.u32 %v25933_v20, 16  ;;  %v25937_v32 = vld [vmem:[%s31746_s2 + $0x68] sm:$0xff]  }
 0x24c   : > { %v23714_v34 = vpop.f32.mrb[170].mxu1  ;;  %v6314_v5 = vpop.f32.mrb[171].mxu0  ;;  %24200 = vmatpush3.bf16.msra.mxu1 %v25922_v11  ;;  %24155 = vmatprep.mubr.bf16.mxu1 %v10335_v56  ;;  %v10343_v58 = vsel %vm1026_vm1, %v10338_v7, %v10342_v3 }
 0x24d   : > { %v29234_v61 = vadd.f32 %v6636_v42, %v6350_v43  ;;  %v6351_v47 = vadd.f32 %v6314_v5, %v29105_v22  ;;  %v6639_v57 = vpop.f32.mrb[171].mxu1  ;;  %v20742_v22 = vcombine.low %v29079_v55, %v29082_v50  ;;  %24201 = vmatprep.subr.bf16.mxu1 %v25924_v48  ;;  %v25931_v50 = vld [vmem:[%s31746_s2 + $0x18] sm:$0xff]   ;;  %v10346_v15 = vor.u32 %v10344_v39, %v10342_v3  ;;  %v25935_v42 = vld [vmem:[%s31746_s2 + $0x60] sm:$0xff]   ;;  %v10609_v39 = vld [vmem:[#allocation2 + $0x8] sm:$0x80] }
 0x24e   : > { %24170 = vmatpush3.bf16.msra.mxu0 %v25923_v53  ;;  %v10356_v53 = vshll.u32 %v25934_v8, 16  ;;  %v10350_v14 = vrot.slane %v10348_v1, 1  ;;  %v29301_v3 = vrot.slane %v10802_v27, 7 }
 0x24f   : > { %v29239_v0 = vadd.f32 %v6639_v57, %v6351_v47  ;;  %24171 = vmatprep.subr.bf16.mxu0 %v25928_v21  ;;  %v20745_v57 = vcombine.low %v29136_v30, %v29172_v6 }
 0x250   : > { %24202 = vmatpush3.bf16.msra.mxu1 %v25924_v48  ;;  %v20744_v48 = vcombine.low %v29128_v60, %v29133_v2  ;;  %v10358_v34 = vrot.slane %v10356_v53, 1  ;;  %v10351_v26 = vsel %vm1026_vm1, %v10346_v15, %v10350_v14  ;;  %v10354_v60 = vor.u32 %v10352_v45, %v10350_v14  ;;  %v25938_v2 = vld [vmem:[%s31746_s2 + $0x28] sm:$0xff]   ;;  %v26221_v53 = vld [vmem:[#allocation2] sm:$0xff] }
 0x251   : > { %v23685_v46 = vpop.f32.mrb[172].mxu0  ;;  %24124 = vmatmul.mubr.bf16.gmra.mrb[20].mxu0 %v20742_v22  ;;  %24203 = vmatprep.subr.bf16.mxu1 %v25929_v63  ;;  %v10364_v22 = vshll.u32 %v25940_v36, 16  ;;  %v10798_v45 = vshrl.u32 %v10609_v39, 16  ;;  %v25948_v36 = vld [vmem:[%s31746_s2 + $0x88] sm:$0xff]  }
 0x252   : > { %v23717_v37 = vpop.f32.mrb[172].mxu1  ;;  %v6327_v17 = vpop.f32.mrb[173].mxu0  ;;  %24172 = vmatpush3.bf16.msra.mxu0 %v25928_v21  ;;  %24127 = vmatprep.mubr.bf16.mxu0 %v20743_v28  ;;  %v10359_v30 = vsel %vm1026_vm1, %v10354_v60, %v10358_v34  ;;  %v10360_v21 = vshrl.u32 %v25934_v8, 16 }
 0x253   : > { %v6652_v54 = vpop.f32.mrb[173].mxu1  ;;  %v6354_v55 = vadd.f32 %v6327_v17, %v29130_v44  ;;  %v23686_v16 = vpop.f32.mrb[174].mxu0  ;;  %24156 = vmatmul.mubr.bf16.gmra.mrb[20].mxu1 %v10343_v58  ;;  %24173 = vmatprep.subr.bf16.mxu0 %v25930_v52  ;;  %v10366_v12 = vrot.slane %v10364_v22, 1  ;;  %v25942_v17 = vld [vmem:[%s31746_s2 + $0x70] sm:$0xff]  }
 0x254   : > { %v23718_v62 = vpop.f32.mrb[174].mxu1  ;;  %v6330_v59 = vpop.f32.mrb[175].mxu0  ;;  %24204 = vmatpush3.bf16.msra.mxu1 %v25929_v63  ;;  %24159 = vmatprep.mubr.bf16.mxu1 %v10351_v26  ;;  %v25941_v63 = vld [vmem:[%s26321_s20 + $0x130] ss:$0 sps:$4 sm:$0x11]   ;;  %v10362_v37 = vor.u32 %v10360_v21, %v10358_v34  ;;  %v29337_v34 = vld [vmem:[#allocation2 + $0x28] sm:$0xff] }
 0x255   : > { %v29259_v29 = vadd.f32 %v6652_v54, %v6354_v55  ;;  %v6355_v44 = vadd.f32 %v6330_v59, %v29142_v40  ;;  %v6655_v11 = vpop.f32.mrb[175].mxu1  ;;  %v25936_v40 = vld [vmem:[%s31746_s2 + $0x20] sm:$0xff]   ;;  %24205 = vmatprep.subr.bf16.mxu1 %v25931_v50  ;;  %v10372_v54 = vshll.u32 %v25941_v63, 16  ;;  %v20746_v55 = vcombine.low %v29175_v25, %v29178_v33 }
 0x256   : > { %24174 = vmatpush3.bf16.msra.mxu0 %v25930_v52  ;;  %v10370_v16 = vor.u32 %v10368_v13, %v10366_v12  ;;  %v10807_v33 = vor.u32 %v10805_v41, %v29301_v3 }
 0x257   : > { %v29265_v49 = vadd.f32 %v6655_v11, %v6355_v44  ;;  %24175 = vmatprep.subr.bf16.mxu0 %v25935_v42  ;;  %v10374_v62 = vrot.slane %v10372_v54, 1  ;;  %v25944_v44 = vld [vmem:[%s31746_s2 + $0x78] sm:$0xff]  }
 0x258   : > { %24206 = vmatpush3.bf16.msra.mxu1 %v25931_v50  ;;  %v10367_v50 = vsel %vm1026_vm1, %v10362_v37, %v10366_v12  ;;  %v25949_v37 = vld [vmem:[%s31746_s2 + $0xc8] sm:$0xff]   ;;  %v10829_v12 = vshll.u32 %v29337_v34, 16 }
 0x259   : > { %v23737_v43 = vpop.f32.mrb[176].mxu0  ;;  %24128 = vmatmul.mubr.bf16.gmra.mrb[24].mxu0 %v20744_v48  ;;  %24207 = vmatprep.subr.bf16.mxu1 %v25936_v40  ;;  %v10375_v8 = vsel %vm1026_vm1, %v10370_v16, %v10374_v62  ;;  %v25946_v48 = vld [vmem:[%s31746_s2 + $0x80] sm:$0xff]  }
 0x25a   : > { %v23769_v23 = vpop.f32.mrb[176].mxu1  ;;  %v6797_v38 = vpop.f32.mrb[177].mxu0  ;;  %24176 = vmatpush3.bf16.msra.mxu0 %v25935_v42  ;;  %24131 = vmatprep.mubr.bf16.mxu0 %v20745_v57  ;;  %v29320_v42 = vld [vmem:[#allocation2 + $0x20] sm:$0xff]  ;;  %v10800_v43 = vrot.slane %v10798_v45, 7 }
 0x25b   : > { %v6860_v5 = vadd.f32 %v6797_v38, %v29167_v10  ;;  %v7110_v47 = vpop.f32.mrb[177].mxu1  ;;  %v23738_v35 = vpop.f32.mrb[178].mxu0  ;;  %24160 = vmatmul.mubr.bf16.gmra.mrb[24].mxu1 %v10359_v30  ;;  %24177 = vmatprep.subr.bf16.mxu0 %v25937_v32  ;;  %v10818_v14 = vshrl.u32 %v29320_v42, 16  ;;  %v29349_v30 = vld [vmem:[#allocation2 + $0x30] sm:$0xff]  ;;  %v25954_v45 = vld [vmem:[%s31746_s2 + $0xa0] sm:$0xff]  }
 0x25c   : > { %v23770_v31 = vpop.f32.mrb[178].mxu1  ;;  %v6800_v10 = vpop.f32.mrb[179].mxu0  ;;  %24208 = vmatpush3.bf16.msra.mxu1 %v25936_v40  ;;  %24163 = vmatprep.mubr.bf16.mxu1 %v10367_v50  ;;  %v10808_v23 = vsel %vm10796_vm2, %v10800_v43, %v10807_v33  ;;  %v10834_v13 = vshrl.u32 %v29349_v30, 16  ;;  %v10837_v50 = vshll.u32 %v29349_v30, 16  ;;  %v25955_v43 = vld [vmem:[%s31746_s2 + $0xe0] sm:$0xff]  }
 0x25d   : > { %v29286_v19 = vadd.f32 %v7110_v47, %v6860_v5  ;;  %v7113_v9 = vpop.f32.mrb[179].mxu1  ;;  %v6861_v6 = vadd.f32 %v6800_v10, %v29182_v24  ;;  %v25943_v24 = vld [vmem:[%s31746_s2 + $0x30] sm:$0xff]   ;;  %24209 = vmatprep.subr.bf16.mxu1 %v25938_v2  ;;  %v29334_v38 = vrot.slane %v10818_v14, 7  ;;  %v10826_v5 = vshrl.u32 %v29337_v34, 16 }
 0x25e   : > { %24178 = vmatpush3.bf16.msra.mxu0 %v25937_v32  ;;  %v10821_v32 = vshll.u32 %v29320_v42, 16 }
 0x25f   : > { %v29291_v46 = vadd.f32 %v7113_v9, %v6861_v6  ;;  %24179 = vmatprep.subr.bf16.mxu0 %v25942_v17  ;;  %v29359_v63 = vrot.slane %v10826_v5, 7 }
 0x260   : > { %24210 = vmatpush3.bf16.msra.mxu1 %v25938_v2  ;;  %v29344_v31 = vor.u32 %v10821_v32, %v29334_v38 }
 0x261   : > { %v23741_v52 = vpop.f32.mrb[180].mxu0  ;;  %24132 = vmatmul.mubr.bf16.gmra.mrb[28].mxu0 %v20746_v55  ;;  %24211 = vmatprep.subr.bf16.mxu1 %v25943_v24  ;;  %v25951_v55 = vld [vmem:[%s31746_s2 + $0xd0] sm:$0xff]  }
 0x262   : > { %v23773_v56 = vpop.f32.mrb[180].mxu1  ;;  %v6813_v7 = vpop.f32.mrb[181].mxu0  ;;  %24180 = vmatpush3.bf16.msra.mxu0 %v25942_v17  ;;  %24183 = vmatprep.mubr.bf16.mxu0 %v26221_v53  ;;  %v10824_v54 = vsel %vm10796_vm2, %v29301_v3, %v29344_v31  ;;  %v29378_v52 = vld [vmem:[#allocation2 + $0x40] sm:$0xff] }
 0x263   : > { %v6864_v59 = vadd.f32 %v6813_v7, %v29199_v4  ;;  %v7126_v28 = vpop.f32.mrb[181].mxu1  ;;  %v23742_v11 = vpop.f32.mrb[182].mxu0  ;;  %v25945_v4 = vld [vmem:[%s31746_s2 + $0x38] sm:$0xff]   ;;  %24164 = vmatmul.mubr.bf16.gmra.mrb[28].mxu1 %v10375_v8  ;;  %24181 = vmatprep.subr.bf16.mxu0 %v25944_v44 }
 0x264   : > { %v23774_v20 = vpop.f32.mrb[182].mxu1  ;;  %v6816_v25 = vpop.f32.mrb[183].mxu0  ;;  %24212 = vmatpush3.bf16.msra.mxu1 %v25943_v24  ;;  %24215 = vmatprep.mubr.bf16.mxu1 %v10808_v23  ;;  %v29376_v24 = vrot.slane %v10834_v13, 7  ;;  %v10850_v11 = vshrl.u32 %v29378_v52, 16  ;;  %v11049_v23 = vrot.slane %v10805_v41, 1 }
 0x265   : > { %v29314_v58 = vadd.f32 %v7126_v28, %v6864_v59  ;;  %v6865_v15 = vadd.f32 %v6816_v25, %v29212_v51  ;;  %v7129_v1 = vpop.f32.mrb[183].mxu1  ;;  %v25947_v51 = vld [vmem:[%s31746_s2 + $0xc0] sm:$0xff]   ;;  %24213 = vmatprep.subr.bf16.mxu1 %v25945_v4  ;;  %v25952_v28 = vld [vmem:[%s31746_s2 + $0x98] sm:$0xff]  }
 0x266   : > { %24182 = vmatpush3.bf16.msra.mxu0 %v25944_v44  ;;  %v10839_v20 = vor.u32 %v10837_v50, %v29376_v24 }
 0x267   : > { %v29322_v40 = vadd.f32 %v7129_v1, %v6865_v15  ;;  %24231 = vmatprep.subr.bf16.mxu0 %v25946_v48 }
 0x268   : > { %24214 = vmatpush3.bf16.msra.mxu1 %v25945_v4  ;;  %v25953_v4 = vld [vmem:[%s31746_s2 + $0xd8] sm:$0xff]  }
 0x269   : > { %v23745_v47 = vpop.f32.mrb[184].mxu0  ;;  %24184 = vmatmul.mubr.bf16.vlgmr.msra.gmra.mrb[32].mxu0 %v26221_v53  ;;  %24263 = vmatprep.subr.bf16.mxu1 %v25947_v51  ;;  %v29422_v53 = vrot.slane %v10850_v11, 7 }
 0x26a   : > { %v23777_v57 = vpop.f32.mrb[184].mxu1  ;;  %v6829_v26 = vpop.f32.mrb[185].mxu0  ;;  %24187 = vmatprep.mubr.bf16.mxu0 %v29320_v42  ;;  %24232 = vmatpush3.bf16.msra.mxu0 %v25946_v48  ;;  %v10853_v48 = vshll.u32 %v29378_v52, 16 }
 0x26b   : > { %v6868_v60 = vadd.f32 %v6829_v26, %v29234_v61  ;;  %v7142_v2 = vpop.f32.mrb[185].mxu1  ;;  %v23746_v35 = vpop.f32.mrb[186].mxu0  ;;  %v10816_v61 = vsel %vm10796_vm2, %v29301_v3, %v10807_v33  ;;  %24233 = vmatprep.subr.bf16.mxu0 %v25948_v36  ;;  %v29387_v3 = vor.u32 %v10829_v12, %v29359_v63  ;;  %v25956_v57 = vld [vmem:[%s31746_s2 + $0xa8] sm:$0xff]  }
 0x26c   : > { %v23778_v10 = vpop.f32.mrb[186].mxu1  ;;  %v6832_v9 = vpop.f32.mrb[187].mxu0  ;;  %24216 = vmatmul.mubr.bf16.vlgmr.msra.gmra.mrb[32].mxu1 %v10816_v61  ;;  %v11281_v35 = vld [vmem:[#allocation2 + $0x18] sm:$0x80] }
 0x26d   : > { %v29353_v6 = vadd.f32 %v7142_v2, %v6868_v60  ;;  %v6869_v21 = vadd.f32 %v6832_v9, %v29239_v0  ;;  %v7145_v22 = vpop.f32.mrb[187].mxu1  ;;  %v25950_v0 = vld [vmem:[%s31746_s2 + $0x90] sm:$0xff]   ;;  %24219 = vmatprep.mubr.bf16.mxu1 %v10824_v54  ;;  %24264 = vmatpush3.bf16.msra.mxu1 %v25947_v51  ;;  %v29407_v15 = vsel %vm10796_vm2, %v29334_v38, %v29387_v3  ;;  %v11308_v54 = vshrl.u32 %v11281_v35, 16 }
 0x26e   : > { %24265 = vmatprep.subr.bf16.mxu1 %v25949_v37  ;;  %24234 = vmatpush3.bf16.msra.mxu0 %v25948_v36  ;;  %v10855_v36 = vor.u32 %v10853_v48, %v29422_v53 }
 0x26f   : > { %v29366_v17 = vadd.f32 %v7145_v22, %v6869_v21  ;;  %24235 = vmatprep.subr.bf16.mxu0 %v25950_v0  ;;  %v29448_v22 = vsel %vm10796_vm2, %v29376_v24, %v29387_v3  ;;  %v11050_v24 = vor.u32 %v11049_v23, %v10802_v27 }
 0x271   : > { %v23749_v16 = vpop.f32.mrb[188].mxu0  ;;  %24266 = vmatpush3.bf16.msra.mxu1 %v25949_v37  ;;  %24188 = vmatmul.mubr.bf16.gmra.mrb[36].mxu0 %v29337_v34 }
 0x272   : > { %v23781_v56 = vpop.f32.mrb[188].mxu1  ;;  %v6845_v7 = vpop.f32.mrb[189].mxu0  ;;  %24267 = vmatprep.subr.bf16.mxu1 %v25951_v55  ;;  %24191 = vmatprep.mubr.bf16.mxu0 %v29349_v30  ;;  %v25959_v16 = vld [vmem:[%s31746_s2 + $0xf0] sm:$0xff]  }
 0x273   : > { %v6872_v62 = vadd.f32 %v6845_v7, %v29259_v29  ;;  %v7158_v59 = vpop.f32.mrb[189].mxu1  ;;  %v23750_v44 = vpop.f32.mrb[190].mxu0  ;;  %24236 = vmatpush3.bf16.msra.mxu0 %v25950_v0  ;;  %v25958_v0 = vld [vmem:[%s31746_s2 + $0xb0] sm:$0xff]  }
 0x274   : > { %v23782_v25 = vpop.f32.mrb[190].mxu1  ;;  %v6848_v33 = vpop.f32.mrb[191].mxu0  ;;  %24220 = vmatmul.mubr.bf16.gmra.mrb[36].mxu1 %v29407_v15  ;;  %24237 = vmatprep.subr.bf16.mxu0 %v25952_v28  ;;  %v11310_v44 = vrot.slane %v11308_v54, 7 }
 0x275   : > { %v29397_v39 = vadd.f32 %v7158_v59, %v6872_v62  ;;  %v6873_v29 = vadd.f32 %v6848_v33, %v29265_v49  ;;  %v7161_v8 = vpop.f32.mrb[191].mxu1  ;;  %v29415_v49 = vsel %vm10796_vm2, %v29359_v63, %v10839_v20  ;;  %24268 = vmatpush3.bf16.msra.mxu1 %v25951_v55  ;;  %v11055_v25 = vsel %vm1026_vm1, %v11050_v24, %v11049_v23 }
 0x276   : > { %24223 = vmatprep.mubr.bf16.mxu1 %v29415_v49  ;;  %24269 = vmatprep.subr.bf16.mxu1 %v25953_v4 }
 0x277   : > { %v29410_v1 = vadd.f32 %v7161_v8, %v6873_v29  ;;  %24238 = vmatpush3.bf16.msra.mxu0 %v25952_v28 }
 0x278   : > { %24239 = vmatprep.subr.bf16.mxu0 %v25954_v45 }
 0x279   : > { %v23801_v51 = vpop.f32.mrb[192].mxu0  ;;  %24270 = vmatpush3.bf16.msra.mxu1 %v25953_v4  ;;  %24192 = vmatmul.mubr.bf16.gmra.mrb[40].mxu0 %v29337_v34  ;;  %v11062_v4 = vrot.slane %v10821_v32, 1  ;;  %v25963_v32 = vld [vmem:[%s31746_s2 + $0x140] sm:$0xff]  }
 0x27a   : > { %v23833_v38 = vpop.f32.mrb[192].mxu1  ;;  %v7435_v47 = vpop.f32.mrb[193].mxu0  ;;  %24271 = vmatprep.subr.bf16.mxu1 %v25955_v43  ;;  %24195 = vmatprep.mubr.bf16.mxu0 %v29378_v52  ;;  %v25962_v51 = vld [vmem:[%s31746_s2 + $0x100] sm:$0xff]  }
 0x27b   : > { %v7498_v26 = vadd.f32 %v7435_v47, %v29286_v19  ;;  %v7628_v60 = vpop.f32.mrb[193].mxu1  ;;  %v23802_v2 = vpop.f32.mrb[194].mxu0  ;;  %v25957_v19 = vld [vmem:[%s31746_s2 + $0xe8] sm:$0xff]   ;;  %24240 = vmatpush3.bf16.msra.mxu0 %v25954_v45  ;;  %v29484_v45 = vsel %vm10796_vm2, %v29422_v53, %v29387_v3  ;;  %v11066_v23 = vor.u32 %v11062_v4, %v10818_v14  ;;  %v29501_v38 = vrot.slane %v10829_v12, 1 }
 0x27c   : > { %v23834_v10 = vpop.f32.mrb[194].mxu1  ;;  %v7438_v41 = vpop.f32.mrb[195].mxu0  ;;  %24224 = vmatmul.mubr.bf16.gmra.mrb[40].mxu1 %v29448_v22  ;;  %24241 = vmatprep.subr.bf16.mxu0 %v25956_v57  ;;  %v11063_v14 = vsel %vm1026_vm1, %v11050_v24, %v11062_v4  ;;  %v25967_v24 = vld [vmem:[%s31746_s2 + $0x150] sm:$0xff]  }
 0x27d   : > { %v29438_v9 = vadd.f32 %v7628_v60, %v7498_v26  ;;  %v7499_v61 = vadd.f32 %v7438_v41, %v29291_v46  ;;  %v7631_v21 = vpop.f32.mrb[195].mxu1  ;;  %v29456_v46 = vsel %vm10796_vm2, %v29359_v63, %v10855_v36  ;;  %24272 = vmatpush3.bf16.msra.mxu1 %v25955_v43  ;;  %v29532_v54 = vor.u32 %v29501_v38, %v10826_v5  ;;  %v25968_v5 = vld [vmem:[%s31746_s2 + $0x118] sm:$0xff]  }
 0x27e   : > { %24227 = vmatprep.mubr.bf16.mxu1 %v29456_v46  ;;  %24273 = vmatprep.subr.bf16.mxu1 %v25957_v19 }
 0x27f   : > { %v29451_v37 = vadd.f32 %v7631_v21, %v7499_v61  ;;  %24242 = vmatpush3.bf16.msra.mxu0 %v25956_v57  ;;  %v25964_v57 = vld [vmem:[%s31746_s2 + $0x108] sm:$0xff]   ;;  %v29513_v61 = vsel %vm1026_vm1, %v11066_v23, %v29501_v38  ;;  %v11078_v21 = vrot.slane %v10837_v50, 1 }
 0x280   : > { %24243 = vmatprep.subr.bf16.mxu0 %v25958_v0 }
 0x281   : > { %v23805_v55 = vpop.f32.mrb[196].mxu0  ;;  %24274 = vmatpush3.bf16.msra.mxu1 %v25957_v19  ;;  %24196 = vmatmul.mubr.bf16.gmra.mrb[44].mxu0 %v29337_v34 }
 0x282   : > { %v23837_v56 = vpop.f32.mrb[196].mxu1  ;;  %v7451_v7 = vpop.f32.mrb[197].mxu0  ;;  %24275 = vmatprep.subr.bf16.mxu1 %v25959_v16  ;;  %24247 = vmatprep.mubr.bf16.mxu0 %v11055_v25 }
 0x283   : > { %v7502_v62 = vadd.f32 %v7451_v7, %v29314_v58  ;;  %v7644_v59 = vpop.f32.mrb[197].mxu1  ;;  %v23806_v28 = vpop.f32.mrb[198].mxu0  ;;  %v25961_v58 = vld [vmem:[%s31746_s2 + $0xf8] sm:$0xff]   ;;  %24244 = vmatpush3.bf16.msra.mxu0 %v25958_v0  ;;  %v29527_v0 = vld [vmem:[#allocation2 + $0x50] sm:$0xff] }
 0x284   : > { %v23838_v27 = vpop.f32.mrb[198].mxu1  ;;  %v7454_v20 = vpop.f32.mrb[199].mxu0  ;;  %24228 = vmatmul.mubr.bf16.gmra.mrb[44].mxu1 %v29484_v45  ;;  %24245 = vmatprep.subr.bf16.mxu0 %v25960_v18 }
 0x285   : > { %v29472_v33 = vadd.f32 %v7644_v59, %v7502_v62  ;;  %v7503_v29 = vadd.f32 %v7454_v20, %v29322_v40  ;;  %v7647_v8 = vpop.f32.mrb[199].mxu1  ;;  %v11318_v40 = vsel %vm10796_vm2, %v11310_v44, %v29344_v31  ;;  %24276 = vmatpush3.bf16.msra.mxu1 %v25959_v16  ;;  %v11360_v62 = vshrl.u32 %v29527_v0, 16 }
 0x286   : > { %24279 = vmatprep.mubr.bf16.mxu1 %v11318_v40  ;;  %24277 = vmatprep.subr.bf16.mxu1 %v25961_v58  ;;  %v11094_v20 = vrot.slane %v10853_v48, 1 }
 0x287   : > { %v29486_v43 = vadd.f32 %v7647_v8, %v7503_v29  ;;  %24246 = vmatpush3.bf16.msra.mxu0 %v25960_v18  ;;  %v29571_v48 = vrot.slane %v11360_v62, 7  ;;  %v25971_v8 = vld [vmem:[%s31746_s2 + $0x160] sm:$0xff]  }
 0x288   : > { %24295 = vmatprep.subr.bf16.mxu0 %v25962_v51 }
 0x289   : > { %v23809_v53 = vpop.f32.mrb[200].mxu0  ;;  %24278 = vmatpush3.bf16.msra.mxu1 %v25961_v58  ;;  %v11363_v58 = vshll.u32 %v29527_v0, 16 }
 0x28a   : > { %v23841_v31 = vpop.f32.mrb[200].mxu1  ;;  %v7467_v47 = vpop.f32.mrb[201].mxu0  ;;  %24248 = vmatmul.mubr.bf16.vlgmr.msra.gmra.mrb[48].mxu0 %v11063_v14  ;;  %24327 = vmatprep.subr.bf16.mxu1 %v25963_v32 }
 0x28b   : > { %v7506_v26 = vadd.f32 %v7467_v47, %v29353_v6  ;;  %v7660_v60 = vpop.f32.mrb[201].mxu1  ;;  %v23810_v2 = vpop.f32.mrb[202].mxu0  ;;  %v25965_v6 = vld [vmem:[%s31746_s2 + $0x148] sm:$0xff]   ;;  %24251 = vmatprep.mubr.bf16.mxu0 %v29513_v61  ;;  %24296 = vmatpush3.bf16.msra.mxu0 %v25962_v51  ;;  %v29586_v31 = vor.u32 %v11363_v58, %v29571_v48 }
 0x28c   : > { %v23842_v35 = vpop.f32.mrb[202].mxu1  ;;  %v7470_v36 = vpop.f32.mrb[203].mxu0  ;;  %24280 = vmatmul.mubr.bf16.vlgmr.msra.gmra.mrb[48].mxu1 %v29407_v15  ;;  %24297 = vmatprep.subr.bf16.mxu0 %v25964_v57  ;;  %v11082_v15 = vor.u32 %v11078_v21, %v10834_v13  ;;  %v29547_v13 = vsel %vm1026_vm1, %v29532_v54, %v11078_v21  ;;  %v25972_v47 = vld [vmem:[%s31746_s2 + $0x128] sm:$0xff]  }
 0x28d   : > { %v29508_v10 = vadd.f32 %v7660_v60, %v7506_v26  ;;  %v7507_v12 = vadd.f32 %v7470_v36, %v29366_v17  ;;  %v7663_v41 = vpop.f32.mrb[203].mxu1  ;;  %v25966_v17 = vld [vmem:[%s31746_s2 + $0x110] sm:$0xff]   ;;  %24283 = vmatprep.mubr.bf16.mxu1 %v29415_v49  ;;  %24328 = vmatpush3.bf16.msra.mxu1 %v25963_v32  ;;  %v29593_v26 = vsel %vm1026_vm1, %v29532_v54, %v11094_v20 }
 0x28e   : > { %24329 = vmatprep.subr.bf16.mxu1 %v25965_v6  ;;  %v29560_v25 = vsel %vm1026_vm1, %v11082_v15, %v29501_v38  ;;  %v11026_v32 = vld [vmem:[#allocation2 + $0x50] sm:$0x1] }
 0x28f   : > { %v29521_v19 = vadd.f32 %v7663_v41, %v7507_v12  ;;  %24298 = vmatpush3.bf16.msra.mxu0 %v25964_v57  ;;  %v11108_v36 = vshll.u32 %v11026_v32, 16  ;;  %v25973_v12 = vld [vmem:[%s31746_s2 + $0x168] sm:$0xff]  }
 0x290   : > { %24299 = vmatprep.subr.bf16.mxu0 %v25966_v17 }
 0x291   : > { %v23813_v50 = vpop.f32.mrb[204].mxu0  ;;  %24330 = vmatpush3.bf16.msra.mxu1 %v25965_v6  ;;  %v25974_v6 = vld [vmem:[%s31746_s2 + $0x130] sm:$0xff]  }
 0x292   : > { %v23845_v55 = vpop.f32.mrb[204].mxu1  ;;  %v7483_v16 = vpop.f32.mrb[205].mxu0  ;;  %24252 = vmatmul.mubr.bf16.gmra.mrb[52].mxu0 %v29547_v13  ;;  %24331 = vmatprep.subr.bf16.mxu1 %v25967_v24  ;;  %v11110_v50 = vrot.slane %v11108_v36, 1 }
 0x293   : > { %v7510_v56 = vadd.f32 %v7483_v16, %v29397_v39  ;;  %v7676_v7 = vpop.f32.mrb[205].mxu1  ;;  %v23814_v49 = vpop.f32.mrb[206].mxu0  ;;  %v25969_v39 = vld [vmem:[%s31746_s2 + $0x158] sm:$0xff]   ;;  %24255 = vmatprep.mubr.bf16.mxu0 %v29560_v25  ;;  %24300 = vmatpush3.bf16.msra.mxu0 %v25966_v17 }
 0x294   : > { %v23846_v59 = vpop.f32.mrb[206].mxu1  ;;  %v7486_v28 = vpop.f32.mrb[207].mxu0  ;;  %24284 = vmatmul.mubr.bf16.gmra.mrb[52].mxu1 %v29448_v22  ;;  %24301 = vmatprep.subr.bf16.mxu0 %v25968_v5  ;;  %v11098_v22 = vor.u32 %v11094_v20, %v10850_v11 }
 0x295   : > { %v29549_v44 = vadd.f32 %v7676_v7, %v7510_v56  ;;  %v7511_v18 = vadd.f32 %v7486_v28, %v29410_v1  ;;  %v7679_v27 = vpop.f32.mrb[207].mxu1  ;;  %v25970_v1 = vld [vmem:[%s31746_s2 + $0x120] sm:$0xff]   ;;  %24287 = vmatprep.mubr.bf16.mxu1 %v29456_v46  ;;  %24332 = vmatpush3.bf16.msra.mxu1 %v25967_v24 }
 0x296   : > { %24333 = vmatprep.subr.bf16.mxu1 %v25969_v39  ;;  %v29607_v14 = vsel %vm1026_vm1, %v11098_v22, %v29501_v38 }
 0x297   : > { %v29563_v29 = vadd.f32 %v7679_v27, %v7511_v18  ;;  %24302 = vmatpush3.bf16.msra.mxu0 %v25968_v5  ;;  %v25976_v5 = vld [vmem:[%s31746_s2 + $0x138] sm:$0xff]  }
 0x298   : > { %24303 = vmatprep.subr.bf16.mxu0 %v25970_v1 }
 0x299   : > { %v23865_v4 = vpop.f32.mrb[208].mxu0  ;;  %24334 = vmatpush3.bf16.msra.mxu1 %v25969_v39  ;;  %v11111_v39 = vsel %vm1026_vm1, %v29532_v54, %v11110_v50 }
 0x29a   : > { %v23897_v40 = vpop.f32.mrb[208].mxu1  ;;  %v7941_v51 = vpop.f32.mrb[209].mxu0  ;;  %24256 = vmatmul.mubr.bf16.gmra.mrb[56].mxu0 %v29593_v26  ;;  %24335 = vmatprep.subr.bf16.mxu1 %v25971_v8 }
 0x29b   : > { %v8004_v53 = vadd.f32 %v7941_v51, %v29438_v9  ;;  %v29581_v23 = vpop.f32.mrb[209].mxu1  ;;  %v23866_v46 = vpop.f32.mrb[210].mxu0  ;;  %v29598_v9 = vld [vmem:[%s31747_s3] ss:$0 sm:$0xff]  ;;  %24259 = vmatprep.mubr.bf16.mxu0 %v29607_v14  ;;  %24304 = vmatpush3.bf16.msra.mxu0 %v25970_v1  ;;  %v29645_v1 = vsel %vm10796_vm2, %v29571_v48, %v29387_v3 }
 0x29c   : > { %v23898_v11 = vpop.f32.mrb[210].mxu1  ;;  %v7944_v57 = vpop.f32.mrb[211].mxu0  ;;  %24288 = vmatmul.mubr.bf16.gmra.mrb[56].mxu1 %v29484_v45  ;;  %24305 = vmatprep.subr.bf16.mxu0 %v25972_v47  ;;  %v25975_v45 = vld [vmem:[%s31746_s2 + $0x170] sm:$0xff]   ;;  %v25979_v48 = vld [vmem:[%s31746_s2 + $0x1c0] sm:$0xff]  }
 0x29d   : > { %v8020_v60 = vadd.f32 %v29598_v9, %v8004_v53  ;;  %v8005_v2 = vadd.f32 %v7944_v57, %v29451_v37  ;;  %v29602_v35 = vpop.f32.mrb[211].mxu1  ;;  %v29618_v37 = vsel %vm10796_vm2, %v29359_v63, %v29586_v31  ;;  %24336 = vmatpush3.bf16.msra.mxu1 %v25971_v8 }
 0x29e   : > { %24291 = vmatprep.mubr.bf16.mxu1 %v29618_v37  ;;  %24337 = vmatprep.subr.bf16.mxu1 %v25973_v12 }
 0x29f   : > { %v8021_v41 = vadd.f32 %v29598_v9, %v8005_v2  ;;  %v8036_v21 = vmax.f32 %v8020_v60, 0.0  ;;  %24306 = vmatpush3.bf16.msra.mxu0 %v25972_v47 }
 0x2a0   : > { %24307 = vmatprep.subr.bf16.mxu0 %v25974_v6 }
 0x2a1   : > { %v8037_v17 = vmax.f32 %v8021_v41, 0.0  ;;  %v23869_v24 = vpop.f32.mrb[212].mxu0  ;;  %24338 = vmatpush3.bf16.msra.mxu1 %v25973_v12 }
 0x2a2   : > { %v23901_v15 = vpop.f32.mrb[212].mxu1  ;;  %v7957_v55 = vpop.f32.mrb[213].mxu0  ;;  %24260 = vmatmul.mubr.bf16.gmra.mrb[60].mxu0 %v11111_v39  ;;  %24339 = vmatprep.subr.bf16.mxu1 %v25975_v45  ;;  %v11798_v39 = vrot.slane %v11363_v58, 1 }
 0x2a3   : > { %v8068_v16 = vpack.c.bf16 %v8037_v17, %v8036_v21  ;;  %v8008_v56 = vadd.f32 %v7957_v55, %v29472_v33  ;;  %v29628_v7 = vpop.f32.mrb[213].mxu1  ;;  %v23870_v49 = vpop.f32.mrb[214].mxu0  ;;  %v25977_v33 = vld [vmem:[%s31746_s2 + $0x178] sm:$0xff]   ;;  %24308 = vmatpush3.bf16.msra.mxu0 %v25974_v6  ;;  %24311 = vmatprep.mubr.bf16.mxu0 %v29320_v42  ;;  %v25983_v21 = vld [vmem:[%s31746_s2 + $0x1d0] sm:$0xff]  }
 0x2a4   : > { %v23902_v59 = vpop.f32.mrb[214].mxu1  ;;  %v7960_v28 = vpop.f32.mrb[215].mxu0  ;;  %24292 = vmatmul.mubr.bf16.gmra.mrb[60].mxu1 %v29645_v1  ;;  %24309 = vmatprep.subr.bf16.mxu0 %v25976_v5 }
 0x2a5   : > { %8076 = vst [vmem:[#allocation2 + $0xa0] sm:$0xff] %v8068_v16  ;;  %v8024_v18 = vadd.f32 %v29598_v9, %v8008_v56  ;;  %v8009_v27 = vadd.f32 %v7960_v28, %v29486_v43  ;;  %v29640_v20 = vpop.f32.mrb[215].mxu1  ;;  %v25978_v43 = vld [vmem:[%s31746_s2 + $0x180] sm:$0xff]   ;;  %24340 = vmatpush3.bf16.msra.mxu1 %v25975_v45  ;;  %24343 = vmatprep.mubr.bf16.mxu1 %v29513_v61  ;;  %v25980_v61 = vld [vmem:[%s31746_s2 + $0x188] sm:$0xff]   ;;  %v29695_v59 = vld [vmem:[#allocation2 + $0x30] sm:$0xff] }
 0x2a6   : > { %24341 = vmatprep.subr.bf16.mxu1 %v25977_v33  ;;  %v12016_v58 = vshrl.u32 %v29695_v59, 16 }
 0x2a7   : > { %v8025_v8 = vadd.f32 %v29598_v9, %v8009_v27  ;;  %v8040_v4 = vmax.f32 %v8024_v18, 0.0  ;;  %24310 = vmatpush3.bf16.msra.mxu0 %v25976_v5  ;;  %v25985_v5 = vld [vmem:[%s31746_s2 + $0x1d8] sm:$0xff]   ;;  %v25986_v18 = vld [vmem:[%s31746_s2 + $0x1a0] sm:$0xff]  }
 0x2a8   : > { %24359 = vmatprep.subr.bf16.mxu0 %v25978_v43 }
 0x2a9   : > { %v8041_v22 = vmax.f32 %v8025_v8, 0.0  ;;  %v23873_v40 = vpop.f32.mrb[216].mxu0  ;;  %24342 = vmatpush3.bf16.msra.mxu1 %v25977_v33 }
 0x2aa   : > { %v23905_v42 = vpop.f32.mrb[216].mxu1  ;;  %v7973_v51 = vpop.f32.mrb[217].mxu0  ;;  %24312 = vmatmul.mubr.bf16.vlgmr.msra.gmra.mrb[64].mxu0 %v29337_v34  ;;  %24391 = vmatprep.subr.bf16.mxu1 %v25979_v48  ;;  %v25988_v40 = vld [vmem:[%s31746_s2 + $0x1a8] sm:$0xff]  }
 0x2ab   : > { %v8070_v32 = vpack.c.bf16 %v8041_v22, %v8040_v4  ;;  %v8012_v53 = vadd.f32 %v7973_v51, %v29508_v10  ;;  %v29658_v46 = vpop.f32.mrb[217].mxu1  ;;  %v23874_v47 = vpop.f32.mrb[218].mxu0  ;;  %v25981_v10 = vld [vmem:[%s31746_s2 + $0x1c8] sm:$0xff]   ;;  %24315 = vmatprep.mubr.bf16.mxu0 %v29349_v30  ;;  %24360 = vmatpush3.bf16.msra.mxu0 %v25978_v43 }
 0x2ac   : > { %v23906_v11 = vpop.f32.mrb[218].mxu1  ;;  %v7976_v57 = vpop.f32.mrb[219].mxu0  ;;  %24344 = vmatmul.mubr.bf16.vlgmr.msra.gmra.mrb[64].mxu1 %v29547_v13  ;;  %24361 = vmatprep.subr.bf16.mxu0 %v25980_v61 }
 0x2ad   : > { %8078 = vst [vmem:[#allocation2 + $0xb0] sm:$0xff] %v8070_v32  ;;  %v8028_v60 = vadd.f32 %v29598_v9, %v8012_v53  ;;  %v8013_v2 = vadd.f32 %v7976_v57, %v29521_v19  ;;  %v29665_v36 = vpop.f32.mrb[219].mxu1  ;;  %v25982_v19 = vld [vmem:[%s31746_s2 + $0x190] sm:$0xff]   ;;  %24347 = vmatprep.mubr.bf16.mxu1 %v29560_v25  ;;  %24392 = vmatpush3.bf16.msra.mxu1 %v25979_v48  ;;  %v25984_v25 = vld [vmem:[%s31746_s2 + $0x198] sm:$0xff]   ;;  %v11730_v48 = vld [vmem:[#allocation2 + $0x60] sm:$0x1] }
 0x2ae   : > { %24393 = vmatprep.subr.bf16.mxu1 %v25981_v10  ;;  %v11812_v11 = vshll.u32 %v11730_v48, 16  ;;  %v29727_v57 = vrot.slane %v12016_v58, 7  ;;  %v25996_v48 = vld [vmem:[%s31746_s2 + $0x208] sm:$0xff]  }
 0x2af   : > { %v8029_v12 = vadd.f32 %v29598_v9, %v8013_v2  ;;  %v8044_v41 = vmax.f32 %v8028_v60, 0.0  ;;  %24362 = vmatpush3.bf16.msra.mxu0 %v25980_v61  ;;  %v29719_v61 = vld [vmem:[#allocation2 + $0x28] sm:$0xff]  ;;  %v29729_v60 = vld [vmem:[#allocation2 + $0x40] sm:$0xff] }
 0x2b0   : > { %24363 = vmatprep.subr.bf16.mxu0 %v25982_v19 }
 0x2b1   : > { %v8045_v6 = vmax.f32 %v8029_v12, 0.0  ;;  %v23877_v30 = vpop.f32.mrb[220].mxu0  ;;  %24394 = vmatpush3.bf16.msra.mxu1 %v25981_v10  ;;  %v25990_v12 = vld [vmem:[%s31746_s2 + $0x1b0] sm:$0xff]  }
 0x2b2   : > { %v23909_v17 = vpop.f32.mrb[220].mxu1  ;;  %v7989_v50 = vpop.f32.mrb[221].mxu0  ;;  %24316 = vmatmul.mubr.bf16.gmra.mrb[68].mxu0 %v29337_v34  ;;  %24395 = vmatprep.subr.bf16.mxu1 %v25983_v21  ;;  %v25987_v34 = vld [vmem:[%s31746_s2 + $0x1e0] sm:$0xff]   ;;  %v12032_v30 = vshrl.u32 %v29729_v60, 16 }
 0x2b3   : > { %v8072_v13 = vpack.c.bf16 %v8045_v6, %v8044_v41  ;;  %v8016_v24 = vadd.f32 %v7989_v50, %v29549_v44  ;;  %v29682_v45 = vpop.f32.mrb[221].mxu1  ;;  %v23878_v15 = vpop.f32.mrb[222].mxu0  ;;  %24319 = vmatprep.mubr.bf16.mxu0 %v29378_v52  ;;  %24364 = vmatpush3.bf16.msra.mxu0 %v25982_v19  ;;  %v12019_v19 = vshll.u32 %v29695_v59, 16  ;;  %v25991_v41 = vld [vmem:[%s31746_s2 + $0x1f0] sm:$0xff]  }
 0x2b4   : > { %v23910_v55 = vpop.f32.mrb[222].mxu1  ;;  %v7992_v16 = vpop.f32.mrb[223].mxu0  ;;  %24348 = vmatmul.mubr.bf16.gmra.mrb[68].mxu1 %v29593_v26  ;;  %24365 = vmatprep.subr.bf16.mxu0 %v25984_v25 }
 0x2b5   : > { %8080 = vst [vmem:[#allocation2 + $0xc0] sm:$0xff] %v8072_v13  ;;  %v8032_v56 = vadd.f32 %v29598_v9, %v8016_v24  ;;  %v8017_v44 = vadd.f32 %v7992_v16, %v29563_v29  ;;  %v29692_v49 = vpop.f32.mrb[223].mxu1  ;;  %v11985_v29 = vld [vmem:[#allocation2 + $0x28] sm:$0x80]  ;;  %24351 = vmatprep.mubr.bf16.mxu1 %v29607_v14  ;;  %24396 = vmatpush3.bf16.msra.mxu1 %v25983_v21  ;;  %v11814_v24 = vrot.slane %v11812_v11, 1  ;;  %v25992_v16 = vld [vmem:[%s31746_s2 + $0x1b8] sm:$0xff]  }
 0x2b6   : > { %24397 = vmatprep.subr.bf16.mxu1 %v25985_v5  ;;  %v11802_v14 = vor.u32 %v11798_v39, %v11360_v62  ;;  %v12012_v47 = vshrl.u32 %v11985_v29, 16  ;;  %v25989_v62 = vld [vmem:[%s31746_s2 + $0x1e8] sm:$0xff]   ;;  %v12021_v17 = vor.u32 %v12019_v19, %v29727_v57 }
 0x2b7   : > { %v8033_v28 = vadd.f32 %v29598_v9, %v8017_v44  ;;  %v8048_v52 = vmax.f32 %v8032_v56, 0.0  ;;  %24366 = vmatpush3.bf16.msra.mxu0 %v25984_v25  ;;  %v11815_v29 = vsel %vm1026_vm1, %v29532_v54, %v11814_v24 }
 0x2b8   : > { %24367 = vmatprep.subr.bf16.mxu0 %v25986_v18  ;;  %v11807_v10 = vsel %vm1026_vm1, %v11802_v14, %v29501_v38  ;;  %v12014_v6 = vrot.slane %v12012_v47, 7 }
 0x2b9   : > { %v8049_v9 = vmax.f32 %v8033_v28, 0.0  ;;  %v23929_v33 = vpop.f32.mrb[224].mxu0  ;;  %24398 = vmatpush3.bf16.msra.mxu1 %v25985_v5 }
 0x2ba   : > { %v23961_v27 = vpop.f32.mrb[224].mxu1  ;;  %v8507_v8 = vpop.f32.mrb[225].mxu0  ;;  %24320 = vmatmul.mubr.bf16.gmra.mrb[72].mxu0 %v29719_v61  ;;  %24399 = vmatprep.subr.bf16.mxu1 %v25987_v34  ;;  %v25995_v33 = vld [vmem:[%s31746_s2 + $0x40] sm:$0xff]  }
 0x2bb   : > { %v8074_v43 = vpack.c.bf16 %v8049_v9, %v8048_v52  ;;  %v8508_v26 = vadd.f32 %v8507_v8, %v29581_v23  ;;  %v8804_v4 = vpop.f32.mrb[225].mxu1  ;;  %v23930_v22 = vpop.f32.mrb[226].mxu0  ;;  %24323 = vmatprep.mubr.bf16.mxu0 %v29527_v0  ;;  %24368 = vmatpush3.bf16.msra.mxu0 %v25986_v18  ;;  %v25993_v18 = vld [vmem:[%s31746_s2 + $0x1f8] sm:$0xff]   ;;  %v12035_v9 = vshll.u32 %v29729_v60, 16 }
 0x2bc   : > { %v23962_v42 = vpop.f32.mrb[226].mxu1  ;;  %v8510_v51 = vpop.f32.mrb[227].mxu0  ;;  %24369 = vmatprep.subr.bf16.mxu0 %v25988_v40 }
 0x2bd   : > { %8082 = vst [vmem:[#allocation2 + $0xd0] sm:$0xff] %v8074_v43  ;;  %v29716_v32 = vadd.f32 %v8804_v4, %v8508_v26  ;;  %v8511_v53 = vadd.f32 %v8510_v51, %v29602_v35  ;;  %v8807_v23 = vpop.f32.mrb[227].mxu1  ;;  %v11799_v35 = vsel %vm1026_vm1, %v29532_v54, %v11798_v39  ;;  %24400 = vmatpush3.bf16.msra.mxu1 %v25987_v34  ;;  %v12034_v34 = vrot.slane %v12032_v30, 7 }
 0x2be   : > { %24352 = vmatmul.mubr.bf16.gmra.mrb[72].mxu1 %v11799_v35  ;;  %24401 = vmatprep.subr.bf16.mxu1 %v25989_v62  ;;  %v12030_v51 = vsel %vm10796_vm2, %v29727_v57, %v29387_v3  ;;  %v29794_v57 = vld [vmem:[#allocation2 + $0x60] sm:$0xff]  ;;  %v25999_v35 = vld [vmem:[%s31746_s2 + $0x50] sm:$0xff]  }
 0x2bf   : > { %v29734_v2 = vadd.f32 %v8807_v23, %v8511_v53  ;;  %24355 = vmatprep.mubr.bf16.mxu1 %v11807_v10  ;;  %24370 = vmatpush3.bf16.msra.mxu0 %v25988_v40  ;;  %v12037_v8 = vor.u32 %v12035_v9, %v12034_v34 }
 0x2c0   : > { %24371 = vmatprep.subr.bf16.mxu0 %v25990_v12 }
 0x2c1   : > { %v23933_v21 = vpop.f32.mrb[228].mxu0  ;;  %24402 = vmatpush3.bf16.msra.mxu1 %v25989_v62  ;;  %v25997_v62 = vld [vmem:[%s31746_s2 + $0x48] sm:$0xff]  }
 0x2c2   : > { %v23965_v50 = vpop.f32.mrb[228].mxu1  ;;  %v8523_v13 = vpop.f32.mrb[229].mxu0  ;;  %24324 = vmatmul.mubr.bf16.gmra.mrb[76].mxu0 %v29719_v61  ;;  %24403 = vmatprep.subr.bf16.mxu1 %v25991_v41  ;;  %v12064_v21 = vshrl.u32 %v29794_v57, 16 }
 0x2c3   : > { %v8524_v15 = vadd.f32 %v8523_v13, %v29628_v7  ;;  %v8820_v25 = vpop.f32.mrb[229].mxu1  ;;  %v23934_v55 = vpop.f32.mrb[230].mxu0  ;;  %v12022_v7 = vsel %vm10796_vm2, %v12014_v6, %v12021_v17  ;;  %24372 = vmatpush3.bf16.msra.mxu0 %v25990_v12  ;;  %v26000_v6 = vld [vmem:[%s31746_s2 + $0x218] sm:$0xff]  }
 0x2c4   : > { %v23966_v56 = vpop.f32.mrb[230].mxu1  ;;  %v8526_v5 = vpop.f32.mrb[231].mxu0  ;;  %24375 = vmatprep.mubr.bf16.mxu0 %v12022_v7  ;;  %24373 = vmatprep.subr.bf16.mxu0 %v25992_v16 }
 0x2c5   : > { %v29753_v44 = vadd.f32 %v8820_v25, %v8524_v15  ;;  %v8527_v28 = vadd.f32 %v8526_v5, %v29640_v20  ;;  %v8823_v39 = vpop.f32.mrb[231].mxu1  ;;  %v25994_v20 = vld [vmem:[%s31746_s2 + $0x200] sm:$0xff]   ;;  %24404 = vmatpush3.bf16.msra.mxu1 %v25991_v41  ;;  %v12046_v25 = vsel %vm10796_vm2, %v12034_v34, %v29387_v3  ;;  %v29819_v5 = vrot.slane %v12064_v21, 7 }
 0x2c6   : > { %24356 = vmatmul.mubr.bf16.gmra.mrb[76].mxu1 %v11815_v29  ;;  %24405 = vmatprep.subr.bf16.mxu1 %v25993_v18 }
 0x2c7   : > { %v29765_v52 = vadd.f32 %v8823_v39, %v8527_v28  ;;  %24407 = vmatprep.mubr.bf16.mxu1 %v29695_v59  ;;  %24374 = vmatpush3.bf16.msra.mxu0 %v25992_v16  ;;  %v12067_v39 = vshll.u32 %v29794_v57, 16  ;;  %v29879_v59 = vsel %vm10796_vm2, %v29819_v5, %v29387_v3 }
 0x2c8   : > { %24423 = vmatprep.subr.bf16.mxu0 %v25994_v20 }
 0x2c9   : > { %v23937_v27 = vpop.f32.mrb[232].mxu0  ;;  %24406 = vmatpush3.bf16.msra.mxu1 %v25993_v18  ;;  %v29836_v7 = vor.u32 %v12067_v39, %v29819_v5 }
 0x2ca   : > { %v23969_v43 = vpop.f32.mrb[232].mxu1  ;;  %v8539_v26 = vpop.f32.mrb[233].mxu0  ;;  %24376 = vmatmul.mubr.bf16.vlgmr.msra.gmra.mrb[80].mxu0 %v12030_v51  ;;  %24455 = vmatprep.subr.bf16.mxu1 %v25995_v33  ;;  %v26005_v27 = vld [vmem:[%s31746_s2 + $0x68] sm:$0xff]  }
 0x2cb   : > { %v8540_v4 = vadd.f32 %v8539_v26, %v29658_v46  ;;  %v8836_v22 = vpop.f32.mrb[233].mxu1  ;;  %v23938_v14 = vpop.f32.mrb[234].mxu0  ;;  %v12038_v46 = vsel %vm10796_vm2, %v29359_v63, %v12037_v8  ;;  %24424 = vmatpush3.bf16.msra.mxu0 %v25994_v20  ;;  %v12457_v26 = vrot.slane %v12019_v19, 1 }
 0x2cc   : > { %v23970_v40 = vpop.f32.mrb[234].mxu1  ;;  %v8542_v42 = vpop.f32.mrb[235].mxu0  ;;  %24379 = vmatprep.mubr.bf16.mxu0 %v12038_v46  ;;  %24425 = vmatprep.subr.bf16.mxu0 %v25996_v48 }
 0x2cd   : > { %v29784_v53 = vadd.f32 %v8836_v22, %v8540_v4  ;;  %v8543_v23 = vadd.f32 %v8542_v42, %v29665_v36  ;;  %v8839_v47 = vpop.f32.mrb[235].mxu1  ;;  %v25998_v36 = vld [vmem:[%s31746_s2 + $0x210] sm:$0xff]   ;;  %v12458_v42 = vor.u32 %v12457_v26, %v12016_v58 }
 0x2ce   : > { %24408 = vmatmul.mubr.bf16.vlgmr.msra.gmra.mrb[80].mxu1 %v29719_v61  ;;  %v26006_v40 = vld [vmem:[%s31746_s2 + $0x230] sm:$0xff]  }
 0x2cf   : > { %v29792_v11 = vadd.f32 %v8839_v47, %v8543_v23  ;;  %24411 = vmatprep.mubr.bf16.mxu1 %v29729_v60  ;;  %24456 = vmatpush3.bf16.msra.mxu1 %v25995_v33 }
 0x2d0   : > { %24457 = vmatprep.subr.bf16.mxu1 %v25997_v62  ;;  %24426 = vmatpush3.bf16.msra.mxu0 %v25996_v48  ;;  %v29851_v48 = vsel %vm10796_vm2, %v29359_v63, %v29836_v7 }
 0x2d1   : > { %v23941_v10 = vpop.f32.mrb[236].mxu0  ;;  %24427 = vmatprep.subr.bf16.mxu0 %v25998_v36 }
 0x2d2   : > { %v23973_v12 = vpop.f32.mrb[236].mxu1  ;;  %v8555_v41 = vpop.f32.mrb[237].mxu0  ;;  %24380 = vmatmul.mubr.bf16.gmra.mrb[84].mxu0 %v12046_v25  ;;  %v26225_v25 = vld [vmem:[#allocation2 + $0x50] sm:$0xff] }
 0x2d3   : > { %v8556_v17 = vadd.f32 %v8555_v41, %v29682_v45  ;;  %v8852_v50 = vpop.f32.mrb[237].mxu1  ;;  %v23942_v13 = vpop.f32.mrb[238].mxu0  ;;  %24458 = vmatpush3.bf16.msra.mxu1 %v25997_v62  ;;  %v26001_v45 = vld [vmem:[%s31746_s2 + $0x58] sm:$0xff]   ;;  %24383 = vmatprep.mubr.bf16.mxu0 %v29618_v37  ;;  %v26003_v37 = vld [vmem:[%s31746_s2 + $0x60] sm:$0xff]  }
 0x2d4   : > { %v23974_v24 = vpop.f32.mrb[238].mxu1  ;;  %v8558_v15 = vpop.f32.mrb[239].mxu0  ;;  %24459 = vmatprep.subr.bf16.mxu1 %v25999_v35  ;;  %24428 = vmatpush3.bf16.msra.mxu0 %v25998_v36  ;;  %v26008_v36 = vld [vmem:[%s31746_s2 + $0x238] sm:$0xff]   ;;  %v12430_v13 = vld [vmem:[#allocation2 + $0x50] sm:$0xff] }
 0x2d5   : > { %v29811_v55 = vadd.f32 %v8852_v50, %v8556_v17  ;;  %v8559_v16 = vadd.f32 %v8558_v15, %v29692_v49  ;;  %v8855_v56 = vpop.f32.mrb[239].mxu1  ;;  %24429 = vmatprep.subr.bf16.mxu0 %v26000_v6  ;;  %v26002_v49 = vld [vmem:[%s31746_s2 + $0x220] sm:$0xff]  }
 0x2d6   : > { %24412 = vmatmul.mubr.bf16.gmra.mrb[84].mxu1 %v29719_v61  ;;  %v26010_v15 = vld [vmem:[%s31746_s2] sm:$0xff]  }
 0x2d7   : > { %v29822_v28 = vadd.f32 %v8855_v56, %v8559_v16  ;;  %24415 = vmatprep.mubr.bf16.mxu1 %v29527_v0  ;;  %24460 = vmatpush3.bf16.msra.mxu1 %v25999_v35  ;;  %v26004_v0 = vld [vmem:[%s31746_s2 + $0x228] sm:$0xff]   ;;  %v26009_v35 = vld [vmem:[%s31746_s2 + $0x78] sm:$0xff]  }
 0x2d8   : > { %24461 = vmatprep.subr.bf16.mxu1 %v26001_v45  ;;  %24430 = vmatpush3.bf16.msra.mxu0 %v26000_v6  ;;  %v12470_v6 = vrot.slane %v12035_v9, 1  ;;  %v26011_v9 = vld [vmem:[%s31746_s2 + $0x80] sm:$0xff]  }
 0x2d9   : > { %v23993_v18 = vpop.f32.mrb[240].mxu0  ;;  %24431 = vmatprep.subr.bf16.mxu0 %v26002_v49 }
 0x2da   : > { %v24025_v34 = vpop.f32.mrb[240].mxu1  ;;  %v9129_v29 = vpop.f32.mrb[241].mxu0  ;;  %24384 = vmatmul.mubr.bf16.gmra.mrb[88].mxu0 %v29645_v1  ;;  %v12474_v16 = vor.u32 %v12470_v6, %v12032_v30  ;;  %v26012_v18 = vld [vmem:[%s31746_s2 + $0x8] sm:$0xff]  }
 0x2db   : > { %v9322_v20 = vpop.f32.mrb[241].mxu1  ;;  %v9192_v33 = vadd.f32 %v9129_v29, %v29716_v32  ;;  %v23994_v8 = vpop.f32.mrb[242].mxu0  ;;  %24462 = vmatpush3.bf16.msra.mxu1 %v26001_v45  ;;  %24387 = vmatprep.mubr.bf16.mxu0 %v29851_v48 }
 0x2dc   : > { %v24026_v43 = vpop.f32.mrb[242].mxu1  ;;  %v9132_v4 = vpop.f32.mrb[243].mxu0  ;;  %24463 = vmatprep.subr.bf16.mxu1 %v26003_v37  ;;  %24432 = vmatpush3.bf16.msra.mxu0 %v26002_v49  ;;  %v26013_v8 = vld [vmem:[%s31746_s2 + $0x88] sm:$0xff]  }
 0x2dd   : > { %v9325_v22 = vpop.f32.mrb[243].mxu1  ;;  %v29853_v32 = vadd.f32 %v9322_v20, %v9192_v33  ;;  %v9193_v14 = vadd.f32 %v9132_v4, %v29734_v2  ;;  %24433 = vmatprep.subr.bf16.mxu0 %v26004_v0  ;;  %v26007_v2 = vld [vmem:[%s31746_s2 + $0x70] sm:$0xff]   ;;  %v12479_v33 = vsel %vm1026_vm1, %v12474_v16, %v29501_v38 }
 0x2de   : > { %24416 = vmatmul.mubr.bf16.gmra.mrb[88].mxu1 %v29719_v61  ;;  %v26014_v4 = vld [vmem:[%s31746_s2 + $0x10] sm:$0xff]  }
 0x2df   : > { %v29858_v19 = vadd.f32 %v9325_v22, %v9193_v14  ;;  %24419 = vmatprep.mubr.bf16.mxu1 %v29794_v57  ;;  %24464 = vmatpush3.bf16.msra.mxu1 %v26003_v37  ;;  %v12488_v22 = vshrl.u32 %v12430_v13, 16 }
 0x2e0   : > { %24465 = vmatprep.subr.bf16.mxu1 %v26005_v27  ;;  %24434 = vmatpush3.bf16.msra.mxu0 %v26004_v0  ;;  %v12471_v0 = vsel %vm1026_vm1, %v29532_v54, %v12470_v6  ;;  %v29945_v6 = vrot.slane %v12067_v39, 1  ;;  %v26019_v39 = vld [vmem:[%s31746_s2 + $0xa0] sm:$0xff]  }
 0x2e1   : > { %v23997_v51 = vpop.f32.mrb[244].mxu0  ;;  %24435 = vmatprep.subr.bf16.mxu0 %v26006_v40 }
 0x2e2   : > { %v24029_v23 = vpop.f32.mrb[244].mxu1  ;;  %v9145_v47 = vpop.f32.mrb[245].mxu0  ;;  %24388 = vmatmul.mubr.bf16.gmra.mrb[92].mxu0 %v29879_v59 }
 0x2e3   : > { %v9338_v46 = vpop.f32.mrb[245].mxu1  ;;  %v9196_v62 = vadd.f32 %v9145_v47, %v29753_v44  ;;  %v23998_v10 = vpop.f32.mrb[246].mxu0  ;;  %24466 = vmatpush3.bf16.msra.mxu1 %v26005_v27  ;;  %v12463_v44 = vsel %vm1026_vm1, %v12458_v42, %v29501_v38  ;;  %v26016_v47 = vld [vmem:[%s31746_s2 + $0x18] sm:$0xff]  }
 0x2e4   : > { %v24030_v12 = vpop.f32.mrb[246].mxu1  ;;  %v9148_v58 = vpop.f32.mrb[247].mxu0  ;;  %24467 = vmatprep.subr.bf16.mxu1 %v26007_v2  ;;  %24436 = vmatpush3.bf16.msra.mxu0 %v26006_v40 }
 0x2e5   : > { %v9341_v41 = vpop.f32.mrb[247].mxu1  ;;  %v29886_v17 = vadd.f32 %v9338_v46, %v9196_v62  ;;  %v9197_v50 = vadd.f32 %v9148_v58, %v29765_v52  ;;  %24439 = vmatprep.mubr.bf16.mxu0 %v12463_v44  ;;  %24437 = vmatprep.subr.bf16.mxu0 %v26008_v36  ;;  %v12484_v52 = vshll.u32 %v12430_v13, 16  ;;  %v29935_v58 = vld [vmem:[#allocation2 + $0x70] sm:$0xff] }
 0x2e6   : > { %24420 = vmatmul.mubr.bf16.gmra.mrb[92].mxu1 %v29719_v61 }
 0x2e7   : > { %v29890_v24 = vadd.f32 %v9341_v41, %v9197_v50  ;;  %24468 = vmatpush3.bf16.msra.mxu1 %v26007_v2  ;;  %24471 = vmatprep.mubr.bf16.mxu1 %v26225_v25  ;;  %v12486_v43 = vrot.slane %v12484_v52, 1  ;;  %v26017_v41 = vld [vmem:[%s31746_s2 + $0x98] sm:$0xff]   ;;  %v26018_v50 = vld [vmem:[%s31746_s2 + $0x20] sm:$0xff]   ;;  %v29960_v25 = vor.u32 %v29945_v6, %v12064_v21 }
 0x2e8   : > { %24469 = vmatprep.subr.bf16.mxu1 %v26009_v35  ;;  %24438 = vmatpush3.bf16.msra.mxu0 %v26008_v36 }
 0x2e9   : > { %24487 = vmatprep.subr.bf16.mxu0 %v26010_v15  ;;  %v29924_v14 = vor.u32 %v12488_v22, %v12486_v43  ;;  %v12487_v36 = vsel %vm1026_vm1, %v29532_v54, %v12486_v43  ;;  %v12511_v21 = vsel %vm1026_vm1, %v29960_v25, %v29501_v38 }
 0x2ea   : > { %v24001_v56 = vpop.f32.mrb[248].mxu0  ;;  %v24033_v45 = vpop.f32.mrb[248].mxu1 }
 0x2eb   : > { %v9161_v49 = vpop.f32.mrb[249].mxu0  ;;  %v9354_v37 = vpop.f32.mrb[249].mxu1  ;;  %24470 = vmatpush3.bf16.msra.mxu1 %v26009_v35  ;;  %24440 = vmatmul.mubr.bf16.vlgmr.msra.gmra.mrb[96].mxu0 %v12471_v0  ;;  %v12495_v12 = vsel %vm1026_vm1, %v29924_v14, %v29501_v38  ;;  %v26020_v56 = vld [vmem:[%s31746_s2 + $0x28] sm:$0xff]   ;;  %v26022_v38 = vld [vmem:[%s31746_s2 + $0x30] sm:$0xff]  }
 0x2ec   : > { %v9200_v34 = vadd.f32 %v9161_v49, %v29784_v53  ;;  %v24002_v29 = vpop.f32.mrb[250].mxu0  ;;  %v24034_v20 = vpop.f32.mrb[250].mxu1  ;;  %24519 = vmatprep.subr.bf16.mxu1 %v26011_v9  ;;  %24443 = vmatprep.mubr.bf16.mxu0 %v12479_v33  ;;  %v12503_v49 = vsel %vm1026_vm1, %v29532_v54, %v29945_v6 }
 0x2ed   : > { %v9164_v60 = vpop.f32.mrb[251].mxu0  ;;  %v9357_v30 = vpop.f32.mrb[251].mxu1  ;;  %24488 = vmatpush3.bf16.msra.mxu0 %v26010_v15  ;;  %v12434_v15 = vld [vmem:[#allocation2 + $0x70] sm:$0x1]  ;;  %v29976_v29 = vld [vmem:[#allocation2 + $0x80] sm:$0xff] }
 0x2ee   : > { %v29908_v27 = vadd.f32 %v9354_v37, %v9200_v34  ;;  %v9201_v53 = vadd.f32 %v9164_v60, %v29792_v11  ;;  %24472 = vmatmul.mubr.bf16.vlgmr.msra.gmra.mrb[96].mxu1 %v29719_v61  ;;  %24489 = vmatprep.subr.bf16.mxu0 %v26012_v18  ;;  %v26015_v11 = vld [vmem:[%s31746_s2 + $0x90] sm:$0xff]   ;;  %v12516_v37 = vshll.u32 %v12434_v15, 16  ;;  %v26027_v15 = vld [vmem:[%s31746_s2 + $0x100] sm:$0xff]  }
 0x2ef   : > { %24475 = vmatprep.mubr.bf16.mxu1 %v29794_v57  ;;  %24520 = vmatpush3.bf16.msra.mxu1 %v26011_v9  ;;  %v26023_v60 = vld [vmem:[%s31746_s2 + $0xb0] sm:$0xff]  }
 0x2f0   : > { %v29915_v26 = vadd.f32 %v9357_v30, %v9201_v53  ;;  %24521 = vmatprep.subr.bf16.mxu1 %v26013_v8 }
 0x2f1   : > { %24490 = vmatpush3.bf16.msra.mxu0 %v26012_v18 }
 0x2f2   : > { %v24005_v40 = vpop.f32.mrb[252].mxu0  ;;  %v24037_v2 = vpop.f32.mrb[252].mxu1  ;;  %24491 = vmatprep.subr.bf16.mxu0 %v26014_v4 }
 0x2f3   : > { %v9177_v42 = vpop.f32.mrb[253].mxu0  ;;  %v9370_v51 = vpop.f32.mrb[253].mxu1  ;;  %24522 = vmatpush3.bf16.msra.mxu1 %v26013_v8  ;;  %24444 = vmatmul.mubr.bf16.gmra.mrb[100].mxu0 %v12487_v36  ;;  %v12518_v8 = vrot.slane %v12516_v37, 1  ;;  %v13094_v40 = vshrl.u32 %v29935_v58, 16 }
 0x2f4   : > { %v9204_v23 = vadd.f32 %v9177_v42, %v29811_v55  ;;  %v24006_v46 = vpop.f32.mrb[254].mxu0  ;;  %v24038_v62 = vpop.f32.mrb[254].mxu1  ;;  %24523 = vmatprep.subr.bf16.mxu1 %v26015_v11  ;;  %24447 = vmatprep.mubr.bf16.mxu0 %v12495_v12  ;;  %v13315_v12 = vshrl.u32 %v29719_v61, 16 }
 0x2f5   : > { %v9180_v35 = vpop.f32.mrb[255].mxu0  ;;  %v9373_v10 = vpop.f32.mrb[255].mxu1  ;;  %24492 = vmatpush3.bf16.msra.mxu0 %v26014_v4  ;;  %v12519_v2 = vsel %vm1026_vm1, %v29532_v54, %v12518_v8  ;;  %v26026_v54 = vld [vmem:[%s31746_s2 + $0xc0] sm:$0xff]   ;;  %v26032_v8 = vld [vmem:[%s31746_s2 + $0xd8] sm:$0xff]  }
 0x2f6   : > { %v29937_v55 = vadd.f32 %v9370_v51, %v9204_v23  ;;  %v9205_v44 = vadd.f32 %v9180_v35, %v29822_v28  ;;  %24476 = vmatmul.mubr.bf16.gmra.mrb[100].mxu1 %v29719_v61  ;;  %24493 = vmatprep.subr.bf16.mxu0 %v26016_v47  ;;  %v12871_v28 = vld [vmem:[#allocation2 + $0x48] sm:$0x80] }
 0x2f7   : > { %24479 = vmatprep.mubr.bf16.mxu1 %v29935_v58  ;;  %24524 = vmatpush3.bf16.msra.mxu1 %v26015_v11  ;;  %v13058_v34 = vshrl.u32 %v12871_v28, 16  ;;  %v26024_v11 = vld [vmem:[%s31746_s2 + $0x38] sm:$0xff]  }
 0x2f8   : > { %v29951_v13 = vadd.f32 %v9373_v10, %v9205_v44  ;;  %24525 = vmatprep.subr.bf16.mxu1 %v26017_v41 }
 0x2f9   : > { %24494 = vmatpush3.bf16.msra.mxu0 %v26016_v47  ;;  %v13060_v43 = vrot.slane %v13058_v34, 7  ;;  %v26025_v47 = vld [vmem:[%s31746_s2 + $0xb8] sm:$0xff]  }
 0x2fa   : > { %v24057_v9 = vpop.f32.mrb[0].mxu0  ;;  %24495 = vmatprep.subr.bf16.mxu0 %v26018_v50 }
 0x2fb   : > { %v9635_v52 = vpop.f32.mrb[1].mxu0  ;;  %24526 = vmatpush3.bf16.msra.mxu1 %v26017_v41  ;;  %24448 = vmatmul.mubr.bf16.gmra.mrb[104].mxu0 %v12503_v49  ;;  %v13068_v51 = vsel %vm10796_vm2, %v13060_v43, %v29586_v31  ;;  %v30034_v9 = vrot.slane %v13094_v40, 7 }
 0x2fc   : > { %v9698_v16 = vadd.f32 %v9635_v52, %v29853_v32  ;;  %v24058_v45 = vpop.f32.mrb[2].mxu0  ;;  %24527 = vmatprep.subr.bf16.mxu1 %v26019_v39  ;;  %v26021_v32 = vld [vmem:[%s31746_s2 + $0xa8] sm:$0xff]   ;;  %24451 = vmatprep.mubr.bf16.mxu0 %v12511_v21  ;;  %v24089_v20 = vpop.f32.mrb[0].mxu1  ;;  %v26030_v21 = vld [vmem:[%s31746_s2 + $0xd0] sm:$0xff]  }
 0x2fd   : > { %v9638_v57 = vpop.f32.mrb[3].mxu0  ;;  %24496 = vmatpush3.bf16.msra.mxu0 %v26018_v50  ;;  %v9960_v0 = vpop.f32.mrb[1].mxu1  ;;  %v13113_v20 = vshll.u32 %v29976_v29, 16 }
 0x2fe   : > { %v9699_v18 = vadd.f32 %v9638_v57, %v29858_v19  ;;  %24480 = vmatmul.mubr.bf16.gmra.mrb[104].mxu1 %v29719_v61  ;;  %24497 = vmatprep.subr.bf16.mxu0 %v26020_v56  ;;  %v13311_v19 = vshll.u32 %v29719_v61, 16  ;;  %v29987_v30 = vadd.f32 %v9960_v0, %v9698_v16  ;;  %v24090_v33 = vpop.f32.mrb[2].mxu1  ;;  %v26029_v16 = vld [vmem:[%s31746_s2 + $0x108] sm:$0xff]  }
 0x2ff   : > { %24483 = vmatprep.mubr.bf16.mxu1 %v29976_v29  ;;  %24528 = vmatpush3.bf16.msra.mxu1 %v26019_v39  ;;  %v9963_v53 = vpop.f32.mrb[3].mxu1 }
 0x300   : > { %24529 = vmatprep.subr.bf16.mxu1 %v26021_v32  ;;  %v29989_v4 = vadd.f32 %v9963_v53, %v9699_v18  ;;  %v29993_v22 = vrot.slane %v13311_v19, 1 }
 0x301   : > { %24498 = vmatpush3.bf16.msra.mxu0 %v26020_v56 }
 0x302   : > { %24499 = vmatprep.subr.bf16.mxu0 %v26022_v38  ;;  %v24061_v42 = vpop.f32.mrb[4].mxu0  ;;  %v13314_v31 = vsel %vm1026_vm1, %v29924_v14, %v29993_v22  ;;  %v13097_v14 = vshll.u32 %v29935_v58, 16  ;;  %v30025_v28 = vor.u32 %v13315_v12, %v29993_v22 }
 0x303   : > { %24530 = vmatpush3.bf16.msra.mxu1 %v26021_v32  ;;  %24452 = vmatmul.mubr.bf16.gmra.mrb[108].mxu0 %v12519_v2  ;;  %v9651_v23 = vpop.f32.mrb[5].mxu0 }
 0x304   : > { %24531 = vmatprep.subr.bf16.mxu1 %v26023_v60  ;;  %24503 = vmatprep.mubr.bf16.mxu0 %v13068_v51  ;;  %v24093_v46 = vpop.f32.mrb[4].mxu1  ;;  %v9702_v62 = vadd.f32 %v9651_v23, %v29886_v17  ;;  %v24062_v36 = vpop.f32.mrb[6].mxu0  ;;  %v13322_v56 = vsel %vm1026_vm1, %v30025_v28, %v29945_v6  ;;  %v13337_v49 = vrot.slane %v13097_v14, 1  ;;  %v13110_v6 = vshrl.u32 %v29976_v29, 16 }
 0x305   : > { %24500 = vmatpush3.bf16.msra.mxu0 %v26022_v38  ;;  %v9976_v35 = vpop.f32.mrb[5].mxu1  ;;  %v9654_v10 = vpop.f32.mrb[7].mxu0  ;;  %v30053_v18 = vor.u32 %v13097_v14, %v30034_v9  ;;  %v13353_v51 = vrot.slane %v13113_v20, 1  ;;  %v26035_v36 = vld [vmem:[%s31746_s2 + $0x120] sm:$0xff]   ;;  %v13540_v14 = vld [vmem:[#allocation2 + $0x58] sm:$0x80] }
 0x306   : > { %24484 = vmatmul.mubr.bf16.gmra.mrb[108].mxu1 %v29719_v61  ;;  %24501 = vmatprep.subr.bf16.mxu0 %v26024_v11  ;;  %v30015_v41 = vadd.f32 %v9976_v35, %v9702_v62  ;;  %v24094_v17 = vpop.f32.mrb[6].mxu1  ;;  %v9703_v44 = vadd.f32 %v9654_v10, %v29890_v24  ;;  %v26028_v24 = vld [vmem:[%s31746_s2 + $0xc8] sm:$0xff]   ;;  %v13341_v33 = vor.u32 %v13337_v49, %v13094_v40 }
 0x307   : > { %24532 = vmatpush3.bf16.msra.mxu1 %v26023_v60  ;;  %24535 = vmatprep.mubr.bf16.mxu1 %v13314_v31  ;;  %v9979_v50 = vpop.f32.mrb[7].mxu1  ;;  %v13100_v43 = vsel %vm10796_vm2, %v29359_v63, %v30053_v18  ;;  %v30078_v40 = vld [vmem:[#allocation2 + $0x28] sm:$0xff]  ;;  %v13338_v42 = vsel %vm1026_vm1, %v30025_v28, %v13337_v49 }
 0x308   : > { %24533 = vmatprep.subr.bf16.mxu1 %v26025_v47  ;;  %v30027_v39 = vadd.f32 %v9979_v50, %v9703_v44  ;;  %v14048_v2 = vshrl.u32 %v30078_v40, 16  ;;  %v13346_v23 = vsel %vm1026_vm1, %v13341_v33, %v29993_v22  ;;  %v26036_v10 = vld [vmem:[%s31746_s2 + $0xe8] sm:$0xff]  }
 0x309   : > { %24502 = vmatpush3.bf16.msra.mxu0 %v26024_v11  ;;  %v26033_v11 = vld [vmem:[%s31746_s2 + $0x118] sm:$0xff]  }
 0x30a   : > { %24551 = vmatprep.subr.bf16.mxu0 %v26026_v54  ;;  %v24065_v52 = vpop.f32.mrb[8].mxu0  ;;  %v30093_v46 = vrot.slane %v14048_v2, 7 }
 0x30b   : > { %24534 = vmatpush3.bf16.msra.mxu1 %v26025_v47  ;;  %v9667_v45 = vpop.f32.mrb[9].mxu0  ;;  %v30089_v47 = vshll.u32 %v30078_v40, 16 }
 0x30c   : > { %24504 = vmatmul.mubr.bf16.vlgmr.msra.gmra.mrb[112].mxu0 %v29645_v1  ;;  %24583 = vmatprep.subr.bf16.mxu1 %v26027_v15  ;;  %v13330_v1 = vsel %vm1026_vm1, %v29960_v25, %v29993_v22  ;;  %v9706_v57 = vadd.f32 %v9667_v45, %v29908_v27  ;;  %v24066_v37 = vpop.f32.mrb[10].mxu0  ;;  %v26031_v27 = vld [vmem:[%s31746_s2 + $0x110] sm:$0xff]  }
 0x30d   : > { %24507 = vmatprep.mubr.bf16.mxu0 %v29851_v48  ;;  %24552 = vmatpush3.bf16.msra.mxu0 %v26026_v54  ;;  %v24097_v48 = vpop.f32.mrb[8].mxu1  ;;  %v9670_v32 = vpop.f32.mrb[11].mxu0  ;;  %v13286_v54 = vld [vmem:[#allocation2 + $0x90] sm:$0x1]  ;;  %v30106_v17 = vor.u32 %v30093_v46, %v30089_v47  ;;  %v26037_v37 = vld [vmem:[%s31746_s2 + $0x128] sm:$0xff]  }
 0x30e   : > { %24536 = vmatmul.mubr.bf16.vlgmr.msra.gmra.mrb[112].mxu1 %v13322_v56  ;;  %24553 = vmatprep.subr.bf16.mxu0 %v26028_v24  ;;  %v9992_v34 = vpop.f32.mrb[9].mxu1  ;;  %v9707_v25 = vadd.f32 %v9670_v32, %v29915_v26  ;;  %v30067_v26 = vrot.slane %v13110_v6, 7  ;;  %v13108_v56 = vsel %vm10796_vm2, %v30034_v9, %v29387_v3  ;;  %v13354_v32 = vsel %vm1026_vm1, %v30025_v28, %v13353_v51 }
 0x30f   : > { %24539 = vmatprep.mubr.bf16.mxu1 %v13330_v1  ;;  %24584 = vmatpush3.bf16.msra.mxu1 %v26027_v15  ;;  %v30060_v0 = vadd.f32 %v9992_v34, %v9706_v57  ;;  %v24098_v38 = vpop.f32.mrb[10].mxu1 }
 0x310   : > { %24585 = vmatprep.subr.bf16.mxu1 %v26029_v16  ;;  %v9995_v60 = vpop.f32.mrb[11].mxu1  ;;  %v30099_v31 = vor.u32 %v13113_v20, %v30067_v26  ;;  %v26039_v20 = vld [vmem:[%s31746_s2 + $0x130] sm:$0xff]  }
 0x311   : > { %24554 = vmatpush3.bf16.msra.mxu0 %v26028_v24  ;;  %v30069_v53 = vadd.f32 %v9995_v60, %v9707_v25 }
 0x312   : > { %24555 = vmatprep.subr.bf16.mxu0 %v26030_v21 }
 0x313   : > { %24586 = vmatpush3.bf16.msra.mxu1 %v26029_v16  ;;  %v13357_v16 = vor.u32 %v13353_v51, %v13110_v6  ;;  %v13566_v6 = vshrl.u32 %v13540_v14, 16  ;;  %v13124_v51 = vsel %vm10796_vm2, %v30067_v26, %v29387_v3  ;;  %v26041_v3 = vld [vmem:[%s31746_s2 + $0x138] sm:$0xff]  }
 0x314   : > { %24508 = vmatmul.mubr.bf16.gmra.mrb[116].mxu0 %v29879_v59  ;;  %24587 = vmatprep.subr.bf16.mxu1 %v26031_v27  ;;  %v26034_v59 = vld [vmem:[%s31746_s2 + $0xe0] sm:$0xff]   ;;  %v24069_v62 = vpop.f32.mrb[12].mxu0 }
 0x315   : > { %24511 = vmatprep.mubr.bf16.mxu0 %v13100_v43  ;;  %24556 = vmatpush3.bf16.msra.mxu0 %v26030_v21  ;;  %v9683_v35 = vpop.f32.mrb[13].mxu0  ;;  %v13367_v21 = vshll.u32 %v13286_v54, 16  ;;  %v13568_v38 = vrot.slane %v13566_v6, 7 }
 0x316   : > { %24540 = vmatmul.mubr.bf16.gmra.mrb[116].mxu1 %v13338_v42  ;;  %24557 = vmatprep.subr.bf16.mxu0 %v26032_v8  ;;  %v24101_v44 = vpop.f32.mrb[12].mxu1  ;;  %v9710_v50 = vadd.f32 %v9683_v35, %v29937_v55  ;;  %v24070_v15 = vpop.f32.mrb[14].mxu0  ;;  %v13116_v55 = vsel %vm10796_vm2, %v29359_v63, %v30099_v31  ;;  %v26038_v63 = vld [vmem:[%s31746_s2 + $0xf0] sm:$0xff]   ;;  %v26040_v42 = vld [vmem:[%s31746_s2 + $0xf8] sm:$0xff]  }
 0x317   : > { %24543 = vmatprep.mubr.bf16.mxu1 %v13346_v23  ;;  %24588 = vmatpush3.bf16.msra.mxu1 %v26031_v27  ;;  %v10008_v24 = vpop.f32.mrb[13].mxu1  ;;  %v9686_v52 = vpop.f32.mrb[15].mxu0  ;;  %v13369_v27 = vrot.slane %v13367_v21, 1  ;;  %v13576_v35 = vsel %vm10796_vm2, %v13568_v38, %v29836_v7  ;;  %v26042_v7 = vld [vmem:[%s31746_s2 + $0x140] sm:$0xff]   ;;  %v26044_v21 = vld [vmem:[%s31746_s2 + $0x148] sm:$0xff]  }
 0x318   : > { %24589 = vmatprep.subr.bf16.mxu1 %v26033_v11  ;;  %v30112_v45 = vadd.f32 %v10008_v24, %v9710_v50  ;;  %v24102_v49 = vpop.f32.mrb[14].mxu1  ;;  %v9711_v1 = vadd.f32 %v9686_v52, %v29951_v13  ;;  %v13362_v13 = vsel %vm1026_vm1, %v13357_v16, %v29993_v22  ;;  %v26228_v24 = vld [vmem:[#allocation2 + $0x60] sm:$0xff] }
 0x319   : > { %24558 = vmatpush3.bf16.msra.mxu0 %v26032_v8  ;;  %v10011_v57 = vpop.f32.mrb[15].mxu1  ;;  %v13370_v44 = vsel %vm1026_vm1, %v30025_v28, %v13369_v27  ;;  %v30188_v27 = vld [vmem:[#allocation2 + $0x90] sm:$0xff] }
 0x31a   : > { %24559 = vmatprep.subr.bf16.mxu0 %v26034_v59  ;;  %v30121_v48 = vadd.f32 %v10011_v57, %v9711_v1 }
 0x31b   : > { %24590 = vmatpush3.bf16.msra.mxu1 %v26033_v11 }
 0x31c   : > { %24512 = vmatmul.mubr.bf16.gmra.mrb[120].mxu0 %v13108_v56  ;;  %24591 = vmatprep.subr.bf16.mxu1 %v26035_v36  ;;  %v24121_v34 = vpop.f32.mrb[16].mxu0  ;;  %v26043_v56 = vld [vmem:[%s31746_s2 + $0x180] sm:$0xff]  }
 0x31d   : > { %24515 = vmatprep.mubr.bf16.mxu0 %v13116_v55  ;;  %24560 = vmatpush3.bf16.msra.mxu0 %v26034_v59  ;;  %v10153_v25 = vpop.f32.mrb[17].mxu0 }
 0x31e   : > { %24544 = vmatmul.mubr.bf16.gmra.mrb[120].mxu1 %v13354_v32  ;;  %24561 = vmatprep.subr.bf16.mxu0 %v26036_v10  ;;  %v24153_v60 = vpop.f32.mrb[16].mxu1  ;;  %v10216_v33 = vadd.f32 %v10153_v25, %v29987_v30  ;;  %v24122_v8 = vpop.f32.mrb[18].mxu0  ;;  %v30143_v30 = vrot.slane %v13315_v12, 7  ;;  %v26045_v25 = vld [vmem:[%s31746_s2 + $0x188] sm:$0xff]  }
 0x31f   : > { %24547 = vmatprep.mubr.bf16.mxu1 %v13362_v13  ;;  %24592 = vmatpush3.bf16.msra.mxu1 %v26035_v36  ;;  %v10466_v43 = vpop.f32.mrb[17].mxu1  ;;  %v10156_v11 = vpop.f32.mrb[19].mxu0  ;;  %v30145_v36 = vld [vmem:[#allocation2 + $0xa0] sm:$0xff]  ;;  %v26047_v8 = vld [vmem:[%s31746_s2 + $0x190] sm:$0xff]  }
 0x320   : > { %24593 = vmatprep.subr.bf16.mxu1 %v26037_v37  ;;  %v10529_v59 = vadd.f32 %v10466_v43, %v10216_v33  ;;  %v24154_v23 = vpop.f32.mrb[18].mxu1  ;;  %v10217_v62 = vadd.f32 %v10156_v11, %v29989_v4  ;;  %v30155_v4 = vld [vmem:[%s31747_s3] ss:$0 sm:$0xff]  ;;  %v14322_v50 = vshll.u32 %v30145_v36, 16  ;;  %v30168_v14 = vor.u32 %v30143_v30, %v13311_v19 }
 0x321   : > { %24562 = vmatpush3.bf16.msra.mxu0 %v26036_v10  ;;  %v10469_v54 = vpop.f32.mrb[19].mxu1  ;;  %v13592_v38 = vsel %vm10796_vm2, %v30143_v30, %v30053_v18 }
 0x322   : > { %24563 = vmatprep.subr.bf16.mxu0 %v26038_v63  ;;  %v10545_v12 = vadd.f32 %v30155_v4, %v10529_v59  ;;  %v10530_v10 = vadd.f32 %v10469_v54, %v10217_v62  ;;  %v30179_v6 = vrot.slane %v14322_v50, 1  ;;  %v13584_v13 = vsel %vm10796_vm2, %v29819_v5, %v30168_v14  ;;  %v26048_v59 = vld [vmem:[%s31746_s2 + $0x158] sm:$0xff]  }
 0x323   : > { %24594 = vmatpush3.bf16.msra.mxu1 %v26037_v37  ;;  %v14319_v5 = vshrl.u32 %v30145_v36, 16 }
 0x324   : > { %24516 = vmatmul.mubr.bf16.gmra.mrb[124].mxu0 %v13124_v51  ;;  %24595 = vmatprep.subr.bf16.mxu1 %v26039_v20  ;;  %v10546_v15 = vadd.f32 %v30155_v4, %v10530_v10  ;;  %v24125_v52 = vpop.f32.mrb[20].mxu0  ;;  %v10561_v49 = vmax.f32 %v10545_v12, 0.0 }
 0x325   : > { %24564 = vmatpush3.bf16.msra.mxu0 %v26038_v63  ;;  %24567 = vmatprep.mubr.bf16.mxu0 %v13576_v35  ;;  %v10169_v16 = vpop.f32.mrb[21].mxu0  ;;  %v30205_v18 = vor.u32 %v30179_v6, %v14319_v5  ;;  %v26049_v52 = vld [vmem:[%s31746_s2 + $0x198] sm:$0xff]  }
 0x326   : > { %24548 = vmatmul.mubr.bf16.gmra.mrb[124].mxu1 %v13370_v44  ;;  %24565 = vmatprep.subr.bf16.mxu0 %v26040_v42  ;;  %v10562_v1 = vmax.f32 %v10546_v15, 0.0  ;;  %v24157_v57 = vpop.f32.mrb[20].mxu1  ;;  %v10220_v55 = vadd.f32 %v10169_v16, %v30015_v41  ;;  %v24126_v37 = vpop.f32.mrb[22].mxu0 }
 0x327   : > { %24596 = vmatpush3.bf16.msra.mxu1 %v26039_v20  ;;  %24599 = vmatprep.mubr.bf16.mxu1 %v26228_v24  ;;  %v10482_v61 = vpop.f32.mrb[21].mxu1  ;;  %v10172_v19 = vpop.f32.mrb[23].mxu0  ;;  %v26050_v57 = vld [vmem:[%s31746_s2 + $0x160] sm:$0xff]  }
 0x328   : > { %24597 = vmatprep.subr.bf16.mxu1 %v26041_v3  ;;  %v10593_v32 = vpack.c.bf16 %v10562_v1, %v10561_v49  ;;  %v10533_v63 = vadd.f32 %v10482_v61, %v10220_v55  ;;  %v24158_v41 = vpop.f32.mrb[22].mxu1  ;;  %v10221_v34 = vadd.f32 %v10172_v19, %v30027_v39  ;;  %v26046_v39 = vld [vmem:[%s31746_s2 + $0x150] sm:$0xff]   ;;  %v13621_v55 = vshll.u32 %v30188_v27, 16 }
 0x329   : > { %24566 = vmatpush3.bf16.msra.mxu0 %v26040_v42  ;;  %v10485_v20 = vpop.f32.mrb[23].mxu1  ;;  %v13618_v42 = vshrl.u32 %v30188_v27, 16  ;;  %v30231_v1 = vld [vmem:[#allocation2 + $0x70] sm:$0xff] }
 0x32a   : > { %24615 = vmatprep.subr.bf16.mxu0 %v26042_v7  ;;  %10601 = vst [vmem:[#allocation2 + $0xe0] sm:$0xff] %v10593_v32  ;;  %v10549_v60 = vadd.f32 %v30155_v4, %v10533_v63  ;;  %v10534_v33 = vadd.f32 %v10485_v20, %v10221_v34  ;;  %v14271_v63 = vshrl.u32 %v30231_v1, 16 }
 0x32b   : > { %24598 = vmatpush3.bf16.msra.mxu1 %v26041_v3 }
 0x32c   : > { %24568 = vmatmul.mubr.bf16.vlgmr.msra.gmra.mrb[128].mxu0 %v13584_v13  ;;  %24647 = vmatprep.subr.bf16.mxu1 %v26043_v56  ;;  %v10550_v43 = vadd.f32 %v30155_v4, %v10534_v33  ;;  %v24129_v11 = vpop.f32.mrb[24].mxu0  ;;  %v10565_v23 = vmax.f32 %v10549_v60, 0.0  ;;  %v26052_v13 = vld [vmem:[%s31746_s2 + $0x168] sm:$0xff]  }
 0x32d   : > { %24571 = vmatprep.mubr.bf16.mxu0 %v13592_v38  ;;  %24616 = vmatpush3.bf16.msra.mxu0 %v26042_v7  ;;  %v10185_v51 = vpop.f32.mrb[25].mxu0  ;;  %v13616_v11 = vsel %vm10796_vm2, %v30067_v26, %v30168_v14  ;;  %v30268_v26 = vld [vmem:[#allocation2 + $0x80] sm:$0xff] }
 0x32e   : > { %24600 = vmatmul.mubr.bf16.vlgmr.msra.gmra.mrb[128].mxu1 %v30078_v40  ;;  %24617 = vmatprep.subr.bf16.mxu0 %v26044_v21  ;;  %v10566_v62 = vmax.f32 %v10550_v43, 0.0  ;;  %v24161_v54 = vpop.f32.mrb[24].mxu1  ;;  %v10224_v35 = vadd.f32 %v10185_v51, %v30060_v0  ;;  %v24130_v3 = vpop.f32.mrb[26].mxu0  ;;  %v30223_v0 = vrot.slane %v13618_v42, 7  ;;  %v26053_v51 = vld [vmem:[%s31746_s2 + $0x1a8] sm:$0xff]  }
 0x32f   : > { %24603 = vmatprep.mubr.bf16.mxu1 %v29935_v58  ;;  %24648 = vmatpush3.bf16.msra.mxu1 %v26043_v56  ;;  %v10498_v12 = vpop.f32.mrb[25].mxu1  ;;  %v10188_v10 = vpop.f32.mrb[27].mxu0  ;;  %v13600_v58 = vsel %vm10796_vm2, %v30034_v9, %v30168_v14  ;;  %v13608_v9 = vsel %vm10796_vm2, %v30143_v30, %v30099_v31  ;;  %v30228_v56 = vld [vmem:[#allocation2 + $0x60] sm:$0xff] }
 0x330   : > { %24649 = vmatprep.subr.bf16.mxu1 %v26045_v25  ;;  %v10595_v44 = vpack.c.bf16 %v10566_v62, %v10565_v23  ;;  %v10537_v7 = vadd.f32 %v10498_v12, %v10224_v35  ;;  %v24162_v15 = vpop.f32.mrb[26].mxu1  ;;  %v10225_v24 = vadd.f32 %v10188_v10, %v30069_v53  ;;  %v26051_v31 = vld [vmem:[%s31746_s2 + $0x1a0] sm:$0xff]   ;;  %v14007_v19 = vshll.u32 %v30228_v56, 16  ;;  %v26054_v35 = vld [vmem:[%s31746_s2 + $0x170] sm:$0xff]  }
 0x331   : > { %24618 = vmatpush3.bf16.msra.mxu0 %v26044_v21  ;;  %v10501_v16 = vpop.f32.mrb[27].mxu1  ;;  %v30247_v32 = vor.u32 %v13621_v55, %v30223_v0  ;;  %v14005_v3 = vshrl.u32 %v30228_v56, 16  ;;  %v30277_v10 = vrot.slane %v14271_v63, 7 }
 0x332   : > { %24619 = vmatprep.subr.bf16.mxu0 %v26046_v39  ;;  %10603 = vst [vmem:[#allocation2 + $0xf0] sm:$0xff] %v10595_v44  ;;  %v10553_v53 = vadd.f32 %v30155_v4, %v10537_v7  ;;  %v10538_v49 = vadd.f32 %v10501_v16, %v10225_v24  ;;  %v14009_v62 = vrot.slane %v14007_v19, 1  ;;  %v14020_v7 = vshll.u32 %v30231_v1, 16  ;;  %v26055_v24 = vld [vmem:[%s31746_s2 + $0x1b0] sm:$0xff]   ;;  %v26057_v19 = vld [vmem:[%s31746_s2 + $0x1b8] sm:$0xff]  }
 0x333   : > { %24650 = vmatpush3.bf16.msra.mxu1 %v26045_v25  ;;  %v14287_v16 = vshrl.u32 %v30268_v26, 16 }
 0x334   : > { %24572 = vmatmul.mubr.bf16.gmra.mrb[132].mxu0 %v13600_v58  ;;  %24651 = vmatprep.subr.bf16.mxu1 %v26047_v8  ;;  %v10554_v37 = vadd.f32 %v30155_v4, %v10538_v49  ;;  %v24133_v61 = vpop.f32.mrb[28].mxu0  ;;  %v10569_v41 = vmax.f32 %v10553_v53, 0.0 }
 0x335   : > { %24575 = vmatprep.mubr.bf16.mxu0 %v13608_v9  ;;  %24620 = vmatpush3.bf16.msra.mxu0 %v26046_v39  ;;  %v10201_v21 = vpop.f32.mrb[29].mxu0  ;;  %v14276_v61 = vor.u32 %v30277_v10, %v14020_v7 }
 0x336   : > { %24604 = vmatmul.mubr.bf16.gmra.mrb[132].mxu1 %v30078_v40  ;;  %24621 = vmatprep.subr.bf16.mxu0 %v26048_v59  ;;  %v10570_v34 = vmax.f32 %v10554_v37, 0.0  ;;  %v10228_v25 = vadd.f32 %v10201_v21, %v30112_v45  ;;  %v24134_v20 = vpop.f32.mrb[30].mxu0  ;;  %v14241_v45 = vld [vmem:[#allocation2 + $0x68] sm:$0x80] }
 0x337   : > { %24607 = vmatprep.mubr.bf16.mxu1 %v29976_v29  ;;  %24652 = vmatpush3.bf16.msra.mxu1 %v26047_v8  ;;  %v24165_v29 = vpop.f32.mrb[28].mxu1  ;;  %v10204_v60 = vpop.f32.mrb[31].mxu0  ;;  %v14267_v12 = vshrl.u32 %v14241_v45, 16  ;;  %v14290_v45 = vshll.u32 %v30268_v26, 16 }
 0x338   : > { %24653 = vmatprep.subr.bf16.mxu1 %v26049_v52  ;;  %v10514_v38 = vpop.f32.mrb[29].mxu1  ;;  %v10597_v33 = vpack.c.bf16 %v10570_v34, %v10569_v41  ;;  %v10229_v43 = vadd.f32 %v10204_v60, %v30121_v48  ;;  %v14022_v29 = vrot.slane %v14020_v7, 1  ;;  %v30305_v60 = vrot.slane %v14287_v16, 7 }
 0x339   : > { %24622 = vmatpush3.bf16.msra.mxu0 %v26048_v59  ;;  %v10541_v39 = vadd.f32 %v10514_v38, %v10228_v25  ;;  %v24166_v8 = vpop.f32.mrb[30].mxu1  ;;  %v30264_v59 = vsel %vm10796_vm2, %v30143_v30, %v30247_v32  ;;  %v14269_v37 = vrot.slane %v14267_v12, 7  ;;  %v26058_v38 = vld [vmem:[%s31746_s2 + $0x1c0] sm:$0xff]  }
 0x33a   : > { %24623 = vmatprep.subr.bf16.mxu0 %v26050_v57  ;;  %v10517_v23 = vpop.f32.mrb[31].mxu1  ;;  %10605 = vst [vmem:[#allocation2 + $0x100] sm:$0xff] %v10597_v33  ;;  %v14023_v12 = vsel %vm1026_vm1, %v30025_v28, %v14022_v29 }
 0x33b   : > { %24654 = vmatpush3.bf16.msra.mxu1 %v26049_v52  ;;  %v10557_v48 = vadd.f32 %v30155_v4, %v10541_v39  ;;  %v10542_v54 = vadd.f32 %v10517_v23, %v10229_v43  ;;  %v14010_v52 = vor.u32 %v14009_v62, %v14005_v3  ;;  %v14277_v39 = vsel %vm10796_vm2, %v14269_v37, %v14276_v61  ;;  %v26059_v43 = vld [vmem:[%s31746_s2 + $0x200] sm:$0xff]   ;;  %v26060_v3 = vld [vmem:[%s31746_s2 + $0x1c8] sm:$0xff]  }
 0x33c   : > { %24576 = vmatmul.mubr.bf16.gmra.mrb[136].mxu0 %v13616_v11  ;;  %24655 = vmatprep.subr.bf16.mxu1 %v26051_v31  ;;  %v24185_v44 = vpop.f32.mrb[32].mxu0  ;;  %v14300_v37 = vor.u32 %v30089_v47, %v30143_v30 }
 0x33d   : > { %24579 = vmatprep.mubr.bf16.mxu0 %v30264_v59  ;;  %24624 = vmatpush3.bf16.msra.mxu0 %v26050_v57  ;;  %v10558_v58 = vadd.f32 %v30155_v4, %v10542_v54  ;;  %v10733_v15 = vpop.f32.mrb[33].mxu0  ;;  %v10573_v9 = vmax.f32 %v10557_v48, 0.0  ;;  %v26056_v4 = vld [vmem:[%s31746_s2 + $0x178] sm:$0xff]   ;;  %v14015_v20 = vsel %vm1026_vm1, %v14010_v52, %v29993_v22  ;;  %v26061_v44 = vld [vmem:[%s31746_s2 + $0x208] sm:$0xff]   ;;  %v14285_v52 = vsel %vm10796_vm2, %v30277_v10, %v30168_v14  ;;  %v26063_v10 = vld [vmem:[%s31746_s2 + $0x210] sm:$0xff]  }
 0x33e   : > { %24608 = vmatmul.mubr.bf16.gmra.mrb[136].mxu1 %v30078_v40  ;;  %24625 = vmatprep.subr.bf16.mxu0 %v26052_v13  ;;  %v24186_v49 = vpop.f32.mrb[34].mxu0 }
 0x33f   : > { %24611 = vmatprep.mubr.bf16.mxu1 %v30188_v27  ;;  %24656 = vmatpush3.bf16.msra.mxu1 %v26051_v31  ;;  %v10574_v56 = vmax.f32 %v10558_v58, 0.0  ;;  %v24217_v53 = vpop.f32.mrb[32].mxu1  ;;  %v10736_v31 = vpop.f32.mrb[35].mxu0  ;;  %v30346_v49 = vrot.slane %v30089_v47, 1 }
 0x340   : > { %24657 = vmatprep.subr.bf16.mxu1 %v26053_v51  ;;  %v10955_v57 = vpop.f32.mrb[33].mxu1  ;;  %v26062_v53 = vld [vmem:[%s31746_s2 + $0x1d0] sm:$0xff]  }
 0x341   : > { %24626 = vmatpush3.bf16.msra.mxu0 %v26052_v13  ;;  %v10599_v21 = vpack.c.bf16 %v10574_v56, %v10573_v9  ;;  %v30293_v41 = vadd.f32 %v10955_v57, %v10733_v15  ;;  %v24218_v34 = vpop.f32.mrb[34].mxu1  ;;  %v13632_v13 = vsel %vm10796_vm2, %v30223_v0, %v30168_v14 }
 0x342   : > { %24627 = vmatprep.subr.bf16.mxu0 %v26054_v35  ;;  %v10958_v25 = vpop.f32.mrb[35].mxu1 }
 0x343   : > { %24658 = vmatpush3.bf16.msra.mxu1 %v26053_v51  ;;  %10607 = vst [vmem:[#allocation2 + $0x110] sm:$0xff] %v10599_v21  ;;  %v30307_v33 = vadd.f32 %v10958_v25, %v10736_v31  ;;  %v30316_v51 = vor.u32 %v14271_v63, %v14022_v29  ;;  %v26064_v21 = vld [vmem:[%s31746_s2 + $0x1d8] sm:$0xff]   ;;  %v14054_v25 = vrot.slane %v13621_v55, 1  ;;  %v30388_v55 = vor.u32 %v14048_v2, %v30346_v49 }
 0x344   : > { %24580 = vmatmul.mubr.bf16.gmra.mrb[140].mxu0 %v13632_v13  ;;  %24659 = vmatprep.subr.bf16.mxu1 %v26055_v24  ;;  %v24189_v8 = vpop.f32.mrb[36].mxu0 }
 0x345   : > { %24628 = vmatpush3.bf16.msra.mxu0 %v26054_v35  ;;  %24631 = vmatprep.mubr.bf16.mxu0 %v14015_v20  ;;  %v10749_v11 = vpop.f32.mrb[37].mxu0  ;;  %v14292_v35 = vor.u32 %v14290_v45, %v30305_v60  ;;  %v14031_v15 = vsel %vm1026_vm1, %v30316_v51, %v29993_v22  ;;  %v13987_v8 = vld [vmem:[#allocation2 + $0xa0] sm:$0x1] }
 0x346   : > { %24612 = vmatmul.mubr.bf16.gmra.mrb[140].mxu1 %v30078_v40  ;;  %24629 = vmatprep.subr.bf16.mxu0 %v26056_v4  ;;  %v24190_v62 = vpop.f32.mrb[38].mxu0 }
 0x347   : > { %24660 = vmatpush3.bf16.msra.mxu1 %v26055_v24  ;;  %24663 = vmatprep.mubr.bf16.mxu1 %v14277_v39  ;;  %v24221_v23 = vpop.f32.mrb[36].mxu1  ;;  %v10752_v54 = vpop.f32.mrb[39].mxu0  ;;  %v30333_v24 = vrot.slane %v14290_v45, 1  ;;  %v14293_v56 = vsel %vm10796_vm2, %v30143_v30, %v14292_v35  ;;  %v26065_v30 = vld [vmem:[%s31746_s2 + $0x218] sm:$0xff]   ;;  %v30383_v39 = vrot.slane %v14319_v5, 7  ;;  %v14058_v5 = vor.u32 %v14054_v25, %v13618_v42  ;;  %v26068_v62 = vld [vmem:[%s31746_s2 + $0x1e8] sm:$0xff]  }
 0x348   : > { %24661 = vmatprep.subr.bf16.mxu1 %v26057_v19  ;;  %v10971_v48 = vpop.f32.mrb[37].mxu1  ;;  %v30408_v42 = vsel %vm1026_vm1, %v30388_v55, %v14054_v25  ;;  %v14068_v35 = vshll.u32 %v13987_v8, 16 }
 0x349   : > { %24630 = vmatpush3.bf16.msra.mxu0 %v26056_v4  ;;  %v30325_v58 = vadd.f32 %v10971_v48, %v10749_v11  ;;  %v24222_v63 = vpop.f32.mrb[38].mxu1  ;;  %v14042_v4 = vor.u32 %v14287_v16, %v30333_v24  ;;  %v14039_v16 = vsel %vm1026_vm1, %v30025_v28, %v30333_v24  ;;  %v26066_v28 = vld [vmem:[%s31746_s2 + $0x1e0] sm:$0xff]   ;;  %v30413_v36 = vsel %vm1026_vm1, %v14058_v5, %v30346_v49 }
 0x34a   : > { %24679 = vmatprep.subr.bf16.mxu0 %v26058_v38  ;;  %v10974_v7 = vpop.f32.mrb[39].mxu1  ;;  %v26067_v11 = vld [vmem:[%s31746_s2 + $0x220] sm:$0xff]   ;;  %v30423_v63 = vsel %vm10796_vm2, %v30223_v0, %v30106_v17 }
 0x34b   : > { %24662 = vmatpush3.bf16.msra.mxu1 %v26057_v19  ;;  %v30338_v9 = vadd.f32 %v10974_v7, %v10752_v54  ;;  %v30366_v47 = vsel %vm1026_vm1, %v14042_v4, %v30346_v49 }
 0x34c   : > { %24632 = vmatmul.mubr.bf16.vlgmr.msra.gmra.mrb[144].mxu0 %v14023_v12  ;;  %24711 = vmatprep.subr.bf16.mxu1 %v26059_v43  ;;  %v24193_v22 = vpop.f32.mrb[40].mxu0 }
 0x34d   : > { %24635 = vmatprep.mubr.bf16.mxu0 %v14031_v15  ;;  %24680 = vmatpush3.bf16.msra.mxu0 %v26058_v38  ;;  %v10765_v14 = vpop.f32.mrb[41].mxu0  ;;  %v14301_v38 = vsel %vm10796_vm2, %v30305_v60, %v14300_v37  ;;  %v14070_v15 = vrot.slane %v14068_v35, 1 }
 0x34e   : > { %24664 = vmatmul.mubr.bf16.vlgmr.msra.gmra.mrb[144].mxu1 %v14285_v52  ;;  %24681 = vmatprep.subr.bf16.mxu0 %v26060_v3  ;;  %v24194_v31 = vpop.f32.mrb[42].mxu0  ;;  %v26071_v52 = vld [vmem:[%s31746_s2 + $0x230] sm:$0xff]  }
 0x34f   : > { %24667 = vmatprep.mubr.bf16.mxu1 %v14293_v56  ;;  %24712 = vmatpush3.bf16.msra.mxu1 %v26059_v43  ;;  %v24225_v57 = vpop.f32.mrb[40].mxu1  ;;  %v10768_v19 = vpop.f32.mrb[43].mxu0 }
 0x350   : > { %24713 = vmatprep.subr.bf16.mxu1 %v26061_v44  ;;  %v10987_v61 = vpop.f32.mrb[41].mxu1 }
 0x351   : > { %24682 = vmatpush3.bf16.msra.mxu0 %v26060_v3  ;;  %v30359_v34 = vadd.f32 %v10987_v61, %v10765_v14  ;;  %v24226_v13 = vpop.f32.mrb[42].mxu1  ;;  %v14071_v61 = vsel %vm1026_vm1, %v30388_v55, %v14070_v15 }
 0x352   : > { %24683 = vmatprep.subr.bf16.mxu0 %v26062_v53  ;;  %v10990_v29 = vpop.f32.mrb[43].mxu1  ;;  %v30454_v13 = vsel %vm10796_vm2, %v30383_v39, %v30106_v17 }
 0x353   : > { %24714 = vmatpush3.bf16.msra.mxu1 %v26061_v44  ;;  %v30373_v20 = vadd.f32 %v10990_v29, %v10768_v19  ;;  %v26070_v44 = vld [vmem:[%s31746_s2 + $0x1f0] sm:$0xff]   ;;  %v26074_v29 = vld [vmem:[%s31746_s2 + $0x40] sm:$0xff]  }
 0x354   : > { %24636 = vmatmul.mubr.bf16.gmra.mrb[148].mxu0 %v14039_v16  ;;  %24715 = vmatprep.subr.bf16.mxu1 %v26063_v10  ;;  %v24197_v60 = vpop.f32.mrb[44].mxu0  ;;  %v14716_v16 = vsel %vm1026_vm1, %v30316_v51, %v30346_v49  ;;  %v26076_v51 = vld [vmem:[%s31746_s2 + $0x48] sm:$0xff]  }
 0x355   : > { %24639 = vmatprep.mubr.bf16.mxu0 %v30366_v47  ;;  %24684 = vmatpush3.bf16.msra.mxu0 %v26062_v53  ;;  %v10781_v43 = vpop.f32.mrb[45].mxu0  ;;  %v26072_v53 = vld [vmem:[%s31746_s2 + $0x1f8] sm:$0xff]  }
 0x356   : > { %24668 = vmatmul.mubr.bf16.gmra.mrb[148].mxu1 %v14301_v38  ;;  %24685 = vmatprep.subr.bf16.mxu0 %v26064_v21  ;;  %v24198_v23 = vpop.f32.mrb[46].mxu0 }
 0x357   : > { %24671 = vmatprep.mubr.bf16.mxu1 %v30264_v59  ;;  %24716 = vmatpush3.bf16.msra.mxu1 %v26063_v10  ;;  %v24229_v45 = vpop.f32.mrb[44].mxu1  ;;  %v10784_v2 = vpop.f32.mrb[47].mxu0  ;;  %v30399_v59 = vor.u32 %v14322_v50, %v30383_v39  ;;  %v26069_v50 = vld [vmem:[%s31746_s2 + $0x228] sm:$0xff]  }
 0x358   : > { %24717 = vmatprep.subr.bf16.mxu1 %v26065_v30  ;;  %v11003_v40 = vpop.f32.mrb[45].mxu1 }
 0x359   : > { %24686 = vmatpush3.bf16.msra.mxu0 %v26064_v21  ;;  %v30404_v48 = vadd.f32 %v11003_v40, %v10781_v43  ;;  %v24230_v54 = vpop.f32.mrb[46].mxu1  ;;  %v30433_v7 = vsel %vm10796_vm2, %v30093_v46, %v30399_v59  ;;  %v30476_v40 = vld [vmem:[#allocation2 + $0x28] sm:$0xff] }
 0x35a   : > { %24687 = vmatprep.subr.bf16.mxu0 %v26066_v28  ;;  %v11006_v3 = vpop.f32.mrb[47].mxu1  ;;  %v26079_v54 = vld [vmem:[%s31746_s2 + $0x10] sm:$0xff]  }
 0x35b   : > { %24718 = vmatpush3.bf16.msra.mxu1 %v26065_v30  ;;  %v30418_v12 = vadd.f32 %v11006_v3, %v10784_v2  ;;  %v14724_v2 = vsel %vm1026_vm1, %v30388_v55, %v30333_v24 }
 0x35c   : > { %24640 = vmatmul.mubr.bf16.gmra.mrb[152].mxu0 %v30408_v42  ;;  %24719 = vmatprep.subr.bf16.mxu1 %v26067_v11 }
 0x35d   : > { %24643 = vmatprep.mubr.bf16.mxu0 %v30413_v36  ;;  %24688 = vmatpush3.bf16.msra.mxu0 %v26066_v28  ;;  %v24249_v0 = vpop.f32.mrb[48].mxu0 }
 0x35e   : > { %24672 = vmatmul.mubr.bf16.gmra.mrb[152].mxu1 %v30423_v63  ;;  %24689 = vmatprep.subr.bf16.mxu0 %v26068_v62  ;;  %v11202_v56 = vpop.f32.mrb[49].mxu0 }
 0x35f   : > { %24675 = vmatprep.mubr.bf16.mxu1 %v30433_v7  ;;  %24720 = vmatpush3.bf16.msra.mxu1 %v26067_v11  ;;  %v24281_v22 = vpop.f32.mrb[48].mxu1  ;;  %v11265_v14 = vadd.f32 %v11202_v56, %v30293_v41  ;;  %v24250_v10 = vpop.f32.mrb[50].mxu0  ;;  %v26073_v41 = vld [vmem:[%s31746_s2 + $0x238] sm:$0xff]  }
 0x360   : > { %24721 = vmatprep.subr.bf16.mxu1 %v26069_v50  ;;  %v11465_v4 = vpop.f32.mrb[49].mxu1  ;;  %v11205_v57 = vpop.f32.mrb[51].mxu0  ;;  %v26081_v22 = vld [vmem:[%s31746_s2 + $0x18] sm:$0xff]  }
 0x361   : > { %24690 = vmatpush3.bf16.msra.mxu0 %v26068_v62  ;;  %v24282_v31 = vpop.f32.mrb[50].mxu1  ;;  %v11266_v37 = vadd.f32 %v11205_v57, %v30307_v33  ;;  %v30446_v19 = vadd.f32 %v11465_v4, %v11265_v14  ;;  %v26078_v62 = vld [vmem:[%s31746_s2 + $0x50] sm:$0xff]  }
 0x362   : > { %24691 = vmatprep.subr.bf16.mxu0 %v26070_v44  ;;  %v11468_v21 = vpop.f32.mrb[51].mxu1  ;;  %v14688_v14 = vld [vmem:[#allocation2 + $0xb0] sm:$0x1] }
 0x363   : > { %24722 = vmatpush3.bf16.msra.mxu1 %v26069_v50  ;;  %v30457_v33 = vadd.f32 %v11468_v21, %v11266_v37  ;;  %v15118_v37 = vld [vmem:[#allocation2 + $0x88] sm:$0x80] }
 0x364   : > { %24644 = vmatmul.mubr.bf16.gmra.mrb[156].mxu0 %v14071_v61  ;;  %24723 = vmatprep.subr.bf16.mxu1 %v26071_v52 }
 0x365   : > { %24692 = vmatpush3.bf16.msra.mxu0 %v26070_v44  ;;  %24695 = vmatprep.mubr.bf16.mxu0 %v30231_v1  ;;  %v24253_v30 = vpop.f32.mrb[52].mxu0  ;;  %v26075_v1 = vld [vmem:[%s31746_s2] sm:$0xff]  }
 0x366   : > { %24676 = vmatmul.mubr.bf16.gmra.mrb[156].mxu1 %v30454_v13  ;;  %24693 = vmatprep.subr.bf16.mxu0 %v26072_v53  ;;  %v11218_v25 = vpop.f32.mrb[53].mxu0  ;;  %v14769_v30 = vshll.u32 %v14688_v14, 16 }
 0x367   : > { %24724 = vmatpush3.bf16.msra.mxu1 %v26071_v52  ;;  %24727 = vmatprep.mubr.bf16.mxu1 %v14716_v16  ;;  %v24285_v38 = vpop.f32.mrb[52].mxu1  ;;  %v11269_v28 = vadd.f32 %v11218_v25, %v30325_v58  ;;  %v24254_v60 = vpop.f32.mrb[54].mxu0  ;;  %v26077_v58 = vld [vmem:[%s31746_s2 + $0x8] sm:$0xff]  }
 0x368   : > { %24725 = vmatprep.subr.bf16.mxu1 %v26073_v41  ;;  %v11481_v8 = vpop.f32.mrb[53].mxu1  ;;  %v11221_v43 = vpop.f32.mrb[55].mxu0  ;;  %v14756_v38 = vsel %vm1026_vm1, %v30388_v55, %v30179_v6  ;;  %v14764_v60 = vsel %vm1026_vm1, %v30205_v18, %v30346_v49 }
 0x369   : > { %24694 = vmatpush3.bf16.msra.mxu0 %v26072_v53  ;;  %v24286_v11 = vpop.f32.mrb[54].mxu1  ;;  %v11270_v5 = vadd.f32 %v11221_v43, %v30338_v9  ;;  %v30474_v45 = vadd.f32 %v11481_v8, %v11269_v28  ;;  %v30531_v28 = vld [vmem:[#allocation2 + $0xa0] sm:$0xff]  ;;  %v26087_v43 = vld [vmem:[%s31746_s2 + $0x30] sm:$0xff]  }
 0x36a   : > { %24743 = vmatprep.subr.bf16.mxu0 %v26074_v29  ;;  %v11484_v23 = vpop.f32.mrb[55].mxu1 }
 0x36b   : > { %24726 = vmatpush3.bf16.msra.mxu1 %v26073_v41  ;;  %v30486_v9 = vadd.f32 %v11484_v23, %v11270_v5  ;;  %v14771_v5 = vrot.slane %v14769_v30, 1 }
 0x36c   : > { %24696 = vmatmul.mubr.bf16.vlgmr.msra.gmra.mrb[160].mxu0 %v30476_v40  ;;  %24775 = vmatprep.subr.bf16.mxu1 %v26075_v1 }
 0x36d   : > { %24699 = vmatprep.mubr.bf16.mxu0 %v30268_v26  ;;  %24744 = vmatpush3.bf16.msra.mxu0 %v26074_v29  ;;  %v24257_v35 = vpop.f32.mrb[56].mxu0  ;;  %v26080_v26 = vld [vmem:[%s31746_s2 + $0x58] sm:$0xff]   ;;  %v26085_v29 = vld [vmem:[%s31746_s2 + $0x28] sm:$0xff]  }
 0x36e   : > { %24728 = vmatmul.mubr.bf16.vlgmr.msra.gmra.mrb[160].mxu1 %v14724_v2  ;;  %24745 = vmatprep.subr.bf16.mxu0 %v26076_v51  ;;  %v11234_v24 = vpop.f32.mrb[57].mxu0 }
 0x36f   : > { %24731 = vmatprep.mubr.bf16.mxu1 %v30366_v47  ;;  %24776 = vmatpush3.bf16.msra.mxu1 %v26075_v1  ;;  %v24289_v3 = vpop.f32.mrb[56].mxu1  ;;  %v11273_v50 = vadd.f32 %v11234_v24, %v30359_v34  ;;  %v24258_v44 = vpop.f32.mrb[58].mxu0  ;;  %v15305_v1 = vshrl.u32 %v15118_v37, 16 }
 0x370   : > { %24777 = vmatprep.subr.bf16.mxu1 %v26077_v58  ;;  %v11497_v0 = vpop.f32.mrb[57].mxu1  ;;  %v11237_v15 = vpop.f32.mrb[59].mxu0  ;;  %v30556_v44 = vld [vmem:[#allocation2 + $0xb0] sm:$0xff] }
 0x371   : > { %24746 = vmatpush3.bf16.msra.mxu0 %v26076_v51  ;;  %v24290_v52 = vpop.f32.mrb[58].mxu1  ;;  %v11274_v47 = vadd.f32 %v11237_v15, %v30373_v20  ;;  %v30500_v56 = vadd.f32 %v11497_v0, %v11273_v50  ;;  %v26082_v20 = vld [vmem:[%s31746_s2 + $0x60] sm:$0xff]   ;;  %v26086_v51 = vld [vmem:[%s31746_s2 + $0x70] sm:$0xff]   ;;  %v15307_v49 = vrot.slane %v15305_v1, 7  ;;  %v14772_v15 = vsel %vm1026_vm1, %v30388_v55, %v14771_v5 }
 0x372   : > { %24747 = vmatprep.subr.bf16.mxu0 %v26078_v62  ;;  %v11500_v53 = vpop.f32.mrb[59].mxu1  ;;  %v26231_v52 = vld [vmem:[#allocation2 + $0x90] sm:$0xff]  ;;  %v15344_v30 = vshll.u32 %v30556_v44, 16 }
 0x373   : > { %24778 = vmatpush3.bf16.msra.mxu1 %v26077_v58  ;;  %v30507_v34 = vadd.f32 %v11500_v53, %v11274_v47  ;;  %v26090_v47 = vld [vmem:[%s31746_s2 + $0x80] sm:$0xff]  }
 0x374   : > { %24700 = vmatmul.mubr.bf16.gmra.mrb[164].mxu0 %v30476_v40  ;;  %24779 = vmatprep.subr.bf16.mxu1 %v26079_v54 }
 0x375   : > { %24703 = vmatprep.mubr.bf16.mxu0 %v30188_v27  ;;  %24748 = vmatpush3.bf16.msra.mxu0 %v26078_v62  ;;  %v24261_v10 = vpop.f32.mrb[60].mxu0  ;;  %v26083_v27 = vld [vmem:[%s31746_s2 + $0x20] sm:$0xff]   ;;  %v26088_v62 = vld [vmem:[%s31746_s2 + $0x78] sm:$0xff]  }
 0x376   : > { %24732 = vmatmul.mubr.bf16.gmra.mrb[164].mxu1 %v30408_v42  ;;  %24749 = vmatprep.subr.bf16.mxu0 %v26080_v26  ;;  %v11250_v4 = vpop.f32.mrb[61].mxu0 }
 0x377   : > { %24735 = vmatprep.mubr.bf16.mxu1 %v30413_v36  ;;  %24780 = vmatpush3.bf16.msra.mxu1 %v26079_v54  ;;  %v24293_v57 = vpop.f32.mrb[60].mxu1  ;;  %v11277_v31 = vadd.f32 %v11250_v4, %v30404_v48  ;;  %v24262_v42 = vpop.f32.mrb[62].mxu0  ;;  %v26084_v36 = vld [vmem:[%s31746_s2 + $0x68] sm:$0xff]  }
 0x378   : > { %24781 = vmatprep.subr.bf16.mxu1 %v26081_v22  ;;  %v11513_v61 = vpop.f32.mrb[61].mxu1  ;;  %v11253_v21 = vpop.f32.mrb[63].mxu0 }
 0x379   : > { %24750 = vmatpush3.bf16.msra.mxu0 %v26080_v26  ;;  %v24294_v41 = vpop.f32.mrb[62].mxu1  ;;  %v11278_v16 = vadd.f32 %v11253_v21, %v30418_v12  ;;  %v30525_v48 = vadd.f32 %v11513_v61, %v11277_v31  ;;  %v26093_v61 = vld [vmem:[%s31746_s2 + $0xc8] sm:$0xff]  }
 0x37a   : > { %24751 = vmatprep.subr.bf16.mxu0 %v26082_v20  ;;  %v11516_v25 = vpop.f32.mrb[63].mxu1  ;;  %v26095_v41 = vld [vmem:[%s31746_s2 + $0xd0] sm:$0xff]  }
 0x37b   : > { %24782 = vmatpush3.bf16.msra.mxu1 %v26081_v22  ;;  %v30534_v12 = vadd.f32 %v11516_v25, %v11278_v16  ;;  %v26091_v22 = vld [vmem:[%s31746_s2 + $0xc0] sm:$0xff]   ;;  %v26096_v25 = vld [vmem:[%s31746_s2 + $0x98] sm:$0xff]  }
 0x37c   : > { %24704 = vmatmul.mubr.bf16.gmra.mrb[168].mxu0 %v30476_v40  ;;  %24783 = vmatprep.subr.bf16.mxu1 %v26083_v27 }
 0x37d   : > { %24707 = vmatprep.mubr.bf16.mxu0 %v30531_v28  ;;  %24752 = vmatpush3.bf16.msra.mxu0 %v26082_v20  ;;  %v24313_v8 = vpop.f32.mrb[64].mxu0  ;;  %v26092_v20 = vld [vmem:[%s31746_s2 + $0x88] sm:$0xff]  }
 0x37e   : > { %24736 = vmatmul.mubr.bf16.gmra.mrb[168].mxu1 %v14756_v38  ;;  %24753 = vmatprep.subr.bf16.mxu0 %v26084_v36  ;;  %v11643_v11 = vpop.f32.mrb[65].mxu0 }
 0x37f   : > { %24739 = vmatprep.mubr.bf16.mxu1 %v14764_v60  ;;  %24784 = vmatpush3.bf16.msra.mxu1 %v26083_v27  ;;  %v24345_v23 = vpop.f32.mrb[64].mxu1  ;;  %v11706_v58 = vadd.f32 %v11643_v11, %v30446_v19  ;;  %v24314_v2 = vpop.f32.mrb[66].mxu0  ;;  %v26089_v19 = vld [vmem:[%s31746_s2 + $0x38] sm:$0xff]  }
 0x380   : > { %24785 = vmatprep.subr.bf16.mxu1 %v26085_v29  ;;  %v11906_v54 = vpop.f32.mrb[65].mxu1  ;;  %v11646_v35 = vpop.f32.mrb[67].mxu0  ;;  %v15525_v2 = vld [vmem:[#allocation2 + $0x90] sm:$0xff] }
 0x381   : > { %24754 = vmatpush3.bf16.msra.mxu0 %v26084_v36  ;;  %v30549_v24 = vadd.f32 %v11906_v54, %v11706_v58  ;;  %v24346_v26 = vpop.f32.mrb[66].mxu1  ;;  %v11707_v3 = vadd.f32 %v11646_v35, %v30457_v33  ;;  %v15315_v33 = vsel %vm10796_vm2, %v15307_v49, %v30247_v32  ;;  %v15341_v32 = vshrl.u32 %v30556_v44, 16 }
 0x382   : > { %24755 = vmatprep.subr.bf16.mxu0 %v26086_v51  ;;  %v11909_v50 = vpop.f32.mrb[67].mxu1 }
 0x383   : > { %24786 = vmatpush3.bf16.msra.mxu1 %v26085_v29  ;;  %v30558_v0 = vadd.f32 %v11909_v50, %v11707_v3  ;;  %v30596_v16 = vrot.slane %v15341_v32, 7  ;;  %v15553_v50 = vshll.u32 %v15525_v2, 16 }
 0x384   : > { %24708 = vmatmul.mubr.bf16.gmra.mrb[172].mxu0 %v30476_v40  ;;  %24787 = vmatprep.subr.bf16.mxu1 %v26087_v43 }
 0x385   : > { %24756 = vmatpush3.bf16.msra.mxu0 %v26086_v51  ;;  %24759 = vmatprep.mubr.bf16.mxu0 %v26231_v52  ;;  %v24317_v53 = vpop.f32.mrb[68].mxu0 }
 0x386   : > { %24740 = vmatmul.mubr.bf16.gmra.mrb[172].mxu1 %v14772_v15  ;;  %24757 = vmatprep.subr.bf16.mxu0 %v26088_v62  ;;  %v11659_v55 = vpop.f32.mrb[69].mxu0 }
 0x387   : > { %24788 = vmatpush3.bf16.msra.mxu1 %v26087_v43  ;;  %24791 = vmatprep.mubr.bf16.mxu1 %v15315_v33  ;;  %v24349_v14 = vpop.f32.mrb[68].mxu1  ;;  %v11710_v10 = vadd.f32 %v11659_v55, %v30474_v45  ;;  %v24318_v4 = vpop.f32.mrb[70].mxu0  ;;  %v30582_v45 = vld [vmem:[#allocation2 + $0xc0] sm:$0xff] }
 0x388   : > { %24789 = vmatprep.subr.bf16.mxu1 %v26089_v19  ;;  %v11922_v27 = vpop.f32.mrb[69].mxu1  ;;  %v11662_v57 = vpop.f32.mrb[71].mxu0  ;;  %v15357_v1 = vshrl.u32 %v30582_v45, 16  ;;  %v15360_v26 = vshll.u32 %v30582_v45, 16  ;;  %v15558_v4 = vshll.u32 %v30476_v40, 16 }
 0x389   : > { %24758 = vmatpush3.bf16.msra.mxu0 %v26088_v62  ;;  %v30575_v31 = vadd.f32 %v11922_v27, %v11710_v10  ;;  %v24350_v42 = vpop.f32.mrb[70].mxu1  ;;  %v11711_v37 = vadd.f32 %v11662_v57, %v30486_v9  ;;  %v26094_v9 = vld [vmem:[%s31746_s2 + $0x90] sm:$0xff]   ;;  %v26098_v62 = vld [vmem:[%s31746_s2 + $0xa0] sm:$0xff]   ;;  %v15555_v57 = vrot.slane %v15553_v50, 1 }
 0x38a   : > { %24807 = vmatprep.subr.bf16.mxu0 %v26090_v47  ;;  %v11925_v21 = vpop.f32.mrb[71].mxu1  ;;  %v30629_v54 = vrot.slane %v15357_v1, 7  ;;  %v15355_v42 = vsel %vm10796_vm2, %v30596_v16, %v30106_v17  ;;  %v26106_v50 = vld [vmem:[%s31746_s2 + $0x100] sm:$0xff]  }
 0x38b   : > { %24790 = vmatpush3.bf16.msra.mxu1 %v26089_v19  ;;  %v30584_v36 = vadd.f32 %v11925_v21, %v11711_v37  ;;  %v26100_v19 = vld [vmem:[%s31746_s2 + $0xa8] sm:$0xff]   ;;  %v26102_v21 = vld [vmem:[%s31746_s2 + $0xb0] sm:$0xff]  }
 0x38c   : > { %24760 = vmatmul.mubr.bf16.vlgmr.msra.gmra.mrb[176].mxu0 %v30476_v40  ;;  %24839 = vmatprep.subr.bf16.mxu1 %v26091_v22  ;;  %v30642_v55 = vor.u32 %v15360_v26, %v30629_v54 }
 0x38d   : > { %24763 = vmatprep.mubr.bf16.mxu0 %v30531_v28  ;;  %24808 = vmatpush3.bf16.msra.mxu0 %v26090_v47  ;;  %v24321_v29 = vpop.f32.mrb[72].mxu0  ;;  %v15787_v47 = vld [vmem:[#allocation2 + $0x98] sm:$0x80] }
 0x38e   : > { %24792 = vmatmul.mubr.bf16.vlgmr.msra.gmra.mrb[176].mxu1 %v30423_v63  ;;  %24809 = vmatprep.subr.bf16.mxu0 %v26092_v20  ;;  %v11675_v63 = vpop.f32.mrb[73].mxu0  ;;  %v26103_v29 = vld [vmem:[%s31746_s2 + $0xf0] sm:$0xff]  }
 0x38f   : > { %24795 = vmatprep.mubr.bf16.mxu1 %v30433_v7  ;;  %24840 = vmatpush3.bf16.msra.mxu1 %v26091_v22  ;;  %v11714_v60 = vadd.f32 %v11675_v63, %v30500_v56  ;;  %v24322_v51 = vpop.f32.mrb[74].mxu0  ;;  %v30608_v7 = vor.u32 %v15344_v30, %v30596_v16  ;;  %v26097_v56 = vld [vmem:[%s31746_s2 + $0xd8] sm:$0xff]   ;;  %v30667_v63 = vrot.slane %v15558_v4, 1 }
 0x390   : > { %24841 = vmatprep.subr.bf16.mxu1 %v26093_v61  ;;  %v11678_v43 = vpop.f32.mrb[75].mxu0 }
 0x391   : > { %v24353_v38 = vpop.f32.mrb[72].mxu1  ;;  %24810 = vmatpush3.bf16.msra.mxu0 %v26092_v20  ;;  %v11715_v23 = vadd.f32 %v11678_v43, %v30507_v34  ;;  %v15347_v34 = vsel %vm10796_vm2, %v30093_v46, %v30608_v7 }
 0x392   : > { %v11938_v8 = vpop.f32.mrb[73].mxu1  ;;  %24811 = vmatprep.subr.bf16.mxu0 %v26094_v9 }
 0x393   : > { %v30610_v11 = vadd.f32 %v11938_v8, %v11714_v60  ;;  %v24354_v5 = vpop.f32.mrb[74].mxu1  ;;  %24842 = vmatpush3.bf16.msra.mxu1 %v26093_v61  ;;  %v15363_v61 = vsel %vm10796_vm2, %v30093_v46, %v30642_v55  ;;  %v15562_v46 = vshrl.u32 %v30476_v40, 16 }
 0x394   : > { %v11941_v58 = vpop.f32.mrb[75].mxu1  ;;  %24764 = vmatmul.mubr.bf16.gmra.mrb[180].mxu0 %v30476_v40  ;;  %24843 = vmatprep.subr.bf16.mxu1 %v26095_v41  ;;  %v26104_v5 = vld [vmem:[%s31746_s2 + $0xb8] sm:$0xff]  }
 0x395   : > { %v30617_v49 = vadd.f32 %v11941_v58, %v11715_v23  ;;  %24767 = vmatprep.mubr.bf16.mxu0 %v30556_v44  ;;  %24812 = vmatpush3.bf16.msra.mxu0 %v26094_v9  ;;  %v24325_v35 = vpop.f32.mrb[76].mxu0  ;;  %v15551_v9 = vshrl.u32 %v15525_v2, 16 }
 0x396   : > { %24796 = vmatmul.mubr.bf16.gmra.mrb[180].mxu1 %v30454_v13  ;;  %24813 = vmatprep.subr.bf16.mxu0 %v26096_v25  ;;  %v26099_v13 = vld [vmem:[%s31746_s2 + $0xe0] sm:$0xff]   ;;  %v11691_v3 = vpop.f32.mrb[77].mxu0  ;;  %v26105_v35 = vld [vmem:[%s31746_s2 + $0xf8] sm:$0xff]  }
 0x397   : > { %24799 = vmatprep.mubr.bf16.mxu1 %v15347_v34  ;;  %24844 = vmatpush3.bf16.msra.mxu1 %v26095_v41  ;;  %v11718_v52 = vadd.f32 %v11691_v3, %v30525_v48  ;;  %v24326_v33 = vpop.f32.mrb[78].mxu0  ;;  %v26101_v48 = vld [vmem:[%s31746_s2 + $0xe8] sm:$0xff]   ;;  %v15556_v38 = vor.u32 %v15555_v57, %v15551_v9 }
 0x398   : > { %24845 = vmatprep.subr.bf16.mxu1 %v26097_v56  ;;  %v11694_v22 = vpop.f32.mrb[79].mxu0  ;;  %v26108_v33 = vld [vmem:[%s31746_s2 + $0x108] sm:$0xff]  }
 0x399   : > { %v24357_v15 = vpop.f32.mrb[76].mxu1  ;;  %24814 = vmatpush3.bf16.msra.mxu0 %v26096_v25  ;;  %v11719_v10 = vadd.f32 %v11694_v22, %v30534_v12  ;;  %v15813_v12 = vshrl.u32 %v15787_v47, 16 }
 0x39a   : > { %v11954_v53 = vpop.f32.mrb[77].mxu1  ;;  %24815 = vmatprep.subr.bf16.mxu0 %v26098_v62  ;;  %v26107_v15 = vld [vmem:[%s31746_s2 + $0x140] sm:$0xff]  }
 0x39b   : > { %v30644_v20 = vadd.f32 %v11954_v53, %v11718_v52  ;;  %v24358_v14 = vpop.f32.mrb[78].mxu1  ;;  %24846 = vmatpush3.bf16.msra.mxu1 %v26097_v56  ;;  %v15815_v43 = vrot.slane %v15813_v12, 7 }
 0x39c   : > { %v11957_v27 = vpop.f32.mrb[79].mxu1  ;;  %24768 = vmatmul.mubr.bf16.gmra.mrb[184].mxu0 %v30476_v40  ;;  %24847 = vmatprep.subr.bf16.mxu1 %v26099_v13 }
 0x39d   : > { %v30655_v37 = vadd.f32 %v11957_v27, %v11719_v10  ;;  %24771 = vmatprep.mubr.bf16.mxu0 %v30582_v45  ;;  %24816 = vmatpush3.bf16.msra.mxu0 %v26098_v62  ;;  %v24377_v41 = vpop.f32.mrb[80].mxu0 }
 0x39e   : > { %24800 = vmatmul.mubr.bf16.gmra.mrb[184].mxu1 %v15355_v42  ;;  %24817 = vmatprep.subr.bf16.mxu0 %v26100_v19  ;;  %v12169_v25 = vpop.f32.mrb[81].mxu0 }
 0x39f   : > { %24803 = vmatprep.mubr.bf16.mxu1 %v15363_v61  ;;  %24848 = vmatpush3.bf16.msra.mxu1 %v26099_v13  ;;  %v12232_v51 = vadd.f32 %v12169_v25, %v30549_v24  ;;  %v24378_v8 = vpop.f32.mrb[82].mxu0  ;;  %v15561_v24 = vsel %vm1026_vm1, %v15556_v38, %v30667_v63  ;;  %v15371_v13 = vsel %vm10796_vm2, %v30629_v54, %v30106_v17  ;;  %v30722_v61 = vld [vmem:[#allocation2 + $0xd0] sm:$0xff] }
 0x3a0   : > { %24849 = vmatprep.subr.bf16.mxu1 %v26101_v48  ;;  %v12172_v56 = vpop.f32.mrb[83].mxu0  ;;  %v15865_v25 = vshrl.u32 %v30722_v61, 16 }
 0x3a1   : > { %v24409_v60 = vpop.f32.mrb[80].mxu1  ;;  %24818 = vmatpush3.bf16.msra.mxu0 %v26100_v19  ;;  %v12233_v34 = vadd.f32 %v12172_v56, %v30558_v0  ;;  %v30688_v0 = vrot.slane %v15562_v46, 7  ;;  %v15823_v19 = vsel %vm10796_vm2, %v15815_v43, %v30399_v59  ;;  %v26113_v56 = vld [vmem:[%s31746_s2 + $0x158] sm:$0xff]  }
 0x3a2   : > { %v12347_v23 = vpop.f32.mrb[81].mxu1  ;;  %24819 = vmatprep.subr.bf16.mxu0 %v26102_v21 }
 0x3a3   : > { %v30674_v58 = vadd.f32 %v12347_v23, %v12232_v51  ;;  %v24410_v2 = vpop.f32.mrb[82].mxu1  ;;  %24850 = vmatpush3.bf16.msra.mxu1 %v26101_v48  ;;  %v30705_v59 = vor.u32 %v30688_v0, %v15558_v4  ;;  %v26109_v4 = vld [vmem:[%s31746_s2 + $0x148] sm:$0xff]  }
 0x3a4   : > { %v12350_v62 = vpop.f32.mrb[83].mxu1  ;;  %24772 = vmatmul.mubr.bf16.gmra.mrb[188].mxu0 %v30476_v40  ;;  %24851 = vmatprep.subr.bf16.mxu1 %v26103_v29  ;;  %v30691_v40 = vor.u32 %v15562_v46, %v30667_v63 }
 0x3a5   : > { %v30686_v3 = vadd.f32 %v12350_v62, %v12233_v34  ;;  %24820 = vmatpush3.bf16.msra.mxu0 %v26102_v21  ;;  %24823 = vmatprep.mubr.bf16.mxu0 %v15561_v24  ;;  %v24381_v17 = vpop.f32.mrb[84].mxu0  ;;  %v15600_v34 = vrot.slane %v15360_v26, 1  ;;  %v15847_v62 = vsel %vm10796_vm2, %v30596_v16, %v30705_v59  ;;  %v15855_v24 = vsel %vm10796_vm2, %v30688_v0, %v30642_v55 }
 0x3a6   : > { %24804 = vmatmul.mubr.bf16.gmra.mrb[188].mxu1 %v15371_v13  ;;  %24821 = vmatprep.subr.bf16.mxu0 %v26104_v5  ;;  %v12185_v52 = vpop.f32.mrb[85].mxu0  ;;  %v15569_v14 = vsel %vm1026_vm1, %v30691_v40, %v30179_v6  ;;  %v15577_v6 = vsel %vm1026_vm1, %v30205_v18, %v30667_v63  ;;  %v26110_v18 = vld [vmem:[%s31746_s2 + $0x110] sm:$0xff]   ;;  %v30776_v26 = vrot.slane %v15865_v25, 7  ;;  %v16226_v13 = vld [vmem:[#allocation2 + $0xa0] sm:$0xff]  ;;  %v15868_v17 = vshll.u32 %v30722_v61, 16 }
 0x3a7   : > { %24852 = vmatpush3.bf16.msra.mxu1 %v26103_v29  ;;  %24855 = vmatprep.mubr.bf16.mxu1 %v15823_v19  ;;  %v12236_v53 = vadd.f32 %v12185_v52, %v30575_v31  ;;  %v24382_v22 = vpop.f32.mrb[86].mxu0  ;;  %v15584_v31 = vrot.slane %v15344_v30, 1  ;;  %v15839_v30 = vsel %vm10796_vm2, %v30688_v0, %v30608_v7  ;;  %v26112_v7 = vld [vmem:[%s31746_s2 + $0x118] sm:$0xff]   ;;  %v15604_v55 = vor.u32 %v15600_v34, %v15357_v1  ;;  %v26116_v1 = vld [vmem:[%s31746_s2 + $0x128] sm:$0xff]  }
 0x3a8   : > { %24853 = vmatprep.subr.bf16.mxu1 %v26105_v35  ;;  %v12188_v48 = vpop.f32.mrb[87].mxu0 }
 0x3a9   : > { %v24413_v47 = vpop.f32.mrb[84].mxu1  ;;  %24822 = vmatpush3.bf16.msra.mxu0 %v26104_v5  ;;  %v12237_v42 = vadd.f32 %v12188_v48, %v30584_v36  ;;  %v15831_v36 = vsel %vm10796_vm2, %v30383_v39, %v30705_v59  ;;  %v26111_v39 = vld [vmem:[%s31746_s2 + $0x150] sm:$0xff]   ;;  %v15588_v29 = vor.u32 %v15584_v31, %v15341_v32  ;;  %v30750_v23 = vsel %vm1026_vm1, %v30691_v40, %v15584_v31 }
 0x3aa   : > { %v12363_v10 = vpop.f32.mrb[85].mxu1  ;;  %24871 = vmatprep.subr.bf16.mxu0 %v26106_v50 }
 0x3ab   : > { %v30711_v27 = vadd.f32 %v12363_v10, %v12236_v53  ;;  %v24414_v57 = vpop.f32.mrb[86].mxu1  ;;  %24854 = vmatpush3.bf16.msra.mxu1 %v26105_v35  ;;  %v30758_v2 = vsel %vm1026_vm1, %v15588_v29, %v30667_v63  ;;  %v26114_v35 = vld [vmem:[%s31746_s2 + $0x120] sm:$0xff]   ;;  %v16254_v10 = vshll.u32 %v16226_v13, 16 }
 0x3ac   : > { %v12366_v12 = vpop.f32.mrb[87].mxu1  ;;  %24824 = vmatmul.mubr.bf16.vlgmr.msra.gmra.mrb[192].mxu0 %v15569_v14  ;;  %24903 = vmatprep.subr.bf16.mxu1 %v26107_v15  ;;  %v30788_v14 = vor.u32 %v15868_v17, %v30776_v26 }
 0x3ad   : > { %v30727_v21 = vadd.f32 %v12366_v12, %v12237_v42  ;;  %24827 = vmatprep.mubr.bf16.mxu0 %v15577_v6  ;;  %24872 = vmatpush3.bf16.msra.mxu0 %v26106_v50  ;;  %v24385_v9 = vpop.f32.mrb[88].mxu0  ;;  %v26115_v50 = vld [vmem:[%s31746_s2 + $0x160] sm:$0xff]   ;;  %v30798_v42 = vsel %vm1026_vm1, %v30691_v40, %v15600_v34  ;;  %v30803_v12 = vsel %vm1026_vm1, %v15604_v55, %v30667_v63  ;;  %v26117_v6 = vld [vmem:[%s31746_s2 + $0x168] sm:$0xff]   ;;  %v26120_v34 = vld [vmem:[%s31746_s2 + $0x138] sm:$0xff]  }
 0x3ae   : > { %24856 = vmatmul.mubr.bf16.vlgmr.msra.gmra.mrb[192].mxu1 %v15831_v36  ;;  %24873 = vmatprep.subr.bf16.mxu0 %v26108_v33  ;;  %v12201_v41 = vpop.f32.mrb[89].mxu0  ;;  %v26118_v9 = vld [vmem:[%s31746_s2 + $0x130] sm:$0xff]  }
 0x3af   : > { %24859 = vmatprep.mubr.bf16.mxu1 %v15839_v30  ;;  %24904 = vmatpush3.bf16.msra.mxu1 %v26107_v15  ;;  %v12240_v46 = vadd.f32 %v12201_v41, %v30610_v11  ;;  %v24386_v60 = vpop.f32.mrb[90].mxu0  ;;  %v15533_v15 = vld [vmem:[#allocation2 + $0xd0] sm:$0x1]  ;;  %v15871_v30 = vsel %vm10796_vm2, %v30688_v0, %v30788_v14 }
 0x3b0   : > { %24905 = vmatprep.subr.bf16.mxu1 %v26109_v4  ;;  %v12204_v8 = vpop.f32.mrb[91].mxu0 }
 0x3b1   : > { %v24417_v38 = vpop.f32.mrb[88].mxu1  ;;  %24874 = vmatpush3.bf16.msra.mxu0 %v26108_v33  ;;  %v12241_v32 = vadd.f32 %v12204_v8, %v30617_v49 }
 0x3b2   : > { %v12379_v51 = vpop.f32.mrb[89].mxu1  ;;  %24875 = vmatprep.subr.bf16.mxu0 %v26110_v18  ;;  %v26119_v38 = vld [vmem:[%s31746_s2 + $0x170] sm:$0xff]  }
 0x3b3   : > { %v30745_v43 = vadd.f32 %v12379_v51, %v12240_v46  ;;  %v24418_v5 = vpop.f32.mrb[90].mxu1  ;;  %24906 = vmatpush3.bf16.msra.mxu1 %v26109_v4  ;;  %v15614_v4 = vshll.u32 %v15533_v15, 16  ;;  %v16252_v46 = vshrl.u32 %v16226_v13, 16  ;;  %v15879_v15 = vsel %vm10796_vm2, %v30776_v26, %v30705_v59 }
 0x3b4   : > { %v12382_v11 = vpop.f32.mrb[91].mxu1  ;;  %24828 = vmatmul.mubr.bf16.gmra.mrb[196].mxu0 %v30750_v23  ;;  %24907 = vmatprep.subr.bf16.mxu1 %v26111_v39 }
 0x3b5   : > { %v30762_v49 = vadd.f32 %v12382_v11, %v12241_v32  ;;  %24831 = vmatprep.mubr.bf16.mxu0 %v30758_v2  ;;  %24876 = vmatpush3.bf16.msra.mxu0 %v26110_v18  ;;  %v24389_v16 = vpop.f32.mrb[92].mxu0  ;;  %v21832_v18 = vld [vmem:[%s26321_s20 + $0x20] sm:$0xff]   ;;  %v15616_v29 = vrot.slane %v15614_v4, 1 }
 0x3b6   : > { %24860 = vmatmul.mubr.bf16.gmra.mrb[196].mxu1 %v15847_v62  ;;  %24877 = vmatprep.subr.bf16.mxu0 %v26112_v7  ;;  %v12217_v19 = vpop.f32.mrb[93].mxu0  ;;  %v21690_v8 = vunpack.c.l.bf16 %v21832_v18 }
 0x3b7   : > { %24863 = vmatprep.mubr.bf16.mxu1 %v15855_v24  ;;  %24908 = vmatpush3.bf16.msra.mxu1 %v26111_v39  ;;  %v12244_v33 = vadd.f32 %v12217_v19, %v30644_v20  ;;  %v24390_v47 = vpop.f32.mrb[94].mxu0  ;;  %v16256_v39 = vrot.slane %v16254_v10, 1  ;;  %v15617_v16 = vsel %vm1026_vm1, %v30691_v40, %v15616_v29  ;;  %v26121_v19 = vld [vmem:[%s31746_s2 + $0x178] sm:$0xff]  }
 0x3b8   : > { %24909 = vmatprep.subr.bf16.mxu1 %v26113_v56  ;;  %v12220_v22 = vpop.f32.mrb[95].mxu0 }
 0x3b9   : > { %v24421_v52 = vpop.f32.mrb[92].mxu1  ;;  %24878 = vmatpush3.bf16.msra.mxu0 %v26112_v7  ;;  %v12245_v20 = vadd.f32 %v12220_v22, %v30655_v37  ;;  %v15863_v37 = vsel %vm10796_vm2, %v30629_v54, %v30705_v59  ;;  %v30824_v54 = vld [vmem:[%s31748_s4] ss:$0 sm:$0xff]  ;;  %v16257_v11 = vor.u32 %v16256_v39, %v16252_v46 }
 0x3ba   : > { %v12395_v53 = vpop.f32.mrb[93].mxu1  ;;  %24879 = vmatprep.subr.bf16.mxu0 %v26114_v35  ;;  %v21833_v52 = vld [vmem:[%s26321_s20 + $0x30] sm:$0xff]  }
 0x3bb   : > { %v30793_v48 = vadd.f32 %v12395_v53, %v12244_v33  ;;  %v24422_v57 = vpop.f32.mrb[94].mxu1  ;;  %24910 = vmatpush3.bf16.msra.mxu1 %v26113_v56  ;;  %v26122_v33 = vld [vmem:[%s31746_s2 + $0x180] sm:$0xff]   ;;  %v21694_v4 = vunpack.c.l.bf16 %v21833_v52 }
 0x3bc   : > { %v12398_v31 = vpop.f32.mrb[95].mxu1  ;;  %24832 = vmatmul.mubr.bf16.gmra.mrb[200].mxu0 %v30798_v42  ;;  %24911 = vmatprep.subr.bf16.mxu1 %v26115_v50 }
 0x3bd   : > { %v30808_v36 = vadd.f32 %v12398_v31, %v12245_v20  ;;  %24835 = vmatprep.mubr.bf16.mxu0 %v30803_v12  ;;  %24880 = vmatpush3.bf16.msra.mxu0 %v26114_v35 }
 0x3be   : > { %24864 = vmatmul.mubr.bf16.gmra.mrb[200].mxu1 %v15863_v37  ;;  %24881 = vmatprep.subr.bf16.mxu0 %v26116_v1  ;;  %v24441_v41 = vpop.f32.mrb[96].mxu0 }
 0x3bf   : > { %24867 = vmatprep.mubr.bf16.mxu1 %v15871_v30  ;;  %24912 = vmatpush3.bf16.msra.mxu1 %v26115_v50  ;;  %v12610_v7 = vpop.f32.mrb[97].mxu0  ;;  %v26124_v30 = vld [vmem:[%s31746_s2 + $0x188] sm:$0xff]   ;;  %v21695_v41 = vunpack.c.h.bf16 %v21833_v52  ;;  %v26129_v52 = vld [vmem:[%s31746_s2 + $0x1d8] sm:$0xff]  }
 0x3c0   : > { %24913 = vmatprep.subr.bf16.mxu1 %v26117_v6  ;;  %v12673_v51 = vadd.f32 %v12610_v7, %v30674_v58  ;;  %v24442_v5 = vpop.f32.mrb[98].mxu0  ;;  %v21691_v58 = vunpack.c.h.bf16 %v21832_v18  ;;  %v30868_v7 = vld [vmem:[#allocation2 + $0x28] sm:$0xff] }
 0x3c1   : > { %v24473_v60 = vpop.f32.mrb[96].mxu1  ;;  %24882 = vmatpush3.bf16.msra.mxu0 %v26116_v1  ;;  %v12613_v56 = vpop.f32.mrb[99].mxu0 }
 0x3c2   : > { %v30830_v32 = vpop.f32.mrb[97].mxu1  ;;  %24883 = vmatprep.subr.bf16.mxu0 %v26118_v9  ;;  %v12727_v62 = vadd.f32 %v30824_v54, %v12673_v51  ;;  %v12674_v35 = vadd.f32 %v12613_v56, %v30686_v3  ;;  %v16262_v3 = vsel %vm1026_vm1, %v16257_v11, %v30667_v63  ;;  %v26126_v51 = vld [vmem:[%s31746_s2 + $0x190] sm:$0xff]  }
 0x3c3   : > { %v24474_v24 = vpop.f32.mrb[98].mxu1  ;;  %24914 = vmatpush3.bf16.msra.mxu1 %v26117_v6 }
 0x3c4   : > { %v30839_v13 = vpop.f32.mrb[99].mxu1  ;;  %24836 = vmatmul.mubr.bf16.gmra.mrb[204].mxu0 %v15617_v16  ;;  %24915 = vmatprep.subr.bf16.mxu1 %v26119_v38  ;;  %v12743_v50 = vadd.f32 %v21690_v8, %v12727_v62  ;;  %v12728_v55 = vadd.f32 %v30824_v54, %v12674_v35  ;;  %v26128_v16 = vld [vmem:[%s31746_s2 + $0x198] sm:$0xff]  }
 0x3c5   : > { %24884 = vmatpush3.bf16.msra.mxu0 %v26118_v9  ;;  %24887 = vmatprep.mubr.bf16.mxu0 %v30531_v28  ;;  %v26123_v28 = vld [vmem:[%s31746_s2 + $0x1c0] sm:$0xff]  }
 0x3c6   : > { %24868 = vmatmul.mubr.bf16.gmra.mrb[204].mxu1 %v15879_v15  ;;  %24885 = vmatprep.subr.bf16.mxu0 %v26120_v34  ;;  %v12744_v47 = vadd.f32 %v21691_v58, %v12728_v55  ;;  %v24445_v53 = vpop.f32.mrb[100].mxu0  ;;  %v12759_v1 = vmax.f32 %v12743_v50, 0.0 }
 0x3c7   : > { %24916 = vmatpush3.bf16.msra.mxu1 %v26119_v38  ;;  %24919 = vmatprep.mubr.bf16.mxu1 %v16262_v3  ;;  %v12626_v22 = vpop.f32.mrb[101].mxu0  ;;  %v26125_v38 = vld [vmem:[%s31746_s2 + $0x1c8] sm:$0xff]   ;;  %v30903_v53 = vld [vmem:[#allocation2 + $0xb0] sm:$0xff] }
 0x3c8   : > { %24917 = vmatprep.subr.bf16.mxu1 %v26121_v19  ;;  %v12760_v10 = vmax.f32 %v12744_v47, 0.0  ;;  %v12677_v20 = vadd.f32 %v12626_v22, %v30711_v27  ;;  %v24446_v31 = vpop.f32.mrb[102].mxu0  ;;  %v16301_v22 = vrot.slane %v15868_v17, 1 }
 0x3c9   : > { %v24477_v57 = vpop.f32.mrb[100].mxu1  ;;  %24886 = vmatpush3.bf16.msra.mxu0 %v26120_v34  ;;  %v12629_v37 = vpop.f32.mrb[103].mxu0 }
 0x3ca   : > { %v30859_v6 = vpop.f32.mrb[101].mxu1  ;;  %24935 = vmatprep.subr.bf16.mxu0 %v26122_v33  ;;  %v21707_v18 = vpack.c.bf16 %v12760_v10, %v12759_v1  ;;  %v12731_v9 = vadd.f32 %v30824_v54, %v12677_v20  ;;  %v12678_v27 = vadd.f32 %v12629_v37, %v30727_v21  ;;  %v21834_v21 = vld [vmem:[%s26321_s20 + $0x40] sm:$0xff]   ;;  %v16518_v57 = vshrl.u32 %v30903_v53, 16 }
 0x3cb   : > { %v24478_v39 = vpop.f32.mrb[102].mxu1  ;;  %24918 = vmatpush3.bf16.msra.mxu1 %v26121_v19  ;;  %v21698_v24 = vunpack.c.l.bf16 %v21834_v21  ;;  %v21699_v15 = vunpack.c.h.bf16 %v21834_v21 }
 0x3cc   : > { %v30866_v29 = vpop.f32.mrb[103].mxu1  ;;  %24888 = vmatmul.mubr.bf16.vlgmr.msra.gmra.mrb[208].mxu0 %v30868_v7  ;;  %24967 = vmatprep.subr.bf16.mxu1 %v26123_v28  ;;  %21708 = vst [vmem:[%s28851_s22] sm:$0xff] %v21707_v18   ;;  %v12747_v46 = vadd.f32 %v21694_v4, %v12731_v9  ;;  %v12732_v60 = vadd.f32 %v30824_v54, %v12678_v27  ;;  %v16488_v18 = vld [vmem:[#allocation2 + $0xa8] sm:$0x80] }
 0x3cd   : > { %24891 = vmatprep.mubr.bf16.mxu0 %v30556_v44  ;;  %24936 = vmatpush3.bf16.msra.mxu0 %v26122_v33  ;;  %v26127_v44 = vld [vmem:[%s31746_s2 + $0x1d0] sm:$0xff]   ;;  %v16305_v39 = vor.u32 %v16301_v22, %v15865_v25  ;;  %v26132_v27 = vld [vmem:[%s31746_s2 + $0x1a8] sm:$0xff]  }
 0x3ce   : > { %24920 = vmatmul.mubr.bf16.vlgmr.msra.gmra.mrb[208].mxu1 %v30750_v23  ;;  %24937 = vmatprep.subr.bf16.mxu0 %v26124_v30  ;;  %v12748_v8 = vadd.f32 %v21695_v41, %v12732_v60  ;;  %v24449_v5 = vpop.f32.mrb[104].mxu0  ;;  %v12763_v11 = vmax.f32 %v12747_v46, 0.0  ;;  %v16234_v41 = vld [vmem:[#allocation2 + $0xe0] sm:$0x1]  ;;  %v26133_v25 = vld [vmem:[%s31746_s2 + $0x1e8] sm:$0xff]  }
 0x3cf   : > { %24923 = vmatprep.mubr.bf16.mxu1 %v30758_v2  ;;  %24968 = vmatpush3.bf16.msra.mxu1 %v26123_v28  ;;  %v12642_v56 = vpop.f32.mrb[105].mxu0  ;;  %v26130_v28 = vld [vmem:[%s31746_s2 + $0x1a0] sm:$0xff]   ;;  %v30935_v5 = vrot.slane %v16518_v57, 7 }
 0x3d0   : > { %24969 = vmatprep.subr.bf16.mxu1 %v26125_v38  ;;  %v12764_v34 = vmax.f32 %v12748_v8, 0.0  ;;  %v12681_v62 = vadd.f32 %v12642_v56, %v30745_v43  ;;  %v24450_v35 = vpop.f32.mrb[106].mxu0  ;;  %v16514_v8 = vshrl.u32 %v16488_v18, 16 }
 0x3d1   : > { %v24481_v23 = vpop.f32.mrb[104].mxu1  ;;  %24938 = vmatpush3.bf16.msra.mxu0 %v26124_v30  ;;  %v12645_v2 = vpop.f32.mrb[107].mxu0 }
 0x3d2   : > { %v30887_v58 = vpop.f32.mrb[105].mxu1  ;;  %24939 = vmatprep.subr.bf16.mxu0 %v26126_v51  ;;  %v21712_v19 = vpack.c.bf16 %v12764_v34, %v12763_v11  ;;  %v12735_v50 = vadd.f32 %v30824_v54, %v12681_v62  ;;  %v12682_v43 = vadd.f32 %v12645_v2, %v30762_v49  ;;  %v21835_v49 = vld [vmem:[%s26321_s20 + $0x50] sm:$0xff]   ;;  %v16315_v11 = vshll.u32 %v16234_v41, 16  ;;  %v30942_v34 = vld [vmem:[#allocation2 + $0xc0] sm:$0xff] }
 0x3d3   : > { %v24482_v55 = vpop.f32.mrb[106].mxu1  ;;  %24970 = vmatpush3.bf16.msra.mxu1 %v26125_v38  ;;  %v21702_v37 = vunpack.c.l.bf16 %v21835_v49  ;;  %v21703_v21 = vunpack.c.h.bf16 %v21835_v49  ;;  %v16310_v23 = vsel %vm1026_vm1, %v16305_v39, %v30667_v63  ;;  %v26134_v62 = vld [vmem:[%s31746_s2 + $0x1b0] sm:$0xff]   ;;  %v16537_v39 = vshll.u32 %v30942_v34, 16 }
 0x3d4   : > { %v30894_v3 = vpop.f32.mrb[107].mxu1  ;;  %24892 = vmatmul.mubr.bf16.gmra.mrb[212].mxu0 %v30868_v7  ;;  %24971 = vmatprep.subr.bf16.mxu1 %v26127_v44  ;;  %21836 = vst [vmem:[%s28851_s22 + $0x10] sm:$0xff] %v21712_v19   ;;  %v12751_v33 = vadd.f32 %v21698_v24, %v12735_v50  ;;  %v12736_v47 = vadd.f32 %v30824_v54, %v12682_v43  ;;  %v16516_v19 = vrot.slane %v16514_v8, 7  ;;  %v16534_v50 = vshrl.u32 %v30942_v34, 16 }
 0x3d5   : > { %24895 = vmatprep.mubr.bf16.mxu0 %v30582_v45  ;;  %24940 = vmatpush3.bf16.msra.mxu0 %v26126_v51 }
 0x3d6   : > { %24924 = vmatmul.mubr.bf16.gmra.mrb[212].mxu1 %v30798_v42  ;;  %24941 = vmatprep.subr.bf16.mxu0 %v26128_v16  ;;  %v12752_v1 = vadd.f32 %v21699_v15, %v12736_v47  ;;  %v24453_v10 = vpop.f32.mrb[108].mxu0  ;;  %v26131_v42 = vld [vmem:[%s31746_s2 + $0x1e0] sm:$0xff]   ;;  %v12767_v20 = vmax.f32 %v12751_v33, 0.0  ;;  %v16317_v47 = vrot.slane %v16315_v11, 1 }
 0x3d7   : > { %24927 = vmatprep.mubr.bf16.mxu1 %v30803_v12  ;;  %24972 = vmatpush3.bf16.msra.mxu1 %v26127_v44  ;;  %v12658_v45 = vpop.f32.mrb[109].mxu0 }
 0x3d8   : > { %24973 = vmatprep.subr.bf16.mxu1 %v26129_v52  ;;  %v12768_v4 = vmax.f32 %v12752_v1, 0.0  ;;  %v12685_v31 = vadd.f32 %v12658_v45, %v30793_v48  ;;  %v24454_v30 = vpop.f32.mrb[110].mxu0 }
 0x3d9   : > { %v24485_v17 = vpop.f32.mrb[108].mxu1  ;;  %24942 = vmatpush3.bf16.msra.mxu0 %v26128_v16  ;;  %v12661_v9 = vpop.f32.mrb[111].mxu0  ;;  %v26135_v16 = vld [vmem:[%s31746_s2 + $0x1f0] sm:$0xff]   ;;  %v18072_v30 = vshrl.u32 %v30868_v7, 16 }
 0x3da   : > { %v30918_v12 = vpop.f32.mrb[109].mxu1  ;;  %24943 = vmatprep.subr.bf16.mxu0 %v26130_v28  ;;  %v21717_v38 = vpack.c.bf16 %v12768_v4, %v12767_v20  ;;  %v12739_v48 = vadd.f32 %v30824_v54, %v12685_v31  ;;  %v12686_v60 = vadd.f32 %v12661_v9, %v30808_v36  ;;  %v16302_v36 = vsel %vm1026_vm1, %v30691_v40, %v16301_v22  ;;  %v26137_v17 = vld [vmem:[%s31746_s2 + $0x1f8] sm:$0xff]   ;;  %v26138_v9 = vld [vmem:[%s31746_s2 + $0x200] sm:$0xff]  }
 0x3db   : > { %v24486_v46 = vpop.f32.mrb[110].mxu1  ;;  %24974 = vmatpush3.bf16.msra.mxu1 %v26129_v52  ;;  %v30972_v31 = vrot.slane %v16534_v50, 7 }
 0x3dc   : > { %v30927_v51 = vpop.f32.mrb[111].mxu1  ;;  %24896 = vmatmul.mubr.bf16.gmra.mrb[216].mxu0 %v30868_v7  ;;  %24975 = vmatprep.subr.bf16.mxu1 %v26131_v42  ;;  %21837 = vst [vmem:[%s28851_s22 + $0x20] sm:$0xff] %v21717_v38   ;;  %v12755_v56 = vadd.f32 %v21702_v37, %v12739_v48  ;;  %v12740_v44 = vadd.f32 %v30824_v54, %v12686_v60  ;;  %v16521_v54 = vshll.u32 %v30903_v53, 16  ;;  %v26139_v38 = vld [vmem:[%s31746_s2 + $0x40] sm:$0xff]  }
 0x3dd   : > { %24899 = vmatprep.mubr.bf16.mxu0 %v30722_v61  ;;  %24944 = vmatpush3.bf16.msra.mxu0 %v26130_v28  ;;  %v26136_v28 = vld [vmem:[%s31746_s2 + $0x1b8] sm:$0xff]   ;;  %v16539_v48 = vor.u32 %v16537_v39, %v30972_v31 }
 0x3de   : > { %24928 = vmatmul.mubr.bf16.gmra.mrb[216].mxu1 %v16302_v36  ;;  %24945 = vmatprep.subr.bf16.mxu0 %v26132_v27  ;;  %v12756_v24 = vadd.f32 %v21703_v21, %v12740_v44  ;;  %v16523_v63 = vor.u32 %v16521_v54, %v30935_v5  ;;  %v12771_v55 = vmax.f32 %v12755_v56, 0.0  ;;  %v26140_v56 = vld [vmem:[%s31746_s2 + $0x208] sm:$0xff]   ;;  %v16532_v44 = vsel %vm10796_vm2, %v30935_v5, %v30705_v59  ;;  %v31015_v59 = vld [vmem:[#allocation2 + $0xe0] sm:$0xff] }
 0x3df   : > { %24931 = vmatprep.mubr.bf16.mxu1 %v16310_v23  ;;  %24976 = vmatpush3.bf16.msra.mxu1 %v26131_v42  ;;  %v24505_v35 = vpop.f32.mrb[112].mxu0 }
 0x3e0   : > { %v13215_v2 = vpop.f32.mrb[113].mxu0  ;;  %24977 = vmatprep.subr.bf16.mxu1 %v26133_v25  ;;  %v12772_v43 = vmax.f32 %v12756_v24, 0.0  ;;  %v16524_v4 = vsel %vm10796_vm2, %v16516_v19, %v16523_v63  ;;  %v16540_v24 = vsel %vm10796_vm2, %v30688_v0, %v16539_v48  ;;  %v26141_v35 = vld [vmem:[%s31746_s2 + $0x48] sm:$0xff]   ;;  %v26143_v19 = vld [vmem:[%s31746_s2 + $0x50] sm:$0xff]   ;;  %v16566_v63 = vshrl.u32 %v31015_v59, 16 }
 0x3e1   : > { %v24537_v15 = vpop.f32.mrb[112].mxu1  ;;  %v13216_v52 = vadd.f32 %v13215_v2, %v30830_v32  ;;  %v24506_v33 = vpop.f32.mrb[114].mxu0  ;;  %24946 = vmatpush3.bf16.msra.mxu0 %v26132_v27  ;;  %v18075_v32 = vshll.u32 %v30868_v7, 16 }
 0x3e2   : > { %v13461_v49 = vpop.f32.mrb[113].mxu1  ;;  %v13218_v22 = vpop.f32.mrb[115].mxu0  ;;  %24947 = vmatprep.subr.bf16.mxu0 %v26134_v62  ;;  %v21722_v1 = vpack.c.bf16 %v12772_v43, %v12771_v55 }
 0x3e3   : > { %v30961_v10 = vadd.f32 %v13461_v49, %v13216_v52  ;;  %v24538_v45 = vpop.f32.mrb[114].mxu1  ;;  %24978 = vmatpush3.bf16.msra.mxu1 %v26133_v25  ;;  %v13219_v42 = vadd.f32 %v13218_v22, %v30839_v13  ;;  %v16318_v13 = vsel %vm1026_vm1, %v30691_v40, %v16317_v47  ;;  %v30980_v18 = vrot.slane %v18075_v32, 1  ;;  %v26144_v47 = vld [vmem:[%s31746_s2 + $0x218] sm:$0xff]  }
 0x3e4   : > { %v13464_v20 = vpop.f32.mrb[115].mxu1  ;;  %24900 = vmatmul.mubr.bf16.gmra.mrb[220].mxu0 %v30868_v7  ;;  %24979 = vmatprep.subr.bf16.mxu1 %v26135_v16  ;;  %21838 = vst [vmem:[%s28851_s22 + $0x30] sm:$0xff] %v21722_v1  }
 0x3e5   : > { %v30975_v37 = vadd.f32 %v13464_v20, %v13219_v42  ;;  %24948 = vmatpush3.bf16.msra.mxu0 %v26134_v62  ;;  %24951 = vmatprep.mubr.bf16.mxu0 %v16524_v4  ;;  %v30988_v40 = vor.u32 %v30980_v18, %v18072_v30  ;;  %v26145_v42 = vld [vmem:[%s31746_s2 + $0x58] sm:$0xff]   ;;  %v16569_v4 = vshll.u32 %v31015_v59, 16 }
 0x3e6   : > { %24932 = vmatmul.mubr.bf16.gmra.mrb[220].mxu1 %v16318_v13  ;;  %24949 = vmatprep.subr.bf16.mxu0 %v26136_v28  ;;  %v26147_v13 = vld [vmem:[%s31746_s2 + $0x60] sm:$0xff]  }
 0x3e7   : > { %24980 = vmatpush3.bf16.msra.mxu1 %v26135_v16  ;;  %24983 = vmatprep.mubr.bf16.mxu1 %v30903_v53  ;;  %v24509_v27 = vpop.f32.mrb[116].mxu0 }
 0x3e8   : > { %v13231_v41 = vpop.f32.mrb[117].mxu0  ;;  %24981 = vmatprep.subr.bf16.mxu1 %v26137_v17 }
 0x3e9   : > { %v24541_v46 = vpop.f32.mrb[116].mxu1  ;;  %v13232_v60 = vadd.f32 %v13231_v41, %v30859_v6  ;;  %v24510_v21 = vpop.f32.mrb[118].mxu0  ;;  %24950 = vmatpush3.bf16.msra.mxu0 %v26136_v28  ;;  %v31006_v6 = vrot.slane %v18072_v30, 7 }
 0x3ea   : > { %v13477_v25 = vpop.f32.mrb[117].mxu1  ;;  %v13234_v8 = vpop.f32.mrb[119].mxu0  ;;  %24999 = vmatprep.subr.bf16.mxu0 %v26138_v9  ;;  %v26148_v46 = vld [vmem:[%s31746_s2 + $0x228] sm:$0xff]  }
 0x3eb   : > { %v31003_v36 = vadd.f32 %v13477_v25, %v13232_v60  ;;  %v24542_v11 = vpop.f32.mrb[118].mxu1  ;;  %24982 = vmatpush3.bf16.msra.mxu1 %v26137_v17  ;;  %v13235_v23 = vadd.f32 %v13234_v8, %v30866_v29  ;;  %v26142_v29 = vld [vmem:[%s31746_s2 + $0x210] sm:$0xff]   ;;  %v31023_v5 = vor.u32 %v18075_v32, %v31006_v6  ;;  %v16556_v45 = vsel %vm10796_vm2, %v31006_v6, %v30788_v14 }
 0x3ec   : > { %v13480_v62 = vpop.f32.mrb[119].mxu1  ;;  %24952 = vmatmul.mubr.bf16.vlgmr.msra.gmra.mrb[224].mxu0 %v16532_v44  ;;  %25031 = vmatprep.subr.bf16.mxu1 %v26139_v38  ;;  %v16568_v32 = vrot.slane %v16566_v63, 7  ;;  %v26149_v44 = vld [vmem:[%s31746_s2 + $0x68] sm:$0xff]  }
 0x3ed   : > { %v31013_v2 = vadd.f32 %v13480_v62, %v13235_v23  ;;  %24955 = vmatprep.mubr.bf16.mxu0 %v16540_v24  ;;  %25000 = vmatpush3.bf16.msra.mxu0 %v26138_v9  ;;  %v16548_v1 = vsel %vm10796_vm2, %v30972_v31, %v31023_v5  ;;  %v31072_v8 = vsel %vm10796_vm2, %v30776_v26, %v31023_v5  ;;  %v26150_v26 = vld [vmem:[%s31746_s2 + $0x230] sm:$0xff]  }
 0x3ee   : > { %24984 = vmatmul.mubr.bf16.vlgmr.msra.gmra.mrb[224].mxu1 %v30868_v7  ;;  %25001 = vmatprep.subr.bf16.mxu0 %v26140_v56  ;;  %v31060_v30 = vor.u32 %v16569_v4, %v16568_v32  ;;  %v31107_v53 = vsel %vm10796_vm2, %v16568_v32, %v31023_v5 }
 0x3ef   : > { %24987 = vmatprep.mubr.bf16.mxu1 %v30942_v34  ;;  %25032 = vmatpush3.bf16.msra.mxu1 %v26139_v38  ;;  %v24513_v0 = vpop.f32.mrb[120].mxu0 }
 0x3f0   : > { %v13247_v16 = vpop.f32.mrb[121].mxu0  ;;  %25033 = vmatprep.subr.bf16.mxu1 %v26141_v35 }
 0x3f1   : > { %v24545_v55 = vpop.f32.mrb[120].mxu1  ;;  %v13248_v43 = vadd.f32 %v13247_v16, %v30887_v58  ;;  %v24514_v15 = vpop.f32.mrb[122].mxu0  ;;  %25002 = vmatpush3.bf16.msra.mxu0 %v26140_v56  ;;  %v31078_v56 = vsel %vm10796_vm2, %v31006_v6, %v31060_v30 }
 0x3f2   : > { %v13493_v52 = vpop.f32.mrb[121].mxu1  ;;  %v13250_v33 = vpop.f32.mrb[123].mxu0  ;;  %25003 = vmatprep.subr.bf16.mxu0 %v26142_v29  ;;  %v26152_v55 = vld [vmem:[%s31746_s2 + $0x238] sm:$0xff]  }
 0x3f3   : > { %v31033_v49 = vadd.f32 %v13493_v52, %v13248_v43  ;;  %v24546_v22 = vpop.f32.mrb[122].mxu1  ;;  %25034 = vmatpush3.bf16.msra.mxu1 %v26141_v35  ;;  %v13251_v28 = vadd.f32 %v13250_v33, %v30894_v3  ;;  %v26146_v3 = vld [vmem:[%s31746_s2 + $0x220] sm:$0xff]   ;;  %v16970_v33 = vrot.slane %v16537_v39, 1 }
 0x3f4   : > { %v13496_v58 = vpop.f32.mrb[123].mxu1  ;;  %24956 = vmatmul.mubr.bf16.gmra.mrb[228].mxu0 %v16548_v1  ;;  %25035 = vmatprep.subr.bf16.mxu1 %v26143_v19 }
 0x3f5   : > { %v31047_v20 = vadd.f32 %v13496_v58, %v13251_v28  ;;  %24959 = vmatprep.mubr.bf16.mxu0 %v16556_v45  ;;  %25004 = vmatpush3.bf16.msra.mxu0 %v26142_v29  ;;  %v26154_v28 = vld [vmem:[%s31746_s2] sm:$0xff]   ;;  %v16974_v45 = vor.u32 %v16970_v33, %v16534_v50 }
 0x3f6   : > { %24988 = vmatmul.mubr.bf16.gmra.mrb[228].mxu1 %v30868_v7  ;;  %25005 = vmatprep.subr.bf16.mxu0 %v26144_v47  ;;  %v26155_v58 = vld [vmem:[%s31746_s2 + $0x80] sm:$0xff]  }
 0x3f7   : > { %24991 = vmatprep.mubr.bf16.mxu1 %v30722_v61  ;;  %25036 = vmatpush3.bf16.msra.mxu1 %v26143_v19  ;;  %v24517_v17 = vpop.f32.mrb[124].mxu0 }
 0x3f8   : > { %v13263_v31 = vpop.f32.mrb[125].mxu0  ;;  %25037 = vmatprep.subr.bf16.mxu1 %v26145_v42 }
 0x3f9   : > { %v24549_v9 = vpop.f32.mrb[124].mxu1  ;;  %v13264_v27 = vadd.f32 %v13263_v31, %v30918_v12  ;;  %v24518_v41 = vpop.f32.mrb[126].mxu0  ;;  %25006 = vmatpush3.bf16.msra.mxu0 %v26144_v47  ;;  %v26153_v47 = vld [vmem:[%s31746_s2 + $0x78] sm:$0xff]  }
 0x3fa   : > { %v13509_v38 = vpop.f32.mrb[125].mxu1  ;;  %v13266_v48 = vpop.f32.mrb[127].mxu0  ;;  %25007 = vmatprep.subr.bf16.mxu0 %v26146_v3  ;;  %v16971_v9 = vsel %vm1026_vm1, %v30988_v40, %v16970_v33 }
 0x3fb   : > { %v31066_v60 = vadd.f32 %v13509_v38, %v13264_v27  ;;  %v24550_v21 = vpop.f32.mrb[126].mxu1  ;;  %25038 = vmatpush3.bf16.msra.mxu1 %v26145_v42  ;;  %v13267_v25 = vadd.f32 %v13266_v48, %v30927_v51  ;;  %v16957_v51 = vrot.slane %v16521_v54, 1  ;;  %v26151_v54 = vld [vmem:[%s31746_s2 + $0x70] sm:$0xff]   ;;  %v26157_v38 = vld [vmem:[%s31746_s2 + $0x88] sm:$0xff]  }
 0x3fc   : > { %v13512_v12 = vpop.f32.mrb[127].mxu1  ;;  %24960 = vmatmul.mubr.bf16.gmra.mrb[232].mxu0 %v31072_v8  ;;  %25039 = vmatprep.subr.bf16.mxu1 %v26147_v13 }
 0x3fd   : > { %v31085_v11 = vadd.f32 %v13512_v12, %v13267_v25  ;;  %24963 = vmatprep.mubr.bf16.mxu0 %v31078_v56  ;;  %25008 = vmatpush3.bf16.msra.mxu0 %v26146_v3  ;;  %v16958_v24 = vor.u32 %v16957_v51, %v16518_v57 }
 0x3fe   : > { %24992 = vmatmul.mubr.bf16.gmra.mrb[232].mxu1 %v30868_v7  ;;  %25009 = vmatprep.subr.bf16.mxu0 %v26148_v46 }
 0x3ff   : > { %24995 = vmatprep.mubr.bf16.mxu1 %v31015_v59  ;;  %25040 = vmatpush3.bf16.msra.mxu1 %v26147_v13  ;;  %v24569_v23 = vpop.f32.mrb[128].mxu0 }
 0x400   : > { %v13723_v62 = vpop.f32.mrb[129].mxu0  ;;  %25041 = vmatprep.subr.bf16.mxu1 %v26149_v44 }
 0x401   : > { %v24601_v35 = vpop.f32.mrb[128].mxu1  ;;  %v13786_v29 = vadd.f32 %v13723_v62, %v30961_v10  ;;  %v24570_v0 = vpop.f32.mrb[130].mxu0  ;;  %25010 = vmatpush3.bf16.msra.mxu0 %v26148_v46  ;;  %v16963_v10 = vsel %vm1026_vm1, %v16958_v24, %v30980_v18 }
 0x402   : > { %v13900_v16 = vpop.f32.mrb[129].mxu1  ;;  %v13726_v19 = vpop.f32.mrb[131].mxu0  ;;  %25011 = vmatprep.subr.bf16.mxu0 %v26150_v26  ;;  %v26160_v35 = vld [vmem:[%s31746_s2 + $0x18] sm:$0xff]  }
 0x403   : > { %v31102_v43 = vadd.f32 %v13900_v16, %v13786_v29  ;;  %v24602_v15 = vpop.f32.mrb[130].mxu1  ;;  %25042 = vmatpush3.bf16.msra.mxu1 %v26149_v44  ;;  %v13787_v52 = vadd.f32 %v13726_v19, %v30975_v37  ;;  %v16931_v37 = vld [vmem:[#allocation2 + $0xd0] sm:$0xff] }
 0x404   : > { %v13903_v57 = vpop.f32.mrb[131].mxu1  ;;  %24964 = vmatmul.mubr.bf16.gmra.mrb[236].mxu0 %v31107_v53  ;;  %25043 = vmatprep.subr.bf16.mxu1 %v26151_v54  ;;  %v16984_v42 = vshll.u32 %v16931_v37, 16  ;;  %v16988_v21 = vshrl.u32 %v16931_v37, 16  ;;  %v26159_v44 = vld [vmem:[%s31746_s2 + $0x90] sm:$0xff]   ;;  %v26161_v15 = vld [vmem:[%s31746_s2 + $0x98] sm:$0xff]  }
 0x405   : > { %v31117_v22 = vadd.f32 %v13903_v57, %v13787_v52  ;;  %25012 = vmatpush3.bf16.msra.mxu0 %v26150_v26  ;;  %25015 = vmatprep.mubr.bf16.mxu0 %v16963_v10  ;;  %v17002_v52 = vrot.slane %v16569_v4, 1  ;;  %v26162_v10 = vld [vmem:[%s31746_s2 + $0x20] sm:$0xff]  }
 0x406   : > { %24996 = vmatmul.mubr.bf16.gmra.mrb[236].mxu1 %v30868_v7  ;;  %25013 = vmatprep.subr.bf16.mxu0 %v26152_v55  ;;  %v16986_v48 = vrot.slane %v16984_v42, 1  ;;  %v26163_v4 = vld [vmem:[%s31746_s2 + $0xa0] sm:$0xff]  }
 0x407   : > { %25044 = vmatpush3.bf16.msra.mxu1 %v26151_v54  ;;  %25047 = vmatprep.mubr.bf16.mxu1 %v30722_v61  ;;  %v24573_v39 = vpop.f32.mrb[132].mxu0  ;;  %v26156_v61 = vld [vmem:[%s31746_s2 + $0x8] sm:$0xff]   ;;  %v17006_v37 = vor.u32 %v17002_v52, %v16566_v63 }
 0x408   : > { %v13739_v1 = vpop.f32.mrb[133].mxu0  ;;  %25045 = vmatprep.subr.bf16.mxu1 %v26153_v47  ;;  %v16990_v51 = vor.u32 %v16988_v21, %v16986_v48  ;;  %v16987_v19 = vsel %vm1026_vm1, %v30988_v40, %v16986_v48  ;;  %v26167_v21 = vld [vmem:[%s31746_s2 + $0xb0] sm:$0xff]  }
 0x409   : > { %v24605_v32 = vpop.f32.mrb[132].mxu1  ;;  %v13790_v3 = vadd.f32 %v13739_v1, %v31003_v36  ;;  %v24574_v17 = vpop.f32.mrb[134].mxu0  ;;  %25014 = vmatpush3.bf16.msra.mxu0 %v26152_v55  ;;  %v16979_v36 = vsel %vm1026_vm1, %v16974_v45, %v30980_v18  ;;  %v17365_v45 = vld [vmem:[#allocation2 + $0xc8] sm:$0x80] }
 0x40a   : > { %v13916_v31 = vpop.f32.mrb[133].mxu1  ;;  %v13742_v13 = vpop.f32.mrb[135].mxu0  ;;  %25063 = vmatprep.subr.bf16.mxu0 %v26154_v28 }
 0x40b   : > { %v31135_v27 = vadd.f32 %v13916_v31, %v13790_v3  ;;  %v24606_v34 = vpop.f32.mrb[134].mxu1  ;;  %25046 = vmatpush3.bf16.msra.mxu1 %v26153_v47  ;;  %v13791_v50 = vadd.f32 %v13742_v13, %v31013_v2  ;;  %v26158_v2 = vld [vmem:[%s31746_s2 + $0x10] sm:$0xff]   ;;  %v26164_v3 = vld [vmem:[%s31746_s2 + $0x28] sm:$0xff]   ;;  %v31195_v13 = vsel %vm1026_vm1, %v30988_v40, %v17002_v52 }
 0x40c   : > { %v13919_v41 = vpop.f32.mrb[135].mxu1  ;;  %25016 = vmatmul.mubr.bf16.vlgmr.msra.gmra.mrb[240].mxu0 %v16971_v9  ;;  %25095 = vmatprep.subr.bf16.mxu1 %v26155_v58  ;;  %v31200_v9 = vsel %vm1026_vm1, %v17006_v37, %v30980_v18  ;;  %v26165_v34 = vld [vmem:[%s31746_s2 + $0xa8] sm:$0xff]  }
 0x40d   : > { %v31143_v46 = vadd.f32 %v13919_v41, %v13791_v50  ;;  %25019 = vmatprep.mubr.bf16.mxu0 %v16979_v36  ;;  %25064 = vmatpush3.bf16.msra.mxu0 %v26154_v28  ;;  %v16935_v28 = vld [vmem:[#allocation2 + $0xf0] sm:$0x1]  ;;  %v17552_v50 = vshrl.u32 %v17365_v45, 16 }
 0x40e   : > { %25048 = vmatmul.mubr.bf16.vlgmr.msra.gmra.mrb[240].mxu1 %v30868_v7  ;;  %25065 = vmatprep.subr.bf16.mxu0 %v26156_v61  ;;  %v26166_v36 = vld [vmem:[%s31746_s2 + $0x30] sm:$0xff]  }
 0x40f   : > { %25051 = vmatprep.mubr.bf16.mxu1 %v31015_v59  ;;  %25096 = vmatpush3.bf16.msra.mxu1 %v26155_v58  ;;  %v24577_v25 = vpop.f32.mrb[136].mxu0 }
 0x410   : > { %v13755_v12 = vpop.f32.mrb[137].mxu0  ;;  %25097 = vmatprep.subr.bf16.mxu1 %v26157_v38  ;;  %v17554_v25 = vrot.slane %v17552_v50, 7 }
 0x411   : > { %v24609_v26 = vpop.f32.mrb[136].mxu1  ;;  %v13794_v23 = vadd.f32 %v13755_v12, %v31033_v49  ;;  %v24578_v62 = vpop.f32.mrb[138].mxu0  ;;  %25066 = vmatpush3.bf16.msra.mxu0 %v26156_v61  ;;  %v31164_v49 = vsel %vm1026_vm1, %v16990_v51, %v30980_v18 }
 0x412   : > { %v13932_v54 = vpop.f32.mrb[137].mxu1  ;;  %v13758_v24 = vpop.f32.mrb[139].mxu0  ;;  %25067 = vmatprep.subr.bf16.mxu0 %v26158_v2  ;;  %v26168_v62 = vld [vmem:[%s31746_s2 + $0x38] sm:$0xff]  }
 0x413   : > { %v31157_v29 = vadd.f32 %v13932_v54, %v13794_v23  ;;  %v24610_v0 = vpop.f32.mrb[138].mxu1  ;;  %25098 = vmatpush3.bf16.msra.mxu1 %v26157_v38  ;;  %v13795_v16 = vadd.f32 %v13758_v24, %v31047_v20  ;;  %v31175_v20 = vld [vmem:[#allocation2 + $0xf0] sm:$0xff] }
 0x414   : > { %v13935_v55 = vpop.f32.mrb[139].mxu1  ;;  %25020 = vmatmul.mubr.bf16.gmra.mrb[244].mxu0 %v16987_v19  ;;  %25099 = vmatprep.subr.bf16.mxu1 %v26159_v44  ;;  %v26169_v19 = vld [vmem:[%s31746_s2 + $0xb8] sm:$0xff]  }
 0x415   : > { %v31171_v57 = vadd.f32 %v13935_v55, %v13795_v16  ;;  %25023 = vmatprep.mubr.bf16.mxu0 %v31164_v49  ;;  %25068 = vmatpush3.bf16.msra.mxu0 %v26158_v2 }
 0x416   : > { %25052 = vmatmul.mubr.bf16.gmra.mrb[244].mxu1 %v30868_v7  ;;  %25069 = vmatprep.subr.bf16.mxu0 %v26160_v35 }
 0x417   : > { %25055 = vmatprep.mubr.bf16.mxu1 %v31175_v20  ;;  %25100 = vmatpush3.bf16.msra.mxu1 %v26159_v44  ;;  %v24581_v33 = vpop.f32.mrb[140].mxu0 }
 0x418   : > { %v13771_v47 = vpop.f32.mrb[141].mxu0  ;;  %25101 = vmatprep.subr.bf16.mxu1 %v26161_v15 }
 0x419   : > { %v24613_v39 = vpop.f32.mrb[140].mxu1  ;;  %v13798_v1 = vadd.f32 %v13771_v47, %v31066_v60  ;;  %v24582_v58 = vpop.f32.mrb[142].mxu0  ;;  %25070 = vmatpush3.bf16.msra.mxu0 %v26160_v35  ;;  %v17016_v60 = vshll.u32 %v16935_v28, 16 }
 0x41a   : > { %v13948_v42 = vpop.f32.mrb[141].mxu1  ;;  %v13774_v32 = vpop.f32.mrb[143].mxu0  ;;  %25071 = vmatprep.subr.bf16.mxu0 %v26162_v10 }
 0x41b   : > { %v31190_v17 = vadd.f32 %v13948_v42, %v13798_v1  ;;  %v24614_v31 = vpop.f32.mrb[142].mxu1  ;;  %25102 = vmatpush3.bf16.msra.mxu1 %v26161_v15  ;;  %v13799_v63 = vadd.f32 %v13774_v32, %v31085_v11  ;;  %v31209_v11 = vld [vmem:[#allocation2 + $0x100] sm:$0xff]  ;;  %v17018_v48 = vrot.slane %v17016_v60, 1  ;;  %v26173_v42 = vld [vmem:[%s31746_s2 + $0x108] sm:$0xff]  }
 0x41c   : > { %v13951_v61 = vpop.f32.mrb[143].mxu1  ;;  %25024 = vmatmul.mubr.bf16.gmra.mrb[248].mxu0 %v31195_v13  ;;  %25103 = vmatprep.subr.bf16.mxu1 %v26163_v4  ;;  %v17607_v50 = vshll.u32 %v31209_v11, 16 }
 0x41d   : > { %v31205_v41 = vadd.f32 %v13951_v61, %v13799_v63  ;;  %25027 = vmatprep.mubr.bf16.mxu0 %v31200_v9  ;;  %25072 = vmatpush3.bf16.msra.mxu0 %v26162_v10  ;;  %v17019_v0 = vsel %vm1026_vm1, %v30988_v40, %v17018_v48  ;;  %v26171_v10 = vld [vmem:[%s31746_s2 + $0x100] sm:$0xff]   ;;  %v17604_v63 = vshrl.u32 %v31209_v11, 16  ;;  %v26176_v48 = vld [vmem:[%s31746_s2 + $0xd8] sm:$0xff]  }
 0x41e   : > { %25056 = vmatmul.mubr.bf16.gmra.mrb[248].mxu1 %v30868_v7  ;;  %25073 = vmatprep.subr.bf16.mxu0 %v26164_v3 }
 0x41f   : > { %25059 = vmatprep.mubr.bf16.mxu1 %v31209_v11  ;;  %25104 = vmatpush3.bf16.msra.mxu1 %v26163_v4  ;;  %v24633_v38 = vpop.f32.mrb[144].mxu0  ;;  %v17591_v4 = vshll.u32 %v31175_v20, 16 }
 0x420   : > { %v14162_v2 = vpop.f32.mrb[145].mxu0  ;;  %25105 = vmatprep.subr.bf16.mxu1 %v26165_v34 }
 0x421   : > { %v24665_v12 = vpop.f32.mrb[144].mxu1  ;;  %v14225_v44 = vadd.f32 %v14162_v2, %v31102_v43  ;;  %v24634_v51 = vpop.f32.mrb[146].mxu0  ;;  %25074 = vmatpush3.bf16.msra.mxu0 %v26164_v3  ;;  %v17562_v43 = vsel %vm10796_vm2, %v17554_v25, %v30788_v14  ;;  %v17588_v14 = vshrl.u32 %v31175_v20, 16  ;;  %v17831_v3 = vrot.slane %v17591_v4, 1 }
 0x422   : > { %v14424_v26 = vpop.f32.mrb[145].mxu1  ;;  %v14165_v23 = vpop.f32.mrb[147].mxu0  ;;  %25075 = vmatprep.subr.bf16.mxu0 %v26166_v36  ;;  %v31278_v12 = vrot.slane %v17604_v63, 7  ;;  %v26177_v51 = vld [vmem:[%s31746_s2 + $0x118] sm:$0xff]  }
 0x423   : > { %v31222_v54 = vadd.f32 %v14424_v26, %v14225_v44  ;;  %v24666_v24 = vpop.f32.mrb[146].mxu1  ;;  %25106 = vmatpush3.bf16.msra.mxu1 %v26165_v34  ;;  %v14226_v35 = vadd.f32 %v14165_v23, %v31117_v22  ;;  %v26170_v22 = vld [vmem:[%s31746_s2 + $0xc0] sm:$0xff]   ;;  %v31251_v45 = vrot.slane %v17588_v14, 7  ;;  %v17835_v38 = vor.u32 %v17831_v3, %v17588_v14  ;;  %v18034_v14 = vld [vmem:[#allocation2 + $0xd8] sm:$0x80] }
 0x424   : > { %v14427_v16 = vpop.f32.mrb[147].mxu1  ;;  %25028 = vmatmul.mubr.bf16.gmra.mrb[252].mxu0 %v17019_v0  ;;  %25107 = vmatprep.subr.bf16.mxu1 %v26167_v21  ;;  %v17832_v23 = vsel %vm1026_vm1, %v30988_v40, %v17831_v3  ;;  %v26178_v24 = vld [vmem:[%s31746_s2 + $0xe0] sm:$0xff]   ;;  %v17609_v0 = vor.u32 %v17607_v50, %v31278_v12 }
 0x425   : > { %v31232_v55 = vadd.f32 %v14427_v16, %v14226_v35  ;;  %25076 = vmatpush3.bf16.msra.mxu0 %v26166_v36  ;;  %25079 = vmatprep.mubr.bf16.mxu0 %v17562_v43  ;;  %v17593_v31 = vor.u32 %v17591_v4, %v31251_v45  ;;  %v26179_v43 = vld [vmem:[%s31746_s2 + $0x120] sm:$0xff]   ;;  %v31309_v4 = vsel %vm10796_vm2, %v31251_v45, %v31023_v5  ;;  %v18060_v45 = vshrl.u32 %v18034_v14, 16 }
 0x426   : > { %25060 = vmatmul.mubr.bf16.gmra.mrb[252].mxu1 %v30868_v7  ;;  %25077 = vmatprep.subr.bf16.mxu0 %v26168_v62 }
 0x427   : > { %25108 = vmatpush3.bf16.msra.mxu1 %v26167_v21  ;;  %25111 = vmatprep.mubr.bf16.mxu1 %v31164_v49  ;;  %v24637_v15 = vpop.f32.mrb[148].mxu0  ;;  %v26172_v49 = vld [vmem:[%s31746_s2 + $0xc8] sm:$0xff]   ;;  %v31283_v44 = vsel %vm10796_vm2, %v31006_v6, %v17593_v31 }
 0x428   : > { %v14178_v52 = vpop.f32.mrb[149].mxu0  ;;  %25109 = vmatprep.subr.bf16.mxu1 %v26169_v19 }
 0x429   : > { %v24669_v33 = vpop.f32.mrb[148].mxu1  ;;  %v14229_v7 = vadd.f32 %v14178_v52, %v31135_v27  ;;  %v24638_v47 = vpop.f32.mrb[150].mxu0  ;;  %25078 = vmatpush3.bf16.msra.mxu0 %v26168_v62  ;;  %v17847_v62 = vrot.slane %v17607_v50, 1 }
 0x42a   : > { %v14440_v37 = vpop.f32.mrb[149].mxu1  ;;  %v14181_v28 = vpop.f32.mrb[151].mxu0  ;;  %25127 = vmatprep.subr.bf16.mxu0 %v26170_v22  ;;  %v17780_v47 = vld [vmem:[#allocation2 + $0x110] sm:$0x1] }
 0x42b   : > { %v31248_v39 = vadd.f32 %v14440_v37, %v14229_v7  ;;  %v24670_v1 = vpop.f32.mrb[150].mxu1  ;;  %25110 = vmatpush3.bf16.msra.mxu1 %v26169_v19  ;;  %v14230_v58 = vadd.f32 %v14181_v28, %v31143_v46  ;;  %v26174_v46 = vld [vmem:[%s31746_s2 + $0xd0] sm:$0xff]   ;;  %v17851_v33 = vor.u32 %v17847_v62, %v17604_v63  ;;  %v26180_v7 = vld [vmem:[%s31746_s2 + $0xe8] sm:$0xff]   ;;  %v21839_v63 = vld [vmem:[%s26321_s20 + $0x60] sm:$0xff]  }
 0x42c   : > { %v14443_v27 = vpop.f32.mrb[151].mxu1  ;;  %25080 = vmatmul.mubr.bf16.vlgmr.msra.gmra.mrb[0].mxu0 %v31072_v8  ;;  %25159 = vmatprep.subr.bf16.mxu1 %v26171_v10  ;;  %v31317_v1 = vsel %vm10796_vm2, %v31006_v6, %v17609_v0 }
 0x42d   : > { %v31257_v32 = vadd.f32 %v14443_v27, %v14230_v58  ;;  %25083 = vmatprep.mubr.bf16.mxu0 %v31078_v56  ;;  %25128 = vmatpush3.bf16.msra.mxu0 %v26170_v22  ;;  %v26175_v56 = vld [vmem:[%s31746_s2 + $0x110] sm:$0xff]   ;;  %v26181_v58 = vld [vmem:[%s31746_s2 + $0x128] sm:$0xff]   ;;  %v17856_v3 = vsel %vm1026_vm1, %v17851_v33, %v30980_v18 }
 0x42e   : > { %25112 = vmatmul.mubr.bf16.vlgmr.msra.gmra.mrb[0].mxu1 %v31195_v13  ;;  %25129 = vmatprep.subr.bf16.mxu0 %v26172_v49 }
 0x42f   : > { %25115 = vmatprep.mubr.bf16.mxu1 %v31200_v9  ;;  %25160 = vmatpush3.bf16.msra.mxu1 %v26171_v10  ;;  %v24641_v8 = vpop.f32.mrb[152].mxu0 }
 0x430   : > { %v14194_v60 = vpop.f32.mrb[153].mxu0  ;;  %25161 = vmatprep.subr.bf16.mxu1 %v26173_v42 }
 0x431   : > { %v24673_v13 = vpop.f32.mrb[152].mxu1  ;;  %v14233_v61 = vadd.f32 %v14194_v60, %v31157_v29  ;;  %v24642_v34 = vpop.f32.mrb[154].mxu0  ;;  %25130 = vmatpush3.bf16.msra.mxu0 %v26172_v49  ;;  %v26183_v60 = vld [vmem:[%s31746_s2 + $0x130] sm:$0xff]  }
 0x432   : > { %v14456_v9 = vpop.f32.mrb[153].mxu1  ;;  %v14197_v36 = vpop.f32.mrb[155].mxu0  ;;  %25131 = vmatprep.subr.bf16.mxu0 %v26174_v46 }
 0x433   : > { %v31275_v2 = vadd.f32 %v14456_v9, %v14233_v61  ;;  %v24674_v21 = vpop.f32.mrb[154].mxu1  ;;  %25162 = vmatpush3.bf16.msra.mxu1 %v26173_v42  ;;  %v14234_v25 = vadd.f32 %v14197_v36, %v31171_v57  ;;  %v17840_v57 = vsel %vm1026_vm1, %v17835_v38, %v30980_v18  ;;  %v17848_v42 = vsel %vm1026_vm1, %v30988_v40, %v17847_v62  ;;  %v26184_v38 = vld [vmem:[%s31746_s2 + $0xf8] sm:$0xff]  }
 0x434   : > { %v14459_v29 = vpop.f32.mrb[155].mxu1  ;;  %25084 = vmatmul.mubr.bf16.gmra.mrb[4].mxu0 %v31107_v53  ;;  %25163 = vmatprep.subr.bf16.mxu1 %v26175_v56 }
 0x435   : > { %v31288_v26 = vadd.f32 %v14459_v29, %v14234_v25  ;;  %25087 = vmatprep.mubr.bf16.mxu0 %v31283_v44  ;;  %25132 = vmatpush3.bf16.msra.mxu0 %v26174_v46  ;;  %v26182_v46 = vld [vmem:[%s31746_s2 + $0xf0] sm:$0xff]   ;;  %v21726_v25 = vunpack.c.l.bf16 %v21839_v63 }
 0x436   : > { %25116 = vmatmul.mubr.bf16.gmra.mrb[4].mxu1 %v17832_v23  ;;  %25133 = vmatprep.subr.bf16.mxu0 %v26176_v48 }
 0x437   : > { %25119 = vmatprep.mubr.bf16.mxu1 %v17840_v57  ;;  %25164 = vmatpush3.bf16.msra.mxu1 %v26175_v56  ;;  %v24645_v35 = vpop.f32.mrb[156].mxu0  ;;  %v18062_v56 = vrot.slane %v18060_v45, 7  ;;  %v26185_v57 = vld [vmem:[%s31746_s2 + $0x138] sm:$0xff]  }
 0x438   : > { %v14210_v16 = vpop.f32.mrb[157].mxu0  ;;  %25165 = vmatprep.subr.bf16.mxu1 %v26177_v51 }
 0x439   : > { %v24677_v19 = vpop.f32.mrb[156].mxu1  ;;  %v14237_v22 = vadd.f32 %v14210_v16, %v31190_v17  ;;  %v24646_v15 = vpop.f32.mrb[158].mxu0  ;;  %25134 = vmatpush3.bf16.msra.mxu0 %v26176_v48  ;;  %v31343_v48 = vsel %vm10796_vm2, %v31278_v12, %v31023_v5  ;;  %v18070_v23 = vsel %vm10796_vm2, %v18062_v56, %v31060_v30  ;;  %v31355_v12 = vld [vmem:[%s31748_s4] ss:$0 sm:$0xff] }
 0x43a   : > { %v14472_v52 = vpop.f32.mrb[157].mxu1  ;;  %v14213_v10 = vpop.f32.mrb[159].mxu0  ;;  %25135 = vmatprep.subr.bf16.mxu0 %v26178_v24  ;;  %v26186_v30 = vld [vmem:[%s31746_s2 + $0x140] sm:$0xff]   ;;  %v21840_v19 = vld [vmem:[%s26321_s20 + $0x70] sm:$0xff]  }
 0x43b   : > { %v31311_v37 = vadd.f32 %v14472_v52, %v14237_v22  ;;  %v24678_v17 = vpop.f32.mrb[158].mxu1  ;;  %25166 = vmatpush3.bf16.msra.mxu1 %v26177_v51  ;;  %v14238_v28 = vadd.f32 %v14213_v10, %v31205_v41  ;;  %v17861_v41 = vshll.u32 %v17780_v47, 16  ;;  %v26187_v15 = vld [vmem:[%s31746_s2 + $0x180] sm:$0xff]   ;;  %v21730_v47 = vunpack.c.l.bf16 %v21840_v19 }
 0x43c   : > { %v14475_v49 = vpop.f32.mrb[159].mxu1  ;;  %25088 = vmatmul.mubr.bf16.gmra.mrb[8].mxu0 %v31309_v4  ;;  %25167 = vmatprep.subr.bf16.mxu1 %v26179_v43 }
 0x43d   : > { %v31322_v27 = vadd.f32 %v14475_v49, %v14238_v28  ;;  %25091 = vmatprep.mubr.bf16.mxu0 %v31317_v1  ;;  %25136 = vmatpush3.bf16.msra.mxu0 %v26178_v24  ;;  %v17863_v50 = vrot.slane %v17861_v41, 1  ;;  %v21727_v24 = vunpack.c.h.bf16 %v21839_v63  ;;  %v31380_v63 = vld [vmem:[#allocation2 + $0x110] sm:$0xff] }
 0x43e   : > { %25120 = vmatmul.mubr.bf16.gmra.mrb[8].mxu1 %v17848_v42  ;;  %25137 = vmatprep.subr.bf16.mxu0 %v26180_v7 }
 0x43f   : > { %25123 = vmatprep.mubr.bf16.mxu1 %v17856_v3  ;;  %25168 = vmatpush3.bf16.msra.mxu1 %v26179_v43  ;;  %v24697_v8 = vpop.f32.mrb[160].mxu0  ;;  %v17864_v35 = vsel %vm1026_vm1, %v30988_v40, %v17863_v50  ;;  %v18112_v50 = vshrl.u32 %v31380_v63, 16 }
 0x440   : > { %v14601_v31 = vpop.f32.mrb[161].mxu0  ;;  %25169 = vmatprep.subr.bf16.mxu1 %v26181_v58 }
 0x441   : > { %v24729_v13 = vpop.f32.mrb[160].mxu1  ;;  %v14664_v61 = vadd.f32 %v14601_v31, %v31222_v54  ;;  %v24698_v34 = vpop.f32.mrb[162].mxu0  ;;  %25138 = vmatpush3.bf16.msra.mxu0 %v26180_v7  ;;  %v21731_v31 = vunpack.c.h.bf16 %v21840_v19  ;;  %v18115_v19 = vshll.u32 %v31380_v63, 16 }
 0x442   : > { %v14863_v9 = vpop.f32.mrb[161].mxu1  ;;  %v14604_v36 = vpop.f32.mrb[163].mxu0  ;;  %25139 = vmatprep.subr.bf16.mxu0 %v26182_v46  ;;  %v21841_v13 = vld [vmem:[%s26321_s20 + $0x80] sm:$0xff]   ;;  %v26191_v34 = vld [vmem:[%s31746_s2 + $0x190] sm:$0xff]  }
 0x443   : > { %v14926_v21 = vadd.f32 %v14863_v9, %v14664_v61  ;;  %v24730_v29 = vpop.f32.mrb[162].mxu1  ;;  %25170 = vmatpush3.bf16.msra.mxu1 %v26181_v58  ;;  %v14665_v54 = vadd.f32 %v14604_v36, %v31232_v55 }
 0x444   : > { %v14866_v51 = vpop.f32.mrb[163].mxu1  ;;  %25092 = vmatmul.mubr.bf16.gmra.mrb[12].mxu0 %v31343_v48  ;;  %25171 = vmatprep.subr.bf16.mxu1 %v26183_v60  ;;  %v21734_v29 = vunpack.c.l.bf16 %v21841_v13 }
 0x445   : > { %v14974_v62 = vadd.f32 %v31355_v12, %v14926_v21  ;;  %v14927_v55 = vadd.f32 %v14866_v51, %v14665_v54  ;;  %25140 = vmatpush3.bf16.msra.mxu0 %v26182_v46  ;;  %25143 = vmatprep.mubr.bf16.mxu0 %v18070_v23  ;;  %v26192_v54 = vld [vmem:[%s31746_s2 + $0x158] sm:$0xff]  }
 0x446   : > { %25124 = vmatmul.mubr.bf16.gmra.mrb[12].mxu1 %v17864_v35  ;;  %25141 = vmatprep.subr.bf16.mxu0 %v26184_v38  ;;  %v31407_v35 = vrot.slane %v18112_v50, 7 }
 0x447   : > { %v14990_v0 = vadd.f32 %v21726_v25, %v14974_v62  ;;  %v14975_v16 = vadd.f32 %v31355_v12, %v14927_v55  ;;  %25172 = vmatpush3.bf16.msra.mxu1 %v26183_v60  ;;  %25175 = vmatprep.mubr.bf16.mxu1 %v31015_v59  ;;  %v24701_v43 = vpop.f32.mrb[164].mxu0  ;;  %v26188_v59 = vld [vmem:[%s31746_s2 + $0x148] sm:$0xff]  }
 0x448   : > { %v14617_v22 = vpop.f32.mrb[165].mxu0  ;;  %25173 = vmatprep.subr.bf16.mxu1 %v26185_v57  ;;  %v21735_v43 = vunpack.c.h.bf16 %v21841_v13 }
 0x449   : > { %v14991_v14 = vadd.f32 %v21727_v24, %v14975_v16  ;;  %v24733_v52 = vpop.f32.mrb[164].mxu1  ;;  %v14668_v10 = vadd.f32 %v14617_v22, %v31248_v39  ;;  %v24702_v33 = vpop.f32.mrb[166].mxu0  ;;  %25142 = vmatpush3.bf16.msra.mxu0 %v26184_v38  ;;  %v15006_v28 = vmax.f32 %v14990_v0, 0.0  ;;  %v26189_v39 = vld [vmem:[%s31746_s2 + $0x188] sm:$0xff]  }
 0x44a   : > { %v14879_v7 = vpop.f32.mrb[165].mxu1  ;;  %v14620_v17 = vpop.f32.mrb[167].mxu0  ;;  %25191 = vmatprep.subr.bf16.mxu0 %v26186_v30  ;;  %v31422_v52 = vld [vmem:[#allocation2 + $0xf0] sm:$0xff]  ;;  %v26195_v33 = vld [vmem:[%s31746_s2 + $0x1a0] sm:$0xff]  }
 0x44b   : > { %v15007_v49 = vmax.f32 %v14991_v14, 0.0  ;;  %v14930_v58 = vadd.f32 %v14879_v7, %v14668_v10  ;;  %v24734_v45 = vpop.f32.mrb[166].mxu1  ;;  %25174 = vmatpush3.bf16.msra.mxu1 %v26185_v57  ;;  %v14669_v42 = vadd.f32 %v14620_v17, %v31257_v32  ;;  %v31382_v32 = vld [vmem:[#allocation2 + $0x28] sm:$0xff]  ;;  %v21842_v14 = vld [vmem:[%s26321_s20 + $0x90] sm:$0xff]   ;;  %v18117_v7 = vor.u32 %v18115_v19, %v31407_v35 }
 0x44c   : > { %v14882_v41 = vpop.f32.mrb[167].mxu1  ;;  %25144 = vmatmul.mubr.bf16.vlgmr.msra.gmra.mrb[16].mxu0 %v31107_v53  ;;  %25223 = vmatprep.subr.bf16.mxu1 %v26187_v15  ;;  %v26190_v53 = vld [vmem:[%s31746_s2 + $0x150] sm:$0xff]  }
 0x44d   : > { %v21743_v3 = vpack.c.bf16 %v15007_v49, %v15006_v28  ;;  %v14978_v46 = vadd.f32 %v31355_v12, %v14930_v58  ;;  %v14931_v8 = vadd.f32 %v14882_v41, %v14669_v42  ;;  %25147 = vmatprep.mubr.bf16.mxu0 %v31283_v44  ;;  %25192 = vmatpush3.bf16.msra.mxu0 %v26186_v30  ;;  %v21738_v58 = vunpack.c.l.bf16 %v21842_v14  ;;  %v26196_v42 = vld [vmem:[%s31746_s2 + $0x168] sm:$0xff]  }
 0x44e   : > { %25176 = vmatmul.mubr.bf16.vlgmr.msra.gmra.mrb[16].mxu1 %v31382_v32  ;;  %25193 = vmatprep.subr.bf16.mxu0 %v26188_v59  ;;  %v18765_v41 = vshrl.u32 %v31422_v52, 16 }
 0x44f   : > { %21843 = vst [vmem:[%s28851_s22 + $0x40] sm:$0xff] %v21743_v3   ;;  %v14994_v60 = vadd.f32 %v21730_v47, %v14978_v46  ;;  %v14979_v56 = vadd.f32 %v31355_v12, %v14931_v8  ;;  %25179 = vmatprep.mubr.bf16.mxu1 %v31175_v20  ;;  %25224 = vmatpush3.bf16.msra.mxu1 %v26187_v15  ;;  %v24705_v44 = vpop.f32.mrb[168].mxu0 }
 0x450   : > { %v14633_v61 = vpop.f32.mrb[169].mxu0  ;;  %25225 = vmatprep.subr.bf16.mxu1 %v26189_v39 }
 0x451   : > { %v14995_v9 = vadd.f32 %v21731_v31, %v14979_v56  ;;  %v24737_v36 = vpop.f32.mrb[168].mxu1  ;;  %v14672_v38 = vadd.f32 %v14633_v61, %v31275_v2  ;;  %v24706_v21 = vpop.f32.mrb[170].mxu0  ;;  %25194 = vmatpush3.bf16.msra.mxu0 %v26188_v59  ;;  %v15010_v51 = vmax.f32 %v14994_v60, 0.0  ;;  %v26193_v2 = vld [vmem:[%s31746_s2 + $0x198] sm:$0xff]   ;;  %v31440_v60 = vsel %vm10796_vm2, %v31006_v6, %v18117_v7  ;;  %v26197_v56 = vld [vmem:[%s31746_s2 + $0x1a8] sm:$0xff]  }
 0x452   : > { %v14895_v25 = vpop.f32.mrb[169].mxu1  ;;  %v14636_v20 = vpop.f32.mrb[171].mxu0  ;;  %25195 = vmatprep.subr.bf16.mxu0 %v26190_v53  ;;  %v26201_v7 = vld [vmem:[%s31746_s2 + $0x1b8] sm:$0xff]  }
 0x453   : > { %v15011_v23 = vmax.f32 %v14995_v9, 0.0  ;;  %v14934_v57 = vadd.f32 %v14895_v25, %v14672_v38  ;;  %v24738_v62 = vpop.f32.mrb[170].mxu1  ;;  %25226 = vmatpush3.bf16.msra.mxu1 %v26189_v39  ;;  %v14673_v55 = vadd.f32 %v14636_v20, %v31288_v26  ;;  %v31411_v26 = vld [vmem:[#allocation2 + $0xe0] sm:$0xff]  ;;  %v31454_v38 = vrot.slane %v18765_v41, 7 }
 0x454   : > { %v14898_v24 = vpop.f32.mrb[171].mxu1  ;;  %25148 = vmatmul.mubr.bf16.gmra.mrb[20].mxu0 %v31309_v4  ;;  %25227 = vmatprep.subr.bf16.mxu1 %v26191_v34  ;;  %v26194_v4 = vld [vmem:[%s31746_s2 + $0x160] sm:$0xff]   ;;  %v18501_v47 = vshll.u32 %v31411_v26, 16  ;;  %v18499_v9 = vshrl.u32 %v31411_v26, 16 }
 0x455   : > { %v21748_v30 = vpack.c.bf16 %v15011_v23, %v15010_v51  ;;  %v14982_v0 = vadd.f32 %v31355_v12, %v14934_v57  ;;  %v14935_v16 = vadd.f32 %v14898_v24, %v14673_v55  ;;  %25151 = vmatprep.mubr.bf16.mxu0 %v31317_v1  ;;  %25196 = vmatpush3.bf16.msra.mxu0 %v26190_v53  ;;  %v31459_v20 = vld [vmem:[#allocation2 + $0x100] sm:$0xff]  ;;  %v26199_v51 = vld [vmem:[%s31746_s2 + $0x1b0] sm:$0xff]   ;;  %v18514_v57 = vshll.u32 %v31422_v52, 16 }
 0x456   : > { %25180 = vmatmul.mubr.bf16.gmra.mrb[20].mxu1 %v31382_v32  ;;  %25197 = vmatprep.subr.bf16.mxu0 %v26192_v54  ;;  %v18503_v44 = vrot.slane %v18501_v47, 1 }
 0x457   : > { %21844 = vst [vmem:[%s28851_s22 + $0x50] sm:$0xff] %v21748_v30   ;;  %v14998_v22 = vadd.f32 %v21734_v29, %v14982_v0  ;;  %v14983_v15 = vadd.f32 %v31355_v12, %v14935_v16  ;;  %25183 = vmatprep.mubr.bf16.mxu1 %v31209_v11  ;;  %25228 = vmatpush3.bf16.msra.mxu1 %v26191_v34  ;;  %v24709_v1 = vpop.f32.mrb[172].mxu0  ;;  %v26200_v16 = vld [vmem:[%s31746_s2 + $0x178] sm:$0xff]  }
 0x458   : > { %v14649_v10 = vpop.f32.mrb[173].mxu0  ;;  %25229 = vmatprep.subr.bf16.mxu1 %v26193_v2  ;;  %v18504_v23 = vor.u32 %v18503_v44, %v18499_v9  ;;  %v18770_v0 = vor.u32 %v31454_v38, %v18514_v57  ;;  %v31475_v1 = vsel %vm10796_vm2, %v31407_v35, %v31023_v5 }
 0x459   : > { %v14999_v17 = vadd.f32 %v21735_v43, %v14983_v15  ;;  %v24741_v59 = vpop.f32.mrb[172].mxu1  ;;  %v14676_v11 = vadd.f32 %v14649_v10, %v31311_v37  ;;  %v24710_v28 = vpop.f32.mrb[174].mxu0  ;;  %25198 = vmatpush3.bf16.msra.mxu0 %v26192_v54  ;;  %v15014_v39 = vmax.f32 %v14998_v22, 0.0  ;;  %v18735_v37 = vld [vmem:[#allocation2 + $0xe8] sm:$0x80]  ;;  %v18781_v43 = vshrl.u32 %v31459_v20, 16 }
 0x45a   : > { %v14911_v49 = vpop.f32.mrb[173].mxu1  ;;  %v14652_v45 = vpop.f32.mrb[175].mxu0  ;;  %25199 = vmatprep.subr.bf16.mxu0 %v26194_v4  ;;  %v18761_v36 = vshrl.u32 %v18735_v37, 16  ;;  %v18509_v10 = vsel %vm1026_vm1, %v18504_v23, %v30980_v18  ;;  %v26202_v59 = vld [vmem:[%s31746_s2 + $0x1c0] sm:$0xff]   ;;  %v26204_v37 = vld [vmem:[%s31746_s2 + $0x1c8] sm:$0xff]  }
 0x45b   : > { %v15015_v3 = vmax.f32 %v14999_v17, 0.0  ;;  %v14938_v46 = vadd.f32 %v14911_v49, %v14676_v11  ;;  %v24742_v8 = vpop.f32.mrb[174].mxu1  ;;  %25230 = vmatpush3.bf16.msra.mxu1 %v26193_v2  ;;  %v14677_v31 = vadd.f32 %v14652_v45, %v31322_v27  ;;  %v21739_v27 = vunpack.c.h.bf16 %v21842_v14 }
 0x45c   : > { %v14914_v53 = vpop.f32.mrb[175].mxu1  ;;  %25152 = vmatmul.mubr.bf16.gmra.mrb[24].mxu0 %v31343_v48  ;;  %25231 = vmatprep.subr.bf16.mxu1 %v26195_v33  ;;  %v26198_v48 = vld [vmem:[%s31746_s2 + $0x170] sm:$0xff]   ;;  %v18763_v30 = vrot.slane %v18761_v36, 7  ;;  %v31492_v11 = vrot.slane %v18781_v43, 7 }
 0x45d   : > { %v21753_v13 = vpack.c.bf16 %v15015_v3, %v15014_v39  ;;  %v14986_v61 = vadd.f32 %v31355_v12, %v14938_v46  ;;  %v14939_v34 = vadd.f32 %v14914_v53, %v14677_v31  ;;  %25155 = vmatprep.mubr.bf16.mxu0 %v31440_v60  ;;  %25200 = vmatpush3.bf16.msra.mxu0 %v26194_v4  ;;  %v26206_v36 = vld [vmem:[%s31746_s2 + $0x1d0] sm:$0xff]  }
 0x45e   : > { %25184 = vmatmul.mubr.bf16.gmra.mrb[24].mxu1 %v31382_v32  ;;  %25201 = vmatprep.subr.bf16.mxu0 %v26196_v42  ;;  %v18771_v35 = vsel %vm10796_vm2, %v18763_v30, %v18770_v0 }
 0x45f   : > { %21845 = vst [vmem:[%s28851_s22 + $0x60] sm:$0xff] %v21753_v13   ;;  %v15002_v21 = vadd.f32 %v21738_v58, %v14986_v61  ;;  %v14987_v25 = vadd.f32 %v31355_v12, %v14939_v34  ;;  %25187 = vmatprep.mubr.bf16.mxu1 %v31380_v63  ;;  %25232 = vmatpush3.bf16.msra.mxu1 %v26195_v33  ;;  %v24761_v29 = vpop.f32.mrb[176].mxu0  ;;  %v18516_v33 = vrot.slane %v18514_v57, 1  ;;  %v26203_v58 = vld [vmem:[%s31746_s2 + $0x200] sm:$0xff]   ;;  %v26205_v61 = vld [vmem:[%s31746_s2 + $0x208] sm:$0xff]  }
 0x460   : > { %v15241_v54 = vpop.f32.mrb[177].mxu0  ;;  %25233 = vmatprep.subr.bf16.mxu1 %v26197_v56 }
 0x461   : > { %v15003_v62 = vadd.f32 %v21739_v27, %v14987_v25  ;;  %v24793_v55 = vpop.f32.mrb[176].mxu1  ;;  %v24762_v24 = vpop.f32.mrb[178].mxu0  ;;  %25202 = vmatpush3.bf16.msra.mxu0 %v26196_v42  ;;  %v15018_v26 = vmax.f32 %v15002_v21, 0.0  ;;  %v18520_v45 = vor.u32 %v18765_v41, %v18516_v33  ;;  %v18784_v42 = vshll.u32 %v31459_v20, 16 }
 0x462   : > { %v15462_v12 = vpop.f32.mrb[177].mxu1  ;;  %v15244_v2 = vpop.f32.mrb[179].mxu0  ;;  %25203 = vmatprep.subr.bf16.mxu0 %v26198_v48  ;;  %v18517_v53 = vsel %vm1026_vm1, %v30988_v40, %v18516_v33  ;;  %v18779_v27 = vsel %vm10796_vm2, %v31454_v38, %v31023_v5  ;;  %v26207_v38 = vld [vmem:[%s31746_s2 + $0x210] sm:$0xff]   ;;  %v26208_v24 = vld [vmem:[%s31746_s2 + $0x1d8] sm:$0xff]   ;;  %v18481_v33 = vld [vmem:[#allocation2 + $0x120] sm:$0x1] }
 0x463   : > { %v15019_v4 = vmax.f32 %v15003_v62, 0.0  ;;  %v31470_v22 = vadd.f32 %v15462_v12, %v15241_v54  ;;  %v24794_v15 = vpop.f32.mrb[178].mxu1  ;;  %25234 = vmatpush3.bf16.msra.mxu1 %v26197_v56  ;;  %v18786_v31 = vor.u32 %v18784_v42, %v31492_v11  ;;  %v31511_v13 = vsel %vm1026_vm1, %v18520_v45, %v30980_v18  ;;  %v31532_v54 = vld [vmem:[#allocation2] sm:$0xff]  ;;  %v26212_v45 = vld [vmem:[%s31746_s2 + $0x1e8] sm:$0xff]  }
 0x464   : > { %v15465_v14 = vpop.f32.mrb[179].mxu1  ;;  %25156 = vmatmul.mubr.bf16.gmra.mrb[28].mxu0 %v31475_v1  ;;  %25235 = vmatprep.subr.bf16.mxu1 %v26199_v51  ;;  %v18532_v34 = vrot.slane %v18784_v42, 1  ;;  %v18816_v15 = vshll.u32 %v31532_v54, 16 }
 0x465   : > { %v21758_v47 = vpack.c.bf16 %v15019_v4, %v15018_v26  ;;  %v31483_v17 = vadd.f32 %v15465_v14, %v15244_v2  ;;  %25204 = vmatpush3.bf16.msra.mxu0 %v26198_v48  ;;  %25207 = vmatprep.mubr.bf16.mxu0 %v18509_v10  ;;  %v18787_v9 = vsel %vm10796_vm2, %v31006_v6, %v18786_v31  ;;  %v18548_v26 = vrot.slane %v18115_v19, 1  ;;  %v26210_v19 = vld [vmem:[%s31746_s2 + $0x1e0] sm:$0xff]  }
 0x466   : > { %25188 = vmatmul.mubr.bf16.gmra.mrb[28].mxu1 %v31382_v32  ;;  %25205 = vmatprep.subr.bf16.mxu0 %v26200_v16  ;;  %v18536_v29 = vor.u32 %v18781_v43, %v18532_v34  ;;  %v31542_v30 = vsel %vm1026_vm1, %v30988_v40, %v18532_v34  ;;  %v26209_v43 = vld [vmem:[%s31746_s2 + $0x218] sm:$0xff]   ;;  %v18795_v10 = vsel %vm10796_vm2, %v31492_v11, %v31023_v5  ;;  %v26211_v5 = vld [vmem:[%s31746_s2 + $0x220] sm:$0xff]  }
 0x467   : > { %21846 = vst [vmem:[%s28851_s22 + $0x70] sm:$0xff] %v21758_v47   ;;  %25236 = vmatpush3.bf16.msra.mxu1 %v26199_v51  ;;  %25239 = vmatprep.mubr.bf16.mxu1 %v18771_v35  ;;  %v24765_v28 = vpop.f32.mrb[180].mxu0  ;;  %v18813_v51 = vshrl.u32 %v31532_v54, 16  ;;  %v31574_v35 = vor.u32 %v18548_v26, %v18112_v50  ;;  %v31586_v50 = vsel %vm1026_vm1, %v30988_v40, %v18548_v26 }
 0x468   : > { %v15257_v49 = vpop.f32.mrb[181].mxu0  ;;  %25237 = vmatprep.subr.bf16.mxu1 %v26201_v7 }
 0x469   : > { %v24797_v39 = vpop.f32.mrb[180].mxu1  ;;  %v24766_v3 = vpop.f32.mrb[182].mxu0  ;;  %25206 = vmatpush3.bf16.msra.mxu0 %v26200_v16  ;;  %v31547_v16 = vsel %vm1026_vm1, %v18536_v29, %v30980_v18  ;;  %v31556_v4 = vrot.slane %v18813_v51, 7 }
 0x46a   : > { %v15478_v46 = vpop.f32.mrb[181].mxu1  ;;  %v15260_v8 = vpop.f32.mrb[183].mxu0  ;;  %25255 = vmatprep.subr.bf16.mxu0 %v26202_v59 }
 0x46b   : > { %v31507_v56 = vadd.f32 %v15478_v46, %v15257_v49  ;;  %v24798_v41 = vpop.f32.mrb[182].mxu1  ;;  %25238 = vmatpush3.bf16.msra.mxu1 %v26201_v7  ;;  %v18557_v46 = vsel %vm1026_vm1, %v31574_v35, %v30980_v18 }
 0x46c   : > { %v15481_v44 = vpop.f32.mrb[183].mxu1  ;;  %25208 = vmatmul.mubr.bf16.vlgmr.msra.gmra.mrb[32].mxu0 %v18517_v53  ;;  %25287 = vmatprep.subr.bf16.mxu1 %v26203_v58  ;;  %v26214_v41 = vld [vmem:[%s31746_s2 + $0x1f0] sm:$0xff]  }
 0x46d   : > { %v31519_v48 = vadd.f32 %v15481_v44, %v15260_v8  ;;  %25211 = vmatprep.mubr.bf16.mxu0 %v31511_v13  ;;  %25256 = vmatpush3.bf16.msra.mxu0 %v26202_v59  ;;  %v18818_v59 = vor.u32 %v18816_v15, %v31556_v4  ;;  %v26213_v8 = vld [vmem:[%s31746_s2 + $0x228] sm:$0xff]  }
 0x46e   : > { %25240 = vmatmul.mubr.bf16.vlgmr.msra.gmra.mrb[32].mxu1 %v18779_v27  ;;  %25257 = vmatprep.subr.bf16.mxu0 %v26204_v37 }
 0x46f   : > { %25243 = vmatprep.mubr.bf16.mxu1 %v18787_v9  ;;  %25288 = vmatpush3.bf16.msra.mxu1 %v26203_v58  ;;  %v24769_v21 = vpop.f32.mrb[184].mxu0  ;;  %v18819_v31 = vsel %vm10796_vm2, %v31006_v6, %v18818_v59  ;;  %v26215_v6 = vld [vmem:[%s31746_s2 + $0x230] sm:$0xff]  }
 0x470   : > { %v15273_v25 = vpop.f32.mrb[185].mxu0  ;;  %25289 = vmatprep.subr.bf16.mxu1 %v26205_v61  ;;  %v26216_v21 = vld [vmem:[%s31746_s2 + $0x1f8] sm:$0xff]  }
 0x471   : > { %v24801_v23 = vpop.f32.mrb[184].mxu1  ;;  %v24770_v57 = vpop.f32.mrb[186].mxu0  ;;  %25258 = vmatpush3.bf16.msra.mxu0 %v26204_v37 }
 0x472   : > { %v15494_v62 = vpop.f32.mrb[185].mxu1  ;;  %v15276_v55 = vpop.f32.mrb[187].mxu0  ;;  %25259 = vmatprep.subr.bf16.mxu0 %v26206_v36 }
 0x473   : > { %v31538_v12 = vadd.f32 %v15494_v62, %v15273_v25  ;;  %v24802_v2 = vpop.f32.mrb[186].mxu1  ;;  %25290 = vmatpush3.bf16.msra.mxu1 %v26205_v61 }
 0x474   : > { %v15497_v0 = vpop.f32.mrb[187].mxu1  ;;  %25212 = vmatmul.mubr.bf16.gmra.mrb[36].mxu0 %v31542_v30  ;;  %25291 = vmatprep.subr.bf16.mxu1 %v26207_v38 }
 0x475   : > { %v31559_v14 = vadd.f32 %v15497_v0, %v15276_v55  ;;  %25215 = vmatprep.mubr.bf16.mxu0 %v31547_v16  ;;  %25260 = vmatpush3.bf16.msra.mxu0 %v26206_v36 }
 0x476   : > { %25244 = vmatmul.mubr.bf16.gmra.mrb[36].mxu1 %v18795_v10  ;;  %25261 = vmatprep.subr.bf16.mxu0 %v26208_v24 }
 0x477   : > { %25247 = vmatprep.mubr.bf16.mxu1 %v31440_v60  ;;  %25292 = vmatpush3.bf16.msra.mxu1 %v26207_v38  ;;  %v24773_v7 = vpop.f32.mrb[188].mxu0  ;;  %v18562_v60 = vshll.u32 %v18481_v33, 16 }
 0x478   : > { %v15289_v47 = vpop.f32.mrb[189].mxu0  ;;  %25293 = vmatprep.subr.bf16.mxu1 %v26209_v43 }
 0x479   : > { %v24805_v11 = vpop.f32.mrb[188].mxu1  ;;  %v24774_v28 = vpop.f32.mrb[190].mxu0  ;;  %25262 = vmatpush3.bf16.msra.mxu0 %v26208_v24  ;;  %v18564_v53 = vrot.slane %v18562_v60, 1 }
 0x47a   : > { %v15510_v49 = vpop.f32.mrb[189].mxu1  ;;  %v15292_v58 = vpop.f32.mrb[191].mxu0  ;;  %25263 = vmatprep.subr.bf16.mxu0 %v26210_v19 }
 0x47b   : > { %v31582_v42 = vadd.f32 %v15510_v49, %v15289_v47  ;;  %v24806_v39 = vpop.f32.mrb[190].mxu1  ;;  %25294 = vmatpush3.bf16.msra.mxu1 %v26209_v43 }
 0x47c   : > { %v15513_v3 = vpop.f32.mrb[191].mxu1  ;;  %25216 = vmatmul.mubr.bf16.gmra.mrb[40].mxu0 %v31586_v50  ;;  %25295 = vmatprep.subr.bf16.mxu1 %v26211_v5 }
 0x47d   : > { %v31597_v37 = vadd.f32 %v15513_v3, %v15292_v58  ;;  %25219 = vmatprep.mubr.bf16.mxu0 %v18557_v46  ;;  %25264 = vmatpush3.bf16.msra.mxu0 %v26210_v19  ;;  %v19249_v58 = vrot.slane %v18816_v15, 1  ;;  %v19182_v46 = vld [vmem:[#allocation2 + $0x130] sm:$0x1] }
 0x47e   : > { %25248 = vmatmul.mubr.bf16.gmra.mrb[40].mxu1 %v31475_v1  ;;  %25265 = vmatprep.subr.bf16.mxu0 %v26212_v45  ;;  %v18565_v1 = vsel %vm1026_vm1, %v30988_v40, %v18564_v53  ;;  %v26217_v40 = vld [vmem:[%s31746_s2 + $0x238] sm:$0xff]  }
 0x47f   : > { %25296 = vmatpush3.bf16.msra.mxu1 %v26211_v5  ;;  %v24825_v18 = vpop.f32.mrb[192].mxu0  ;;  %25251 = vmatprep.mubr.bf16.mxu1 %v18819_v31  ;;  %v19253_v3 = vor.u32 %v19249_v58, %v18813_v51 }
 0x480   : > { %v15708_v44 = vpop.f32.mrb[193].mxu0  ;;  %25297 = vmatprep.subr.bf16.mxu1 %v26213_v8 }
 0x481   : > { %v24857_v61 = vpop.f32.mrb[192].mxu1  ;;  %v15771_v34 = vadd.f32 %v15708_v44, %v31470_v22  ;;  %v24826_v27 = vpop.f32.mrb[194].mxu0  ;;  %25266 = vmatpush3.bf16.msra.mxu0 %v26212_v45  ;;  %v18827_v22 = vsel %vm10796_vm2, %v31556_v4, %v18818_v59  ;;  %v19263_v44 = vshll.u32 %v19182_v46, 16 }
 0x482   : > { %v15970_v9 = vpop.f32.mrb[193].mxu1  ;;  %v15711_v36 = vpop.f32.mrb[195].mxu0  ;;  %25267 = vmatprep.subr.bf16.mxu0 %v26214_v41  ;;  %v19258_v61 = vsel %vm1026_vm1, %v19253_v3, %v19249_v58 }
 0x483   : > { %v31612_v25 = vadd.f32 %v15970_v9, %v15771_v34  ;;  %v24858_v38 = vpop.f32.mrb[194].mxu1  ;;  %25298 = vmatpush3.bf16.msra.mxu1 %v26213_v8  ;;  %v15772_v29 = vadd.f32 %v15711_v36, %v31483_v17  ;;  %v19265_v34 = vrot.slane %v19263_v44, 1 }
 0x484   : > { %v15973_v23 = vpop.f32.mrb[195].mxu1  ;;  %25220 = vmatmul.mubr.bf16.gmra.mrb[44].mxu0 %v18565_v1  ;;  %25299 = vmatprep.subr.bf16.mxu1 %v26215_v6 }
 0x485   : > { %v31620_v57 = vadd.f32 %v15973_v23, %v15772_v29  ;;  %25268 = vmatpush3.bf16.msra.mxu0 %v26214_v41  ;;  %25271 = vmatprep.mubr.bf16.mxu0 %v31422_v52 }
 0x486   : > { %25252 = vmatmul.mubr.bf16.gmra.mrb[44].mxu1 %v18827_v22  ;;  %25269 = vmatprep.subr.bf16.mxu0 %v26216_v21  ;;  %v19266_v22 = vsel %vm1026_vm1, %v19253_v3, %v19265_v34 }
 0x487   : > { %25300 = vmatpush3.bf16.msra.mxu1 %v26215_v6  ;;  %25303 = vmatprep.mubr.bf16.mxu1 %v31511_v13  ;;  %v24829_v17 = vpop.f32.mrb[196].mxu0 }
 0x488   : > { %v15724_v62 = vpop.f32.mrb[197].mxu0  ;;  %25301 = vmatprep.subr.bf16.mxu1 %v26217_v40 }
 0x489   : > { %v24861_v55 = vpop.f32.mrb[196].mxu1  ;;  %v15775_v24 = vadd.f32 %v15724_v62, %v31507_v56  ;;  %v24830_v2 = vpop.f32.mrb[198].mxu0  ;;  %25270 = vmatpush3.bf16.msra.mxu0 %v26216_v21  ;;  %v19239_v56 = vshll.u32 %v31382_v32, 16 }
 0x48a   : > { %v15986_v0 = vpop.f32.mrb[197].mxu1  ;;  %v15727_v43 = vpop.f32.mrb[199].mxu0 }
 0x48b   : > { %v31625_v26 = vadd.f32 %v15986_v0, %v15775_v24  ;;  %v24862_v4 = vpop.f32.mrb[198].mxu1  ;;  %25302 = vmatpush3.bf16.msra.mxu1 %v26217_v40  ;;  %v15776_v52 = vadd.f32 %v15727_v43, %v31519_v48  ;;  %v19241_v11 = vrot.slane %v19239_v56, 1 }
 0x48c   : > { %v15989_v10 = vpop.f32.mrb[199].mxu1  ;;  %25272 = vmatmul.mubr.bf16.vlgmr.msra.gmra.mrb[48].mxu0 %v31382_v32 }
 0x48d   : > { %v31629_v13 = vadd.f32 %v15989_v10, %v15776_v52  ;;  %25275 = vmatprep.mubr.bf16.mxu0 %v31459_v20 }
 0x48e   : > { %25304 = vmatmul.mubr.bf16.vlgmr.msra.gmra.mrb[48].mxu1 %v31542_v30  ;;  %v19243_v30 = vshrl.u32 %v31382_v32, 16 }
 0x48f   : > { %25307 = vmatprep.mubr.bf16.mxu1 %v31547_v16  ;;  %v24833_v19 = vpop.f32.mrb[200].mxu0 }
 0x490   : > { %v15740_v33 = vpop.f32.mrb[201].mxu0  ;;  %v19245_v45 = vor.u32 %v19243_v30, %v19241_v11 }
 0x491   : > { %v24865_v7 = vpop.f32.mrb[200].mxu1  ;;  %v15779_v47 = vadd.f32 %v15740_v33, %v31538_v12  ;;  %v24834_v5 = vpop.f32.mrb[202].mxu0  ;;  %v19242_v12 = vsel %vm1026_vm1, %v31574_v35, %v19241_v11 }
 0x492   : > { %v16002_v48 = vpop.f32.mrb[201].mxu1  ;;  %v15743_v59 = vpop.f32.mrb[203].mxu0  ;;  %v19250_v15 = vsel %vm1026_vm1, %v19245_v45, %v19249_v58 }
 0x493   : > { %v31636_v28 = vadd.f32 %v16002_v48, %v15779_v47  ;;  %v24866_v60 = vpop.f32.mrb[202].mxu1  ;;  %v15780_v20 = vadd.f32 %v15743_v59, %v31559_v14 }
 0x494   : > { %v16005_v49 = vpop.f32.mrb[203].mxu1  ;;  %25276 = vmatmul.mubr.bf16.gmra.mrb[52].mxu0 %v31382_v32 }
 0x495   : > { %v31641_v16 = vadd.f32 %v16005_v49, %v15780_v20  ;;  %25279 = vmatprep.mubr.bf16.mxu0 %v31380_v63 }
 0x496   : > { %25308 = vmatmul.mubr.bf16.gmra.mrb[52].mxu1 %v31586_v50 }
 0x497   : > { %25311 = vmatprep.mubr.bf16.mxu1 %v19242_v12  ;;  %v24837_v14 = vpop.f32.mrb[204].mxu0 }
 0x498   : > { %v15756_v39 = vpop.f32.mrb[205].mxu0 }
 0x499   : > { %v24869_v8 = vpop.f32.mrb[204].mxu1  ;;  %v15783_v31 = vadd.f32 %v15756_v39, %v31582_v42  ;;  %v24838_v63 = vpop.f32.mrb[206].mxu0 }
 0x49a   : > { %v16018_v53 = vpop.f32.mrb[205].mxu1  ;;  %v15759_v50 = vpop.f32.mrb[207].mxu0 }
 0x49b   : > { %v16045_v41 = vadd.f32 %v16018_v53, %v15783_v31  ;;  %v24870_v18 = vpop.f32.mrb[206].mxu1  ;;  %v15784_v35 = vadd.f32 %v15759_v50, %v31597_v37 }
 0x49c   : > { %v16021_v6 = vpop.f32.mrb[207].mxu1  ;;  %25280 = vmatmul.mubr.bf16.gmra.mrb[56].mxu0 %v31382_v32 }
 0x49d   : > { %v16046_v51 = vadd.f32 %v16021_v6, %v15784_v35  ;;  %25283 = vmatprep.mubr.bf16.mxu0 %v31532_v54 }
 0x49e   : > { %25312 = vmatmul.mubr.bf16.gmra.mrb[56].mxu1 %v19250_v15 }
 0x49f   : > { %v24889_v42 = vpop.f32.mrb[208].mxu0  ;;  %25315 = vmatprep.mubr.bf16.mxu1 %v19258_v61 }
 0x4a0   : > { %v16147_v27 = vpop.f32.mrb[209].mxu0 }
 0x4a1   : > { %v24921_v1 = vpop.f32.mrb[208].mxu1  ;;  %v16210_v9 = vadd.f32 %v16147_v27, %v31612_v25  ;;  %v24890_v37 = vpop.f32.mrb[210].mxu0 }
 0x4a2   : > { %v16409_v36 = vpop.f32.mrb[209].mxu1  ;;  %v16150_v21 = vpop.f32.mrb[211].mxu0 }
 0x4a3   : > { %v16472_v38 = vadd.f32 %v16409_v36, %v16210_v9  ;;  %v24922_v29 = vpop.f32.mrb[210].mxu1  ;;  %v16211_v32 = vadd.f32 %v16150_v21, %v31620_v57 }
 0x4a4   : > { %v16412_v23 = vpop.f32.mrb[211].mxu1  ;;  %25284 = vmatmul.mubr.bf16.gmra.mrb[60].mxu0 %v31532_v54 }
 0x4a5   : > { %v16473_v40 = vadd.f32 %v16412_v23, %v16211_v32 }
 0x4a6   : > { %25316 = vmatmul.mubr.bf16.gmra.mrb[60].mxu1 %v19266_v22 }
 0x4a7   : > { %v24893_v17 = vpop.f32.mrb[212].mxu0 }
 0x4a8   : > { %v16163_v62 = vpop.f32.mrb[213].mxu0 }
 0x4a9   : > { %v24925_v55 = vpop.f32.mrb[212].mxu1  ;;  %v16214_v24 = vadd.f32 %v16163_v62, %v31625_v26  ;;  %v24894_v25 = vpop.f32.mrb[214].mxu0 }
 0x4aa   : > { %v16425_v2 = vpop.f32.mrb[213].mxu1  ;;  %v16166_v0 = vpop.f32.mrb[215].mxu0 }
 0x4ab   : > { %v16476_v43 = vadd.f32 %v16425_v2, %v16214_v24  ;;  %v24926_v4 = vpop.f32.mrb[214].mxu1  ;;  %v16215_v52 = vadd.f32 %v16166_v0, %v31629_v13 }
 0x4ac   : > { %v16428_v57 = vpop.f32.mrb[215].mxu1 }
 0x4ad   : > { %v16477_v10 = vadd.f32 %v16428_v57, %v16215_v52 }
 0x4af   : > { %v24897_v56 = vpop.f32.mrb[216].mxu0 }
 0x4b0   : > { %v16179_v19 = vpop.f32.mrb[217].mxu0 }
 0x4b1   : > { %v24929_v33 = vpop.f32.mrb[216].mxu1  ;;  %v16218_v54 = vadd.f32 %v16179_v19, %v31636_v28  ;;  %v24898_v7 = vpop.f32.mrb[218].mxu0 }
 0x4b2   : > { %v16441_v47 = vpop.f32.mrb[217].mxu1  ;;  %v16182_v5 = vpop.f32.mrb[219].mxu0 }
 0x4b3   : > { %v16480_v48 = vadd.f32 %v16441_v47, %v16218_v54  ;;  %v24930_v59 = vpop.f32.mrb[218].mxu1  ;;  %v16219_v26 = vadd.f32 %v16182_v5, %v31641_v16 }
 0x4b4   : > { %v16444_v11 = vpop.f32.mrb[219].mxu1  ;;  %v21847_v59 = vld [vmem:[%s26321_s20 + $0xa0] sm:$0xff]  }
 0x4b5   : > { %v16481_v60 = vadd.f32 %v16444_v11, %v16219_v26 }
 0x4b7   : > { %v24901_v20 = vpop.f32.mrb[220].mxu0 }
 0x4b8   : > { %v16195_v30 = vpop.f32.mrb[221].mxu0 }
 0x4b9   : > { %v24933_v49 = vpop.f32.mrb[220].mxu1  ;;  %v16222_v13 = vadd.f32 %v16195_v30, %v16045_v41  ;;  %v24902_v12 = vpop.f32.mrb[222].mxu0  ;;  %v21762_v30 = vunpack.c.l.bf16 %v21847_v59 }
 0x4ba   : > { %v16457_v58 = vpop.f32.mrb[221].mxu1  ;;  %v16198_v45 = vpop.f32.mrb[223].mxu0 }
 0x4bb   : > { %v16484_v14 = vadd.f32 %v16457_v58, %v16222_v13  ;;  %v24934_v39 = vpop.f32.mrb[222].mxu1  ;;  %v16223_v3 = vadd.f32 %v16198_v45, %v16046_v51  ;;  %v31677_v58 = vld [vmem:[%s31748_s4] ss:$0 sm:$0xff] }
 0x4bc   : > { %v16460_v28 = vpop.f32.mrb[223].mxu1 }
 0x4bd   : > { %v16485_v46 = vadd.f32 %v16460_v28, %v16223_v3  ;;  %v21763_v3 = vunpack.c.h.bf16 %v21847_v59 }
 0x4bf   : > { %v24953_v8 = vpop.f32.mrb[224].mxu0 }
 0x4c0   : > { %v16671_v31 = vpop.f32.mrb[225].mxu0 }
 0x4c1   : > { %v24985_v63 = vpop.f32.mrb[224].mxu1  ;;  %v16734_v53 = vadd.f32 %v16671_v31, %v16472_v38  ;;  %v24954_v50 = vpop.f32.mrb[226].mxu0  ;;  %v21848_v31 = vld [vmem:[%s26321_s20 + $0xb0] sm:$0xff]  }
 0x4c2   : > { %v16848_v16 = vpop.f32.mrb[225].mxu1  ;;  %v16674_v18 = vpop.f32.mrb[227].mxu0 }
 0x4c3   : > { %v16911_v35 = vadd.f32 %v16848_v16, %v16734_v53  ;;  %v24986_v15 = vpop.f32.mrb[226].mxu1  ;;  %v16735_v44 = vadd.f32 %v16674_v18, %v16473_v40 }
 0x4c4   : > { %v16851_v6 = vpop.f32.mrb[227].mxu1 }
 0x4c5   : > { %v16912_v41 = vadd.f32 %v16851_v6, %v16735_v44  ;;  %v21766_v44 = vunpack.c.l.bf16 %v21848_v31 }
 0x4c7   : > { %v24957_v61 = vpop.f32.mrb[228].mxu0 }
 0x4c8   : > { %v16687_v42 = vpop.f32.mrb[229].mxu0 }
 0x4c9   : > { %v24989_v34 = vpop.f32.mrb[228].mxu1  ;;  %v16738_v27 = vadd.f32 %v16687_v42, %v16476_v43  ;;  %v24958_v1 = vpop.f32.mrb[230].mxu0 }
 0x4ca   : > { %v16864_v51 = vpop.f32.mrb[229].mxu1  ;;  %v16690_v9 = vpop.f32.mrb[231].mxu0 }
 0x4cb   : > { %v16915_v37 = vadd.f32 %v16864_v51, %v16738_v27  ;;  %v24990_v36 = vpop.f32.mrb[230].mxu1  ;;  %v16739_v21 = vadd.f32 %v16690_v9, %v16477_v10  ;;  %v21767_v51 = vunpack.c.h.bf16 %v21848_v31 }
 0x4cc   : > { %v16867_v29 = vpop.f32.mrb[231].mxu1 }
 0x4cd   : > { %v16916_v38 = vadd.f32 %v16867_v29, %v16739_v21  ;;  %v21849_v29 = vld [vmem:[%s26321_s20 + $0xc0] sm:$0xff]  }
 0x4cf   : > { %v24961_v32 = vpop.f32.mrb[232].mxu0 }
 0x4d0   : > { %v16703_v22 = vpop.f32.mrb[233].mxu0 }
 0x4d1   : > { %v24993_v23 = vpop.f32.mrb[232].mxu1  ;;  %v16742_v17 = vadd.f32 %v16703_v22, %v16480_v48  ;;  %v24962_v62 = vpop.f32.mrb[234].mxu0 }
 0x4d2   : > { %v16880_v40 = vpop.f32.mrb[233].mxu1  ;;  %v16706_v55 = vpop.f32.mrb[235].mxu0 }
 0x4d3   : > { %v16919_v24 = vadd.f32 %v16880_v40, %v16742_v17  ;;  %v24994_v25 = vpop.f32.mrb[234].mxu1  ;;  %v16743_v2 = vadd.f32 %v16706_v55, %v16481_v60  ;;  %v21770_v55 = vunpack.c.l.bf16 %v21849_v29 }
 0x4d4   : > { %v16883_v0 = vpop.f32.mrb[235].mxu1 }
 0x4d5   : > { %v31665_v43 = vadd.f32 %v16883_v0, %v16743_v2 }
 0x4d7   : > { %v24965_v4 = vpop.f32.mrb[236].mxu0 }
 0x4d8   : > { %v16719_v52 = vpop.f32.mrb[237].mxu0 }
 0x4d9   : > { %v24997_v57 = vpop.f32.mrb[236].mxu1  ;;  %v16746_v10 = vadd.f32 %v16719_v52, %v16484_v14  ;;  %v24966_v56 = vpop.f32.mrb[238].mxu0 }
 0x4da   : > { %v16896_v19 = vpop.f32.mrb[237].mxu1  ;;  %v16722_v33 = vpop.f32.mrb[239].mxu0 }
 0x4db   : > { %v31667_v54 = vadd.f32 %v16896_v19, %v16746_v10  ;;  %v24998_v7 = vpop.f32.mrb[238].mxu1  ;;  %v16747_v47 = vadd.f32 %v16722_v33, %v16485_v46  ;;  %v21771_v10 = vunpack.c.h.bf16 %v21849_v29 }
 0x4dc   : > { %v16899_v5 = vpop.f32.mrb[239].mxu1  ;;  %v21850_v7 = vld [vmem:[%s26321_s20 + $0xd0] sm:$0xff]  }
 0x4dd   : > { %v31669_v48 = vadd.f32 %v16899_v5, %v16747_v47 }
 0x4df   : > { %v25017_v26 = vpop.f32.mrb[240].mxu0 }
 0x4e0   : > { %v17110_v11 = vpop.f32.mrb[241].mxu0 }
 0x4e1   : > { %v25049_v60 = vpop.f32.mrb[240].mxu1  ;;  %v17173_v20 = vadd.f32 %v17110_v11, %v16911_v35  ;;  %v25018_v49 = vpop.f32.mrb[242].mxu0 }
 0x4e2   : > { %v31672_v13 = vpop.f32.mrb[241].mxu1  ;;  %v17113_v12 = vpop.f32.mrb[243].mxu0 }
 0x4e3   : > { %v17221_v45 = vadd.f32 %v31677_v58, %v17173_v20  ;;  %v25050_v14 = vpop.f32.mrb[242].mxu1  ;;  %v17174_v39 = vadd.f32 %v17113_v12, %v16912_v41  ;;  %v21774_v20 = vunpack.c.l.bf16 %v21850_v7 }
 0x4e4   : > { %v31680_v28 = vpop.f32.mrb[243].mxu1 }
 0x4e5   : > { %v17237_v46 = vadd.f32 %v21762_v30, %v17221_v45  ;;  %v17222_v8 = vadd.f32 %v31677_v58, %v17174_v39 }
 0x4e7   : > { %v17238_v63 = vadd.f32 %v21763_v3, %v17222_v8  ;;  %v25021_v53 = vpop.f32.mrb[244].mxu0  ;;  %v17253_v16 = vmax.f32 %v17237_v46, 0.0  ;;  %v21775_v3 = vunpack.c.h.bf16 %v21850_v7 }
 0x4e8   : > { %v17126_v50 = vpop.f32.mrb[245].mxu0 }
 0x4e9   : > { %v17254_v18 = vmax.f32 %v17238_v63, 0.0  ;;  %v25053_v35 = vpop.f32.mrb[244].mxu1  ;;  %v17177_v15 = vadd.f32 %v17126_v50, %v16915_v37  ;;  %v25022_v6 = vpop.f32.mrb[246].mxu0 }
 0x4ea   : > { %v31684_v61 = vpop.f32.mrb[245].mxu1  ;;  %v17129_v41 = vpop.f32.mrb[247].mxu0 }
 0x4eb   : > { %v21779_v42 = vpack.c.bf16 %v17254_v18, %v17253_v16  ;;  %v17225_v34 = vadd.f32 %v31677_v58, %v17177_v15  ;;  %v25054_v27 = vpop.f32.mrb[246].mxu1  ;;  %v17178_v1 = vadd.f32 %v17129_v41, %v16916_v38 }
 0x4ec   : > { %v31687_v9 = vpop.f32.mrb[247].mxu1 }
 0x4ed   : > { %21851 = vst [vmem:[%s28851_s22 + $0x80] sm:$0xff] %v21779_v42   ;;  %v17241_v36 = vadd.f32 %v21766_v44, %v17225_v34  ;;  %v17226_v21 = vadd.f32 %v31677_v58, %v17178_v1 }
 0x4ef   : > { %v17242_v32 = vadd.f32 %v21767_v51, %v17226_v21  ;;  %v25025_v37 = vpop.f32.mrb[248].mxu0  ;;  %v17257_v23 = vmax.f32 %v17241_v36, 0.0 }
 0x4f0   : > { %v17142_v22 = vpop.f32.mrb[249].mxu0 }
 0x4f1   : > { %v17258_v17 = vmax.f32 %v17242_v32, 0.0  ;;  %v25057_v62 = vpop.f32.mrb[248].mxu1  ;;  %v17181_v40 = vadd.f32 %v17142_v22, %v16919_v24  ;;  %v25026_v25 = vpop.f32.mrb[250].mxu0 }
 0x4f2   : > { %v31692_v38 = vpop.f32.mrb[249].mxu1  ;;  %v17145_v2 = vpop.f32.mrb[251].mxu0 }
 0x4f3   : > { %v21784_v0 = vpack.c.bf16 %v17258_v17, %v17257_v23  ;;  %v17229_v4 = vadd.f32 %v31677_v58, %v17181_v40  ;;  %v25058_v52 = vpop.f32.mrb[250].mxu1  ;;  %v17182_v57 = vadd.f32 %v17145_v2, %v31665_v43 }
 0x4f4   : > { %v31696_v56 = vpop.f32.mrb[251].mxu1 }
 0x4f5   : > { %21852 = vst [vmem:[%s28851_s22 + $0x90] sm:$0xff] %v21784_v0   ;;  %v17245_v19 = vadd.f32 %v21770_v55, %v17229_v4  ;;  %v17230_v33 = vadd.f32 %v31677_v58, %v17182_v57 }
 0x4f7   : > { %v17246_v24 = vadd.f32 %v21771_v10, %v17230_v33  ;;  %v25029_v47 = vpop.f32.mrb[252].mxu0  ;;  %v17261_v59 = vmax.f32 %v17245_v19, 0.0 }
 0x4f8   : > { %v17158_v5 = vpop.f32.mrb[253].mxu0 }
 0x4f9   : > { %v17262_v26 = vmax.f32 %v17246_v24, 0.0  ;;  %v25061_v11 = vpop.f32.mrb[252].mxu1  ;;  %v17185_v60 = vadd.f32 %v17158_v5, %v31667_v54  ;;  %v25030_v30 = vpop.f32.mrb[254].mxu0 }
 0x4fa   : > { %v17536_v43 = vpop.f32.mrb[253].mxu1  ;;  %v17161_v49 = vpop.f32.mrb[255].mxu0 }
 0x4fb   : > { %v21789_v12 = vpack.c.bf16 %v17262_v26, %v17261_v59  ;;  %v17233_v45 = vadd.f32 %v31677_v58, %v17185_v60  ;;  %v25062_v14 = vpop.f32.mrb[254].mxu1  ;;  %v17186_v39 = vadd.f32 %v17161_v49, %v31669_v48 }
 0x4fc   : > { %v17539_v46 = vpop.f32.mrb[255].mxu1 }
 0x4fd   : > { %21853 = vst [vmem:[%s28851_s22 + $0xa0] sm:$0xff] %v21789_v12   ;;  %v17249_v8 = vadd.f32 %v21774_v20, %v17233_v45  ;;  %v17234_v31 = vadd.f32 %v31677_v58, %v17186_v39 }
 0x4ff   : > { %v17250_v63 = vadd.f32 %v21775_v3, %v17234_v31  ;;  %v25081_v53 = vpop.f32.mrb[0].mxu0  ;;  %v17265_v50 = vmax.f32 %v17249_v8, 0.0 }
 0x500   : > { %v17709_v54 = vpop.f32.mrb[1].mxu0 }
 0x501   : > { %v17266_v16 = vmax.f32 %v17250_v63, 0.0  ;;  %v25113_v18 = vpop.f32.mrb[0].mxu1  ;;  %v17710_v35 = vadd.f32 %v17709_v54, %v31672_v13  ;;  %v25082_v15 = vpop.f32.mrb[2].mxu0 }
 0x502   : > { %v17955_v44 = vpop.f32.mrb[1].mxu1  ;;  %v17712_v6 = vpop.f32.mrb[3].mxu0 }
 0x503   : > { %v21794_v41 = vpack.c.bf16 %v17266_v16, %v17265_v50  ;;  %v18018_v48 = vadd.f32 %v17955_v44, %v17710_v35  ;;  %v25114_v42 = vpop.f32.mrb[2].mxu1  ;;  %v17713_v34 = vadd.f32 %v17712_v6, %v31680_v28 }
 0x504   : > { %v17958_v27 = vpop.f32.mrb[3].mxu1 }
 0x505   : > { %21854 = vst [vmem:[%s28851_s22 + $0xb0] sm:$0xff] %v21794_v41   ;;  %v18019_v1 = vadd.f32 %v17958_v27, %v17713_v34 }
 0x507   : > { %v25085_v51 = vpop.f32.mrb[4].mxu0 }
 0x508   : > { %v17725_v36 = vpop.f32.mrb[5].mxu0 }
 0x509   : > { %v25117_v21 = vpop.f32.mrb[4].mxu1  ;;  %v17726_v29 = vadd.f32 %v17725_v36, %v31684_v61  ;;  %v25086_v32 = vpop.f32.mrb[6].mxu0 }
 0x50a   : > { %v17971_v37 = vpop.f32.mrb[5].mxu1  ;;  %v17728_v22 = vpop.f32.mrb[7].mxu0 }
 0x50b   : > { %v18022_v13 = vadd.f32 %v17971_v37, %v17726_v29  ;;  %v25118_v23 = vpop.f32.mrb[6].mxu1  ;;  %v17729_v17 = vadd.f32 %v17728_v22, %v31687_v9 }
 0x50c   : > { %v17974_v62 = vpop.f32.mrb[7].mxu1 }
 0x50d   : > { %v18023_v40 = vadd.f32 %v17974_v62, %v17729_v17 }
 0x50f   : > { %v25089_v55 = vpop.f32.mrb[8].mxu0 }
 0x510   : > { %v17741_v25 = vpop.f32.mrb[9].mxu0 }
 0x511   : > { %v25121_v28 = vpop.f32.mrb[8].mxu1  ;;  %v17742_v2 = vadd.f32 %v17741_v25, %v31692_v38  ;;  %v25090_v0 = vpop.f32.mrb[10].mxu0 }
 0x512   : > { %v17987_v4 = vpop.f32.mrb[9].mxu1  ;;  %v17744_v52 = vpop.f32.mrb[11].mxu0 }
 0x513   : > { %v18026_v57 = vadd.f32 %v17987_v4, %v17742_v2  ;;  %v25122_v10 = vpop.f32.mrb[10].mxu1  ;;  %v17745_v61 = vadd.f32 %v17744_v52, %v31696_v56 }
 0x514   : > { %v17990_v19 = vpop.f32.mrb[11].mxu1 }
 0x515   : > { %v18027_v33 = vadd.f32 %v17990_v19, %v17745_v61 }
 0x517   : > { %v25093_v7 = vpop.f32.mrb[12].mxu0 }
 0x518   : > { %v17757_v24 = vpop.f32.mrb[13].mxu0 }
 0x519   : > { %v25125_v47 = vpop.f32.mrb[12].mxu1  ;;  %v17758_v9 = vadd.f32 %v17757_v24, %v17536_v43  ;;  %v25094_v5 = vpop.f32.mrb[14].mxu0 }
 0x51a   : > { %v18003_v59 = vpop.f32.mrb[13].mxu1  ;;  %v17760_v26 = vpop.f32.mrb[15].mxu0 }
 0x51b   : > { %v18030_v11 = vadd.f32 %v18003_v59, %v17758_v9  ;;  %v25126_v60 = vpop.f32.mrb[14].mxu1  ;;  %v17761_v20 = vadd.f32 %v17760_v26, %v17539_v46 }
 0x51c   : > { %v18006_v38 = vpop.f32.mrb[15].mxu1 }
 0x51d   : > { %v18031_v30 = vadd.f32 %v18006_v38, %v17761_v20 }
 0x51f   : > { %v25145_v49 = vpop.f32.mrb[16].mxu0 }
 0x520   : > { %v18217_v12 = vpop.f32.mrb[17].mxu0 }
 0x521   : > { %v25177_v45 = vpop.f32.mrb[16].mxu1  ;;  %v18280_v14 = vadd.f32 %v18217_v12, %v18018_v48  ;;  %v25146_v39 = vpop.f32.mrb[18].mxu0 }
 0x522   : > { %v18394_v56 = vpop.f32.mrb[17].mxu1  ;;  %v18220_v3 = vpop.f32.mrb[19].mxu0 }
 0x523   : > { %v18457_v8 = vadd.f32 %v18394_v56, %v18280_v14  ;;  %v25178_v31 = vpop.f32.mrb[18].mxu1  ;;  %v18281_v63 = vadd.f32 %v18220_v3, %v18019_v1 }
 0x524   : > { %v18397_v53 = vpop.f32.mrb[19].mxu1 }
 0x525   : > { %v18458_v43 = vadd.f32 %v18397_v53, %v18281_v63 }
 0x527   : > { %v25149_v54 = vpop.f32.mrb[20].mxu0 }
 0x528   : > { %v18233_v50 = vpop.f32.mrb[21].mxu0 }
 0x529   : > { %v25181_v16 = vpop.f32.mrb[20].mxu1  ;;  %v18284_v18 = vadd.f32 %v18233_v50, %v18022_v13  ;;  %v25150_v35 = vpop.f32.mrb[22].mxu0 }
 0x52a   : > { %v18410_v46 = vpop.f32.mrb[21].mxu1  ;;  %v18236_v15 = vpop.f32.mrb[23].mxu0 }
 0x52b   : > { %v18461_v44 = vadd.f32 %v18410_v46, %v18284_v18  ;;  %v25182_v6 = vpop.f32.mrb[22].mxu1  ;;  %v18285_v41 = vadd.f32 %v18236_v15, %v18023_v40 }
 0x52c   : > { %v18413_v42 = vpop.f32.mrb[23].mxu1 }
 0x52d   : > { %v18462_v48 = vadd.f32 %v18413_v42, %v18285_v41 }
 0x52f   : > { %v25153_v34 = vpop.f32.mrb[24].mxu0 }
 0x530   : > { %v18249_v27 = vpop.f32.mrb[25].mxu0 }
 0x531   : > { %v25185_v51 = vpop.f32.mrb[24].mxu1  ;;  %v18288_v36 = vadd.f32 %v18249_v27, %v18026_v57  ;;  %v25154_v21 = vpop.f32.mrb[26].mxu0 }
 0x532   : > { %v18426_v1 = vpop.f32.mrb[25].mxu1  ;;  %v18252_v29 = vpop.f32.mrb[27].mxu0 }
 0x533   : > { %v18465_v32 = vadd.f32 %v18426_v1, %v18288_v36  ;;  %v25186_v37 = vpop.f32.mrb[26].mxu1  ;;  %v18289_v22 = vadd.f32 %v18252_v29, %v18027_v33 }
 0x534   : > { %v18429_v23 = vpop.f32.mrb[27].mxu1 }
 0x535   : > { %v18466_v13 = vadd.f32 %v18429_v23, %v18289_v22 }
 0x537   : > { %v25157_v17 = vpop.f32.mrb[28].mxu0 }
 0x538   : > { %v18265_v62 = vpop.f32.mrb[29].mxu0 }
 0x539   : > { %v25189_v55 = vpop.f32.mrb[28].mxu1  ;;  %v18292_v25 = vadd.f32 %v18265_v62, %v18030_v11  ;;  %v25158_v28 = vpop.f32.mrb[30].mxu0 }
 0x53a   : > { %v18442_v40 = vpop.f32.mrb[29].mxu1  ;;  %v18268_v2 = vpop.f32.mrb[31].mxu0 }
 0x53b   : > { %v18469_v0 = vadd.f32 %v18442_v40, %v18292_v25  ;;  %v25190_v4 = vpop.f32.mrb[30].mxu1  ;;  %v18293_v52 = vadd.f32 %v18268_v2, %v18031_v30 }
 0x53c   : > { %v18445_v10 = vpop.f32.mrb[31].mxu1 }
 0x53d   : > { %v18470_v57 = vadd.f32 %v18445_v10, %v18293_v52 }
 0x53f   : > { %v25209_v61 = vpop.f32.mrb[32].mxu0 }
 0x540   : > { %v18656_v19 = vpop.f32.mrb[33].mxu0 }
 0x541   : > { %v25241_v7 = vpop.f32.mrb[32].mxu1  ;;  %v18719_v24 = vadd.f32 %v18656_v19, %v18457_v8  ;;  %v25210_v47 = vpop.f32.mrb[34].mxu0 }
 0x542   : > { %v18918_v33 = vpop.f32.mrb[33].mxu1  ;;  %v18659_v9 = vpop.f32.mrb[35].mxu0  ;;  %v21856_v47 = vld [vmem:[%s26321_s20 + $0xf0] sm:$0xff]  }
 0x543   : > { %v18981_v5 = vadd.f32 %v18918_v33, %v18719_v24  ;;  %v25242_v59 = vpop.f32.mrb[34].mxu1  ;;  %v18720_v26 = vadd.f32 %v18659_v9, %v18458_v43 }
 0x544   : > { %v18921_v60 = vpop.f32.mrb[35].mxu1 }
 0x545   : > { %v18982_v11 = vadd.f32 %v18921_v60, %v18720_v26 }
 0x547   : > { %v25213_v20 = vpop.f32.mrb[36].mxu0 }
 0x548   : > { %v18672_v38 = vpop.f32.mrb[37].mxu0  ;;  %v21802_v20 = vunpack.c.l.bf16 %v21856_v47 }
 0x549   : > { %v25245_v49 = vpop.f32.mrb[36].mxu1  ;;  %v18723_v12 = vadd.f32 %v18672_v38, %v18461_v44  ;;  %v25214_v45 = vpop.f32.mrb[38].mxu0 }
 0x54a   : > { %v18934_v30 = vpop.f32.mrb[37].mxu1  ;;  %v18675_v14 = vpop.f32.mrb[39].mxu0 }
 0x54b   : > { %v18985_v39 = vadd.f32 %v18934_v30, %v18723_v12  ;;  %v25246_v56 = vpop.f32.mrb[38].mxu1  ;;  %v18724_v3 = vadd.f32 %v18675_v14, %v18462_v48 }
 0x54c   : > { %v18937_v31 = vpop.f32.mrb[39].mxu1 }
 0x54d   : > { %v18986_v8 = vadd.f32 %v18937_v31, %v18724_v3 }
 0x54f   : > { %v25217_v63 = vpop.f32.mrb[40].mxu0 }
 0x550   : > { %v18688_v53 = vpop.f32.mrb[41].mxu0  ;;  %v21803_v63 = vunpack.c.h.bf16 %v21856_v47 }
 0x551   : > { %v25249_v54 = vpop.f32.mrb[40].mxu1  ;;  %v18727_v50 = vadd.f32 %v18688_v53, %v18465_v32  ;;  %v25218_v16 = vpop.f32.mrb[42].mxu0 }
 0x552   : > { %v18950_v43 = vpop.f32.mrb[41].mxu1  ;;  %v18691_v18 = vpop.f32.mrb[43].mxu0 }
 0x553   : > { %v31713_v35 = vadd.f32 %v18950_v43, %v18727_v50  ;;  %v25250_v46 = vpop.f32.mrb[42].mxu1  ;;  %v18728_v15 = vadd.f32 %v18691_v18, %v18466_v13  ;;  %v21855_v13 = vld [vmem:[%s26321_s20 + $0xe0] sm:$0xff]  }
 0x554   : > { %v18953_v44 = vpop.f32.mrb[43].mxu1  ;;  %v21798_v2 = vunpack.c.l.bf16 %v21855_v13  ;;  %v21799_v61 = vunpack.c.h.bf16 %v21855_v13  ;;  %v21857_v50 = vld [vmem:[%s26321_s20 + $0x100] sm:$0xff]  }
 0x555   : > { %v31715_v6 = vadd.f32 %v18953_v44, %v18728_v15  ;;  %v21806_v44 = vunpack.c.l.bf16 %v21857_v50 }
 0x557   : > { %v25221_v41 = vpop.f32.mrb[44].mxu0 }
 0x558   : > { %v18704_v42 = vpop.f32.mrb[45].mxu0 }
 0x559   : > { %v25253_v48 = vpop.f32.mrb[44].mxu1  ;;  %v18731_v34 = vadd.f32 %v18704_v42, %v18469_v0  ;;  %v25222_v27 = vpop.f32.mrb[46].mxu0 }
 0x55a   : > { %v18966_v51 = vpop.f32.mrb[45].mxu1  ;;  %v18707_v36 = vpop.f32.mrb[47].mxu0 }
 0x55b   : > { %v31717_v21 = vadd.f32 %v18966_v51, %v18731_v34  ;;  %v25254_v1 = vpop.f32.mrb[46].mxu1  ;;  %v18732_v29 = vadd.f32 %v18707_v36, %v18470_v57 }
 0x55c   : > { %v18969_v32 = vpop.f32.mrb[47].mxu1 }
 0x55d   : > { %v31719_v37 = vadd.f32 %v18969_v32, %v18732_v29 }
 0x55f   : > { %v25273_v22 = vpop.f32.mrb[48].mxu0 }
 0x560   : > { %v19095_v23 = vpop.f32.mrb[49].mxu0  ;;  %v21807_v22 = vunpack.c.h.bf16 %v21857_v50 }
 0x561   : > { %v25305_v17 = vpop.f32.mrb[48].mxu1  ;;  %v19158_v62 = vadd.f32 %v19095_v23, %v18981_v5  ;;  %v25274_v55 = vpop.f32.mrb[50].mxu0 }
 0x562   : > { %v19357_v25 = vpop.f32.mrb[49].mxu1  ;;  %v19098_v28 = vpop.f32.mrb[51].mxu0  ;;  %v21858_v17 = vld [vmem:[%s26321_s20 + $0x110] sm:$0xff]  }
 0x563   : > { %v19420_v40 = vadd.f32 %v19357_v25, %v19158_v62  ;;  %v25306_v0 = vpop.f32.mrb[50].mxu1  ;;  %v19159_v4 = vadd.f32 %v19098_v28, %v18982_v11 }
 0x564   : > { %v19360_v52 = vpop.f32.mrb[51].mxu1 }
 0x565   : > { %v19468_v10 = vadd.f32 %v31677_v58, %v19420_v40  ;;  %v19421_v57 = vadd.f32 %v19360_v52, %v19159_v4 }
 0x567   : > { %v19484_v19 = vadd.f32 %v21798_v2, %v19468_v10  ;;  %v19469_v7 = vadd.f32 %v31677_v58, %v19421_v57  ;;  %v25277_v24 = vpop.f32.mrb[52].mxu0  ;;  %v21810_v2 = vunpack.c.l.bf16 %v21858_v17 }
 0x568   : > { %v19111_v33 = vpop.f32.mrb[53].mxu0 }
 0x569   : > { %v19485_v9 = vadd.f32 %v21799_v61, %v19469_v7  ;;  %v25309_v5 = vpop.f32.mrb[52].mxu1  ;;  %v19162_v59 = vadd.f32 %v19111_v33, %v18985_v39  ;;  %v25278_v26 = vpop.f32.mrb[54].mxu0  ;;  %v19500_v38 = vmax.f32 %v19484_v19, 0.0  ;;  %v21811_v33 = vunpack.c.h.bf16 %v21858_v17 }
 0x56a   : > { %v19373_v60 = vpop.f32.mrb[53].mxu1  ;;  %v19114_v11 = vpop.f32.mrb[55].mxu0 }
 0x56b   : > { %v19501_v49 = vmax.f32 %v19485_v9, 0.0  ;;  %v19424_v12 = vadd.f32 %v19373_v60, %v19162_v59  ;;  %v25310_v45 = vpop.f32.mrb[54].mxu1  ;;  %v19163_v30 = vadd.f32 %v19114_v11, %v18986_v8 }
 0x56c   : > { %v19376_v14 = vpop.f32.mrb[55].mxu1 }
 0x56d   : > { %v21815_v56 = vpack.c.bf16 %v19501_v49, %v19500_v38  ;;  %v19472_v3 = vadd.f32 %v31677_v58, %v19424_v12  ;;  %v19425_v31 = vadd.f32 %v19376_v14, %v19163_v30 }
 0x56f   : > { %21859 = vst [vmem:[%s28851_s22 + $0xc0] sm:$0xff] %v21815_v56   ;;  %v19488_v53 = vadd.f32 %v21802_v20, %v19472_v3  ;;  %v19473_v39 = vadd.f32 %v31677_v58, %v19425_v31  ;;  %v25281_v54 = vpop.f32.mrb[56].mxu0 }
 0x570   : > { %v19127_v16 = vpop.f32.mrb[57].mxu0 }
 0x571   : > { %v19489_v43 = vadd.f32 %v21803_v63, %v19473_v39  ;;  %v25313_v18 = vpop.f32.mrb[56].mxu1  ;;  %v19166_v46 = vadd.f32 %v19127_v16, %v31713_v35  ;;  %v25282_v15 = vpop.f32.mrb[58].mxu0  ;;  %v19504_v42 = vmax.f32 %v19488_v53, 0.0 }
 0x572   : > { %v19389_v8 = vpop.f32.mrb[57].mxu1  ;;  %v19130_v41 = vpop.f32.mrb[59].mxu0 }
 0x573   : > { %v19505_v48 = vmax.f32 %v19489_v43, 0.0  ;;  %v19428_v34 = vadd.f32 %v19389_v8, %v19166_v46  ;;  %v25314_v27 = vpop.f32.mrb[58].mxu1  ;;  %v19167_v51 = vadd.f32 %v19130_v41, %v31715_v6 }
 0x574   : > { %v19392_v36 = vpop.f32.mrb[59].mxu1 }
 0x575   : > { %v21820_v1 = vpack.c.bf16 %v19505_v48, %v19504_v42  ;;  %v19476_v29 = vadd.f32 %v31677_v58, %v19428_v34  ;;  %v19429_v32 = vadd.f32 %v19392_v36, %v19167_v51 }
 0x577   : > { %21860 = vst [vmem:[%s28851_s22 + $0xd0] sm:$0xff] %v21820_v1   ;;  %v19492_v23 = vadd.f32 %v21806_v44, %v19476_v29  ;;  %v19477_v35 = vadd.f32 %v31677_v58, %v19429_v32  ;;  %v25285_v13 = vpop.f32.mrb[60].mxu0 }
 0x578   : > { %v19143_v62 = vpop.f32.mrb[61].mxu0 }
 0x579   : > { %v19493_v55 = vadd.f32 %v21807_v22, %v19477_v35  ;;  %v25317_v25 = vpop.f32.mrb[60].mxu1  ;;  %v19170_v28 = vadd.f32 %v19143_v62, %v31717_v21  ;;  %v25286_v40 = vpop.f32.mrb[62].mxu0  ;;  %v19508_v4 = vmax.f32 %v19492_v23, 0.0 }
 0x57a   : > { %v19405_v6 = vpop.f32.mrb[61].mxu1  ;;  %v19146_v0 = vpop.f32.mrb[63].mxu0 }
 0x57b   : > { %v19509_v52 = vmax.f32 %v19493_v55, 0.0  ;;  %v19432_v10 = vadd.f32 %v19405_v6, %v19170_v28  ;;  %v25318_v57 = vpop.f32.mrb[62].mxu1  ;;  %v19171_v61 = vadd.f32 %v19146_v0, %v31719_v37 }
 0x57c   : > { %v19408_v19 = vpop.f32.mrb[63].mxu1 }
 0x57d   : > { %v21825_v7 = vpack.c.bf16 %v19509_v52, %v19508_v4  ;;  %v19480_v24 = vadd.f32 %v31677_v58, %v19432_v10  ;;  %v19433_v47 = vadd.f32 %v19408_v19, %v19171_v61 }
 0x57f   : > { %21861 = vst [vmem:[%s28851_s22 + $0xe0] sm:$0xff] %v21825_v7   ;;  %v19496_v9 = vadd.f32 %v21810_v2, %v19480_v24  ;;  %v19481_v21 = vadd.f32 %v31677_v58, %v19433_v47 }
 0x581   : > { %v19497_v5 = vadd.f32 %v21811_v33, %v19481_v21  ;;  %v19512_v59 = vmax.f32 %v19496_v9, 0.0 }
 0x583   : > { %v19513_v26 = vmax.f32 %v19497_v5, 0.0 }
 0x585   : > { %v21830_v60 = vpack.c.bf16 %v19513_v26, %v19512_v59 }
 0x587   : > { %21862 = vst [vmem:[%s28851_s22 + $0xf0] sm:$0xff] %v21830_v60  }
 0x588 PF: > { %s15_s18 = sadd.s32 1, %s26243_s18  }
 0x589   : > { %p12_p4 = scmp.ge.s32.totalorder %s15_s18, 4  }
 0x58b   :  { %14 = sbr.rel (!%p12_p4) target bundleno = 1 (0x1), region = 86 }

</bundles_post_ra>
